<compile_context>
chip_gen: v7x
topology: tpu7x:2x2x1
jax: 0.10.0
libtpu: 0.0.40
codegen_flags: <defaults>
</compile_context>

<pallas_src>
import math

import jax
import jax.numpy as jnp
from jax import lax
from jax.experimental import pallas as pl
from jax.experimental.pallas import tpu as pltpu

# Small, TPU-friendly problem sizes consistent with the module's forward
# (input_dim must be divisible by num_heads=8).
SEQ = 8            # L  (sequence length)
BATCH = 16         # N  (batch size)
B_BLK = 8          # sequences per grid step (=> grid of 2 parallel blocks)
EMBED = 128        # input_dim
NUM_HEADS = 8
HEAD_DIM = EMBED // NUM_HEADS
HIDDEN = 64        # hidden_dim
HIDDEN2 = HIDDEN // 2
NUM_CLASSES = 4
OUT_PAD = 128      # lane-dense padded logits width
LN_EPS = 1e-5
SCALE = 1.0 / math.sqrt(HEAD_DIM)


def attention_classifier_kernel(
    x_ref,                                   # (B_BLK, L, E) f32
    wqkv_ref,                                # (E, 3E)  bf16 (q cols pre-scaled)
    bqkv_ref,                                # (1, 3E)  f32  (q part pre-scaled)
    wo_ref,                                  # (E, E)   bf16
    bo_ref, ln_w_ref, ln_b_ref,              # (1, E)   f32
    w1_ref, b1_ref, w2_ref, b2_ref,          # MLP
    w3_ref, b3_ref,                          # (H2, 128) bf16 / (1, 128) f32 (padded)
    out_ref,                                 # (B_BLK, 128) f32
):
    # Fold the batch block into the matmul M dim: (B_BLK*L, E) = (64, 128).
    x = x_ref[...].reshape(B_BLK * SEQ, EMBED)                  # f32

    # ---- fused lane-dense QKV projection: one (64,128)@(128,384) MXU pass ----
    qkv = jnp.dot(x.astype(jnp.bfloat16), wqkv_ref[...],
                  preferred_element_type=jnp.float32) + bqkv_ref[...]
    q = qkv[:, :EMBED]                 # (64, 128), 1/sqrt(hd) already folded in
    k = qkv[:, EMBED:2 * EMBED]
    v = qkv[:, 2 * EMBED:]

    def split_heads(t):                # (B*L, E) -> (B*H, L, hd)  (tiny relayout)
        t = t.reshape(B_BLK, SEQ, NUM_HEADS, HEAD_DIM)
        t = jnp.transpose(t, (0, 2, 1, 3))
        return t.reshape(B_BLK * NUM_HEADS, SEQ, HEAD_DIM)

    qh, kh, vh = split_heads(q), split_heads(k), split_heads(v)

    # ---- scaled dot-product attention, batched over (batch, head) ----
    s = jnp.einsum("gld,gmd->glm", qh, kh,
                   preferred_element_type=jnp.float32)          # (B*H, L, L)
    s = s - jnp.max(s, axis=-1, keepdims=True)
    p = jnp.exp(s)
    p = p * pl.reciprocal(jnp.sum(p, axis=-1, keepdims=True), approx=True)
    o = jnp.einsum("glm,gmd->gld", p, vh,
                   preferred_element_type=jnp.float32)          # (B*H, L, hd)

    # ---- merge heads back into the lane dim: (B*L, E = H*hd) ----
    o = jnp.transpose(o.reshape(B_BLK, NUM_HEADS, SEQ, HEAD_DIM), (0, 2, 1, 3))
    o = o.reshape(B_BLK * SEQ, EMBED)

    # ---- single K=128 output projection (head-sum folded into contraction) ----
    attn = jnp.dot(o.astype(jnp.bfloat16), wo_ref[...],
                   preferred_element_type=jnp.float32) + bo_ref[...]   # (B*L, E)

    # ---- residual + LayerNorm over embedding dim (f32) ----
    y = x + attn
    mu = jnp.mean(y, axis=-1, keepdims=True)
    var = jnp.mean((y - mu) ** 2, axis=-1, keepdims=True)
    y = (y - mu) * lax.rsqrt(var + LN_EPS) * ln_w_ref[...] + ln_b_ref[...]

    # ---- mean over the sequence dim (torch.mean(x, dim=0)) ----
    pooled = jnp.mean(y.reshape(B_BLK, SEQ, EMBED), axis=1)     # (B_BLK, E)

    # ---- classifier MLP (dropouts are identity in eval mode) ----
    h1 = jnp.maximum(jnp.dot(pooled.astype(jnp.bfloat16), w1_ref[...],
                             preferred_element_type=jnp.float32) + b1_ref[...], 0.0)
    h2 = jnp.maximum(jnp.dot(h1.astype(jnp.bfloat16), w2_ref[...],
                             preferred_element_type=jnp.float32) + b2_ref[...], 0.0)
    # lane-dense (B_BLK, 128) unmasked store; real logits are columns [0, NUM_CLASSES)
    out_ref[...] = jnp.dot(h2.astype(jnp.bfloat16), w3_ref[...],
                           preferred_element_type=jnp.float32) + b3_ref[...]


def attention_threat_classifier(x_nle, pp):
    """x_nle: (N, L, E) batch-first == PyTorch (L, N, E).transpose(0, 1)."""
    n, l, e = x_nle.shape
    assert l == SEQ and e == EMBED

    n_blocks = pl.cdiv(n, B_BLK)
    n_pad = n_blocks * B_BLK
    x_f32 = x_nle.astype(jnp.float32)
    if n_pad != n:
        x_f32 = jnp.pad(x_f32, ((0, n_pad - n), (0, 0), (0, 0)))

    def wspec(shape):
        return pl.BlockSpec(shape, lambda i: (0, 0))   # resident across grid steps

    in_specs = [
        pl.BlockSpec((B_BLK, SEQ, EMBED), lambda i: (i, 0, 0)),    # x (per batch block)
        wspec((EMBED, 3 * EMBED)),                                 # wqkv
        wspec((1, 3 * EMBED)),                                     # bqkv
        wspec((EMBED, EMBED)),                                     # wo
        wspec((1, EMBED)),                                         # bo
        wspec((1, EMBED)),                                         # ln_w
        wspec((1, EMBED)),                                         # ln_b
        wspec((EMBED, HIDDEN)),                                    # w1
        wspec((1, HIDDEN)),                                        # b1
        wspec((HIDDEN, HIDDEN2)),                                  # w2
        wspec((1, HIDDEN2)),                                       # b2
        wspec((HIDDEN2, OUT_PAD)),                                 # w3 (padded)
        wspec((1, OUT_PAD)),                                       # b3 (padded)
    ]
    out_spec = pl.BlockSpec((B_BLK, OUT_PAD), lambda i: (i, 0))

    args = (x_f32,
            pp["wqkv"], pp["bqkv"], pp["wo"], pp["bo"], pp["ln_w"], pp["ln_b"],
            pp["w1"], pp["b1"], pp["w2"], pp["b2"], pp["w3p"], pp["b3p"])

    # Advisory cost estimate so XLA overlaps surrounding ops with this call.
    flops_per_seq = (2 * SEQ * EMBED * 3 * EMBED                 # fused QKV
                     + 2 * 2 * NUM_HEADS * SEQ * SEQ * HEAD_DIM  # scores + PV
                     + 2 * SEQ * EMBED * EMBED                   # out projection
                     + 2 * (EMBED * HIDDEN + HIDDEN * HIDDEN2 + HIDDEN2 * OUT_PAD))
    weight_bytes = sum(int(v.size) * v.dtype.itemsize for kk, v in pp.items())
    cost = pl.CostEstimate(
        flops=int(n_pad * flops_per_seq),
        transcendentals=int(n_pad * NUM_HEADS * SEQ * SEQ),
        bytes_accessed=int(weight_bytes + n_pad * SEQ * EMBED * 4 + n_pad * OUT_PAD * 4),
    )

    out = pl.pallas_call(
        attention_classifier_kernel,
        out_shape=jax.ShapeDtypeStruct((n_pad, OUT_PAD), jnp.float32),
        grid=(n_blocks,),
        in_specs=in_specs,
        out_specs=out_spec,
        cost_estimate=cost,
        compiler_params=pltpu.CompilerParams(
            dimension_semantics=("parallel",)),   # shards blocks across v7x's 2 TCs
    )(*args)
    return out[:n, :NUM_CLASSES]


def prepare_params(p):
    """Host-side layout work: fused QKV weight, SCALE fold, bf16 cast, padded head."""
    bf16, f32 = jnp.bfloat16, jnp.float32
    w_in = p["w_in"].astype(f32)                      # (E, 3E), used as x @ w_in
    b_in = p["b_in"].reshape(1, 3 * EMBED).astype(f32)

    # Fold 1/sqrt(head_dim) into the q projection (PyTorch scales q post-projection).
    col_scale = jnp.concatenate([jnp.full((EMBED,), SCALE, f32),
                                 jnp.ones((2 * EMBED,), f32)])
    wqkv = w_in * col_scale[None, :]
    bqkv = b_in * col_scale[None, :]

    w3p = jnp.zeros((HIDDEN2, OUT_PAD), f32).at[:, :NUM_CLASSES].set(p["w3"])
    b3p = jnp.zeros((1, OUT_PAD), f32).at[:, :NUM_CLASSES].set(p["b3"])

    return {
        "wqkv": wqkv.astype(bf16),
        "bqkv": bqkv,                                  # f32, lane-dense
        "wo": p["w_out"].astype(bf16),                 # (E, E), used as concat_heads @ wo
        "bo": p["b_out"].astype(f32),
        "ln_w": p["ln_w"].astype(f32),
        "ln_b": p["ln_b"].astype(f32),
        "w1": p["w1"].astype(bf16),
        "b1": p["b1"].astype(f32),
        "w2": p["w2"].astype(bf16),
        "b2": p["b2"].astype(f32),
        "w3p": w3p.astype(bf16),
        "b3p": b3p,
    }


def reference(x_nle, pp):
    """Pure-JAX f32 reference using the same (bf16-rounded) parameters."""
    f32 = jnp.float32
    x = x_nle.astype(f32)
    n, l, _ = x.shape
    qkv = jnp.einsum("nle,ef->nlf", x, pp["wqkv"].astype(f32)) + pp["bqkv"]
    q, k, v = qkv[..., :EMBED], qkv[..., EMBED:2 * EMBED], qkv[..., 2 * EMBED:]

    def heads(t):
        return t.reshape(n, l, NUM_HEADS, HEAD_DIM).transpose(0, 2, 1, 3)

    qh, kh, vh = heads(q), heads(k), heads(v)
    s = jnp.einsum("nhld,nhmd->nhlm", qh, kh)          # SCALE already folded into q
    pr = jax.nn.softmax(s, axis=-1)
    o = jnp.einsum("nhlm,nhmd->nhld", pr, vh)
    o = o.transpose(0, 2, 1, 3).reshape(n, l, EMBED)
    attn = o @ pp["wo"].astype(f32) + pp["bo"]
    y = x + attn
    mu = y.mean(-1, keepdims=True)
    var = ((y - mu) ** 2).mean(-1, keepdims=True)
    y = (y - mu) / jnp.sqrt(var + LN_EPS) * pp["ln_w"] + pp["ln_b"]
    pooled = y.mean(axis=1)                            # (N, E)
    h1 = jax.nn.relu(pooled @ pp["w1"].astype(f32) + pp["b1"])
    h2 = jax.nn.relu(h1 @ pp["w2"].astype(f32) + pp["b2"])
    out = h2 @ pp["w3p"].astype(f32) + pp["b3p"]
    return out[:, :NUM_CLASSES]


def make_params(key):
    keys = jax.random.split(key, 12)

    def init(k, shape, scale=0.05):
        return (scale * jax.random.normal(k, shape)).astype(jnp.float32)

    # Weights stored as (in, out); equivalent to PyTorch (out, in) used as x @ W.T.
    return {
        "w_in": init(keys[0], (EMBED, 3 * EMBED)),
        "b_in": init(keys[1], (1, 3 * EMBED)),
        "w_out": init(keys[2], (EMBED, EMBED)),
        "b_out": init(keys[3], (1, EMBED)),
        "ln_w": jnp.ones((1, EMBED), jnp.float32),
        "ln_b": jnp.zeros((1, EMBED), jnp.float32),
        "w1": init(keys[4], (EMBED, HIDDEN)),
        "b1": init(keys[5], (1, HIDDEN)),
        "w2": init(keys[6], (HIDDEN, HIDDEN2)),
        "b2": init(keys[7], (1, HIDDEN2)),
        "w3": init(keys[8], (HIDDEN2, NUM_CLASSES)),
        "b3": init(keys[9], (1, NUM_CLASSES)),
    }


if __name__ == "__main__":
    root = jax.random.PRNGKey(0)
    pkey, xkey = jax.random.split(root)
    params = make_params(pkey)
    prepared = prepare_params(params)
    # x in batch-first layout (N, L, E); PyTorch would receive x.transpose(0, 1).
    x = jax.random.normal(xkey, (BATCH, SEQ, EMBED), dtype=jnp.float32)

    out = jax.block_until_ready(attention_threat_classifier(x, prepared))
    ref = jax.block_until_ready(reference(x, prepared))

    assert out.shape == (BATCH, NUM_CLASSES)
    assert jnp.all(jnp.isfinite(out))
    # bf16 matmul operands + approx softmax reciprocal => loose-but-meaningful tol
    assert jnp.allclose(out, ref, rtol=5e-2, atol=5e-3), (out, ref)

    print("KERNEL_OK")
</pallas_src>

<mosaic_0001>
module attributes {stable_mosaic.version = 11 : i64} {
  func.func @attention_classifier_kernel(%arg0: i32, %arg1: memref<8x8x128xf32, #tpu.memory_space<vmem>>, %arg2: memref<128x384xbf16, #tpu.memory_space<vmem>>, %arg3: memref<1x384xf32, #tpu.memory_space<vmem>>, %arg4: memref<128x128xbf16, #tpu.memory_space<vmem>>, %arg5: memref<1x128xf32, #tpu.memory_space<vmem>>, %arg6: memref<1x128xf32, #tpu.memory_space<vmem>>, %arg7: memref<1x128xf32, #tpu.memory_space<vmem>>, %arg8: memref<128x64xbf16, #tpu.memory_space<vmem>>, %arg9: memref<1x64xf32, #tpu.memory_space<vmem>>, %arg10: memref<64x32xbf16, #tpu.memory_space<vmem>>, %arg11: memref<1x32xf32, #tpu.memory_space<vmem>>, %arg12: memref<32x128xbf16, #tpu.memory_space<vmem>>, %arg13: memref<1x128xf32, #tpu.memory_space<vmem>>, %arg14: memref<8x128xf32, #tpu.memory_space<vmem>>) attributes {dimension_semantics = [#tpu.dimension_semantics<parallel>], iteration_bounds = array<i64: 2>, scalar_prefetch = 0 : i64, scratch_operands = 0 : i64, tpu.core_type = #tpu.core_type<tc>, window_params = [{transform_indices = @transform_0, window_bounds = array<i64: 8, 8, 128>}, {pipeline_mode = #tpu.pipeline_mode<synchronous>, transform_indices = @transform_1, window_bounds = array<i64: 128, 384>}, {pipeline_mode = #tpu.pipeline_mode<synchronous>, transform_indices = @transform_2, window_bounds = array<i64: 1, 384>}, {pipeline_mode = #tpu.pipeline_mode<synchronous>, transform_indices = @transform_3, window_bounds = array<i64: 128, 128>}, {pipeline_mode = #tpu.pipeline_mode<synchronous>, transform_indices = @transform_4, window_bounds = array<i64: 1, 128>}, {pipeline_mode = #tpu.pipeline_mode<synchronous>, transform_indices = @transform_5, window_bounds = array<i64: 1, 128>}, {pipeline_mode = #tpu.pipeline_mode<synchronous>, transform_indices = @transform_6, window_bounds = array<i64: 1, 128>}, {pipeline_mode = #tpu.pipeline_mode<synchronous>, transform_indices = @transform_7, window_bounds = array<i64: 128, 64>}, {pipeline_mode = #tpu.pipeline_mode<synchronous>, transform_indices = @transform_8, window_bounds = array<i64: 1, 64>}, {pipeline_mode = #tpu.pipeline_mode<synchronous>, transform_indices = @transform_9, window_bounds = array<i64: 64, 32>}, {pipeline_mode = #tpu.pipeline_mode<synchronous>, transform_indices = @transform_10, window_bounds = array<i64: 1, 32>}, {pipeline_mode = #tpu.pipeline_mode<synchronous>, transform_indices = @transform_11, window_bounds = array<i64: 32, 128>}, {pipeline_mode = #tpu.pipeline_mode<synchronous>, transform_indices = @transform_12, window_bounds = array<i64: 1, 128>}, {transform_indices = @transform_13, window_bounds = array<i64: 8, 128>}]} {
    %c0 = arith.constant 0 : index
    %c0_0 = arith.constant 0 : index
    %c0_1 = arith.constant 0 : index
    %0 = vector.load %arg1[%c0, %c0_0, %c0_1] : memref<8x8x128xf32, #tpu.memory_space<vmem>>, vector<8x8x128xf32>
    %1 = vector.shape_cast %0 : vector<8x8x128xf32> to vector<64x128xf32>
    %2 = arith.truncf %1 : vector<64x128xf32> to vector<64x128xbf16>
    %c0_2 = arith.constant 0 : index
    %c0_3 = arith.constant 0 : index
    %3 = vector.load %arg2[%c0_2, %c0_3] : memref<128x384xbf16, #tpu.memory_space<vmem>>, vector<128x384xbf16>
    %cst = arith.constant dense<0.000000e+00> : vector<64x384xf32>
    %4 = tpu.matmul %2, %3, %cst {dimension_numbers = #tpu.dot_dimension_numbers<[1], [0], [0], [1], [0, 0, 1, 1], [], []>} : vector<64x128xbf16>, vector<128x384xbf16>, vector<64x384xf32> -> vector<64x384xf32>
    %c0_4 = arith.constant 0 : index
    %c0_5 = arith.constant 0 : index
    %5 = vector.load %arg3[%c0_4, %c0_5] : memref<1x384xf32, #tpu.memory_space<vmem>>, vector<1x384xf32>
    %6 = vector.broadcast %5 : vector<1x384xf32> to vector<64x384xf32>
    %7 = arith.addf %4, %6 : vector<64x384xf32>
    %8 = vector.extract_strided_slice %7 {offsets = [0, 0], sizes = [64, 128], strides = [1, 1]} : vector<64x384xf32> to vector<64x128xf32>
    %9 = vector.extract_strided_slice %7 {offsets = [0, 128], sizes = [64, 128], strides = [1, 1]} : vector<64x384xf32> to vector<64x128xf32>
    %10 = vector.extract_strided_slice %7 {offsets = [0, 256], sizes = [64, 128], strides = [1, 1]} : vector<64x384xf32> to vector<64x128xf32>
    %11 = vector.shape_cast %8 : vector<64x128xf32> to vector<8x8x8x16xf32>
    %12 = tpu.transpose %11, [0, 2, 1, 3] : vector<8x8x8x16xf32> -> vector<8x8x8x16xf32>
    %13 = vector.shape_cast %12 : vector<8x8x8x16xf32> to vector<64x8x16xf32>
    %14 = vector.shape_cast %9 : vector<64x128xf32> to vector<8x8x8x16xf32>
    %15 = tpu.transpose %14, [0, 2, 1, 3] : vector<8x8x8x16xf32> -> vector<8x8x8x16xf32>
    %16 = vector.shape_cast %15 : vector<8x8x8x16xf32> to vector<64x8x16xf32>
    %17 = vector.shape_cast %10 : vector<64x128xf32> to vector<8x8x8x16xf32>
    %18 = tpu.transpose %17, [0, 2, 1, 3] : vector<8x8x8x16xf32> -> vector<8x8x8x16xf32>
    %19 = vector.shape_cast %18 : vector<8x8x8x16xf32> to vector<64x8x16xf32>
    "tpu.trace_start"() <{level = 10 : i32, message = "gld,gmd->glm"}> : () -> ()
    %cst_6 = arith.constant dense<0.000000e+00> : vector<64x8x8xf32>
    %20 = tpu.matmul %13, %16, %cst_6 {dimension_numbers = #tpu.dot_dimension_numbers<[2], [2], [1], [1], [0, 0, 0, 1, 1, 1], [0], [0]>} : vector<64x8x16xf32>, vector<64x8x16xf32>, vector<64x8x8xf32> -> vector<64x8x8xf32>
    "tpu.trace_stop"() : () -> ()
    %cst_7 = arith.constant dense<0xFF800000> : vector<64x8xf32>
    %21 = vector.multi_reduction <maximumf>, %20, %cst_7 [2] : vector<64x8x8xf32> to vector<64x8xf32>
    %22 = vector.shape_cast %21 : vector<64x8xf32> to vector<64x8x1xf32>
    %23 = vector.broadcast %22 : vector<64x8x1xf32> to vector<64x8x8xf32>
    %24 = arith.subf %20, %23 : vector<64x8x8xf32>
    %25 = math.exp %24 : vector<64x8x8xf32>
    %cst_8 = arith.constant dense<0.000000e+00> : vector<64x8xf32>
    %26 = vector.multi_reduction <add>, %25, %cst_8 [2] : vector<64x8x8xf32> to vector<64x8xf32>
    %27 = vector.shape_cast %26 : vector<64x8xf32> to vector<64x8x1xf32>
    %28 = tpu.reciprocal %27 {approx = true} : vector<64x8x1xf32> -> vector<64x8x1xf32>
    %29 = vector.broadcast %28 : vector<64x8x1xf32> to vector<64x8x8xf32>
    %30 = arith.mulf %25, %29 : vector<64x8x8xf32>
    "tpu.trace_start"() <{level = 10 : i32, message = "glm,gmd->gld"}> : () -> ()
    %cst_9 = arith.constant dense<0.000000e+00> : vector<64x8x16xf32>
    %31 = tpu.matmul %30, %19, %cst_9 {dimension_numbers = #tpu.dot_dimension_numbers<[2], [1], [1], [2], [0, 0, 0, 1, 1, 2], [0], [0]>} : vector<64x8x8xf32>, vector<64x8x16xf32>, vector<64x8x16xf32> -> vector<64x8x16xf32>
    "tpu.trace_stop"() : () -> ()
    %32 = vector.shape_cast %31 : vector<64x8x16xf32> to vector<8x8x8x16xf32>
    %33 = tpu.transpose %32, [0, 2, 1, 3] : vector<8x8x8x16xf32> -> vector<8x8x8x16xf32>
    %34 = vector.shape_cast %33 : vector<8x8x8x16xf32> to vector<64x128xf32>
    %35 = arith.truncf %34 : vector<64x128xf32> to vector<64x128xbf16>
    %c0_10 = arith.constant 0 : index
    %c0_11 = arith.constant 0 : index
    %36 = vector.load %arg4[%c0_10, %c0_11] : memref<128x128xbf16, #tpu.memory_space<vmem>>, vector<128x128xbf16>
    %cst_12 = arith.constant dense<0.000000e+00> : vector<64x128xf32>
    %37 = tpu.matmul %35, %36, %cst_12 {dimension_numbers = #tpu.dot_dimension_numbers<[1], [0], [0], [1], [0, 0, 1, 1], [], []>} : vector<64x128xbf16>, vector<128x128xbf16>, vector<64x128xf32> -> vector<64x128xf32>
    %c0_13 = arith.constant 0 : index
    %c0_14 = arith.constant 0 : index
    %38 = vector.load %arg5[%c0_13, %c0_14] : memref<1x128xf32, #tpu.memory_space<vmem>>, vector<1x128xf32>
    %39 = vector.broadcast %38 : vector<1x128xf32> to vector<64x128xf32>
    %40 = arith.addf %37, %39 : vector<64x128xf32>
    %41 = arith.addf %1, %40 : vector<64x128xf32>
    %cst_15 = arith.constant dense<0.000000e+00> : vector<64xf32>
    %42 = vector.multi_reduction <add>, %41, %cst_15 [1] : vector<64x128xf32> to vector<64xf32>
    %43 = vector.shape_cast %42 : vector<64xf32> to vector<64x1xf32>
    %cst_16 = arith.constant 1.280000e+02 : f32
    %44 = vector.broadcast %cst_16 : f32 to vector<64x1xf32>
    %45 = arith.divf %43, %44 : vector<64x1xf32>
    %46 = vector.broadcast %45 : vector<64x1xf32> to vector<64x128xf32>
    %47 = arith.subf %41, %46 : vector<64x128xf32>
    %48 = arith.mulf %47, %47 : vector<64x128xf32>
    %cst_17 = arith.constant dense<0.000000e+00> : vector<64xf32>
    %49 = vector.multi_reduction <add>, %48, %cst_17 [1] : vector<64x128xf32> to vector<64xf32>
    %50 = vector.shape_cast %49 : vector<64xf32> to vector<64x1xf32>
    %cst_18 = arith.constant 1.280000e+02 : f32
    %51 = vector.broadcast %cst_18 : f32 to vector<64x1xf32>
    %52 = arith.divf %50, %51 : vector<64x1xf32>
    %53 = vector.broadcast %45 : vector<64x1xf32> to vector<64x128xf32>
    %54 = arith.subf %41, %53 : vector<64x128xf32>
    %cst_19 = arith.constant 9.99999974E-6 : f32
    %55 = vector.broadcast %cst_19 : f32 to vector<64x1xf32>
    %56 = arith.addf %52, %55 : vector<64x1xf32>
    %57 = math.rsqrt %56 : vector<64x1xf32>
    %58 = vector.broadcast %57 : vector<64x1xf32> to vector<64x128xf32>
    %59 = arith.mulf %54, %58 : vector<64x128xf32>
    %c0_20 = arith.constant 0 : index
    %c0_21 = arith.constant 0 : index
    %60 = vector.load %arg6[%c0_20, %c0_21] : memref<1x128xf32, #tpu.memory_space<vmem>>, vector<1x128xf32>
    %61 = vector.broadcast %60 : vector<1x128xf32> to vector<64x128xf32>
    %62 = arith.mulf %59, %61 : vector<64x128xf32>
    %c0_22 = arith.constant 0 : index
    %c0_23 = arith.constant 0 : index
    %63 = vector.load %arg7[%c0_22, %c0_23] : memref<1x128xf32, #tpu.memory_space<vmem>>, vector<1x128xf32>
    %64 = vector.broadcast %63 : vector<1x128xf32> to vector<64x128xf32>
    %65 = arith.addf %62, %64 : vector<64x128xf32>
    %66 = vector.shape_cast %65 : vector<64x128xf32> to vector<8x8x128xf32>
    %cst_24 = arith.constant dense<0.000000e+00> : vector<8x128xf32>
    %67 = vector.multi_reduction <add>, %66, %cst_24 [1] : vector<8x8x128xf32> to vector<8x128xf32>
    %cst_25 = arith.constant 8.000000e+00 : f32
    %68 = vector.broadcast %cst_25 : f32 to vector<8x128xf32>
    %69 = arith.divf %67, %68 : vector<8x128xf32>
    %70 = arith.truncf %69 : vector<8x128xf32> to vector<8x128xbf16>
    %c0_26 = arith.constant 0 : index
    %c0_27 = arith.constant 0 : index
    %71 = vector.load %arg8[%c0_26, %c0_27] : memref<128x64xbf16, #tpu.memory_space<vmem>>, vector<128x64xbf16>
    %cst_28 = arith.constant dense<0.000000e+00> : vector<8x64xf32>
    %72 = tpu.matmul %70, %71, %cst_28 {dimension_numbers = #tpu.dot_dimension_numbers<[1], [0], [0], [1], [0, 0, 1, 1], [], []>} : vector<8x128xbf16>, vector<128x64xbf16>, vector<8x64xf32> -> vector<8x64xf32>
    %c0_29 = arith.constant 0 : index
    %c0_30 = arith.constant 0 : index
    %73 = vector.load %arg9[%c0_29, %c0_30] : memref<1x64xf32, #tpu.memory_space<vmem>>, vector<1x64xf32>
    %74 = vector.broadcast %73 : vector<1x64xf32> to vector<8x64xf32>
    %75 = arith.addf %72, %74 : vector<8x64xf32>
    %cst_31 = arith.constant 0.000000e+00 : f32
    %76 = vector.broadcast %cst_31 : f32 to vector<8x64xf32>
    %77 = arith.maximumf %75, %76 : vector<8x64xf32>
    %78 = arith.truncf %77 : vector<8x64xf32> to vector<8x64xbf16>
    %c0_32 = arith.constant 0 : index
    %c0_33 = arith.constant 0 : index
    %79 = vector.load %arg10[%c0_32, %c0_33] : memref<64x32xbf16, #tpu.memory_space<vmem>>, vector<64x32xbf16>
    %cst_34 = arith.constant dense<0.000000e+00> : vector<8x32xf32>
    %80 = tpu.matmul %78, %79, %cst_34 {dimension_numbers = #tpu.dot_dimension_numbers<[1], [0], [0], [1], [0, 0, 1, 1], [], []>} : vector<8x64xbf16>, vector<64x32xbf16>, vector<8x32xf32> -> vector<8x32xf32>
    %c0_35 = arith.constant 0 : index
    %c0_36 = arith.constant 0 : index
    %81 = vector.load %arg11[%c0_35, %c0_36] : memref<1x32xf32, #tpu.memory_space<vmem>>, vector<1x32xf32>
    %82 = vector.broadcast %81 : vector<1x32xf32> to vector<8x32xf32>
    %83 = arith.addf %80, %82 : vector<8x32xf32>
    %cst_37 = arith.constant 0.000000e+00 : f32
    %84 = vector.broadcast %cst_37 : f32 to vector<8x32xf32>
    %85 = arith.maximumf %83, %84 : vector<8x32xf32>
    %86 = arith.truncf %85 : vector<8x32xf32> to vector<8x32xbf16>
    %c0_38 = arith.constant 0 : index
    %c0_39 = arith.constant 0 : index
    %87 = vector.load %arg12[%c0_38, %c0_39] : memref<32x128xbf16, #tpu.memory_space<vmem>>, vector<32x128xbf16>
    %cst_40 = arith.constant dense<0.000000e+00> : vector<8x128xf32>
    %88 = tpu.matmul %86, %87, %cst_40 {dimension_numbers = #tpu.dot_dimension_numbers<[1], [0], [0], [1], [0, 0, 1, 1], [], []>} : vector<8x32xbf16>, vector<32x128xbf16>, vector<8x128xf32> -> vector<8x128xf32>
    %c0_41 = arith.constant 0 : index
    %c0_42 = arith.constant 0 : index
    %89 = vector.load %arg13[%c0_41, %c0_42] : memref<1x128xf32, #tpu.memory_space<vmem>>, vector<1x128xf32>
    %90 = vector.broadcast %89 : vector<1x128xf32> to vector<8x128xf32>
    %91 = arith.addf %88, %90 : vector<8x128xf32>
    %c0_43 = arith.constant 0 : index
    %c0_44 = arith.constant 0 : index
    %92 = vector.load %arg14[%c0_43, %c0_44] : memref<8x128xf32, #tpu.memory_space<vmem>>, vector<8x128xf32>
    tpu.vector_store %arg14[%c0_43, %c0_44], %91 {strides = array<i32>} : memref<8x128xf32, #tpu.memory_space<vmem>>, vector<8x128xf32>,
    return
  }
  func.func @transform_0(%arg0: i32) -> (i32, i32, i32) {
    %c0_i32 = arith.constant 0 : i32
    %c0_i32_0 = arith.constant 0 : i32
    %c0_i32_1 = arith.constant 0 : i32
    return %arg0, %c0_i32, %c0_i32_0 : i32, i32, i32
  }
  func.func @transform_1(%arg0: i32) -> (i32, i32) {
    %c0_i32 = arith.constant 0 : i32
    %c0_i32_0 = arith.constant 0 : i32
    %c0_i32_1 = arith.constant 0 : i32
    return %c0_i32, %c0_i32_0 : i32, i32
  }
  func.func @transform_2(%arg0: i32) -> (i32, i32) {
    %c0_i32 = arith.constant 0 : i32
    %c0_i32_0 = arith.constant 0 : i32
    %c0_i32_1 = arith.constant 0 : i32
    return %c0_i32, %c0_i32_0 : i32, i32
  }
  func.func @transform_3(%arg0: i32) -> (i32, i32) {
    %c0_i32 = arith.constant 0 : i32
    %c0_i32_0 = arith.constant 0 : i32
    %c0_i32_1 = arith.constant 0 : i32
    return %c0_i32, %c0_i32_0 : i32, i32
  }
  func.func @transform_4(%arg0: i32) -> (i32, i32) {
    %c0_i32 = arith.constant 0 : i32
    %c0_i32_0 = arith.constant 0 : i32
    %c0_i32_1 = arith.constant 0 : i32
    return %c0_i32, %c0_i32_0 : i32, i32
  }
  func.func @transform_5(%arg0: i32) -> (i32, i32) {
    %c0_i32 = arith.constant 0 : i32
    %c0_i32_0 = arith.constant 0 : i32
    %c0_i32_1 = arith.constant 0 : i32
    return %c0_i32, %c0_i32_0 : i32, i32
  }
  func.func @transform_6(%arg0: i32) -> (i32, i32) {
    %c0_i32 = arith.constant 0 : i32
    %c0_i32_0 = arith.constant 0 : i32
    %c0_i32_1 = arith.constant 0 : i32
    return %c0_i32, %c0_i32_0 : i32, i32
  }
  func.func @transform_7(%arg0: i32) -> (i32, i32) {
    %c0_i32 = arith.constant 0 : i32
    %c0_i32_0 = arith.constant 0 : i32
    %c0_i32_1 = arith.constant 0 : i32
    return %c0_i32, %c0_i32_0 : i32, i32
  }
  func.func @transform_8(%arg0: i32) -> (i32, i32) {
    %c0_i32 = arith.constant 0 : i32
    %c0_i32_0 = arith.constant 0 : i32
    %c0_i32_1 = arith.constant 0 : i32
    return %c0_i32, %c0_i32_0 : i32, i32
  }
  func.func @transform_9(%arg0: i32) -> (i32, i32) {
    %c0_i32 = arith.constant 0 : i32
    %c0_i32_0 = arith.constant 0 : i32
    %c0_i32_1 = arith.constant 0 : i32
    return %c0_i32, %c0_i32_0 : i32, i32
  }
  func.func @transform_10(%arg0: i32) -> (i32, i32) {
    %c0_i32 = arith.constant 0 : i32
    %c0_i32_0 = arith.constant 0 : i32
    %c0_i32_1 = arith.constant 0 : i32
    return %c0_i32, %c0_i32_0 : i32, i32
  }
  func.func @transform_11(%arg0: i32) -> (i32, i32) {
    %c0_i32 = arith.constant 0 : i32
    %c0_i32_0 = arith.constant 0 : i32
    %c0_i32_1 = arith.constant 0 : i32
    return %c0_i32, %c0_i32_0 : i32, i32
  }
  func.func @transform_12(%arg0: i32) -> (i32, i32) {
    %c0_i32 = arith.constant 0 : i32
    %c0_i32_0 = arith.constant 0 : i32
    %c0_i32_1 = arith.constant 0 : i32
    return %c0_i32, %c0_i32_0 : i32, i32
  }
  func.func @transform_13(%arg0: i32) -> (i32, i32) {
    %c0_i32 = arith.constant 0 : i32
    %c0_i32_0 = arith.constant 0 : i32
    return %arg0, %c0_i32 : i32, i32
  }
}

</mosaic_0001>

<bundles_post_ra>
// kernel: tpu_custom_call.1
= control target key start
LH: loop header
LB: loop body
LE: loop exit
PB: predicated region body
PF: predicated region fallthrough
CT: control target
= control target key end

     0   :  { %s29425_s0 = inlined_call_operand.vmem [shape: f32[16,8,128], index: 0, kind: input, shape index: {}]   ;;  %s29426_s1 = inlined_call_operand.hbm [shape: bf16[128,384], index: 1, kind: input, shape index: {}]   ;;  %s29427_s2 = inlined_call_operand.hbm [shape: f32[1,384], index: 2, kind: input, shape index: {}]   ;;  %s29428_s3 = inlined_call_operand.hbm [shape: bf16[128,128], index: 3, kind: input, shape index: {}]   ;;  %s29429_s4 = inlined_call_operand.vmem [shape: f32[1,128], index: 4, kind: input, shape index: {}]   ;;  %s29430_s5 = inlined_call_operand.vmem [shape: f32[1,128], index: 5, kind: input, shape index: {}]   ;;  %s29431_s6 = inlined_call_operand.hbm [shape: f32[1,128], index: 6, kind: input, shape index: {}]   ;;  %s29432_s7 = inlined_call_operand.vmem [shape: bf16[128,64], index: 7, kind: input, shape index: {}]   ;;  %s29433_s8 = inlined_call_operand.hbm [shape: f32[1,64], index: 8, kind: input, shape index: {}]   ;;  %s29434_s9 = inlined_call_operand.vmem [shape: bf16[64,32], index: 9, kind: input, shape index: {}]   ;;  %s29435_s10 = inlined_call_operand.vmem [shape: f32[1,32], index: 10, kind: input, shape index: {}]   ;;  %s29436_s11 = inlined_call_operand.hbm [shape: bf16[32,128], index: 11, kind: input, shape index: {}]   ;;  %s29437_s12 = inlined_call_operand.vmem [shape: f32[1,128], index: 12, kind: input, shape index: {}]   ;;  %s29438_s13 = inlined_call_operand.hbm [shape: f32[16,128], index: 13, kind: output, shape index: {}]  }
   0x1   :  { %29578 = sst [smem:[#allocation123_spill]] %s29427_s2 }
   0x2   :  { %29579 = sst [smem:[#allocation124_spill]] %s29431_s6 }
   0x3   :  { %29580 = sst [smem:[#allocation125_spill]] %s29438_s13 }
   0x4   :  { %18 = vsyncpa [#allocation3], 0 }
   0x5   :  { %19 = vsyncpa [#allocation6], 0 }
   0x6   :  { %20 = vsyncpa [#allocation9], 0 }
   0x7   :  { %21 = vsyncpa [#allocation12], 0 }
   0x8   :  { %22 = vsyncpa [#allocation4], 0 }
   0x9   :  { %24 = vsyncpa [#allocation4 + $0x1], 0  ;;  %s23853_s25 = smov 0   ;;  %s23855_s26 = smov 0  }
   0xa   :  { %s23857_s27 = smov 0   ;;  %s23859_s28 = smov 0  }
   0xb LB: > { %29581 = sst [smem:[#allocation19_spill]] %s23746_s25  ;;  %s23874_s29 = sadd.s32 4294967295, %s23758_s28   ;;  %s23758_s28 = sphi %s23859_s28, %s29916_s28   ;;  %s23754_s27 = sphi %s23857_s27, %s29918_s27   ;;  %s23750_s26 = sphi %s23855_s26, %s29920_s26   ;;  %s23746_s25 = sphi %s23853_s25, %s29919_s25  }
   0xc   : > { %29582 = sst [smem:[#allocation20_spill]] %s23754_s27  ;;  %s21372_s30 = sadd.s32 4294967294, %s23758_s28  }
   0xd   : > { %29583 = sst [smem:[#allocation21_spill]] %s23758_s28  ;;  %s23878_s14 = sadd.s32 1, %s23758_s28  }
   0xe   : > { %29584 = sst [smem:[#allocation22_spill]] %s23878_s14  ;;  %s315_s15 = sadd.s32 1, %s23754_s27 }
   0xf   : > { %s312_s16 = ssub.s32 %s23758_s28, %s23878_s14  ;;  %p325_p0 = scmp.ne.s32.totalorder %s23754_s27, %s23750_s26 }
  0x10   : > { %p313_p1 = scmp.eq.s32.totalorder %s312_s16, 0  ;;  %p326_p2 = scmp.eq.s32.totalorder %s23874_s29, 1 }
  0x11   : > { %p331_p3 = scmp.ne.s32.totalorder %s23750_s26, %s23746_s25  ;;  %p332_p4 = scmp.eq.s32.totalorder %s21372_s30, 1 }
  0x12   : > { %s23889_s17 = scalar_select %p313_p1, %s23754_s27, %s315_s15  }
  0x13   : > { %p23891_p5 = por %p326_p2, %p325_p0  ;;  %p23895_p6 = por %p332_p4, %p331_p3 }
  0x14   : > { %29585 = sst [smem:[#allocation23_spill]] %s23889_s17  ;;  %p21373_p7 = scmp.ge.s32.totalorder %s23758_s28, 1 }
  0x15   : > { %s29586_s18 = scalar_select %p23891_p5, 1, 0 }
  0x16   : > { %s29587_s19 = scalar_select %p23895_p6, 1, 0 }
  0x17   : > { %p339_p8 = scmp.lt.s32.totalorder %s23758_s28, 3  ;;  %p29444_p9 = scmp.eq.s32.totalorder %s23874_s29, 0 }
  0x18   : > { %29588 = sst [smem:[#allocation24_spill]] %s29587_s19  ;;  %s23760_s21 = smov [#allocation5]  }
  0x19   : > { %p23902_p10 = pnand %p21373_p7, %p339_p8  ;;  %s365_s22 = sshll.u32 %s23760_s21, 4  ;;  %s366_s22 = int_to_ptr.vmem [resolvable:$true] %s365_s22 }
  0x1a   : > { %s23761_s23 = smov [#allocation8]   ;;  %s23762_s15 = smov [#allocation2]  }
  0x1b   : > { %s29589_s20 = scalar_select %p23902_p10, 1, 0 }
  0x1c   : > { %p22948_p11 = pneg %p23902_p10  ;;  %s395_s24 = sshll.u32 %s23761_s23, 4  ;;  %s23914_s24 = int_to_ptr.vmem [resolvable:$true] %s395_s24 }
  0x1d   : > { %s351_s16 = sshll.u32 %s23762_s15, 4  ;;  %s29591_s2 = sld [smem:[#allocation123_spill]]  ;;  %s23916_s16 = int_to_ptr.vmem [resolvable:$true] %s351_s16 }
  0x1e   : > { %p23910_p12 = pnand %p29444_p9, %p22948_p11 }
  0x20   : > { %p23926_p0 = pneg %p23910_p12 }
  0x23   : > { %s23512_s21 = scalar_lea.hbm %s29591_s2, 48 }
  0x24   : > { %p23513_p13 = scmp.ne.s32.totalorder %s29591_s2, %s23512_s21  ;;  %p23519_p3 = scmp.lt.u32.totalorder %s23512_s21, %s29591_s2 }
  0x26   : > { %p23515_p1 = pnand %p23926_p0, %p23513_p13 }
  0x28   : > { %p23516_p2 = pneg %p23515_p1 }
  0x2a   : > { %p23521_p4 = pnand %p23519_p3, %p23516_p2 }
  0x2c   : > { %23524 = shalt.err (!%p23521_p4)
}
  0x2d   : > { %s23525_s27 = scalar_lea.vmem %s366_s22, 48  ;;  %s23532_s14 = scalar_lea.vmem %s366_s22, 64 }
  0x2e   : > { %p23526_p7 = scmp.ne.s32.totalorder %s366_s22, %s23525_s27  ;;  %p23533_p9 = scmp.lt.s32.totalorder %s366_s22, %s366_s22 }
  0x2f   : > { %p23534_p6 = scmp.lt.s32.totalorder %s23532_s14, %s23525_s27 }
  0x30   : > { %p23528_p8 = pnand %p23526_p7, %p23926_p0 }
  0x31   : > { %p23535_p5 = por %p23534_p6, %p23533_p9 }
  0x32   : > { %p23529_p11 = pneg %p23528_p8 }
  0x34   : > { %p23536_p10 = pnand %p23535_p5, %p23529_p11 }
  0x36   : > { %23539 = shalt.err (!%p23536_p10)
}
  0x37   : > { %22954 = dma.hbm_to_vmem [thread:$0]  (!%p23910_p12), %s29591_s2, 48, %s366_s22, [#allocation6]  }
  0x38   : > { %s29593_s6 = sld [smem:[#allocation124_spill]] }
  0x3e   : > { %s23540_s15 = scalar_lea.hbm %s29593_s6, 16 }
  0x3f   : > { %p23541_p13 = scmp.ne.s32.totalorder %s29593_s6, %s23540_s15  ;;  %p23547_p5 = scmp.lt.u32.totalorder %s23540_s15, %s29593_s6 }
  0x41   : > { %p23543_p1 = pnand %p23541_p13, %p23926_p0 }
  0x43   : > { %p23544_p6 = pneg %p23543_p1 }
  0x45   : > { %p23549_p9 = pnand %p23547_p5, %p23544_p6 }
  0x47   : > { %23552 = shalt.err (!%p23549_p9)
}
  0x48   : > { %s23553_s22 = scalar_lea.vmem %s23914_s24, 16  ;;  %s23560_s13 = scalar_lea.vmem %s23914_s24, 32 }
  0x49   : > { %p23554_p10 = scmp.ne.s32.totalorder %s23914_s24, %s23553_s22  ;;  %p23561_p4 = scmp.lt.s32.totalorder %s23914_s24, %s23914_s24 }
  0x4a   : > { %p23562_p7 = scmp.lt.s32.totalorder %s23560_s13, %s23553_s22 }
  0x4b   : > { %p23556_p2 = pnand %p23554_p10, %p23926_p0 }
  0x4c   : > { %p23563_p8 = por %p23562_p7, %p23561_p4 }
  0x4d   : > { %p23557_p3 = pneg %p23556_p2 }
  0x4f   : > { %p23564_p11 = pnand %p23563_p8, %p23557_p3 }
  0x51   : > { %23567 = shalt.err (!%p23564_p11)
}
  0x52   : > { %22960 = dma.hbm_to_vmem [thread:$0]  (!%p23910_p12), %s29593_s6, 16, %s23914_s24, [#allocation9]  }
  0x53   : > { %s23568_s21 = scalar_lea.hbm %s29426_s1, 3072 }
  0x54   : > { %p23569_p13 = scmp.ne.s32.totalorder %s29426_s1, %s23568_s21  ;;  %p23575_p5 = scmp.lt.u32.totalorder %s23568_s21, %s29426_s1 }
  0x56   : > { %p23571_p1 = pnand %p23569_p13, %p23926_p0 }
  0x58   : > { %p23572_p6 = pneg %p23571_p1 }
  0x5a   : > { %p23577_p9 = pnand %p23575_p5, %p23572_p6 }
  0x5c   : > { %23580 = shalt.err (!%p23577_p9)
}
  0x5d   : > { %s23581_s24 = scalar_lea.vmem %s23916_s16, 3072  ;;  %p23589_p4 = scmp.lt.s32.totalorder %s23916_s16, %s23916_s16 }
  0x5e   : > { %p23582_p10 = scmp.ne.s32.totalorder %s23916_s16, %s23581_s24  ;;  %p23590_p7 = scmp.lt.s32.totalorder %s23581_s24, %s23581_s24 }
  0x60   : > { %p23584_p2 = pnand %p23582_p10, %p23926_p0  ;;  %p23591_p8 = por %p23590_p7, %p23589_p4 }
  0x62   : > { %p23585_p3 = pneg %p23584_p2 }
  0x64   : > { %p23592_p11 = pnand %p23591_p8, %p23585_p3 }
  0x66   : > { %23595 = shalt.err (!%p23592_p11)
}
  0x67   : > { %s23763_s13 = smov 192   ;;  %s23764_s28 = smov 12  }
  0x68   : > { %22951 = dma.hbm_to_vmem [thread:$0]  (!%p23910_p12), %s29426_s1, 3072, %s23916_s16, [#allocation3], %s23763_s13, %s23763_s13, %s23764_s28  }
  0x69   : > { %s23765_s25 = smov [#allocation7]   ;;  %s23596_s14 = scalar_lea.hbm %s29428_s3, 1024 }
  0x6a   : > { %s375_s21 = sshll.u32 %s23765_s25, 4  ;;  %p23597_p13 = scmp.ne.s32.totalorder %s29428_s3, %s23596_s14  ;;  %s376_s21 = int_to_ptr.vmem [resolvable:$true] %s375_s21 }
  0x6b   : > { %p23603_p5 = scmp.lt.u32.totalorder %s23596_s14, %s29428_s3 }
  0x6c   : > { %p23599_p1 = pnand %p23597_p13, %p23926_p0 }
  0x6e   : > { %p23600_p6 = pneg %p23599_p1 }
  0x70   : > { %p23605_p9 = pnand %p23603_p5, %p23600_p6 }
  0x72   : > { %23608 = shalt.err (!%p23605_p9)
}
  0x73   : > { %s23609_s16 = scalar_lea.vmem %s376_s21, 1024  ;;  %p23617_p4 = scmp.lt.s32.totalorder %s376_s21, %s376_s21 }
  0x74   : > { %p23610_p10 = scmp.ne.s32.totalorder %s376_s21, %s23609_s16  ;;  %p23618_p7 = scmp.lt.s32.totalorder %s23609_s16, %s23609_s16 }
  0x76   : > { %p23612_p2 = pnand %p23610_p10, %p23926_p0  ;;  %p23619_p8 = por %p23618_p7, %p23617_p4 }
  0x78   : > { %p23613_p3 = pneg %p23612_p2 }
  0x7a   : > { %p23620_p11 = pnand %p23619_p8, %p23613_p3 }
  0x7c   : > { %23623 = shalt.err (!%p23620_p11)
}
  0x7d   : > { %s23766_s13 = smov 64   ;;  %s23767_s28 = smov 4  }
  0x7e   : > { %22957 = dma.hbm_to_vmem [thread:$0]  (!%p23910_p12), %s29428_s3, 1024, %s376_s21, [#allocation6], %s23766_s13, %s23766_s13, %s23767_s28  }
  0x7f   : > { %s23768_s17 = smov [#allocation10]   ;;  %s23769_s25 = smov [#allocation11]  }
  0x80   : > { %s409_s19 = sshll.u32 %s23768_s17, 4  ;;  %s425_s15 = sshll.u32 %s23769_s25, 4  ;;  %s410_s19 = int_to_ptr.vmem [resolvable:$true] %s409_s19  ;;  %s24010_s15 = int_to_ptr.vmem [resolvable:$true] %s425_s15 }
  0x81   : > { %s23624_s22 = scalar_lea.hbm %s29433_s8, 16 }
  0x82   : > { %p23625_p13 = scmp.ne.s32.totalorder %s29433_s8, %s23624_s22  ;;  %p23631_p5 = scmp.lt.u32.totalorder %s23624_s22, %s29433_s8 }
  0x84   : > { %p23627_p1 = pnand %p23625_p13, %p23926_p0 }
  0x86   : > { %p23628_p6 = pneg %p23627_p1 }
  0x88   : > { %p23633_p9 = pnand %p23631_p5, %p23628_p6 }
  0x8a   : > { %23636 = shalt.err (!%p23633_p9)
}
  0x8b   : > { %s23637_s6 = scalar_lea.vmem %s410_s19, 16  ;;  %s23644_s17 = scalar_lea.vmem %s410_s19, 32 }
  0x8c   : > { %p23638_p10 = scmp.ne.s32.totalorder %s410_s19, %s23637_s6  ;;  %p23645_p4 = scmp.lt.s32.totalorder %s410_s19, %s410_s19 }
  0x8d   : > { %p23646_p7 = scmp.lt.s32.totalorder %s23644_s17, %s23637_s6 }
  0x8e   : > { %p23640_p2 = pnand %p23638_p10, %p23926_p0 }
  0x8f   : > { %p23647_p8 = por %p23646_p7, %p23645_p4 }
  0x90   : > { %p23641_p3 = pneg %p23640_p2 }
  0x92   : > { %p23648_p11 = pnand %p23647_p8, %p23641_p3 }
  0x94   : > { %23651 = shalt.err (!%p23648_p11)
}
  0x95   : > { %22963 = dma.hbm_to_vmem [thread:$0]  (!%p23910_p12), %s29433_s8, 16, %s410_s19, [#allocation9]  }
  0x96   : > { %s23652_s24 = scalar_lea.hbm %s29436_s11, 256 }
  0x97   : > { %p23653_p13 = scmp.ne.s32.totalorder %s29436_s11, %s23652_s24  ;;  %p23659_p5 = scmp.lt.u32.totalorder %s23652_s24, %s29436_s11 }
  0x99   : > { %p23655_p1 = pnand %p23653_p13, %p23926_p0 }
  0x9b   : > { %p23656_p6 = pneg %p23655_p1 }
  0x9d   : > { %p23661_p9 = pnand %p23659_p5, %p23656_p6 }
  0x9f   : > { %23664 = shalt.err (!%p23661_p9)
}
  0xa0   : > { %s23665_s19 = scalar_lea.vmem %s24010_s15, 256  ;;  %p23673_p4 = scmp.lt.s32.totalorder %s24010_s15, %s24010_s15 }
  0xa1   : > { %p23666_p10 = scmp.ne.s32.totalorder %s24010_s15, %s23665_s19  ;;  %p23674_p7 = scmp.lt.s32.totalorder %s23665_s19, %s23665_s19 }
  0xa3   : > { %p23668_p2 = pnand %p23666_p10, %p23926_p0  ;;  %p23675_p8 = por %p23674_p7, %p23673_p4 }
  0xa5   : > { %p23669_p3 = pneg %p23668_p2 }
  0xa7   : > { %p23676_p11 = pnand %p23675_p8, %p23669_p3 }
  0xa9   : > { %23679 = shalt.err (!%p23676_p11)
}
  0xaa   : > { %22966 = dma.hbm_to_vmem [thread:$0]  (!%p23910_p12), %s29436_s11, 256, %s24010_s15, [#allocation12], %s23766_s13, %s23766_s13, %s23767_s28  }
  0xab   : > { %p29594_p13 = scmp.ne.s32.totalorder %s29589_s20, 0 }
  0xad   : > { %453 = sbr.rel (%p29594_p13) target bundleno = 3385 (0xd39), region = 72 }
  0xb4   : > { %p29595_p0 = scmp.eq.s32.totalorder %s23874_s29, 0 }
  0xb6   : > { %23725 = dma.done.wait (%p29595_p0), [#allocation3], 3072   ;;  %p29596_p1 = pmov %p29595_p0 }
  0xb7   : > { %p29597_p6 = pmov %p29595_p0 }
  0xb8   : > { %23727 = vsyncadd (%p29596_p1), [#allocation3], 4294964224 }
  0xb9   : > { %23729 = dma.done.wait (%p29597_p6), [#allocation6], 1072   ;;  %p29598_p5 = pmov %p29595_p0 }
  0xba   : > { %p29599_p9 = pmov %p29595_p0 }
  0xbb   : > { %23731 = vsyncadd (%p29598_p5), [#allocation6], 4294966224 }
  0xbc   : > { %23733 = dma.done.wait (%p29599_p9), [#allocation9], 32   ;;  %p29600_p12 = pmov %p29595_p0 }
  0xbd   : > { %p29601_p10 = pmov %p29595_p0 }
  0xbe   : > { %23735 = vsyncadd (%p29600_p12), [#allocation9], 4294967264 }
  0xbf   : > { %23737 = dma.done.wait (%p29601_p10), [#allocation12], 256   ;;  %p29602_p2 = pmov %p29595_p0 }
  0xc0   : > { %v23770_v0 = vmov 0   ;;  %s21389_s20 = sshll.u32 %s23874_s29, 3  ;;  %v23178_v1 = vld [vmem:[#allocation2 + $0x4] ss:$12 sps:$4 sm:$0xff]   ;;  %v23180_v2 = vld [vmem:[#allocation2] ss:$12 sps:$4 sm:$0xff]   ;;  %v570_v37 = vlaneseq }
  0xc1   : > { %23739 = vsyncadd (%p29602_p2), [#allocation12], 4294967040  ;;  %745 = vmatprep.mubr.bf16.mxu0 %v23770_v0  ;;  %p518_p3 = scmp.lt.s32.totalorder %s21389_s20, 15  ;;  %713 = vmatprep.subr.bf16.mxu0 %v23178_v1  ;;  %v23181_v3 = vld [vmem:[#allocation2 + $0x1c] ss:$12 sps:$4 sm:$0xff]   ;;  %s23771_s15 = smov 96  }
  0xc2   : > { %714 = vmatpush1.bf16.msra.mxu0 %v23180_v2  ;;  %v23183_v4 = vld [vmem:[#allocation2 + $0x18] ss:$12 sps:$4 sm:$0xff]   ;;  %v23184_v5 = vld [vmem:[#allocation2 + $0x34] ss:$12 sps:$4 sm:$0xff]   ;;  %v23186_v6 = vld [vmem:[#allocation2 + $0x30] ss:$12 sps:$4 sm:$0xff]  }
  0xc3   : > { %s29922_s20 = smov (!%p518_p3, %s21389_s20), 15  ;;  %715 = vmatprep.subr.bf16.mxu0 %v23181_v3  ;;  %v23187_v7 = vld [vmem:[#allocation2 + $0x4c] ss:$12 sps:$4 sm:$0xff]   ;;  %v23198_v8 = vld [vmem:[#allocation2 + $0x8] ss:$12 sps:$4 sm:$0xff]   ;;  %v24092_v38 = vshrl.u32 %v570_v37, 7 }
  0xc4   : > { %s21390_s30 = sshll.u32 %s29922_s20, 3  ;;  %v23189_v9 = vld [vmem:[#allocation2 + $0x48] ss:$12 sps:$4 sm:$0xff]   ;;  %22194 = vmatprep.subr.bf16.mxu1 %v23198_v8  ;;  %v23190_v10 = vld [vmem:[#allocation2 + $0x64] ss:$12 sps:$4 sm:$0xff]   ;;  %s23772_s27 = smov 112  }
  0xc5   : > { %s24079_s28 = scalar_lea.vmem %s29425_s0, %s21390_s30  ;;  %22195 = vmatpush3.bf16.msra.mxu1 %v23198_v8  ;;  %v23202_v11 = vld [vmem:[#allocation2 + $0x20] ss:$12 sps:$4 sm:$0xff]   ;;  %v23204_v14 = vld [vmem:[#allocation2 + $0x38] ss:$12 sps:$4 sm:$0xff]   ;;  %v23193_v17 = vld [vmem:[#allocation2 + $0x7c] ss:$12 sps:$4 sm:$0xff]  }
  0xc6   : > { %716 = vmatpush1.bf16.msra.mxu0 %v23183_v4  ;;  %v524_v12 = vld [vmem:[%s24079_s28] sm:$0xff]  ;;  %v525_v13 = vld [vmem:[%s24079_s28 + $0x8] sm:$0xff]  ;;  %22196 = vmatprep.subr.bf16.mxu1 %v23202_v11  ;;  %v23205_v18 = vld [vmem:[#allocation2 + $0x50] ss:$12 sps:$4 sm:$0xff]   ;;  %v572_v39 = vsub.s32 0, %v24092_v38  ;;  %v576_v47 = vsub.s32 1, %v24092_v38 }
  0xc7   : > { %717 = vmatprep.subr.bf16.mxu0 %v23184_v5  ;;  %v23192_v15 = vld [vmem:[#allocation2 + $0x60] ss:$12 sps:$4 sm:$0xff]   ;;  %v532_v16 = vpack.c.bf16 %v525_v13, %v524_v12  ;;  %v23195_v19 = vld [vmem:[#allocation2 + $0x78] ss:$12 sps:$4 sm:$0xff]   ;;  %v23199_v21 = vld [vmem:[#allocation2 + $0x90] ss:$12 sps:$4 sm:$0xff]  }
  0xc8   : > { %v23196_v20 = vld [vmem:[#allocation2 + $0x94] ss:$12 sps:$4 sm:$0xff]   ;;  %v23200_v23 = vld [vmem:[#allocation2 + $0xac] ss:$12 sps:$4 sm:$0xff]   ;;  %v23209_v27 = vld [vmem:[#allocation2 + $0xb0] ss:$12 sps:$4 sm:$0xff]  }
  0xc9   : > { %22197 = vmatpush3.bf16.msra.mxu1 %v23202_v11  ;;  %22210 = vmatprep.mubr.bf16.mxu1 %v532_v16  ;;  %v23206_v22 = vld [vmem:[#allocation2 + $0x68] ss:$12 sps:$4 sm:$0xff]   ;;  %v23207_v24 = vld [vmem:[#allocation2 + $0x80] ss:$12 sps:$4 sm:$0xff]   ;;  %v23208_v26 = vld [vmem:[#allocation2 + $0x98] ss:$12 sps:$4 sm:$0xff]  }
  0xca   : > { %718 = vmatpush1.bf16.msra.mxu0 %v23186_v6  ;;  %22198 = vmatprep.subr.bf16.mxu1 %v23204_v14  ;;  %v23203_v25 = vld [vmem:[#allocation2 + $0xa8] ss:$12 sps:$4 sm:$0xff]   ;;  %v527_v29 = vld [vmem:[%s24079_s28 + $0x18] sm:$0xff]  ;;  %v528_v31 = vld [vmem:[%s24079_s28 + $0x20] sm:$0xff]  ;;  %s23773_s14 = smov 64   ;;  %s23774_s22 = smov 80  }
  0xcb   : > { %719 = vmatprep.subr.bf16.mxu0 %v23187_v7  ;;  %v526_v28 = vld [vmem:[%s24079_s28 + $0x10] sm:$0xff]  ;;  %v529_v32 = vld [vmem:[%s24079_s28 + $0x28] sm:$0xff]  ;;  %v531_v35 = vld [vmem:[%s24079_s28 + $0x38] sm:$0xff]  ;;  %s23775_s24 = smov 32   ;;  %s23776_s16 = smov 48   ;;  %v580_v61 = vsub.s32 2, %v24092_v38 }
  0xcc   : > { %v533_v30 = vpack.c.bf16 %v527_v29, %v526_v28  ;;  %v534_v33 = vpack.c.bf16 %v529_v32, %v528_v31  ;;  %v530_v34 = vld [vmem:[%s24079_s28 + $0x30] sm:$0xff]  ;;  %v568_v40 = vld [vmem:[#allocation5] sm:$0x7]  ;;  %s23777_s2 = smov 16   ;;  %v29450_v1 = vmov 0.0   ;;  %vm23779_vm0 = vmmov 0  }
  0xcd   : > { %22199 = vmatpush3.bf16.msra.mxu1 %v23204_v14  ;;  %v535_v36 = vpack.c.bf16 %v531_v35, %v530_v34  ;;  %v24095_v41 = vrot.slane %v568_v40, %v572_v39  ;;  %v24109_v49 = vrot.slane %v568_v40, %v576_v47  ;;  %v24151_v63 = vrot.slane %v568_v40, %v580_v61  ;;  %s21894_s21 = sshll.u32 %s23874_s29, 7  ;;  %s29910_s20 = sld [smem:[#allocation125_spill]] }
  0xce   : > { %720 = vmatpush1.bf16.msra.mxu0 %v23189_v9  ;;  %22200 = vmatprep.subr.bf16.mxu1 %v23205_v18  ;;  %v23780_v14 = vmov 1983009808   ;;  %vm7907_vm1 = vcmask 130048   ;;  %vm12772_vm2 = vcmask 64512   ;;  %vm20557_vm3 = vcmask 261120   ;;  %p29911_p7 = scmp.ne.s32.totalorder %s29586_s18, 0 }
  0xcf   : > { %721 = vmatprep.subr.bf16.mxu0 %v23190_v10  ;;  %29603 = vst [vmem:[#allocation25_spill] sm:$0xff] %v24151_v63  ;;  %vm20566_vm4 = vcmask 392192   ;;  %vm20575_vm5 = vcmask 523264   ;;  %vm20584_vm6 = vcmask 654336   ;;  %vm20593_vm7 = vcmask 785408   ;;  %s23782_s13 = smov [#allocation13]  }
  0xd0   : > { %vm20602_vm8 = vcmask 916480   ;;  %vm20982_vm9 = vcmask 1041409   ;;  %vm20984_vm10 = vcmask 1042434   ;;  %vm20986_vm11 = vcmask 1043459  }
  0xd1   : > { %22201 = vmatpush3.bf16.msra.mxu1 %v23205_v18  ;;  %vm20988_vm12 = vcmask 1044484   ;;  %vm20990_vm13 = vcmask 1045509   ;;  %vm20992_vm14 = vcmask 1046534   ;;  %vm20994_vm15 = vcmask 1047559  }
  0xd2   : > { %722 = vmatpush1.bf16.msra.mxu0 %v23192_v15  ;;  %22202 = vmatprep.subr.bf16.mxu1 %v23206_v22  ;;  %v1030_v15 = vunpack.c.l.s4 %v23780_v14 }
  0xd3   : > { %723 = vmatprep.subr.bf16.mxu0 %v23193_v17  ;;  %s29383_s30 = scalar_lea.hbm %s29910_s20, %s21894_s21 }
  0xd4   : > { %v1031_v18 = vunpack.c.0.s8 %v1030_v15 }
  0xd5   : > { %22203 = vmatpush3.bf16.msra.mxu1 %v23206_v22 }
  0xd6   : > { %724 = vmatpush1.bf16.msra.mxu0 %v23195_v19  ;;  %22204 = vmatprep.subr.bf16.mxu1 %v23207_v24 }
  0xd7   : > { %725 = vmatprep.subr.bf16.mxu0 %v23196_v20  ;;  %v23781_v20 = vmov 1934713408  }
  0xd9   : > { %22205 = vmatpush3.bf16.msra.mxu1 %v23207_v24 }
  0xda   : > { %726 = vmatpush1.bf16.msra.mxu0 %v23199_v21  ;;  %22206 = vmatprep.subr.bf16.mxu1 %v23208_v26  ;;  %v1094_v21 = vunpack.c.l.s4 %v23781_v20 }
  0xdb   : > { %727 = vmatprep.subr.bf16.mxu0 %v23200_v23 }
  0xdc   : > { %v1095_v28 = vunpack.c.0.s8 %v1094_v21 }
  0xdd   : > { %22207 = vmatpush3.bf16.msra.mxu1 %v23208_v26 }
  0xde   : > { %728 = vmatpush1.bf16.msra.mxu0 %v23203_v25  ;;  %22208 = vmatprep.subr.bf16.mxu1 %v23209_v27  ;;  %v24296_v25 = vsub.s32 %v1031_v18, %v24092_v38  ;;  %v24312_v35 = vsub.s32 %v1095_v28, %v24092_v38 }
  0xdf   : > { %22248 = vmatprep.subr.mxu0 %v29450_v1 }
  0xe0   : > { %29604 = vst [vmem:[#allocation26_spill] sm:$0xff] %v24296_v25  ;;  %29605 = vst [vmem:[#allocation27_spill] sm:$0xff] %v24312_v35 }
  0xe1   : > { %746 = vmatmul.mubr.bf16.vlgmr.msra.gmra.mrb[0].mxu0 %v532_v16  ;;  %22209 = vmatpush3.bf16.msra.mxu1 %v23209_v27 }
  0xe2   : > { %755 = vmatprep.mubr.bf16.mxu0 %v23770_v0  ;;  %22218 = vmatprep.subr.mxu1 %v29450_v1 }
  0xe4   : > { %22211 = vmatmul.mubr.bf16.vlgmr.msra.gmra.mrb[0].mxu1 %v533_v30 }
  0xe5   : > { %22214 = vmatprep.mubr.bf16.mxu1 %v534_v33 }
  0xe9   : > { %756 = vmatmul.mubr.bf16.gmra.mrb[4].mxu0 %v533_v30 }
  0xea   : > { %765 = vmatprep.mubr.bf16.mxu0 %v23770_v0 }
  0xec   : > { %22215 = vmatmul.mubr.bf16.gmra.mrb[4].mxu1 %v535_v36 }
  0xed   : > { %22220 = vmatprep.mubr.msk.f32.mxu1 %vm23779_vm0, %v29450_v1 }
  0xf1   : > { %766 = vmatmul.mubr.bf16.gmra.mrb[8].mxu0 %v534_v33 }
  0xf2   : > { %775 = vmatprep.mubr.bf16.mxu0 %v23770_v0 }
  0xf9   : > { %776 = vmatmul.mubr.bf16.gmra.mrb[12].mxu0 %v535_v36 }
  0xfa   : > { %22250 = vmatprep.mubr.msk.f32.mxu0 %vm23779_vm0, %v29450_v1 }
 0x1b4   : > { %v747_v42 = vpop.f32.mrb[0].mxu0 }
 0x1b5   : > { %v24098_v43 = vadd.f32 %v747_v42, %v24095_v41  ;;  %v749_v44 = vpop.f32.mrb[1].mxu0 }
 0x1b6   : > { %v751_v45 = vpop.f32.mrb[2].mxu0  ;;  %v24128_v57 = vadd.f32 %v749_v44, %v24109_v49 }
 0x1b7   : > { %v753_v46 = vpop.f32.mrb[3].mxu0  ;;  %883 = vrot.lane.b32.xlu0 %v24098_v43, %s23771_s15  ;;  %859 = vrot.lane.b32.xlu1 %v24098_v43, %s23772_s27  ;;  %v24111_v50 = vpop.f32.mrb[0].mxu1  ;;  %v24179_v2 = vadd.f32 %v751_v45, %v24095_v41 }
 0x1b8   : > { %v820_v52 = vpop.f32.mrb[1].mxu1  ;;  %v24194_v3 = vadd.f32 %v753_v46, %v24109_v49 }
 0x1b9   : > { %v24121_v54 = vpop.f32.mrb[2].mxu1  ;;  %v24154_v0 = vadd.f32 %v820_v52, %v24151_v63 }
 0x1ba   : > { %v24125_v56 = vpop.f32.mrb[3].mxu1 }
 0x1bb   : > { %931 = vrot.lane.b32.xlu0 %v24098_v43, %s23773_s14  ;;  %907 = vrot.lane.b32.xlu1 %v24098_v43, %s23774_s22 }
 0x1bc   : > { %v757_v48 = vpop.f32.mrb[4].mxu0 }
 0x1bd   : > { %v24113_v51 = vpop.f32.mrb[5].mxu0  ;;  %v24213_v4 = vadd.f32 %v757_v48, %v24095_v41 }
 0x1be   : > { %v24115_v53 = vpop.f32.mrb[6].mxu0  ;;  %v24237_v9 = vadd.f32 %v24113_v51, %v24109_v49 }
 0x1bf   : > { %979 = vrot.lane.b32.xlu0 %v24098_v43, %s23775_s24  ;;  %955 = vrot.lane.b32.xlu1 %v24098_v43, %s23776_s16  ;;  %v24123_v55 = vpop.f32.mrb[7].mxu0  ;;  %v24257_v10 = vadd.f32 %v24115_v53, %v24095_v41 }
 0x1c0   : > { %v24273_v11 = vadd.f32 %v24123_v55, %v24109_v49 }
 0x1c3   : > { %3211 = vrot.lane.b32.xlu0 %v24128_v57, %s23772_s27  ;;  %1003 = vrot.lane.b32.xlu1 %v24098_v43, %s23777_s2 }
 0x1c4   : > { %v24134_v58 = vpop.f32.mrb[8].mxu0 }
 0x1c5   : > { %v24136_v59 = vpop.f32.mrb[9].mxu0  ;;  %v24293_v19 = vadd.f32 %v24134_v58, %v24095_v41 }
 0x1c6   : > { %v24138_v60 = vpop.f32.mrb[10].mxu0  ;;  %v24319_v47 = vadd.f32 %v24136_v59, %v24109_v49 }
 0x1c7   : > { %3235 = vrot.lane.b32.xlu0 %v24128_v57, %s23771_s15  ;;  %3259 = vrot.lane.b32.xlu1 %v24128_v57, %s23774_s22  ;;  %v24145_v62 = vpop.f32.mrb[11].mxu0  ;;  %v24341_v18 = vadd.f32 %v24138_v60, %v24095_v41 }
 0x1cb   : > { %3283 = vrot.lane.b32.xlu0 %v24128_v57, %s23773_s14  ;;  %3307 = vrot.lane.b32.xlu1 %v24128_v57, %s23776_s16 }
 0x1cc   : > { %v24215_v5 = vpop.f32.mrb[12].mxu0 }
 0x1cd   : > { %v24221_v6 = vpop.f32.mrb[13].mxu0 }
 0x1ce   : > { %v24223_v7 = vpop.f32.mrb[14].mxu0 }
 0x1cf   : > { %3331 = vrot.lane.b32.xlu0 %v24128_v57, %s23775_s24  ;;  %3355 = vrot.lane.b32.xlu1 %v24128_v57, %s23777_s2  ;;  %v24225_v8 = vpop.f32.mrb[15].mxu0 }
 0x1d3   : > { %5587 = vrot.lane.b32.xlu0 %v24154_v0, %s23771_s15  ;;  %5563 = vrot.lane.b32.xlu1 %v24154_v0, %s23772_s27 }
 0x1d7   : > { %5635 = vrot.lane.b32.xlu0 %v24154_v0, %s23773_s14  ;;  %5611 = vrot.lane.b32.xlu1 %v24154_v0, %s23774_s22 }
 0x1db   : > { %5707 = vrot.lane.b32.xlu0 %v24154_v0, %s23777_s2  ;;  %5659 = vrot.lane.b32.xlu1 %v24154_v0, %s23776_s16 }
 0x1df   : > { %885 = vrot.lane.b32.xlu0 %v24179_v2, %s23771_s15  ;;  %5683 = vrot.lane.b32.xlu1 %v24154_v0, %s23775_s24 }
 0x1e3   : > { %933 = vrot.lane.b32.xlu0 %v24179_v2, %s23773_s14  ;;  %861 = vrot.lane.b32.xlu1 %v24179_v2, %s23772_s27 }
 0x1e7   : > { %981 = vrot.lane.b32.xlu0 %v24179_v2, %s23775_s24  ;;  %909 = vrot.lane.b32.xlu1 %v24179_v2, %s23774_s22 }
 0x1eb   : > { %3213 = vrot.lane.b32.xlu0 %v24194_v3, %s23772_s27  ;;  %957 = vrot.lane.b32.xlu1 %v24179_v2, %s23776_s16 }
 0x1ef   : > { %3261 = vrot.lane.b32.xlu0 %v24194_v3, %s23774_s22  ;;  %1005 = vrot.lane.b32.xlu1 %v24179_v2, %s23777_s2 }
 0x1f3   : > { %3285 = vrot.lane.b32.xlu0 %v24194_v3, %s23773_s14  ;;  %3237 = vrot.lane.b32.xlu1 %v24194_v3, %s23771_s15 }
 0x1f7   : > { %3333 = vrot.lane.b32.xlu0 %v24194_v3, %s23775_s24  ;;  %3309 = vrot.lane.b32.xlu1 %v24194_v3, %s23776_s16 }
 0x1fb   : > { %887 = vrot.lane.b32.xlu0 %v24213_v4, %s23771_s15  ;;  %3357 = vrot.lane.b32.xlu1 %v24194_v3, %s23777_s2 }
 0x1ff   : > { %935 = vrot.lane.b32.xlu0 %v24213_v4, %s23773_s14  ;;  %863 = vrot.lane.b32.xlu1 %v24213_v4, %s23772_s27 }
 0x203   : > { %983 = vrot.lane.b32.xlu0 %v24213_v4, %s23775_s24  ;;  %911 = vrot.lane.b32.xlu1 %v24213_v4, %s23774_s22 }
 0x207   : > { %3215 = vrot.lane.b32.xlu0 %v24237_v9, %s23772_s27  ;;  %959 = vrot.lane.b32.xlu1 %v24213_v4, %s23776_s16 }
 0x20b   : > { %3263 = vrot.lane.b32.xlu0 %v24237_v9, %s23774_s22  ;;  %1007 = vrot.lane.b32.xlu1 %v24213_v4, %s23777_s2 }
 0x20f   : > { %3287 = vrot.lane.b32.xlu0 %v24237_v9, %s23773_s14  ;;  %3239 = vrot.lane.b32.xlu1 %v24237_v9, %s23771_s15 }
 0x213   : > { %3335 = vrot.lane.b32.xlu0 %v24237_v9, %s23775_s24  ;;  %3311 = vrot.lane.b32.xlu1 %v24237_v9, %s23776_s16 }
 0x217   : > { %889 = vrot.lane.b32.xlu0 %v24257_v10, %s23771_s15  ;;  %3359 = vrot.lane.b32.xlu1 %v24237_v9, %s23777_s2 }
 0x21b   : > { %937 = vrot.lane.b32.xlu0 %v24257_v10, %s23773_s14  ;;  %865 = vrot.lane.b32.xlu1 %v24257_v10, %s23772_s27 }
 0x21f   : > { %985 = vrot.lane.b32.xlu0 %v24257_v10, %s23775_s24  ;;  %913 = vrot.lane.b32.xlu1 %v24257_v10, %s23774_s22 }
 0x223   : > { %3217 = vrot.lane.b32.xlu0 %v24273_v11, %s23772_s27  ;;  %961 = vrot.lane.b32.xlu1 %v24257_v10, %s23776_s16 }
 0x227   : > { %3265 = vrot.lane.b32.xlu0 %v24273_v11, %s23774_s22  ;;  %1009 = vrot.lane.b32.xlu1 %v24257_v10, %s23777_s2 }
 0x229   : > { %v884_v12 = vpop.permute.xlu0 %883  ;;  %v860_v13 = vpop.permute.xlu1 %859 }
 0x22a   : > { %v1027_v26 = vcombine.low %v24098_v43, %v884_v12  ;;  %v1028_v29 = vcombine.high %v24098_v43, %v884_v12 }
 0x22b   : > { %3289 = vrot.lane.b32.xlu0 %v24273_v11, %s23773_s14  ;;  %3241 = vrot.lane.b32.xlu1 %v24273_v11, %s23771_s15 }
 0x22c   : > { %v1035_v33 = vrot.slane %v1027_v26, %v24296_v25  ;;  %v1042_v36 = vrot.slane %v1028_v29, %v24296_v25 }
 0x22d   : > { %v932_v16 = vpop.permute.xlu0 %931  ;;  %v908_v17 = vpop.permute.xlu1 %907 }
 0x22e   : > { %v1043_v22 = vcombine.low %v860_v13, %v908_v17  ;;  %v1044_v27 = vcombine.high %v860_v13, %v908_v17 }
 0x22f   : > { %3337 = vrot.lane.b32.xlu0 %v24273_v11, %s23775_s24  ;;  %3313 = vrot.lane.b32.xlu1 %v24273_v11, %s23776_s16 }
 0x230   : > { %v1051_v30 = vrot.slane %v1043_v22, %v24296_v25  ;;  %v1058_v34 = vrot.slane %v1044_v27, %v24296_v25 }
 0x231   : > { %v980_v23 = vpop.permute.xlu0 %979  ;;  %v956_v24 = vpop.permute.xlu1 %955 }
 0x232   : > { %v1091_v37 = vcombine.low %v1035_v33, %v1051_v30  ;;  %v1092_v39 = vcombine.high %v1035_v33, %v1051_v30  ;;  %v1107_v43 = vcombine.low %v1042_v36, %v1058_v34  ;;  %v1108_v44 = vcombine.high %v1042_v36, %v1058_v34 }
 0x233   : > { %891 = vrot.lane.b32.xlu0 %v24293_v19, %s23771_s15  ;;  %3361 = vrot.lane.b32.xlu1 %v24273_v11, %s23777_s2  ;;  %v1059_v46 = vcombine.low %v932_v16, %v980_v23  ;;  %v1060_v53 = vcombine.high %v932_v16, %v980_v23 }
 0x234   : > { %v1099_v51 = vrot.slane %v1091_v37, %v24312_v35  ;;  %v1106_v52 = vrot.slane %v1092_v39, %v24312_v35  ;;  %v24330_v15 = vrot.slane %v1107_v43, %v24312_v35 }
 0x235   : > { %v3212_v31 = vpop.permute.xlu0 %3211  ;;  %v1004_v32 = vpop.permute.xlu1 %1003  ;;  %v1067_v16 = vrot.slane %v1059_v46, %v24296_v25 }
 0x236   : > { %v1075_v45 = vcombine.low %v956_v24, %v1004_v32  ;;  %v1076_v55 = vcombine.high %v956_v24, %v1004_v32  ;;  %v21415_v22 = vcombine.low %v1099_v51, %v1106_v52  ;;  %v21417_v23 = vcombine.high %v1099_v51, %v1106_v52 }
 0x237   : > { %939 = vrot.lane.b32.xlu0 %v24293_v19, %s23773_s14  ;;  %867 = vrot.lane.b32.xlu1 %v24293_v19, %s23772_s27  ;;  %v1074_v24 = vrot.slane %v1060_v53, %v24296_v25 }
 0x238   : > { %v1083_v17 = vrot.slane %v1075_v45, %v24296_v25  ;;  %v1090_v26 = vrot.slane %v1076_v55, %v24296_v25 }
 0x239   : > { %v3236_v40 = vpop.permute.xlu0 %3235  ;;  %v3260_v42 = vpop.permute.xlu1 %3259 }
 0x23a   : > { %v3379_v38 = vcombine.low %v24128_v57, %v3236_v40  ;;  %v3380_v48 = vcombine.high %v24128_v57, %v3236_v40  ;;  %v3395_v13 = vcombine.low %v3212_v31, %v3260_v42  ;;  %v3396_v14 = vcombine.high %v3212_v31, %v3260_v42 }
 0x23b   : > { %987 = vrot.lane.b32.xlu0 %v24293_v19, %s23775_s24  ;;  %915 = vrot.lane.b32.xlu1 %v24293_v19, %s23774_s22  ;;  %v24333_v57 = vrot.slane %v1108_v44, %v24312_v35  ;;  %v1123_v34 = vcombine.low %v1067_v16, %v1083_v17  ;;  %v1124_v36 = vcombine.high %v1067_v16, %v1083_v17 }
 0x23c   : > { %v3387_v12 = vrot.slane %v3379_v38, %v24296_v25  ;;  %v3394_v59 = vrot.slane %v3380_v48, %v24296_v25  ;;  %v3403_v20 = vrot.slane %v3395_v13, %v24296_v25  ;;  %v3410_v21 = vrot.slane %v3396_v14, %v24296_v25 }
 0x23d   : > { %v3284_v58 = vpop.permute.xlu0 %3283  ;;  %v3308_v61 = vpop.permute.xlu1 %3307  ;;  %v21419_v32 = vcombine.low %v24330_v15, %v24333_v57  ;;  %v21421_v33 = vcombine.high %v24330_v15, %v24333_v57  ;;  %v1139_v43 = vcombine.low %v1074_v24, %v1090_v26  ;;  %v1140_v44 = vcombine.high %v1074_v24, %v1090_v26 }
 0x23e   : > { %v3443_v29 = vcombine.low %v3387_v12, %v3403_v20  ;;  %v3444_v30 = vcombine.high %v3387_v12, %v3403_v20  ;;  %v3459_v31 = vcombine.low %v3394_v59, %v3410_v21  ;;  %v3460_v60 = vcombine.high %v3394_v59, %v3410_v21 }
 0x23f   : > { %3219 = vrot.lane.b32.xlu0 %v24319_v47, %s23772_s27  ;;  %963 = vrot.lane.b32.xlu1 %v24293_v19, %s23776_s16  ;;  %v24387_v16 = vrot.slane %v21417_v23, %v24296_v25 }
 0x240   : > { %v3451_v37 = vrot.slane %v3443_v29, %v24312_v35  ;;  %v3458_v39 = vrot.slane %v3444_v30, %v24312_v35  ;;  %v3467_v40 = vrot.slane %v3459_v31, %v24312_v35  ;;  %v3474_v42 = vrot.slane %v3460_v60, %v24312_v35 }
 0x241   : > { %v3332_v27 = vpop.permute.xlu0 %3331  ;;  %v3356_v28 = vpop.permute.xlu1 %3355  ;;  %v1147_v29 = vrot.slane %v1139_v43, %v24312_v35 }
 0x242   : > { %v3411_v45 = vcombine.low %v3284_v58, %v3332_v27  ;;  %v3412_v46 = vcombine.high %v3284_v58, %v3332_v27  ;;  %v21479_v51 = vcombine.low %v3451_v37, %v3458_v39  ;;  %v21481_v52 = vcombine.high %v3451_v37, %v3458_v39 }
 0x243   : > { %3267 = vrot.lane.b32.xlu0 %v24319_v47, %s23774_s22  ;;  %1011 = vrot.lane.b32.xlu1 %v24293_v19, %s23777_s2  ;;  %v21483_v53 = vcombine.low %v3467_v40, %v3474_v42  ;;  %v21485_v55 = vcombine.high %v3467_v40, %v3474_v42  ;;  %v3427_v13 = vcombine.low %v3308_v61, %v3356_v28 }
 0x244   : > { %v3419_v12 = vrot.slane %v3411_v45, %v24296_v25  ;;  %v3426_v59 = vrot.slane %v3412_v46, %v24296_v25  ;;  %v3428_v14 = vcombine.high %v3308_v61, %v3356_v28  ;;  %v24370_v15 = vrot.slane %v21479_v51, %v24296_v25 }
 0x245   : > { %v24361_v38 = vpop.permute.xlu0 %5587  ;;  %v24363_v48 = vpop.permute.xlu1 %5563  ;;  %v24373_v58 = vrot.slane %v21481_v52, %v24296_v25  ;;  %v24376_v57 = vrot.slane %v21483_v53, %v24296_v25  ;;  %v24379_v17 = vrot.slane %v21485_v55, %v24296_v25  ;;  %v24384_v61 = vrot.slane %v21415_v22, %v24296_v25 }
 0x246   : > { %v3435_v20 = vrot.slane %v3427_v13, %v24296_v25  ;;  %v3442_v21 = vrot.slane %v3428_v14, %v24296_v25  ;;  %v1131_v27 = vrot.slane %v1123_v34, %v24312_v35  ;;  %v1138_v28 = vrot.slane %v1124_v36, %v24312_v35 }
 0x247   : > { %3291 = vrot.lane.b32.xlu0 %v24319_v47, %s23773_s14  ;;  %3243 = vrot.lane.b32.xlu1 %v24319_v47, %s23771_s15  ;;  %v1154_v22 = vrot.slane %v1140_v44, %v24312_v35  ;;  %v24402_v37 = vrot.slane %v21419_v32, %v24296_v25  ;;  %v24405_v39 = vrot.slane %v21421_v33, %v24296_v25 }
 0x248   : > { %v3475_v30 = vcombine.low %v3419_v12, %v3435_v20  ;;  %v3476_v31 = vcombine.high %v3419_v12, %v3435_v20  ;;  %v3491_v23 = vcombine.low %v3426_v59, %v3442_v21  ;;  %v3492_v60 = vcombine.high %v3426_v59, %v3442_v21 }
 0x249   : > { %v24391_v24 = vpop.permute.xlu0 %5635  ;;  %v24393_v26 = vpop.permute.xlu1 %5611  ;;  %v4531_v34 = vcombine.low %v24370_v15, %v24373_v58  ;;  %v4563_v36 = vcombine.low %v24376_v57, %v24379_v17  ;;  %v21416_v45 = vcombine.low %v1131_v27, %v1138_v28  ;;  %v21418_v46 = vcombine.high %v1131_v27, %v1138_v28 }
 0x24a   : > { %29606 = vst [vmem:[#allocation28_spill] sm:$0xff] %v24391_v24  ;;  %v3483_v40 = vrot.slane %v3475_v30, %v24312_v35  ;;  %v3490_v42 = vrot.slane %v3476_v31, %v24312_v35  ;;  %v3499_v43 = vrot.slane %v3491_v23, %v24312_v35  ;;  %v3506_v32 = vrot.slane %v3492_v60, %v24312_v35 }
 0x24b   : > { %3339 = vrot.lane.b32.xlu0 %v24319_v47, %s23775_s24  ;;  %3315 = vrot.lane.b32.xlu1 %v24319_v47, %s23776_s16  ;;  %v21420_v51 = vcombine.low %v1147_v29, %v1154_v22  ;;  %v21422_v52 = vcombine.high %v1147_v29, %v1154_v22  ;;  %v2179_v13 = vcombine.low %v24384_v61, %v24387_v16 }
 0x24c   : > { %v21480_v53 = vcombine.low %v3483_v40, %v3490_v42  ;;  %v21482_v55 = vcombine.high %v3483_v40, %v3490_v42  ;;  %v21484_v12 = vcombine.low %v3499_v43, %v3506_v32  ;;  %v21486_v59 = vcombine.high %v3499_v43, %v3506_v32 }
 0x24d   : > { %v24417_v44 = vpop.permute.xlu0 %5707  ;;  %v24419_v33 = vpop.permute.xlu1 %5659  ;;  %v2211_v14 = vcombine.low %v24402_v37, %v24405_v39  ;;  %v4539_v20 = vrot.slane %v4531_v34, %v24312_v35  ;;  %v4571_v21 = vrot.slane %v4563_v36, %v24312_v35  ;;  %v24448_v23 = vrot.slane %v21416_v45, %v24296_v25 }
 0x24e   : > { %29607 = vst [vmem:[#allocation29_spill] sm:$0xff] %v24417_v44  ;;  %29608 = vst [vmem:[#allocation30_spill] sm:$0xff] %v24419_v33  ;;  %v24432_v27 = vrot.slane %v21480_v53, %v24296_v25  ;;  %v24435_v28 = vrot.slane %v21482_v55, %v24296_v25  ;;  %v24438_v29 = vrot.slane %v21484_v12, %v24296_v25 }
 0x24f   : > { %893 = vrot.lane.b32.xlu0 %v24341_v18, %s23771_s15  ;;  %3363 = vrot.lane.b32.xlu1 %v24319_v47, %s23777_s2  ;;  %v24441_v22 = vrot.slane %v21486_v59, %v24296_v25  ;;  %v24451_v60 = vrot.slane %v21418_v46, %v24296_v25  ;;  %v24454_v34 = vrot.slane %v21420_v51, %v24296_v25 }
 0x250   : > { %v24457_v36 = vrot.slane %v21422_v52, %v24296_v25  ;;  %v2187_v40 = vrot.slane %v2179_v13, %v24312_v35  ;;  %v2219_v42 = vrot.slane %v2211_v14, %v24312_v35  ;;  %v4532_v43 = vcombine.high %v24370_v15, %v24373_v58 }
 0x251   : > { %v24443_v30 = vpop.permute.xlu0 %885  ;;  %v24445_v31 = vpop.permute.xlu1 %5683  ;;  %v4564_v32 = vcombine.high %v24376_v57, %v24379_v17  ;;  %v4548_v45 = vcombine.high %v24432_v27, %v24435_v28  ;;  %v4580_v46 = vcombine.high %v24438_v29, %v24441_v22  ;;  %v4595_v51 = vcombine.low %v4539_v20, %v4571_v21 }
 0x252   : > { %29609 = vst [vmem:[#allocation31_spill] sm:$0xff] %v24445_v31  ;;  %v2196_v15 = vcombine.high %v24448_v23, %v24451_v60  ;;  %v2228_v58 = vcombine.high %v24454_v34, %v24457_v36  ;;  %v2180_v57 = vcombine.high %v24384_v61, %v24387_v16  ;;  %v2212_v17 = vcombine.high %v24402_v37, %v24405_v39 }
 0x253   : > { %941 = vrot.lane.b32.xlu0 %v24341_v18, %s23773_s14  ;;  %869 = vrot.lane.b32.xlu1 %v24341_v18, %s23772_s27  ;;  %v2243_v55 = vcombine.low %v2187_v40, %v2219_v42  ;;  %v4596_v12 = vcombine.high %v4539_v20, %v4571_v21  ;;  %v4546_v59 = vrot.slane %v4532_v43, %v24312_v35 }
 0x254   : > { %22219 = vmatpush3.xpose.msk.msra.mxu1 %vm7907_vm1, %v4595_v51  ;;  %v4578_v13 = vrot.slane %v4564_v32, %v24312_v35  ;;  %v24490_v14 = vrot.slane %v4548_v45, %v24312_v35  ;;  %v24493_v33 = vrot.slane %v4580_v46, %v24312_v35  ;;  %v24502_v37 = vrot.slane %v2196_v15, %v24312_v35 }
 0x255   : > { %v24473_v52 = vpop.permute.xlu0 %933  ;;  %v24475_v53 = vpop.permute.xlu1 %861  ;;  %22223 = vmatprep.subr.mxu1 %v29450_v1  ;;  %v24505_v39 = vrot.slane %v2228_v58, %v24312_v35  ;;  %v2244_v21 = vcombine.high %v2187_v40, %v2219_v42  ;;  %v2194_v43 = vrot.slane %v2180_v57, %v24312_v35  ;;  %v2226_v32 = vrot.slane %v2212_v17, %v24312_v35 }
 0x256   : > { %v4601_v20 = vcombine.low %v24490_v14, %v24493_v33  ;;  %v4547_v45 = vcombine.low %v24432_v27, %v24435_v28  ;;  %v4579_v46 = vcombine.low %v24438_v29, %v24441_v22  ;;  %v4597_v51 = vcombine.low %v4546_v59, %v4578_v13 }
 0x257   : > { %989 = vrot.lane.b32.xlu0 %v24341_v18, %s23775_s24  ;;  %917 = vrot.lane.b32.xlu1 %v24341_v18, %s23774_s22  ;;  %v2249_v40 = vcombine.low %v24502_v37, %v24505_v39  ;;  %v24530_v42 = vadd.f32 %v24145_v62, %v24109_v49  ;;  %v2195_v27 = vcombine.low %v24448_v23, %v24451_v60 }
 0x258   : > { %22221 = vmatmul.mubr.msk.f32.vlgmr.msra.gmra.mrb[8].mxu1 %vm7907_vm1, %v2243_v55  ;;  %22249 = vmatpush3.xpose.msk.msra.mxu0 %vm7907_vm1, %v4601_v20  ;;  %v2227_v28 = vcombine.low %v24454_v34, %v24457_v36  ;;  %v2245_v29 = vcombine.low %v2194_v43, %v2226_v32  ;;  %v4598_v22 = vcombine.high %v4546_v59, %v4578_v13 }
 0x259   : > { %v24499_v61 = vpop.permute.xlu0 %981  ;;  %v910_v16 = vpop.permute.xlu1 %909  ;;  %22224 = vmatpush3.xpose.msk.msra.mxu1 %vm7907_vm1, %v4596_v12  ;;  %22225 = vmatprep.mubr.msk.f32.mxu1 %vm23779_vm0, %v29450_v1  ;;  %v4555_v23 = vrot.slane %v4547_v45, %v24312_v35  ;;  %v4587_v60 = vrot.slane %v4579_v46, %v24312_v35  ;;  %v1163_v17 = vcombine.low %v24179_v2, %v24443_v30 }
 0x25a   : > { %22228 = vmatprep.subr.mxu1 %v29450_v1  ;;  %v1179_v62 = vcombine.low %v24475_v53, %v910_v16  ;;  %v1180_v36 = vcombine.high %v24475_v53, %v910_v16  ;;  %v1164_v55 = vcombine.high %v24179_v2, %v24443_v30  ;;  %v2246_v12 = vcombine.high %v2194_v43, %v2226_v32 }
 0x25b   : > { %22251 = vmatmul.mubr.msk.f32.vlgmr.msra.gmra.mrb[16].mxu0 %vm7907_vm1, %v2249_v40  ;;  %3221 = vrot.lane.b32.xlu0 %v24530_v42, %s23772_s27  ;;  %v2203_v59 = vrot.slane %v2195_v27, %v24312_v35  ;;  %v2235_v13 = vrot.slane %v2227_v28, %v24312_v35  ;;  %v4599_v16 = vcombine.low %v4555_v23, %v4587_v60 }
 0x25c   : > { %22226 = vmatmul.mubr.msk.f32.vlgmr.msra.gmra.mrb[10].mxu1 %vm7907_vm1, %v2244_v21  ;;  %965 = vrot.lane.b32.xlu1 %v24341_v18, %s23776_s16  ;;  %v1187_v53 = vrot.slane %v1179_v62, %v24296_v25  ;;  %v1194_v2 = vrot.slane %v1180_v36, %v24296_v25  ;;  %v1171_v30 = vrot.slane %v1163_v17, %v24296_v25 }
 0x25d   : > { %v24521_v15 = vpop.permute.xlu0 %3213  ;;  %v24523_v58 = vpop.permute.xlu1 %957  ;;  %22229 = vmatpush3.xpose.msk.msra.mxu1 %vm7907_vm1, %v4597_v51  ;;  %22230 = vmatprep.mubr.msk.f32.mxu1 %vm23779_vm0, %v29450_v1  ;;  %v24579_v43 = vadd.f32 %v24111_v50, %v24151_v63  ;;  %v24583_v32 = vadd.f32 %v24121_v54, %v24151_v63  ;;  %v1178_v45 = vrot.slane %v1164_v55, %v24296_v25 }
 0x25e   : > { %22233 = vmatprep.subr.mxu1 %v29450_v1  ;;  %v2247_v46 = vcombine.low %v2203_v59, %v2235_v13  ;;  %v1227_v51 = vcombine.low %v1171_v30, %v1187_v53  ;;  %v1228_v40 = vcombine.high %v1171_v30, %v1187_v53  ;;  %v4600_v27 = vcombine.high %v4555_v23, %v4587_v60 }
 0x25f   : > { %3269 = vrot.lane.b32.xlu0 %v24530_v42, %s23774_s22  ;;  %29610 = vst [vmem:[#allocation32_spill] sm:$0xff] %v24579_v43  ;;  %29611 = vst [vmem:[#allocation33_spill] sm:$0xff] %v24583_v32  ;;  %v24597_v54 = vadd.f32 %v24125_v56, %v24151_v63  ;;  %v24606_v62 = vadd.f32 %v24221_v6, %v24109_v49  ;;  %v1244_v23 = vcombine.high %v1178_v45, %v1194_v2 }
 0x260   : > { %22231 = vmatmul.mubr.msk.f32.vlgmr.msra.gmra.mrb[12].mxu1 %vm7907_vm1, %v2245_v29  ;;  %1013 = vrot.lane.b32.xlu1 %v24341_v18, %s23777_s2  ;;  %v1243_v29 = vcombine.low %v1178_v45, %v1194_v2  ;;  %v24615_v56 = vadd.f32 %v24223_v7, %v24095_v41  ;;  %v2248_v17 = vcombine.high %v2203_v59, %v2235_v13 }
 0x261   : > { %v24548_v57 = vpop.permute.xlu0 %3261  ;;  %v24550_v34 = vpop.permute.xlu1 %1005  ;;  %22234 = vmatpush3.xpose.msk.msra.mxu1 %vm7907_vm1, %v4598_v22  ;;  %22235 = vmatprep.mubr.msk.f32.mxu1 %vm23779_vm0, %v29450_v1  ;;  %29612 = vst [vmem:[#allocation34_spill] sm:$0xff] %v24597_v54  ;;  %v24602_v22 = vadd.f32 %v24215_v5, %v24095_v41  ;;  %v1195_v5 = vcombine.low %v24473_v52, %v24499_v61 }
 0x262   : > { %22238 = vmatprep.subr.mxu1 %v29450_v1  ;;  %v1211_v60 = vcombine.low %v24523_v58, %v24550_v34  ;;  %v3531_v6 = vcombine.low %v24521_v15, %v24548_v57  ;;  %v3532_v36 = vcombine.high %v24521_v15, %v24548_v57  ;;  %v1235_v55 = vrot.slane %v1227_v51, %v24312_v35 }
 0x263   : > { %3293 = vrot.lane.b32.xlu0 %v24530_v42, %s23773_s14  ;;  %v4602_v41 = vcombine.high %v24490_v14, %v24493_v33  ;;  %v1251_v15 = vrot.slane %v1243_v29, %v24312_v35  ;;  %v24642_v33 = vadd.f32 %v24225_v8, %v24109_v49  ;;  %v1258_v14 = vrot.slane %v1244_v23, %v24312_v35 }
 0x264   : > { %22236 = vmatmul.mubr.msk.f32.vlgmr.msra.gmra.mrb[14].mxu1 %vm7907_vm1, %v2246_v12  ;;  %3245 = vrot.lane.b32.xlu1 %v24530_v42, %s23771_s15  ;;  %v1242_v12 = vrot.slane %v1228_v40, %v24312_v35  ;;  %v1212_v59 = vcombine.high %v24523_v58, %v24550_v34  ;;  %v1219_v13 = vrot.slane %v1211_v60, %v24296_v25 }
 0x265   : > { %v24569_v20 = vpop.permute.xlu0 %3285  ;;  %v3238_v21 = vpop.permute.xlu1 %3237  ;;  %22239 = vmatpush3.xpose.msk.msra.mxu1 %vm7907_vm1, %v4599_v16  ;;  %22240 = vmatprep.mubr.msk.f32.mxu1 %vm23779_vm0, %v29450_v1  ;;  %v2250_v49 = vcombine.high %v24502_v37, %v24505_v39  ;;  %v1196_v8 = vcombine.high %v24473_v52, %v24499_v61  ;;  %v1203_v58 = vrot.slane %v1195_v5, %v24296_v25 }
 0x266   : > { %22243 = vmatprep.subr.mxu1 %v29450_v1  ;;  %v3515_v7 = vcombine.low %v24194_v3, %v3238_v21  ;;  %v3516_v57 = vcombine.high %v24194_v3, %v3238_v21  ;;  %v3539_v3 = vrot.slane %v3531_v6, %v24296_v25  ;;  %v3546_v21 = vrot.slane %v3532_v36, %v24296_v25 }
 0x267   : > { %3341 = vrot.lane.b32.xlu0 %v24530_v42, %s23775_s24  ;;  %v21423_v34 = vcombine.low %v1235_v55, %v1242_v12  ;;  %v21425_v45 = vcombine.high %v1235_v55, %v1242_v12  ;;  %v21427_v37 = vcombine.low %v1251_v15, %v1258_v14  ;;  %v21429_v39 = vcombine.high %v1251_v15, %v1258_v14 }
 0x268   : > { %22241 = vmatmul.mubr.msk.f32.vlgmr.msra.gmra.mrb[16].mxu1 %vm7907_vm1, %v2247_v46  ;;  %3317 = vrot.lane.b32.xlu1 %v24530_v42, %s23776_s16  ;;  %v3523_v2 = vrot.slane %v3515_v7, %v24296_v25  ;;  %v3530_v30 = vrot.slane %v3516_v57, %v24296_v25  ;;  %v24668_v52 = vrot.slane %v1212_v59, %v24296_v25 }
 0x269   : > { %v24591_v50 = vpop.permute.xlu0 %3333  ;;  %v24593_v28 = vpop.permute.xlu1 %3309  ;;  %22244 = vmatpush3.xpose.msk.msra.mxu1 %vm7907_vm1, %v4600_v27  ;;  %22245 = vmatprep.mubr.msk.f32.mxu1 %vm23779_vm0, %v29450_v1  ;;  %v1259_v61 = vcombine.low %v1203_v58, %v1219_v13  ;;  %v24679_v55 = vrot.slane %v21423_v34, %v24296_v25  ;;  %v24692_v57 = vrot.slane %v21425_v45, %v24296_v25 }
 0x26a   : > { %22253 = vmatprep.subr.mxu1 %v29450_v1  ;;  %v3579_v40 = vcombine.low %v3523_v2, %v3539_v3  ;;  %v3580_v27 = vcombine.high %v3523_v2, %v3539_v3  ;;  %v3595_v29 = vcombine.low %v3530_v30, %v3546_v21  ;;  %v3596_v23 = vcombine.high %v3530_v30, %v3546_v21 }
 0x26b   : > { %895 = vrot.lane.b32.xlu0 %v24602_v22, %s23771_s15  ;;  %22258 = vmatprep.subr.mxu0 %v29450_v1  ;;  %v3547_v12 = vcombine.low %v24569_v20, %v24591_v50  ;;  %v1260_v14 = vcombine.high %v1203_v58, %v1219_v13  ;;  %v24696_v3 = vrot.slane %v21427_v37, %v24296_v25 }
 0x26c   : > { %22246 = vmatmul.mubr.msk.f32.vlgmr.msra.gmra.mrb[18].mxu1 %vm7907_vm1, %v2248_v17  ;;  %3365 = vrot.lane.b32.xlu1 %v24530_v42, %s23777_s2  ;;  %v3587_v60 = vrot.slane %v3579_v40, %v24312_v35  ;;  %v3594_v5 = vrot.slane %v3580_v27, %v24312_v35  ;;  %v3603_v6 = vrot.slane %v3595_v29, %v24312_v35 }
 0x26d   : > { %v24631_v53 = vpop.permute.xlu0 %887  ;;  %v24633_v16 = vpop.permute.xlu1 %3357  ;;  %22254 = vmatpush3.xpose.msk.msra.mxu1 %vm7907_vm1, %v4602_v41  ;;  %22255 = vmatprep.mubr.msk.f32.mxu1 %vm23779_vm0, %v29450_v1  ;;  %v3610_v36 = vrot.slane %v3596_v23, %v24312_v35  ;;  %v1210_v17 = vrot.slane %v1196_v8, %v24296_v25  ;;  %v3548_v41 = vcombine.high %v24569_v20, %v24591_v50 }
 0x26e   : > { %v21487_v59 = vcombine.low %v3587_v60, %v3594_v5  ;;  %v21489_v2 = vcombine.high %v3587_v60, %v3594_v5  ;;  %22263 = vmatprep.subr.mxu1 %v29450_v1  ;;  %v24699_v20 = vrot.slane %v21429_v39, %v24296_v25  ;;  %v3563_v50 = vcombine.low %v24593_v28, %v24633_v16 }
 0x26f   : > { %943 = vrot.lane.b32.xlu0 %v24602_v22, %s23773_s14  ;;  %v3564_v21 = vcombine.high %v24593_v28, %v24633_v16  ;;  %v1267_v13 = vrot.slane %v1259_v61, %v24312_v35  ;;  %v1275_v30 = vcombine.low %v1210_v17, %v24668_v52  ;;  %v21493_v8 = vcombine.high %v3603_v6, %v3610_v36 }
 0x270   : > { %22256 = vmatmul.mubr.msk.f32.vlgmr.msra.gmra.mrb[20].mxu1 %vm7907_vm1, %v2250_v49  ;;  %871 = vrot.lane.b32.xlu1 %v24602_v22, %s23772_s27  ;;  %v21491_v49 = vcombine.low %v3603_v6, %v3610_v36  ;;  %v3555_v58 = vrot.slane %v3547_v12, %v24296_v25  ;;  %v3562_v34 = vrot.slane %v3548_v41, %v24296_v25 }
 0x271   : > { %v24662_v46 = vpop.permute.xlu0 %935  ;;  %v24664_v51 = vpop.permute.xlu1 %863  ;;  %22260 = vmatprep.mubr.msk.f32.mxu0 %vm23779_vm0, %v29450_v1  ;;  %v3571_v45 = vrot.slane %v3563_v50, %v24296_v25  ;;  %v3578_v28 = vrot.slane %v3564_v21, %v24296_v25  ;;  %v1274_v27 = vrot.slane %v1260_v14, %v24312_v35  ;;  %v1276_v29 = vcombine.high %v1210_v17, %v24668_v52 }
 0x272   : > { %v24724_v23 = vrot.slane %v21487_v59, %v24296_v25  ;;  %v24727_v37 = vrot.slane %v21489_v2, %v24296_v25  ;;  %22265 = vmatprep.mubr.msk.f32.mxu1 %vm23779_vm0, %v29450_v1  ;;  %v2315_v6 = vcombine.low %v24679_v55, %v24692_v57  ;;  %v24736_v52 = vrot.slane %v21491_v49, %v24296_v25 }
 0x273   : > { %991 = vrot.lane.b32.xlu0 %v24602_v22, %s23775_s24  ;;  %v3611_v39 = vcombine.low %v3555_v58, %v3571_v45  ;;  %v3612_v61 = vcombine.high %v3555_v58, %v3571_v45  ;;  %v3627_v60 = vcombine.low %v3562_v34, %v3578_v28  ;;  %v3628_v5 = vcombine.high %v3562_v34, %v3578_v28 }
 0x274   : > { %919 = vrot.lane.b32.xlu1 %v24602_v22, %s23774_s22  ;;  %v24739_v36 = vrot.slane %v21493_v8, %v24296_v25  ;;  %v21424_v49 = vcombine.low %v1267_v13, %v1274_v27  ;;  %v21426_v8 = vcombine.high %v1267_v13, %v1274_v27  ;;  %v1299_v58 = vcombine.low %v24213_v4, %v24631_v53 }
 0x275   : > { %v24687_v7 = vpop.permute.xlu0 %983  ;;  %v24689_v15 = vpop.permute.xlu1 %911  ;;  %v3619_v12 = vrot.slane %v3611_v39, %v24312_v35  ;;  %v3626_v41 = vrot.slane %v3612_v61, %v24312_v35  ;;  %v3635_v14 = vrot.slane %v3627_v60, %v24312_v35  ;;  %v3642_v59 = vrot.slane %v3628_v5, %v24312_v35 }
 0x276   : > { %v1315_v17 = vcombine.low %v24664_v51, %v24689_v15  ;;  %v2347_v34 = vcombine.low %v24696_v3, %v24699_v20  ;;  %v1283_v45 = vrot.slane %v1275_v30, %v24312_v35  ;;  %v1290_v28 = vrot.slane %v1276_v29, %v24312_v35 }
 0x277   : > { %3223 = vrot.lane.b32.xlu0 %v24606_v62, %s23772_s27  ;;  %v4667_v39 = vcombine.low %v24724_v23, %v24727_v37  ;;  %v21488_v13 = vcombine.low %v3619_v12, %v3626_v41  ;;  %v1316_v27 = vcombine.high %v24664_v51, %v24689_v15  ;;  %v4699_v30 = vcombine.low %v24736_v52, %v24739_v36 }
 0x278   : > { %967 = vrot.lane.b32.xlu1 %v24602_v22, %s23776_s16  ;;  %v1323_v60 = vrot.slane %v1315_v17, %v24296_v25  ;;  %v21490_v5 = vcombine.high %v3619_v12, %v3626_v41  ;;  %v21492_v29 = vcombine.low %v3635_v14, %v3642_v59  ;;  %v21494_v21 = vcombine.high %v3635_v14, %v3642_v59 }
 0x279   : > { %v24717_v16 = vpop.permute.xlu0 %3215  ;;  %v24719_v40 = vpop.permute.xlu1 %959  ;;  %v24777_v44 = vrot.slane %v21424_v49, %v24296_v25  ;;  %v24780_v61 = vrot.slane %v21426_v8, %v24296_v25  ;;  %v1300_v51 = vcombine.high %v24213_v4, %v24631_v53  ;;  %v1307_v15 = vrot.slane %v1299_v58, %v24296_v25 }
 0x27a   : > { %v21428_v12 = vcombine.low %v1283_v45, %v1290_v28  ;;  %v21430_v41 = vcombine.high %v1283_v45, %v1290_v28  ;;  %v4668_v14 = vcombine.high %v24724_v23, %v24727_v37  ;;  %v4675_v59 = vrot.slane %v4667_v39, %v24312_v35 }
 0x27b   : > { %3271 = vrot.lane.b32.xlu0 %v24606_v62, %s23774_s22  ;;  %v4700_v49 = vcombine.high %v24736_v52, %v24739_v36  ;;  %v24795_v8 = vrot.slane %v21488_v13, %v24296_v25  ;;  %v1330_v4 = vrot.slane %v1316_v27, %v24296_v25  ;;  %v1363_v53 = vcombine.low %v1307_v15, %v1323_v60 }
 0x27c   : > { %1015 = vrot.lane.b32.xlu1 %v24602_v22, %s23777_s2  ;;  %v24799_v58 = vrot.slane %v21490_v5, %v24296_v25  ;;  %v24802_v45 = vrot.slane %v21492_v29, %v24296_v25  ;;  %v24805_v23 = vrot.slane %v21494_v21, %v24296_v25  ;;  %v4707_v37 = vrot.slane %v4699_v30, %v24312_v35 }
 0x27d   : > { %v24749_v2 = vpop.permute.xlu0 %3263  ;;  %v24751_v50 = vpop.permute.xlu1 %1007  ;;  %v1314_v36 = vrot.slane %v1300_v51, %v24296_v25  ;;  %v1364_v28 = vcombine.high %v1307_v15, %v1323_v60  ;;  %v2323_v39 = vrot.slane %v2315_v6, %v24312_v35  ;;  %v2355_v13 = vrot.slane %v2347_v34, %v24312_v35 }
 0x27e   : > { %v24816_v27 = vrot.slane %v21428_v12, %v24296_v25  ;;  %v4731_v5 = vcombine.low %v4675_v59, %v4707_v37  ;;  %v4732_v21 = vcombine.high %v4675_v59, %v4707_v37  ;;  %v4682_v29 = vrot.slane %v4668_v14, %v24312_v35 }
 0x27f   : > { %3295 = vrot.lane.b32.xlu0 %v24606_v62, %s23773_s14  ;;  %v24822_v30 = vrot.slane %v21430_v41, %v24296_v25  ;;  %v1371_v51 = vrot.slane %v1363_v53, %v24312_v35  ;;  %v1379_v60 = vcombine.low %v1314_v36, %v1330_v4  ;;  %v1380_v15 = vcombine.high %v1314_v36, %v1330_v4 }
 0x280   : > { %3247 = vrot.lane.b32.xlu1 %v24606_v62, %s23771_s15  ;;  %v4683_v34 = vcombine.low %v24795_v8, %v24799_v58  ;;  %v4715_v12 = vcombine.low %v24802_v45, %v24805_v23  ;;  %22259 = vmatpush3.xpose.msk.msra.mxu0 %vm7907_vm1, %v4731_v5  ;;  %v4714_v14 = vrot.slane %v4700_v49, %v24312_v35  ;;  %v29613_v37 = vmov 0.0  }
 0x281   : > { %v24774_v1 = vpop.permute.xlu1 %3239  ;;  %v24785_v17 = vpop.permute.xlu0 %3287  ;;  %22264 = vmatpush3.xpose.msk.msra.mxu1 %vm7907_vm1, %v4732_v21  ;;  %v1378_v59 = vrot.slane %v1364_v28, %v24312_v35  ;;  %v2379_v53 = vcombine.low %v2323_v39, %v2355_v13  ;;  %v2380_v4 = vcombine.high %v2323_v39, %v2355_v13  ;;  %22268 = vmatprep.subr.mxu0 %v29613_v37 }
 0x282   : > { %22273 = vmatprep.subr.mxu1 %v29613_v37  ;;  %v2331_v36 = vcombine.low %v24777_v44, %v24780_v61  ;;  %v4733_v24 = vcombine.low %v4682_v29, %v4714_v14  ;;  %v4734_v31 = vcombine.high %v4682_v29, %v4714_v14  ;;  %v29614_v5 = vcombine.high %v24679_v55, %v24692_v57 }
 0x283   : > { %3343 = vrot.lane.b32.xlu0 %v24606_v62, %s23775_s24  ;;  %v1387_v28 = vrot.slane %v1379_v60, %v24312_v35  ;;  %v1394_v39 = vrot.slane %v1380_v15, %v24312_v35  ;;  %22261 = vmatmul.mubr.msk.f32.vlgmr.msra.gmra.mrb[18].mxu0 %vm7907_vm1, %v2379_v53  ;;  %v29615_v13 = vcombine.high %v24696_v3, %v24699_v20 }
 0x284   : > { %v2330_v49 = vrot.slane %v29614_v5, %v24312_v35  ;;  %22266 = vmatmul.mubr.msk.f32.vlgmr.msra.gmra.mrb[22].mxu1 %vm7907_vm1, %v2380_v4  ;;  %v2332_v55 = vcombine.high %v24777_v44, %v24780_v61  ;;  %22269 = vmatpush3.xpose.msk.msra.mxu0 %vm7907_vm1, %v4733_v24  ;;  %v4691_v57 = vrot.slane %v4683_v34, %v24312_v35 }
 0x285   : > { %v24810_v52 = vpop.permute.xlu1 %3311  ;;  %v24825_v6 = vpop.permute.xlu0 %3335  ;;  %v2362_v21 = vrot.slane %v29615_v13, %v24312_v35  ;;  %22274 = vmatpush3.xpose.msk.msra.mxu1 %vm7907_vm1, %v4734_v31  ;;  %v4723_v29 = vrot.slane %v4715_v12, %v24312_v35  ;;  %v2363_v15 = vcombine.low %v24816_v27, %v24822_v30  ;;  %v21431_v14 = vcombine.low %v1371_v51, %v1378_v59 }
 0x286   : > { %v21433_v53 = vcombine.high %v1371_v51, %v1378_v59  ;;  %22270 = vmatprep.mubr.msk.f32.mxu0 %vm23779_vm0, %v29613_v37  ;;  %v3651_v3 = vcombine.low %v24237_v9, %v24774_v1  ;;  %22275 = vmatprep.mubr.msk.f32.mxu1 %vm23779_vm0, %v29613_v37  ;;  %v21435_v12 = vcombine.low %v1387_v28, %v1394_v39 }
 0x287   : > { %v2381_v31 = vcombine.low %v2330_v49, %v2362_v21  ;;  %v2382_v20 = vcombine.high %v2330_v49, %v2362_v21  ;;  %22278 = vmatprep.subr.mxu0 %v29613_v37  ;;  %v4735_v34 = vcombine.low %v4691_v57, %v4723_v29  ;;  %v21437_v4 = vcombine.high %v1387_v28, %v1394_v39 }
 0x288   : > { %v3667_v51 = vcombine.low %v24717_v16, %v24749_v2  ;;  %v3668_v59 = vcombine.high %v24717_v16, %v24749_v2  ;;  %22283 = vmatprep.subr.mxu1 %v29613_v37  ;;  %v1347_v5 = vcombine.low %v24719_v40, %v24751_v50  ;;  %v4736_v49 = vcombine.high %v4691_v57, %v4723_v29 }
 0x289   : > { %v24834_v41 = vpop.permute.xlu1 %3359  ;;  %v24869_v24 = vpop.permute.xlu0 %889  ;;  %22271 = vmatmul.mubr.msk.f32.vlgmr.msra.gmra.mrb[20].mxu0 %vm7907_vm1, %v2381_v31  ;;  %22276 = vmatmul.mubr.msk.f32.vlgmr.msra.gmra.mrb[24].mxu1 %vm7907_vm1, %v2382_v20  ;;  %v3652_v13 = vcombine.high %v24237_v9, %v24774_v1  ;;  %v1331_v39 = vcombine.low %v24662_v46, %v24687_v7  ;;  %v1332_v16 = vcombine.high %v24662_v46, %v24687_v7 }
 0x28a   : > { %v24892_v2 = vrot.slane %v21431_v14, %v24296_v25  ;;  %22279 = vmatpush3.xpose.msk.msra.mxu0 %vm7907_vm1, %v4735_v34  ;;  %v3659_v21 = vrot.slane %v3651_v3, %v24296_v25  ;;  %v24897_v57 = vrot.slane %v21433_v53, %v24296_v25  ;;  %v1348_v1 = vcombine.high %v24719_v40, %v24751_v50 }
 0x28b   : > { %22284 = vmatpush3.xpose.msk.msra.mxu1 %vm7907_vm1, %v4736_v49  ;;  %v3666_v9 = vrot.slane %v3652_v13, %v24296_v25  ;;  %22280 = vmatprep.mubr.msk.f32.mxu0 %vm23779_vm0, %v29613_v37  ;;  %v2364_v46 = vcombine.high %v24816_v27, %v24822_v30  ;;  %v4684_v7 = vcombine.high %v24795_v8, %v24799_v58 }
 0x28c   : > { %v4716_v29 = vcombine.high %v24802_v45, %v24805_v23  ;;  %v3675_v14 = vrot.slane %v3667_v51, %v24296_v25  ;;  %22285 = vmatprep.mubr.msk.f32.mxu1 %vm23779_vm0, %v29613_v37  ;;  %v24917_v50 = vrot.slane %v21435_v12, %v24296_v25  ;;  %v24920_v53 = vrot.slane %v21437_v4, %v24296_v25 }
 0x28d   : > { %v24861_v60 = vpop.permute.xlu1 %865  ;;  %v24914_v40 = vpop.permute.xlu0 %937  ;;  %v3682_v27 = vrot.slane %v3668_v59, %v24296_v25  ;;  %v1355_v8 = vrot.slane %v1347_v5, %v24296_v25  ;;  %3319 = vrot.lane.b32.xlu1 %v24606_v62, %s23776_s16  ;;  %v1339_v58 = vrot.slane %v1331_v39, %v24296_v25  ;;  %v1346_v45 = vrot.slane %v1332_v16, %v24296_v25 }
 0x28e   : > { %v3715_v23 = vcombine.low %v3659_v21, %v3675_v14  ;;  %v3716_v30 = vcombine.high %v3659_v21, %v3675_v14  ;;  %22288 = vmatprep.subr.mxu0 %v29613_v37  ;;  %v2451_v31 = vcombine.low %v24892_v2, %v24897_v57  ;;  %v1362_v20 = vrot.slane %v1348_v1, %v24296_v25 }
 0x28f   : > { %v3731_v34 = vcombine.low %v3666_v9, %v3682_v27  ;;  %v3732_v12 = vcombine.high %v3666_v9, %v3682_v27  ;;  %22293 = vmatprep.subr.mxu1 %v29613_v37  ;;  %v2339_v4 = vrot.slane %v2331_v36, %v24312_v35  ;;  %v2371_v51 = vrot.slane %v2363_v15, %v24312_v35 }
 0x290   : > { %v4698_v59 = vrot.slane %v4684_v7, %v24312_v35  ;;  %v4730_v5 = vrot.slane %v4716_v29, %v24312_v35  ;;  %897 = vrot.lane.b32.xlu0 %v24615_v56, %s23771_s15  ;;  %v1395_v39 = vcombine.low %v1339_v58, %v1355_v8  ;;  %v1396_v16 = vcombine.high %v1339_v58, %v1355_v8 }
 0x291   : > { %v24885_v28 = vpop.permute.xlu1 %913  ;;  %3367 = vrot.lane.b32.xlu1 %v24606_v62, %s23777_s2  ;;  %v3723_v36 = vrot.slane %v3715_v23, %v24312_v35  ;;  %v3730_v15 = vrot.slane %v3716_v30, %v24312_v35  ;;  %v2383_v21 = vcombine.low %v2339_v4, %v2371_v51  ;;  %v2384_v1 = vcombine.high %v2339_v4, %v2371_v51  ;;  %v24952_v9 = vpop.permute.xlu0 %985 }
 0x292   : > { %v1411_v7 = vcombine.low %v1346_v45, %v1362_v20  ;;  %v1412_v29 = vcombine.high %v1346_v45, %v1362_v20  ;;  %v4737_v14 = vcombine.low %v4698_v59, %v4730_v5  ;;  %v4738_v27 = vcombine.high %v4698_v59, %v4730_v5 }
 0x293   : > { %v3739_v49 = vrot.slane %v3731_v34, %v24312_v35  ;;  %v3746_v13 = vrot.slane %v3732_v12, %v24312_v35  ;;  %22281 = vmatmul.mubr.msk.f32.vlgmr.msra.gmra.mrb[22].mxu0 %vm7907_vm1, %v2383_v21  ;;  %22286 = vmatmul.mubr.msk.f32.vlgmr.msra.gmra.mrb[26].mxu1 %vm7907_vm1, %v2384_v1  ;;  %v2346_v8 = vrot.slane %v2332_v55, %v24312_v35 }
 0x294   : > { %v1403_v23 = vrot.slane %v1395_v39, %v24312_v35  ;;  %22289 = vmatpush3.xpose.msk.msra.mxu0 %vm7907_vm1, %v4737_v14  ;;  %22294 = vmatpush3.xpose.msk.msra.mxu1 %vm7907_vm1, %v4738_v27  ;;  %v3683_v45 = vcombine.low %v24785_v17, %v24825_v6  ;;  %v2378_v30 = vrot.slane %v2364_v46, %v24312_v35 }
 0x295   : > { %v24929_v3 = vpop.permute.xlu1 %961  ;;  %v1410_v20 = vrot.slane %v1396_v16, %v24312_v35  ;;  %v21495_v34 = vcombine.low %v3723_v36, %v3730_v15  ;;  %v3684_v44 = vcombine.high %v24785_v17, %v24825_v6  ;;  %22290 = vmatprep.mubr.msk.f32.mxu0 %vm23779_vm0, %v29613_v37  ;;  %22295 = vmatprep.mubr.msk.f32.mxu1 %vm23779_vm0, %v29613_v37  ;;  %v24989_v59 = vpop.permute.xlu0 %3217 }
 0x296   : > { %v21497_v61 = vcombine.high %v3723_v36, %v3730_v15  ;;  %v2385_v55 = vcombine.low %v2346_v8, %v2378_v30  ;;  %v2386_v12 = vcombine.high %v2346_v8, %v2378_v30  ;;  %v3699_v4 = vcombine.low %v24810_v52, %v24834_v41  ;;  %945 = vrot.lane.b32.xlu0 %v24615_v56, %s23773_s14 }
 0x297   : > { %v24982_v46 = vrot.slane %v1411_v7, %v24312_v35  ;;  %v1426_v17 = vrot.slane %v1412_v29, %v24312_v35  ;;  %v21499_v6 = vcombine.low %v3739_v49, %v3746_v13  ;;  %v3700_v51 = vcombine.high %v24810_v52, %v24834_v41  ;;  %873 = vrot.lane.b32.xlu1 %v24615_v56, %s23772_s27 }
 0x298   : > { %v21501_v5 = vcombine.high %v3739_v49, %v3746_v13  ;;  %v3691_v39 = vrot.slane %v3683_v45, %v24296_v25  ;;  %22291 = vmatmul.mubr.msk.f32.vlgmr.msra.gmra.mrb[24].mxu0 %vm7907_vm1, %v2385_v55  ;;  %22296 = vmatmul.mubr.msk.f32.vlgmr.msra.gmra.mrb[28].mxu1 %vm7907_vm1, %v2386_v12  ;;  %v3707_v16 = vrot.slane %v3699_v4, %v24296_v25 }
 0x299   : > { %v24962_v58 = vpop.permute.xlu1 %1009  ;;  %v21432_v36 = vcombine.low %v1403_v23, %v1410_v20  ;;  %v24996_v15 = vrot.slane %v21495_v34, %v24296_v25  ;;  %v3698_v52 = vrot.slane %v3684_v44, %v24296_v25  ;;  %v3714_v41 = vrot.slane %v3700_v51, %v24296_v25  ;;  %22298 = vmatprep.subr.mxu0 %v29613_v37  ;;  %v25023_v55 = vpop.permute.xlu0 %3265 }
 0x29a   : > { %v4763_v49 = vrot.slane %v21497_v61, %v24296_v25  ;;  %v3747_v13 = vcombine.low %v3691_v39, %v3707_v16  ;;  %v3748_v1 = vcombine.high %v3691_v39, %v3707_v16  ;;  %993 = vrot.lane.b32.xlu0 %v24615_v56, %s23775_s24  ;;  %22303 = vmatprep.subr.mxu1 %v29613_v37 }
 0x29b   : > { %v21434_v7 = vcombine.high %v1403_v23, %v1410_v20  ;;  %v21436_v29 = vcombine.low %v24982_v46, %v1426_v17  ;;  %v3763_v14 = vcombine.low %v3698_v52, %v3714_v41  ;;  %v3764_v27 = vcombine.high %v3698_v52, %v3714_v41  ;;  %921 = vrot.lane.b32.xlu1 %v24615_v56, %s23774_s22 }
 0x29c   : > { %v4779_v8 = vrot.slane %v21499_v6, %v24296_v25  ;;  %v4795_v45 = vrot.slane %v21501_v5, %v24296_v25  ;;  %v3755_v30 = vrot.slane %v3747_v13, %v24312_v35  ;;  %v3762_v34 = vrot.slane %v3748_v1, %v24312_v35  ;;  %22300 = vmatprep.mubr.msk.f32.mxu0 %vm23779_vm0, %v29613_v37 }
 0x29d   : > { %v25001_v21 = vpop.permute.xlu1 %3241  ;;  %v21438_v20 = vcombine.high %v24982_v46, %v1426_v17  ;;  %v3771_v44 = vrot.slane %v3763_v14, %v24312_v35  ;;  %v3778_v61 = vrot.slane %v3764_v27, %v24312_v35  ;;  %22305 = vmatprep.mubr.msk.f32.mxu1 %vm23779_vm0, %v29613_v37  ;;  %v25026_v12 = vrot.slane %v21432_v36, %v24296_v25 }
 0x29e   : > { %v4803_v4 = vcombine.low %v24996_v15, %v4763_v49  ;;  %v21496_v6 = vcombine.low %v3755_v30, %v3762_v34  ;;  %v21498_v51 = vcombine.high %v3755_v30, %v3762_v34  ;;  %3225 = vrot.lane.b32.xlu0 %v24642_v33, %s23772_s27  ;;  %v25032_v46 = vrot.slane %v21434_v7, %v24296_v25 }
 0x29f   : > { %v21500_v17 = vcombine.low %v3771_v44, %v3778_v61  ;;  %v21502_v5 = vcombine.high %v3771_v44, %v3778_v61  ;;  %v1451_v39 = vcombine.low %v24861_v60, %v24885_v28  ;;  %969 = vrot.lane.b32.xlu1 %v24615_v56, %s23776_s16  ;;  %v25041_v36 = vrot.slane %v21436_v29, %v24296_v25 }
 0x2a0   : > { %v4835_v52 = vcombine.low %v4779_v8, %v4795_v45  ;;  %v1435_v41 = vcombine.low %v24257_v10, %v24869_v24  ;;  %v1452_v13 = vcombine.high %v24861_v60, %v24885_v28  ;;  %v4804_v1 = vcombine.high %v24996_v15, %v4763_v49  ;;  %v25075_v49 = vpop.permute.xlu0 %3289 }
 0x2a1   : > { %v25038_v16 = vpop.permute.xlu1 %3313  ;;  %v1436_v7 = vcombine.high %v24257_v10, %v24869_v24  ;;  %v25051_v14 = vrot.slane %v21496_v6, %v24296_v25  ;;  %v25054_v27 = vrot.slane %v21498_v51, %v24296_v25  ;;  %v4836_v29 = vcombine.high %v4779_v8, %v4795_v45 }
 0x2a2   : > { %v25057_v30 = vrot.slane %v21500_v17, %v24296_v25  ;;  %v25060_v34 = vrot.slane %v21502_v5, %v24296_v25  ;;  %v4811_v60 = vrot.slane %v4803_v4, %v24312_v35  ;;  %3273 = vrot.lane.b32.xlu0 %v24642_v33, %s23774_s22  ;;  %v25066_v10 = vrot.slane %v21438_v20, %v24296_v25 }
 0x2a3   : > { %v1459_v15 = vrot.slane %v1451_v39, %v24296_v25  ;;  %1017 = vrot.lane.b32.xlu1 %v24615_v56, %s23777_s2  ;;  %v1443_v8 = vrot.slane %v1435_v41, %v24296_v25  ;;  %v1466_v45 = vrot.slane %v1452_v13, %v24296_v25  ;;  %v4843_v20 = vrot.slane %v4835_v52, %v24312_v35 }
 0x2a4   : > { %v2459_v44 = vrot.slane %v2451_v31, %v24312_v35  ;;  %v1450_v61 = vrot.slane %v1436_v7, %v24296_v25  ;;  %v4819_v4 = vcombine.low %v25051_v14, %v25054_v27  ;;  %v29616_v6 = vcombine.low %v24917_v50, %v24920_v53  ;;  %v25111_v24 = vpop.permute.xlu0 %3337 }
 0x2a5   : > { %v4818_v17 = vrot.slane %v4804_v1, %v24312_v35  ;;  %v25092_v5 = vpop.permute.xlu1 %3361  ;;  %v4851_v39 = vcombine.low %v25057_v30, %v25060_v34  ;;  %v4867_v52 = vcombine.low %v4811_v60, %v4843_v20  ;;  %v4868_v41 = vcombine.high %v4811_v60, %v4843_v20 }
 0x2a6   : > { %v2491_v51 = vrot.slane %v29616_v6, %v24312_v35  ;;  %v4850_v31 = vrot.slane %v4836_v29, %v24312_v35  ;;  %3297 = vrot.lane.b32.xlu0 %v24642_v33, %s23773_s14  ;;  %v1467_v1 = vcombine.low %v24914_v40, %v24952_v9  ;;  %v1499_v6 = vcombine.low %v1443_v8, %v1459_v15 }
 0x2a7   : > { %3249 = vrot.lane.b32.xlu1 %v24642_v33, %s23771_s15  ;;  %v1500_v28 = vcombine.high %v1443_v8, %v1459_v15  ;;  %v1515_v60 = vcombine.low %v1450_v61, %v1466_v45  ;;  %22299 = vmatpush3.xpose.msk.msra.mxu0 %vm7907_vm1, %v4867_v52  ;;  %v29617_v23 = vcombine.high %v24892_v2, %v24897_v57 }
 0x2a8   : > { %22304 = vmatpush3.xpose.msk.msra.mxu1 %vm7907_vm1, %v4868_v41  ;;  %v2515_v29 = vcombine.low %v2459_v44, %v2491_v51  ;;  %v2516_v20 = vcombine.high %v2459_v44, %v2491_v51  ;;  %22308 = vmatprep.subr.mxu0 %v29613_v37  ;;  %v4869_v7 = vcombine.low %v4818_v17, %v4850_v31 }
 0x2a9   : > { %22313 = vmatprep.subr.mxu1 %v29613_v37  ;;  %v4870_v13 = vcombine.high %v4818_v17, %v4850_v31  ;;  %v2466_v15 = vrot.slane %v29617_v23, %v24312_v35  ;;  %v29618_v8 = vcombine.high %v24917_v50, %v24920_v53  ;;  %v4827_v44 = vrot.slane %v4819_v4, %v24312_v35  ;;  %v25131_v50 = vpop.permute.xlu1 %867 }
 0x2aa   : > { %v4859_v51 = vrot.slane %v4851_v39, %v24312_v35  ;;  %3345 = vrot.lane.b32.xlu0 %v24642_v33, %s23775_s24  ;;  %v1516_v17 = vcombine.high %v1450_v61, %v1466_v45  ;;  %22301 = vmatmul.mubr.msk.f32.vlgmr.msra.gmra.mrb[26].mxu0 %vm7907_vm1, %v2515_v29  ;;  %v3803_v2 = vcombine.low %v24989_v59, %v25023_v55 }
 0x2ab   : > { %v2498_v52 = vrot.slane %v29618_v8, %v24312_v35  ;;  %22306 = vmatmul.mubr.msk.f32.vlgmr.msra.gmra.mrb[30].mxu1 %vm7907_vm1, %v2516_v20  ;;  %v3804_v57 = vcombine.high %v24989_v59, %v25023_v55  ;;  %v1468_v53 = vcombine.high %v24914_v40, %v24952_v9  ;;  %v25136_v23 = vrot.slane %v1499_v6, %v24312_v35 }
 0x2ac   : > { %v25139_v45 = vrot.slane %v1500_v28, %v24312_v35  ;;  %22309 = vmatpush3.xpose.msk.msra.mxu0 %vm7907_vm1, %v4869_v7  ;;  %22314 = vmatpush3.xpose.msk.msra.mxu1 %vm7907_vm1, %v4870_v13  ;;  %v1483_v61 = vcombine.low %v24929_v3, %v24962_v58  ;;  %v4871_v4 = vcombine.low %v4827_v44, %v4859_v51  ;;  %v25163_v7 = vpop.permute.xlu0 %891 }
 0x2ad   : > { %22310 = vmatprep.mubr.msk.f32.mxu0 %vm23779_vm0, %v29613_v37  ;;  %v2517_v59 = vcombine.low %v2466_v15, %v2498_v52  ;;  %v2518_v55 = vcombine.high %v2466_v15, %v2498_v52  ;;  %22315 = vmatprep.mubr.msk.f32.mxu1 %vm23779_vm0, %v29613_v37  ;;  %v4872_v40 = vcombine.high %v4827_v44, %v4859_v51 }
 0x2ae   : > { %22318 = vmatprep.subr.mxu0 %v29613_v37  ;;  %v3787_v9 = vcombine.low %v24273_v11, %v25001_v21  ;;  %v3788_v28 = vcombine.high %v24273_v11, %v25001_v21  ;;  %v25155_v39 = vrot.slane %v1515_v60, %v24312_v35  ;;  %v25158_v41 = vrot.slane %v1516_v17, %v24312_v35 }
 0x2af   : > { %v3811_v31 = vrot.slane %v3803_v2, %v24296_v25  ;;  %v3818_v13 = vrot.slane %v3804_v57, %v24296_v25  ;;  %22311 = vmatmul.mubr.msk.f32.vlgmr.msra.gmra.mrb[28].mxu0 %vm7907_vm1, %v2517_v59  ;;  %v1484_v6 = vcombine.high %v24929_v3, %v24962_v58  ;;  %22316 = vmatmul.mubr.msk.f32.vlgmr.msra.gmra.mrb[32].mxu1 %vm7907_vm1, %v2518_v55  ;;  %v25177_v3 = vpop.permute.xlu1 %915 }
 0x2b0   : > { %22323 = vmatprep.subr.mxu1 %v29613_v37  ;;  %v3795_v11 = vrot.slane %v3787_v9, %v24296_v25  ;;  %v3802_v21 = vrot.slane %v3788_v28, %v24296_v25  ;;  %v1475_v60 = vrot.slane %v1467_v1, %v24296_v25  ;;  %v1482_v29 = vrot.slane %v1468_v53, %v24296_v25  ;;  %v25211_v59 = vpop.permute.xlu0 %939 }
 0x2b1   : > { %v21439_v20 = vcombine.low %v25136_v23, %v25139_v45  ;;  %v1491_v15 = vrot.slane %v1483_v61, %v24296_v25  ;;  %22319 = vmatpush3.xpose.msk.msra.mxu0 %vm7907_vm1, %v4871_v4  ;;  %22324 = vmatpush3.xpose.msk.msra.mxu1 %vm7907_vm1, %v4872_v40  ;;  %v4820_v1 = vcombine.high %v25051_v14, %v25054_v27 }
 0x2b2   : > { %v3851_v58 = vcombine.low %v3795_v11, %v3811_v31  ;;  %v3852_v8 = vcombine.high %v3795_v11, %v3811_v31  ;;  %v3867_v52 = vcombine.low %v3802_v21, %v3818_v13  ;;  %v3868_v44 = vcombine.high %v3802_v21, %v3818_v13  ;;  %22320 = vmatprep.mubr.msk.f32.mxu0 %vm23779_vm0, %v29613_v37 }
 0x2b3   : > { %v4852_v51 = vcombine.high %v25057_v30, %v25060_v34  ;;  %v21441_v17 = vcombine.high %v25136_v23, %v25139_v45  ;;  %v29619_v2 = vcombine.low %v25026_v12, %v25032_v46  ;;  %v21443_v53 = vcombine.low %v25155_v39, %v25158_v41  ;;  %22325 = vmatprep.mubr.msk.f32.mxu1 %vm23779_vm0, %v29613_v37  ;;  %v25220_v11 = vpop.permute.xlu1 %963 }
 0x2b4   : > { %v1498_v61 = vrot.slane %v1484_v6, %v24296_v25  ;;  %v3859_v14 = vrot.slane %v3851_v58, %v24312_v35  ;;  %v3866_v27 = vrot.slane %v3852_v8, %v24312_v35  ;;  %v25200_v30 = vrot.slane %v21439_v20, %v24296_v25  ;;  %3321 = vrot.lane.b32.xlu1 %v24642_v33, %s23776_s16 }
 0x2b5   : > { %v2475_v57 = vrot.slane %v29619_v2, %v24312_v35  ;;  %v21445_v34 = vcombine.high %v25155_v39, %v25158_v41  ;;  %v29620_v23 = vcombine.low %v25041_v36, %v25066_v10  ;;  %22328 = vmatprep.subr.mxu0 %v29613_v37  ;;  %v1531_v55 = vcombine.low %v1475_v60, %v1491_v15 }
 0x2b6   : > { %v1532_v4 = vcombine.high %v1475_v60, %v1491_v15  ;;  %v3875_v40 = vrot.slane %v3867_v52, %v24312_v35  ;;  %v3882_v9 = vrot.slane %v3868_v44, %v24312_v35  ;;  %22333 = vmatprep.subr.mxu1 %v29613_v37  ;;  %v4834_v13 = vrot.slane %v4820_v1, %v24312_v35 }
 0x2b7   : > { %v2507_v45 = vrot.slane %v29620_v23, %v24312_v35  ;;  %v4866_v6 = vrot.slane %v4852_v51, %v24312_v35  ;;  %5565 = vrot.lane.b32.xlu0 %v24597_v54, %s23772_s27  ;;  %v25223_v21 = vrot.slane %v21441_v17, %v24296_v25  ;;  %v1547_v60 = vcombine.low %v1482_v29, %v1498_v61 }
 0x2b8   : > { %v1548_v20 = vcombine.high %v1482_v29, %v1498_v61  ;;  %v21503_v15 = vcombine.low %v3859_v14, %v3866_v27  ;;  %v21505_v58 = vcombine.high %v3859_v14, %v3866_v27  ;;  %v25228_v44 = vrot.slane %v1531_v55, %v24312_v35  ;;  %v25245_v14 = vpop.permute.xlu0 %987  ;;  %5589 = vrot.lane.b32.xlu1 %v24597_v54, %s23771_s15 }
 0x2b9   : > { %v2519_v28 = vcombine.low %v2475_v57, %v2507_v45  ;;  %v2520_v31 = vcombine.high %v2475_v57, %v2507_v45  ;;  %v4873_v8 = vcombine.low %v4834_v13, %v4866_v6  ;;  %v4874_v52 = vcombine.high %v4834_v13, %v4866_v6 }
 0x2ba   : > { %v25231_v1 = vrot.slane %v1532_v4, %v24312_v35  ;;  %v21507_v51 = vcombine.low %v3875_v40, %v3882_v9  ;;  %v21509_v2 = vcombine.high %v3875_v40, %v3882_v9  ;;  %v3819_v29 = vcombine.low %v25075_v49, %v25111_v24  ;;  %v25273_v4 = vpop.permute.xlu1 %1011 }
 0x2bb   : > { %22321 = vmatmul.mubr.msk.f32.vlgmr.msra.gmra.mrb[30].mxu0 %vm7907_vm1, %v2519_v28  ;;  %22326 = vmatmul.mubr.msk.f32.vlgmr.msra.gmra.mrb[34].mxu1 %vm7907_vm1, %v2520_v31  ;;  %v3820_v17 = vcombine.high %v25075_v49, %v25111_v24  ;;  %v29621_v57 = vcombine.high %v25026_v12, %v25032_v46  ;;  %v25248_v27 = vrot.slane %v1547_v60, %v24312_v35 }
 0x2bc   : > { %22330 = vmatprep.mubr.msk.f32.mxu0 %vm23779_vm0, %v29613_v37  ;;  %22329 = vmatpush3.xpose.msk.msra.mxu0 %vm7907_vm1, %v4873_v8  ;;  %v25251_v23 = vrot.slane %v1548_v20, %v24312_v35  ;;  %v29622_v24 = vcombine.high %v25041_v36, %v25066_v10  ;;  %v25262_v46 = vrot.slane %v21503_v15, %v24296_v25  ;;  %v25302_v39 = vpop.permute.xlu0 %3219 }
 0x2bd   : > { %22334 = vmatpush3.xpose.msk.msra.mxu1 %vm7907_vm1, %v4874_v52  ;;  %v2482_v61 = vrot.slane %v29621_v57, %v24312_v35  ;;  %22335 = vmatprep.mubr.msk.f32.mxu1 %vm23779_vm0, %v29613_v37  ;;  %v25265_v49 = vrot.slane %v21505_v58, %v24296_v25  ;;  %v3835_v45 = vcombine.low %v25038_v16, %v25092_v5 }
 0x2be   : > { %v2514_v12 = vrot.slane %v29622_v24, %v24312_v35  ;;  %v3836_v55 = vcombine.high %v25038_v16, %v25092_v5  ;;  %5661 = vrot.lane.b32.xlu0 %v24597_v54, %s23776_s16  ;;  %v25276_v36 = vrot.slane %v21507_v51, %v24296_v25  ;;  %v25279_v10 = vrot.slane %v21509_v2, %v24296_v25 }
 0x2bf   : > { %22338 = vmatprep.subr.mxu0 %v29613_v37  ;;  %v3827_v28 = vrot.slane %v3819_v29, %v24296_v25  ;;  %v3834_v31 = vrot.slane %v3820_v17, %v24296_v25  ;;  %v3843_v16 = vrot.slane %v3835_v45, %v24296_v25  ;;  %22343 = vmatprep.subr.mxu1 %v29613_v37 }
 0x2c0   : > { %v2521_v40 = vcombine.low %v2482_v61, %v2514_v12  ;;  %v2522_v9 = vcombine.high %v2482_v61, %v2514_v12  ;;  %v3850_v5 = vrot.slane %v3836_v55, %v24296_v25  ;;  %v25291_v13 = vrot.slane %v21443_v53, %v24296_v25  ;;  %5613 = vrot.lane.b32.xlu1 %v24597_v54, %s23774_s22 }
 0x2c1   : > { %v25294_v6 = vrot.slane %v21445_v34, %v24296_v25  ;;  %v21440_v60 = vcombine.low %v25228_v44, %v25231_v1  ;;  %v3883_v20 = vcombine.low %v3827_v28, %v3843_v16  ;;  %v3884_v15 = vcombine.high %v3827_v28, %v3843_v16 }
 0x2c2   : > { %22331 = vmatmul.mubr.msk.f32.vlgmr.msra.gmra.mrb[32].mxu0 %vm7907_vm1, %v2521_v40  ;;  %22336 = vmatmul.mubr.msk.f32.vlgmr.msra.gmra.mrb[36].mxu1 %vm7907_vm1, %v2522_v9  ;;  %v3899_v58 = vcombine.low %v3834_v31, %v3850_v5  ;;  %v3900_v8 = vcombine.high %v3834_v31, %v3850_v5  ;;  %v21442_v41 = vcombine.high %v25228_v44, %v25231_v1  ;;  %v25320_v1 = vpop.permute.xlu1 %3243 }
 0x2c3   : > { %v21444_v53 = vcombine.low %v25248_v27, %v25251_v23  ;;  %v4939_v34 = vcombine.low %v25262_v46, %v25265_v49  ;;  %v4971_v52 = vcombine.low %v25276_v36, %v25279_v10  ;;  %5591 = vrot.lane.b32.xlu0 %v24579_v43, %s23771_s15  ;;  %v3891_v51 = vrot.slane %v3883_v20, %v24312_v35  ;;  %v25353_v20 = vpop.permute.xlu0 %3267 }
 0x2c4   : > { %v3898_v2 = vrot.slane %v3884_v15, %v24312_v35  ;;  %v3907_v29 = vrot.slane %v3899_v58, %v24312_v35  ;;  %v3914_v44 = vrot.slane %v3900_v8, %v24312_v35  ;;  %22340 = vmatprep.mubr.msk.f32.mxu0 %vm23779_vm0, %v29613_v37  ;;  %v2587_v17 = vcombine.low %v25200_v30, %v25223_v21 }
 0x2c5   : > { %v2588_v57 = vcombine.high %v25200_v30, %v25223_v21  ;;  %v2619_v61 = vcombine.low %v25291_v13, %v25294_v6  ;;  %v21446_v24 = vcombine.high %v25248_v27, %v25251_v23  ;;  %22345 = vmatprep.mubr.msk.f32.mxu1 %vm23779_vm0, %v29613_v37  ;;  %3369 = vrot.lane.b32.xlu1 %v24642_v33, %s23777_s2 }
 0x2c6   : > { %v21504_v12 = vcombine.low %v3891_v51, %v3898_v2  ;;  %v21506_v45 = vcombine.high %v3891_v51, %v3898_v2  ;;  %v21508_v55 = vcombine.low %v3907_v29, %v3914_v44  ;;  %v21510_v40 = vcombine.high %v3907_v29, %v3914_v44 }
 0x2c7   : > { %v25335_v9 = vrot.slane %v21440_v60, %v24296_v25  ;;  %v25338_v28 = vrot.slane %v21442_v41, %v24296_v25  ;;  %v1587_v31 = vcombine.low %v25131_v50, %v25177_v3  ;;  %v1588_v27 = vcombine.high %v25131_v50, %v25177_v3  ;;  %5639 = vrot.lane.b32.xlu0 %v24579_v43, %s23773_s14 }
 0x2c8   : > { %v2620_v23 = vcombine.high %v25291_v13, %v25294_v6  ;;  %v25349_v16 = vrot.slane %v21444_v53, %v24296_v25  ;;  %v4947_v5 = vrot.slane %v4939_v34, %v24312_v35  ;;  %v4979_v60 = vrot.slane %v4971_v52, %v24312_v35 }
 0x2c9   : > { %v25356_v15 = vrot.slane %v21446_v24, %v24296_v25  ;;  %v4940_v50 = vcombine.high %v25262_v46, %v25265_v49  ;;  %v1571_v3 = vcombine.low %v24293_v19, %v25163_v7  ;;  %v1572_v13 = vcombine.high %v24293_v19, %v25163_v7  ;;  %5637 = vrot.lane.b32.xlu1 %v24597_v54, %s23773_s14  ;;  %v25378_v46 = vpop.permute.xlu1 %3315 }
 0x2ca   : > { %v25365_v6 = vrot.slane %v21504_v12, %v24296_v25  ;;  %v25368_v58 = vrot.slane %v21506_v45, %v24296_v25  ;;  %v25371_v8 = vrot.slane %v21508_v55, %v24296_v25  ;;  %v25374_v41 = vrot.slane %v21510_v40, %v24296_v25 }
 0x2cb   : > { %v2603_v19 = vcombine.low %v25335_v9, %v25338_v28  ;;  %v4972_v7 = vcombine.high %v25276_v36, %v25279_v10  ;;  %v1595_v49 = vrot.slane %v1587_v31, %v24296_v25  ;;  %v1602_v53 = vrot.slane %v1588_v27, %v24296_v25  ;;  %5711 = vrot.lane.b32.xlu0 %v24579_v43, %s23777_s2 }
 0x2cc   : > { %v5003_v34 = vcombine.low %v4947_v5, %v4979_v60  ;;  %v5004_v52 = vcombine.high %v4947_v5, %v4979_v60  ;;  %v2595_v51 = vrot.slane %v2587_v17, %v24312_v35  ;;  %v2627_v2 = vrot.slane %v2619_v61, %v24312_v35  ;;  %v25403_v61 = vpop.permute.xlu0 %3291 }
 0x2cd   : > { %v2604_v29 = vcombine.high %v25335_v9, %v25338_v28  ;;  %v2635_v44 = vcombine.low %v25349_v16, %v25356_v15  ;;  %v1579_v36 = vrot.slane %v1571_v3, %v24296_v25  ;;  %v1586_v10 = vrot.slane %v1572_v13, %v24296_v25  ;;  %5685 = vrot.lane.b32.xlu1 %v24597_v54, %s23775_s24  ;;  %v25412_v60 = vpop.permute.xlu1 %3363 }
 0x2ce   : > { %v4955_v24 = vcombine.low %v25365_v6, %v25368_v58  ;;  %v4987_v12 = vcombine.low %v25371_v8, %v25374_v41  ;;  %22339 = vmatpush3.xpose.msk.msra.mxu0 %vm7907_vm1, %v5003_v34  ;;  %22344 = vmatpush3.xpose.msk.msra.mxu1 %vm7907_vm1, %v5004_v52  ;;  %v4954_v17 = vrot.slane %v4940_v50, %v24312_v35 }
 0x2cf   : > { %v2651_v45 = vcombine.low %v2595_v51, %v2627_v2  ;;  %v2652_v55 = vcombine.high %v2595_v51, %v2627_v2  ;;  %22348 = vmatprep.subr.mxu0 %v29613_v37  ;;  %v4986_v40 = vrot.slane %v4972_v7, %v24312_v35  ;;  %v1635_v31 = vcombine.low %v1579_v36, %v1595_v49 }
 0x2d0   : > { %v1636_v27 = vcombine.high %v1579_v36, %v1595_v49  ;;  %v1651_v5 = vcombine.low %v1586_v10, %v1602_v53  ;;  %22353 = vmatprep.subr.mxu1 %v29613_v37  ;;  %5569 = vrot.lane.b32.xlu0 %v24583_v32, %s23772_s27  ;;  %v2602_v13 = vrot.slane %v2588_v57, %v24312_v35  ;;  %v25440_v51 = vpop.permute.xlu0 %3339 }
 0x2d1   : > { %22341 = vmatmul.mubr.msk.f32.vlgmr.msra.gmra.mrb[34].mxu0 %vm7907_vm1, %v2651_v45  ;;  %22346 = vmatmul.mubr.msk.f32.vlgmr.msra.gmra.mrb[38].mxu1 %vm7907_vm1, %v2652_v55  ;;  %v5005_v50 = vcombine.low %v4954_v17, %v4986_v40  ;;  %v5006_v3 = vcombine.high %v4954_v17, %v4986_v40  ;;  %v1603_v7 = vcombine.low %v25211_v59, %v25245_v14  ;;  %v25453_v45 = vpop.permute.xlu1 %869 }
 0x2d2   : > { %v1604_v49 = vcombine.high %v25211_v59, %v25245_v14  ;;  %v1652_v34 = vcombine.high %v1586_v10, %v1602_v53  ;;  %22350 = vmatprep.mubr.msk.f32.mxu0 %vm23779_vm0, %v29613_v37  ;;  %22355 = vmatprep.mubr.msk.f32.mxu1 %vm23779_vm0, %v29613_v37  ;;  %v2634_v30 = vrot.slane %v2620_v23, %v24312_v35 }
 0x2d3   : > { %22349 = vmatpush3.xpose.msk.msra.mxu0 %vm7907_vm1, %v5005_v50  ;;  %22354 = vmatpush3.xpose.msk.msra.mxu1 %vm7907_vm1, %v5006_v3  ;;  %v4963_v21 = vrot.slane %v4955_v24, %v24312_v35  ;;  %v4995_v57 = vrot.slane %v4987_v12, %v24312_v35  ;;  %v1643_v52 = vrot.slane %v1635_v31, %v24312_v35 }
 0x2d4   : > { %v1650_v59 = vrot.slane %v1636_v27, %v24312_v35  ;;  %v1659_v14 = vrot.slane %v1651_v5, %v24312_v35  ;;  %v1619_v53 = vcombine.low %v25220_v11, %v25273_v4  ;;  %5709 = vrot.lane.b32.xlu1 %v24597_v54, %s23777_s2  ;;  %v2653_v2 = vcombine.low %v2602_v13, %v2634_v30 }
 0x2d5   : > { %v2654_v23 = vcombine.high %v2602_v13, %v2634_v30  ;;  %22358 = vmatprep.subr.mxu0 %v29613_v37  ;;  %22363 = vmatprep.subr.mxu1 %v29613_v37  ;;  %v5007_v36 = vcombine.low %v4963_v21, %v4995_v57  ;;  %v1666_v10 = vrot.slane %v1652_v34, %v24312_v35 }
 0x2d6   : > { %v3939_v24 = vcombine.low %v25302_v39, %v25353_v20  ;;  %v3940_v12 = vcombine.high %v25302_v39, %v25353_v20  ;;  %v1620_v17 = vcombine.high %v25220_v11, %v25273_v4  ;;  %5665 = vrot.lane.b32.xlu0 %v24583_v32, %s23776_s16  ;;  %22351 = vmatmul.mubr.msk.f32.vlgmr.msra.gmra.mrb[36].mxu0 %vm7907_vm1, %v2653_v2 }
 0x2d7   : > { %22356 = vmatmul.mubr.msk.f32.vlgmr.msra.gmra.mrb[40].mxu1 %vm7907_vm1, %v2654_v23  ;;  %v5008_v55 = vcombine.high %v4963_v21, %v4995_v57  ;;  %v3923_v40 = vcombine.low %v24319_v47, %v25320_v1  ;;  %v3924_v31 = vcombine.high %v24319_v47, %v25320_v1  ;;  %v2636_v39 = vcombine.high %v25349_v16, %v25356_v15 }
 0x2d8   : > { %v1611_v11 = vrot.slane %v1603_v7, %v24296_v25  ;;  %v21447_v4 = vcombine.low %v1643_v52, %v1650_v59  ;;  %v21449_v20 = vcombine.high %v1643_v52, %v1650_v59  ;;  %22359 = vmatpush3.xpose.msk.msra.mxu0 %vm7907_vm1, %v5007_v36  ;;  %v1627_v27 = vrot.slane %v1619_v53, %v24296_v25  ;;  %v25479_v7 = vpop.permute.xlu0 %893 }
 0x2d9   : > { %22364 = vmatpush3.xpose.msk.msra.mxu1 %vm7907_vm1, %v5008_v55  ;;  %v3931_v5 = vrot.slane %v3923_v40, %v24296_v25  ;;  %v3938_v50 = vrot.slane %v3924_v31, %v24296_v25  ;;  %22360 = vmatprep.mubr.msk.f32.mxu0 %vm23779_vm0, %v29613_v37  ;;  %v4956_v47 = vcombine.high %v25365_v6, %v25368_v58 }
 0x2da   : > { %v4988_v1 = vcombine.high %v25371_v8, %v25374_v41  ;;  %v1618_v3 = vrot.slane %v1604_v49, %v24296_v25  ;;  %v3947_v13 = vrot.slane %v3939_v24, %v24296_v25  ;;  %22365 = vmatprep.mubr.msk.f32.mxu1 %vm23779_vm0, %v29613_v37  ;;  %v21451_v34 = vcombine.low %v1659_v14, %v1666_v10  ;;  %v25493_v49 = vpop.permute.xlu1 %917 }
 0x2db   : > { %v21453_v30 = vcombine.high %v1659_v14, %v1666_v10  ;;  %v3954_v21 = vrot.slane %v3940_v12, %v24296_v25  ;;  %v1634_v57 = vrot.slane %v1620_v17, %v24296_v25  ;;  %5567 = vrot.lane.b32.xlu1 %v24579_v43, %s23772_s27  ;;  %v25486_v6 = vrot.slane %v21447_v4, %v24296_v25 }
 0x2dc   : > { %v3987_v58 = vcombine.low %v3931_v5, %v3947_v13  ;;  %v3988_v8 = vcombine.high %v3931_v5, %v3947_v13  ;;  %v2611_v41 = vrot.slane %v2603_v19, %v24312_v35  ;;  %22368 = vmatprep.subr.mxu0 %v29613_v37  ;;  %v25496_v52 = vrot.slane %v21449_v20, %v24296_v25 }
 0x2dd   : > { %v1667_v59 = vcombine.low %v1611_v11, %v1627_v27  ;;  %v1668_v14 = vcombine.high %v1611_v11, %v1627_v27  ;;  %v4003_v53 = vcombine.low %v3938_v50, %v3954_v21  ;;  %22373 = vmatprep.subr.mxu1 %v29613_v37  ;;  %v4004_v2 = vcombine.high %v3938_v50, %v3954_v21  ;;  %v25515_v11 = vpop.permute.xlu0 %941 }
 0x2de   : > { %v2643_v23 = vrot.slane %v2635_v44, %v24312_v35  ;;  %v4970_v19 = vrot.slane %v4956_v47, %v24312_v35  ;;  %v5002_v36 = vrot.slane %v4988_v1, %v24312_v35  ;;  %v25506_v10 = vrot.slane %v21451_v34, %v24296_v25 }
 0x2df   : > { %v25509_v24 = vrot.slane %v21453_v30, %v24296_v25  ;;  %v1683_v12 = vcombine.low %v1618_v3, %v1634_v57  ;;  %v1684_v17 = vcombine.high %v1618_v3, %v1634_v57  ;;  %5615 = vrot.lane.b32.xlu1 %v24579_v43, %s23774_s22  ;;  %v3995_v55 = vrot.slane %v3987_v58, %v24312_v35  ;;  %v25531_v3 = vpop.permute.xlu1 %965 }
 0x2e0   : > { %v4002_v40 = vrot.slane %v3988_v8, %v24312_v35  ;;  %v2655_v44 = vcombine.low %v2611_v41, %v2643_v23  ;;  %v2656_v31 = vcombine.high %v2611_v41, %v2643_v23  ;;  %v25518_v4 = vrot.slane %v1667_v59, %v24312_v35 }
 0x2e1   : > { %v25521_v20 = vrot.slane %v1668_v14, %v24312_v35  ;;  %v4011_v27 = vrot.slane %v4003_v53, %v24312_v35  ;;  %v5009_v5 = vcombine.low %v4970_v19, %v5002_v36  ;;  %v4018_v50 = vrot.slane %v4004_v2, %v24312_v35  ;;  %v25561_v15 = vpop.permute.xlu0 %989 }
 0x2e2   : > { %22361 = vmatmul.mubr.msk.f32.vlgmr.msra.gmra.mrb[38].mxu0 %vm7907_vm1, %v2655_v44  ;;  %22366 = vmatmul.mubr.msk.f32.vlgmr.msra.gmra.mrb[42].mxu1 %vm7907_vm1, %v2656_v31  ;;  %v5010_v47 = vcombine.high %v4970_v19, %v5002_v36  ;;  %v2618_v1 = vrot.slane %v2604_v29, %v24312_v35  ;;  %v25534_v13 = vrot.slane %v1683_v12, %v24312_v35 }
 0x2e3   : > { %v25537_v34 = vrot.slane %v1684_v17, %v24312_v35  ;;  %22369 = vmatpush3.xpose.msk.msra.mxu0 %vm7907_vm1, %v5009_v5  ;;  %v3955_v30 = vcombine.low %v25403_v61, %v25440_v51  ;;  %v3956_v21 = vcombine.high %v25403_v61, %v25440_v51  ;;  %v21511_v57 = vcombine.low %v3995_v55, %v4002_v40  ;;  %v25579_v23 = vpop.permute.xlu1 %1013 }
 0x2e4   : > { %v21513_v58 = vcombine.high %v3995_v55, %v4002_v40  ;;  %22374 = vmatpush3.xpose.msk.msra.mxu1 %vm7907_vm1, %v5010_v47  ;;  %22370 = vmatprep.mubr.msk.f32.mxu0 %vm23779_vm0, %v29613_v37  ;;  %v2650_v9 = vrot.slane %v2636_v39, %v24312_v35  ;;  %v21448_v28 = vcombine.low %v25518_v4, %v25521_v20  ;;  %v25583_v55 = vpop.f32.mrb[4].mxu1 }
 0x2e5   : > { %22375 = vmatprep.mubr.msk.f32.mxu1 %vm23779_vm0, %v29613_v37  ;;  %v3971_v29 = vcombine.low %v25378_v46, %v25412_v60  ;;  %v3972_v61 = vcombine.high %v25378_v46, %v25412_v60  ;;  %5663 = vrot.lane.b32.xlu1 %v24579_v43, %s23776_s16  ;;  %v21515_v51 = vcombine.low %v4011_v27, %v4018_v50 }
 0x2e6   : > { %v21517_v8 = vcombine.high %v4011_v27, %v4018_v50  ;;  %v2657_v41 = vcombine.low %v2618_v1, %v2650_v9  ;;  %v2658_v16 = vcombine.high %v2618_v1, %v2650_v9  ;;  %22378 = vmatprep.subr.mxu0 %v29613_v37  ;;  %v3963_v39 = vrot.slane %v3955_v30, %v24296_v25 }
 0x2e7   : > { %v3970_v59 = vrot.slane %v3956_v21, %v24296_v25  ;;  %v3979_v14 = vrot.slane %v3971_v29, %v24296_v25  ;;  %v3986_v53 = vrot.slane %v3972_v61, %v24296_v25  ;;  %22383 = vmatprep.subr.mxu1 %v29613_v37  ;;  %v21450_v46 = vcombine.high %v25518_v4, %v25521_v20  ;;  %v25593_v20 = vpop.f32.mrb[5].mxu1 }
 0x2e8   : > { %v25572_v60 = vrot.slane %v21511_v57, %v24296_v25  ;;  %v25575_v2 = vrot.slane %v21513_v58, %v24296_v25  ;;  %22371 = vmatmul.mubr.msk.f32.vlgmr.msra.gmra.mrb[40].mxu0 %vm7907_vm1, %v2657_v41  ;;  %22376 = vmatmul.mubr.msk.f32.vlgmr.msra.gmra.mrb[44].mxu1 %vm7907_vm1, %v2658_v16  ;;  %29623 = vst [vmem:[#allocation35_spill] sm:$0xff] %v25583_v55  ;;  %29624 = vst [vmem:[#allocation36_spill] sm:$0xff] %v25593_v20  ;;  %v25601_v1 = vpop.f32.mrb[6].mxu1  ;;  %v25613_v57 = vpop.permute.xlu0 %3221 }
 0x2e9   : > { %v4019_v19 = vcombine.low %v3963_v39, %v3979_v14  ;;  %v4020_v36 = vcombine.high %v3963_v39, %v3979_v14  ;;  %v4035_v12 = vcombine.low %v3970_v59, %v3986_v53  ;;  %v4036_v17 = vcombine.high %v3970_v59, %v3986_v53  ;;  %5687 = vrot.lane.b32.xlu1 %v24579_v43, %s23775_s24  ;;  %v25615_v58 = vpop.f32.mrb[7].mxu1  ;;  %v25627_v41 = vpop.permute.xlu1 %3245 }
 0x2ea   : > { %v21452_v40 = vcombine.low %v25534_v13, %v25537_v34  ;;  %v21454_v44 = vcombine.high %v25534_v13, %v25537_v34  ;;  %v5051_v31 = vrot.slane %v21515_v51, %v24296_v25  ;;  %v5067_v4 = vrot.slane %v21517_v8, %v24296_v25  ;;  %22380 = vmatprep.mubr.msk.f32.mxu0 %vm23779_vm0, %v29613_v37 }
 0x2eb   : > { %v4027_v27 = vrot.slane %v4019_v19, %v24312_v35  ;;  %v4034_v5 = vrot.slane %v4020_v36, %v24312_v35  ;;  %v4043_v50 = vrot.slane %v4035_v12, %v24312_v35  ;;  %v4050_v47 = vrot.slane %v4036_v17, %v24312_v35  ;;  %22385 = vmatprep.mubr.msk.f32.mxu1 %vm23779_vm0, %v29613_v37 }
 0x2ec   : > { %29625 = vst [vmem:[#allocation37_spill] sm:$0xff] %v25601_v1  ;;  %v2723_v13 = vcombine.low %v25486_v6, %v25496_v52  ;;  %v2724_v34 = vcombine.high %v25486_v6, %v25496_v52  ;;  %v25608_v30 = vrot.slane %v21448_v28, %v24296_v25  ;;  %v25611_v21 = vrot.slane %v21450_v46, %v24296_v25 }
 0x2ed   : > { %29626 = vst [vmem:[#allocation38_spill] sm:$0xff] %v25615_v58  ;;  %v2755_v9 = vcombine.low %v25506_v10, %v25509_v24  ;;  %v2756_v29 = vcombine.high %v25506_v10, %v25509_v24  ;;  %v5075_v61 = vcombine.low %v25572_v60, %v25575_v2  ;;  %v1723_v6 = vcombine.low %v25453_v45, %v25493_v49 }
 0x2ee   : > { %5593 = vrot.lane.b32.xlu1 %v24583_v32, %s23771_s15  ;;  %v21512_v52 = vcombine.low %v4027_v27, %v4034_v5  ;;  %v21514_v28 = vcombine.high %v4027_v27, %v4034_v5  ;;  %v21516_v51 = vcombine.low %v4043_v50, %v4050_v47  ;;  %v21518_v8 = vcombine.high %v4043_v50, %v4050_v47  ;;  %v25676_v47 = vpop.permute.xlu1 %3317 }
 0x2ef   : > { %v25630_v16 = vrot.slane %v21452_v40, %v24296_v25  ;;  %v25633_v10 = vrot.slane %v21454_v44, %v24296_v25  ;;  %v5107_v24 = vcombine.low %v5051_v31, %v5067_v4  ;;  %v1707_v39 = vcombine.low %v24341_v18, %v25479_v7 }
 0x2f0   : > { %v2739_v59 = vcombine.low %v25608_v30, %v25611_v21  ;;  %v2740_v14 = vcombine.high %v25608_v30, %v25611_v21  ;;  %v5076_v53 = vcombine.high %v25572_v60, %v25575_v2  ;;  %v1708_v46 = vcombine.high %v24341_v18, %v25479_v7 }
 0x2f1   : > { %v5108_v19 = vcombine.high %v5051_v31, %v5067_v4  ;;  %v1724_v36 = vcombine.high %v25453_v45, %v25493_v49  ;;  %v1731_v12 = vrot.slane %v1723_v6, %v24296_v25  ;;  %v5083_v17 = vrot.slane %v5075_v61, %v24312_v35  ;;  %v25663_v45 = vpop.permute.xlu0 %3269 }
 0x2f2   : > { %5617 = vrot.lane.b32.xlu1 %v24583_v32, %s23774_s22  ;;  %v25652_v40 = vrot.slane %v21512_v52, %v24296_v25  ;;  %v25655_v44 = vrot.slane %v21514_v28, %v24296_v25  ;;  %v25658_v60 = vrot.slane %v21516_v51, %v24296_v25  ;;  %v25661_v18 = vrot.slane %v21518_v8, %v24296_v25 }
 0x2f3   : > { %v2771_v7 = vcombine.low %v25630_v16, %v25633_v10  ;;  %v2772_v49 = vcombine.high %v25630_v16, %v25633_v10  ;;  %v1715_v2 = vrot.slane %v1707_v39, %v24296_v25  ;;  %v5115_v31 = vrot.slane %v5107_v24, %v24312_v35 }
 0x2f4   : > { %v1722_v4 = vrot.slane %v1708_v46, %v24296_v25  ;;  %v1739_v27 = vcombine.low %v25515_v11, %v25561_v15  ;;  %v2731_v5 = vrot.slane %v2723_v13, %v24312_v35  ;;  %v2763_v50 = vrot.slane %v2755_v9, %v24312_v35 }
 0x2f5   : > { %v1738_v61 = vrot.slane %v1724_v36, %v24296_v25  ;;  %v5139_v6 = vcombine.low %v5083_v17, %v5115_v31  ;;  %v5140_v52 = vcombine.high %v5083_v17, %v5115_v31  ;;  %v5090_v28 = vrot.slane %v5076_v53, %v24312_v35  ;;  %v25695_v31 = vpop.permute.xlu0 %3293 }
 0x2f6   : > { %5641 = vrot.lane.b32.xlu1 %v24583_v32, %s23773_s14  ;;  %v5091_v51 = vcombine.low %v25652_v40, %v25655_v44  ;;  %v5123_v8 = vcombine.low %v25658_v60, %v25661_v18  ;;  %v1771_v13 = vcombine.low %v1715_v2, %v1731_v12  ;;  %v5122_v9 = vrot.slane %v5108_v19, %v24312_v35 }
 0x2f7   : > { %v1772_v24 = vcombine.high %v1715_v2, %v1731_v12  ;;  %22379 = vmatpush3.xpose.msk.msra.mxu0 %vm7907_vm1, %v5139_v6  ;;  %22384 = vmatpush3.xpose.msk.msra.mxu1 %vm7907_vm1, %v5140_v52  ;;  %v2738_v39 = vrot.slane %v2724_v34, %v24312_v35  ;;  %v2770_v53 = vrot.slane %v2756_v29, %v24312_v35  ;;  %v25706_v29 = vpop.permute.xlu1 %3365 }
 0x2f8   : > { %v1740_v46 = vcombine.high %v25515_v11, %v25561_v15  ;;  %v2787_v36 = vcombine.low %v2731_v5, %v2763_v50  ;;  %v2788_v17 = vcombine.high %v2731_v5, %v2763_v50  ;;  %22388 = vmatprep.subr.mxu0 %v29613_v37  ;;  %22393 = vmatprep.subr.mxu1 %v29613_v37 }
 0x2f9   : > { %v1787_v19 = vcombine.low %v1722_v4, %v1738_v61  ;;  %v1788_v12 = vcombine.high %v1722_v4, %v1738_v61  ;;  %v5141_v2 = vcombine.low %v5090_v28, %v5122_v9  ;;  %v5142_v6 = vcombine.high %v5090_v28, %v5122_v9 }
 0x2fa   : > { %5689 = vrot.lane.b32.xlu1 %v24583_v32, %s23775_s24  ;;  %v25700_v34 = vrot.slane %v1771_v13, %v24312_v35  ;;  %22381 = vmatmul.mubr.msk.f32.vlgmr.msra.gmra.mrb[42].mxu0 %vm7907_vm1, %v2787_v36  ;;  %v5099_v11 = vrot.slane %v5091_v51, %v24312_v35  ;;  %v5131_v15 = vrot.slane %v5123_v8, %v24312_v35 }
 0x2fb   : > { %22386 = vmatmul.mubr.msk.f32.vlgmr.msra.gmra.mrb[46].mxu1 %vm7907_vm1, %v2788_v17  ;;  %v25709_v4 = vrot.slane %v1772_v24, %v24312_v35  ;;  %22389 = vmatpush3.xpose.msk.msra.mxu0 %vm7907_vm1, %v5141_v2  ;;  %v4075_v5 = vcombine.low %v25613_v57, %v25663_v45  ;;  %v2789_v50 = vcombine.low %v2738_v39, %v2770_v53  ;;  %v25756_v17 = vpop.permute.xlu1 %871 }
 0x2fc   : > { %22394 = vmatpush3.xpose.msk.msra.mxu1 %vm7907_vm1, %v5142_v6  ;;  %22390 = vmatprep.mubr.msk.f32.mxu0 %vm23779_vm0, %v29613_v37  ;;  %v2790_v61 = vcombine.high %v2738_v39, %v2770_v53  ;;  %v5143_v52 = vcombine.low %v5099_v11, %v5131_v15  ;;  %v5144_v28 = vcombine.high %v5099_v11, %v5131_v15  ;;  %v25738_v39 = vpop.permute.xlu0 %3341 }
 0x2fd   : > { %22395 = vmatprep.mubr.msk.f32.mxu1 %vm23779_vm0, %v29613_v37  ;;  %v25720_v51 = vrot.slane %v1739_v27, %v24296_v25  ;;  %v25723_v8 = vrot.slane %v1740_v46, %v24296_v25  ;;  %v4076_v13 = vcombine.high %v25613_v57, %v25663_v45  ;;  %22398 = vmatprep.subr.mxu0 %v29613_v37 }
 0x2fe   : > { %22403 = vmatprep.subr.mxu1 %v29613_v37  ;;  %v25730_v9 = vrot.slane %v1787_v19, %v24312_v35  ;;  %22391 = vmatmul.mubr.msk.f32.vlgmr.msra.gmra.mrb[44].mxu0 %vm7907_vm1, %v2789_v50  ;;  %v4059_v27 = vcombine.low %v24530_v42, %v25627_v41  ;;  %v4060_v24 = vcombine.high %v24530_v42, %v25627_v41 }
 0x2ff   : > { %22396 = vmatmul.mubr.msk.f32.vlgmr.msra.gmra.mrb[48].mxu1 %vm7907_vm1, %v2790_v61  ;;  %v25741_v57 = vrot.slane %v1788_v12, %v24312_v35  ;;  %v21455_v45 = vcombine.low %v25700_v34, %v25709_v4  ;;  %v21457_v53 = vcombine.high %v25700_v34, %v25709_v4  ;;  %22399 = vmatpush3.xpose.msk.msra.mxu0 %vm7907_vm1, %v5143_v52 }
 0x300   : > { %22404 = vmatpush3.xpose.msk.msra.mxu1 %vm7907_vm1, %v5144_v28  ;;  %v4083_v46 = vrot.slane %v4075_v5, %v24296_v25  ;;  %v1755_v42 = vcombine.low %v25531_v3, %v25579_v23  ;;  %v4067_v41 = vrot.slane %v4059_v27, %v24296_v25  ;;  %v4074_v36 = vrot.slane %v4060_v24, %v24296_v25  ;;  %v25786_v52 = vpop.permute.xlu0 %895 }
 0x301   : > { %22400 = vmatprep.mubr.msk.f32.mxu0 %vm23779_vm0, %v29613_v37  ;;  %v4090_v19 = vrot.slane %v4076_v13, %v24296_v25  ;;  %22405 = vmatprep.mubr.msk.f32.mxu1 %vm23779_vm0, %v29613_v37  ;;  %v2747_v12 = vrot.slane %v2739_v59, %v24312_v35  ;;  %v2779_v2 = vrot.slane %v2771_v7, %v24312_v35 }
 0x302   : > { %22408 = vmatprep.subr.mxu0 %v29613_v37  ;;  %v5092_v6 = vcombine.high %v25652_v40, %v25655_v44  ;;  %v5124_v11 = vcombine.high %v25658_v60, %v25661_v18  ;;  %v4123_v15 = vcombine.low %v4067_v41, %v4083_v46  ;;  %v4124_v5 = vcombine.high %v4067_v41, %v4083_v46 }
 0x303   : > { %22413 = vmatprep.subr.mxu1 %v29613_v37  ;;  %v21459_v59 = vcombine.low %v25730_v9, %v25741_v57  ;;  %v1756_v50 = vcombine.high %v25531_v3, %v25579_v23  ;;  %v4139_v61 = vcombine.low %v4074_v36, %v4090_v19  ;;  %v4140_v7 = vcombine.high %v4074_v36, %v4090_v19  ;;  %v25792_v36 = vpop.permute.xlu1 %919 }
 0x304   : > { %5713 = vrot.lane.b32.xlu1 %v24583_v32, %s23777_s2  ;;  %v21461_v40 = vcombine.high %v25730_v9, %v25741_v57  ;;  %v1763_v44 = vrot.slane %v1755_v42, %v24296_v25  ;;  %v4131_v60 = vrot.slane %v4123_v15, %v24312_v35  ;;  %v4138_v18 = vrot.slane %v4124_v5, %v24312_v35 }
 0x305   : > { %v4147_v28 = vrot.slane %v4139_v61, %v24312_v35  ;;  %v4154_v3 = vrot.slane %v4140_v7, %v24312_v35  ;;  %v2791_v23 = vcombine.low %v2747_v12, %v2779_v2  ;;  %v2792_v13 = vcombine.high %v2747_v12, %v2779_v2 }
 0x306   : > { %v21519_v27 = vcombine.low %v4131_v60, %v4138_v18  ;;  %v21521_v24 = vcombine.high %v4131_v60, %v4138_v18  ;;  %v5106_v46 = vrot.slane %v5092_v6, %v24312_v35  ;;  %v5138_v41 = vrot.slane %v5124_v11, %v24312_v35 }
 0x307   : > { %v1770_v42 = vrot.slane %v1756_v50, %v24296_v25  ;;  %v21523_v19 = vcombine.low %v4147_v28, %v4154_v3  ;;  %v21525_v15 = vcombine.high %v4147_v28, %v4154_v3  ;;  %22401 = vmatmul.mubr.msk.f32.vlgmr.msra.gmra.mrb[46].mxu0 %vm7907_vm1, %v2791_v23  ;;  %22406 = vmatmul.mubr.msk.f32.vlgmr.msra.gmra.mrb[50].mxu1 %vm7907_vm1, %v2792_v13  ;;  %v25827_v28 = vpop.permute.xlu0 %943  ;;  %v25849_v16 = vpop.permute.xlu1 %967 }
 0x308   : > { %v25798_v5 = vrot.slane %v21455_v45, %v24296_v25  ;;  %v1803_v12 = vcombine.low %v25720_v51, %v1763_v44  ;;  %v5145_v2 = vcombine.low %v5106_v46, %v5138_v41  ;;  %v5146_v61 = vcombine.high %v5106_v46, %v5138_v41  ;;  %22410 = vmatprep.mubr.msk.f32.mxu0 %vm23779_vm0, %v29613_v37 }
 0x309   : > { %v25804_v6 = vrot.slane %v21519_v27, %v24296_v25  ;;  %v25807_v11 = vrot.slane %v21521_v24, %v24296_v25  ;;  %v25810_v50 = vrot.slane %v21523_v19, %v24296_v25  ;;  %v25813_v7 = vrot.slane %v21525_v15, %v24296_v25  ;;  %22415 = vmatprep.mubr.msk.f32.mxu1 %vm23779_vm0, %v29613_v37 }
 0x30a   : > { %22409 = vmatpush3.xpose.msk.msra.mxu0 %vm7907_vm1, %v5145_v2  ;;  %22414 = vmatpush3.xpose.msk.msra.mxu1 %vm7907_vm1, %v5146_v61  ;;  %v4091_v45 = vcombine.low %v25695_v31, %v25738_v39  ;;  %v4092_v60 = vcombine.high %v25695_v31, %v25738_v39  ;;  %v2754_v18 = vrot.slane %v2740_v14, %v24312_v35 }
 0x30b   : > { %v1804_v3 = vcombine.high %v25720_v51, %v1763_v44  ;;  %v1819_v23 = vcombine.low %v25723_v8, %v1770_v42  ;;  %v1820_v13 = vcombine.high %v25723_v8, %v1770_v42  ;;  %v2786_v27 = vrot.slane %v2772_v49, %v24312_v35  ;;  %22418 = vmatprep.subr.mxu0 %v29613_v37  ;;  %v25864_v19 = vpop.permute.xlu0 %991 }
 0x30c   : > { %v25841_v30 = vrot.slane %v21457_v53, %v24296_v25  ;;  %v1811_v21 = vrot.slane %v1803_v12, %v24312_v35  ;;  %v4107_v14 = vcombine.low %v25676_v47, %v25706_v29  ;;  %v4108_v31 = vcombine.high %v25676_v47, %v25706_v29  ;;  %22423 = vmatprep.subr.mxu1 %v29613_v37 }
 0x30d   : > { %v5211_v10 = vcombine.low %v25804_v6, %v25807_v11  ;;  %v5243_v49 = vcombine.low %v25810_v50, %v25813_v7  ;;  %v2793_v34 = vcombine.low %v2754_v18, %v2786_v27  ;;  %v2794_v4 = vcombine.high %v2754_v18, %v2786_v27 }
 0x30e   : > { %v4099_v51 = vrot.slane %v4091_v45, %v24296_v25  ;;  %v4106_v8 = vrot.slane %v4092_v60, %v24296_v25  ;;  %v4115_v39 = vrot.slane %v4107_v14, %v24296_v25  ;;  %v4122_v47 = vrot.slane %v4108_v31, %v24296_v25 }
 0x30f   : > { %v1818_v29 = vrot.slane %v1804_v3, %v24312_v35  ;;  %v1827_v53 = vrot.slane %v1819_v23, %v24312_v35  ;;  %v1834_v44 = vrot.slane %v1820_v13, %v24312_v35  ;;  %22411 = vmatmul.mubr.msk.f32.vlgmr.msra.gmra.mrb[48].mxu0 %vm7907_vm1, %v2793_v34  ;;  %22416 = vmatmul.mubr.msk.f32.vlgmr.msra.gmra.mrb[52].mxu1 %vm7907_vm1, %v2794_v4  ;;  %v25888_v3 = vpop.permute.xlu1 %1015 }
 0x310   : > { %v4155_v24 = vcombine.low %v4099_v51, %v4115_v39  ;;  %v4156_v46 = vcombine.high %v4099_v51, %v4115_v39  ;;  %v4171_v41 = vcombine.low %v4106_v8, %v4122_v47  ;;  %v4172_v42 = vcombine.high %v4106_v8, %v4122_v47  ;;  %22420 = vmatprep.mubr.msk.f32.mxu0 %vm23779_vm0, %v29613_v37  ;;  %v25903_v39 = vpop.permute.xlu0 %3223 }
 0x311   : > { %v25872_v15 = vrot.slane %v21459_v59, %v24296_v25  ;;  %v25878_v12 = vrot.slane %v21461_v40, %v24296_v25  ;;  %v5219_v2 = vrot.slane %v5211_v10, %v24312_v35  ;;  %v5251_v61 = vrot.slane %v5243_v49, %v24312_v35  ;;  %22425 = vmatprep.mubr.msk.f32.mxu1 %vm23779_vm0, %v29613_v37 }
 0x312   : > { %v4163_v45 = vrot.slane %v4155_v24, %v24312_v35  ;;  %v4170_v60 = vrot.slane %v4156_v46, %v24312_v35  ;;  %v4179_v59 = vrot.slane %v4171_v41, %v24312_v35  ;;  %v4186_v18 = vrot.slane %v4172_v42, %v24312_v35 }
 0x313   : > { %v21456_v9 = vcombine.low %v1811_v21, %v1818_v29  ;;  %v21458_v57 = vcombine.high %v1811_v21, %v1818_v29  ;;  %v21460_v40 = vcombine.low %v1827_v53, %v1834_v44  ;;  %v5275_v23 = vcombine.low %v5219_v2, %v5251_v61  ;;  %v25928_v41 = vpop.permute.xlu1 %3247 }
 0x314   : > { %v21462_v13 = vcombine.high %v1827_v53, %v1834_v44  ;;  %v21520_v27 = vcombine.low %v4163_v45, %v4170_v60  ;;  %v21522_v14 = vcombine.high %v4163_v45, %v4170_v60  ;;  %v5731_v31 = vcombine.low %v24154_v0, %v24361_v38 }
 0x315   : > { %v21524_v49 = vcombine.low %v4179_v59, %v4186_v18  ;;  %v21526_v34 = vcombine.high %v4179_v59, %v4186_v18  ;;  %22419 = vmatpush3.xpose.msk.msra.mxu0 %vm7907_vm1, %v5275_v23  ;;  %v5747_v4 = vcombine.low %v24363_v48, %v24393_v26  ;;  %v2859_v21 = vcombine.low %v25798_v5, %v25841_v30 }
 0x316   : > { %v2891_v51 = vcombine.low %v25872_v15, %v25878_v12  ;;  %v5212_v8 = vcombine.high %v25804_v6, %v25807_v11  ;;  %22428 = vmatprep.subr.mxu0 %v29613_v37  ;;  %v25907_v47 = vrot.slane %v21456_v9, %v24296_v25  ;;  %v25910_v29 = vrot.slane %v21458_v57, %v24296_v25 }
 0x317   : > { %v25913_v53 = vrot.slane %v21460_v40, %v24296_v25  ;;  %v1859_v44 = vcombine.low %v25756_v17, %v25792_v36  ;;  %v25918_v24 = vrot.slane %v21462_v13, %v24296_v25  ;;  %v5244_v6 = vcombine.high %v25810_v50, %v25813_v7 }
 0x318   : > { %v25923_v11 = vrot.slane %v21520_v27, %v24296_v25  ;;  %v25926_v46 = vrot.slane %v21522_v14, %v24296_v25  ;;  %v1843_v42 = vcombine.low %v24602_v22, %v25786_v52  ;;  %v25933_v45 = vrot.slane %v21524_v49, %v24296_v25 }
 0x319   : > { %v25936_v60 = vrot.slane %v21526_v34, %v24296_v25  ;;  %v1860_v50 = vcombine.high %v25756_v17, %v25792_v36  ;;  %v5276_v7 = vcombine.high %v5219_v2, %v5251_v61  ;;  %v2867_v59 = vrot.slane %v2859_v21, %v24312_v35  ;;  %v25966_v34 = vpop.permute.xlu1 %3319 }
 0x31a   : > { %v2899_v18 = vrot.slane %v2891_v51, %v24312_v35  ;;  %v5226_v9 = vrot.slane %v5212_v8, %v24312_v35  ;;  %v2860_v57 = vcombine.high %v25798_v5, %v25841_v30  ;;  %v2892_v40 = vcombine.high %v25872_v15, %v25878_v12  ;;  %v3272_v5 = vpop.permute.xlu0 %3271 }
 0x31b   : > { %v1844_v23 = vcombine.high %v24602_v22, %v25786_v52  ;;  %v1867_v13 = vrot.slane %v1859_v44, %v24296_v25  ;;  %v2875_v17 = vcombine.low %v25907_v47, %v25910_v29  ;;  %v5227_v36 = vcombine.low %v25923_v11, %v25926_v46  ;;  %22424 = vmatpush3.xpose.msk.msra.mxu1 %vm7907_vm1, %v5276_v7 }
 0x31c   : > { %v2923_v2 = vcombine.low %v2867_v59, %v2899_v18  ;;  %v5258_v61 = vrot.slane %v5244_v6, %v24312_v35  ;;  %v1851_v30 = vrot.slane %v1843_v42, %v24296_v25  ;;  %v5259_v15 = vcombine.low %v25933_v45, %v25936_v60  ;;  %22433 = vmatprep.subr.mxu1 %v29613_v37 }
 0x31d   : > { %v1874_v22 = vrot.slane %v1860_v50, %v24296_v25  ;;  %v2924_v52 = vcombine.high %v2867_v59, %v2899_v18  ;;  %v2876_v12 = vcombine.high %v25907_v47, %v25910_v29  ;;  %v2907_v27 = vcombine.low %v25913_v53, %v25918_v24 }
 0x31e   : > { %22421 = vmatmul.mubr.msk.f32.vlgmr.msra.gmra.mrb[50].mxu0 %vm7907_vm1, %v2923_v2  ;;  %v5277_v14 = vcombine.low %v5226_v9, %v5258_v61  ;;  %v5278_v49 = vcombine.high %v5226_v9, %v5258_v61  ;;  %v1858_v21 = vrot.slane %v1844_v23, %v24296_v25  ;;  %v1907_v51 = vcombine.low %v1851_v30, %v1867_v13 }
 0x31f   : > { %22426 = vmatmul.mubr.msk.f32.vlgmr.msra.gmra.mrb[54].mxu1 %vm7907_vm1, %v2924_v52  ;;  %22430 = vmatprep.mubr.msk.f32.mxu0 %vm23779_vm0, %v29613_v37  ;;  %v2874_v8 = vrot.slane %v2860_v57, %v24312_v35  ;;  %v1908_v44 = vcombine.high %v1851_v30, %v1867_v13  ;;  %v2906_v6 = vrot.slane %v2892_v40, %v24312_v35  ;;  %v25985_v40 = vpop.permute.xlu0 %3295  ;;  %v25996_v52 = vpop.permute.xlu1 %3367 }
 0x320   : > { %22429 = vmatpush3.xpose.msk.msra.mxu0 %vm7907_vm1, %v5277_v14  ;;  %22434 = vmatpush3.xpose.msk.msra.mxu1 %vm7907_vm1, %v5278_v49  ;;  %v5235_v42 = vrot.slane %v5227_v36, %v24312_v35  ;;  %v2908_v50 = vcombine.high %v25913_v53, %v25918_v24  ;;  %v1923_v7 = vcombine.low %v1858_v21, %v1874_v22 }
 0x321   : > { %22435 = vmatprep.mubr.msk.f32.mxu1 %vm23779_vm0, %v29613_v37  ;;  %22438 = vmatprep.subr.mxu0 %v29613_v37  ;;  %v5267_v59 = vrot.slane %v5259_v15, %v24312_v35  ;;  %v1924_v18 = vcombine.high %v1858_v21, %v1874_v22  ;;  %v4211_v9 = vcombine.low %v25903_v39, %v3272_v5 }
 0x322   : > { %v2925_v57 = vcombine.low %v2874_v8, %v2906_v6  ;;  %v2926_v23 = vcombine.high %v2874_v8, %v2906_v6  ;;  %22443 = vmatprep.subr.mxu1 %v29613_v37  ;;  %v1875_v13 = vcombine.low %v25827_v28, %v25864_v19  ;;  %v4212_v36 = vcombine.high %v25903_v39, %v3272_v5 }
 0x323   : > { %v5279_v2 = vcombine.low %v5235_v42, %v5267_v59  ;;  %v5280_v61 = vcombine.high %v5235_v42, %v5267_v59  ;;  %v1915_v30 = vrot.slane %v1907_v51, %v24312_v35  ;;  %v1922_v15 = vrot.slane %v1908_v44, %v24312_v35 }
 0x324   : > { %22431 = vmatmul.mubr.msk.f32.vlgmr.msra.gmra.mrb[52].mxu0 %vm7907_vm1, %v2925_v57  ;;  %22436 = vmatmul.mubr.msk.f32.vlgmr.msra.gmra.mrb[56].mxu1 %vm7907_vm1, %v2926_v23  ;;  %v4195_v22 = vcombine.low %v24606_v62, %v25928_v41  ;;  %v1876_v14 = vcombine.high %v25827_v28, %v25864_v19  ;;  %v1931_v39 = vrot.slane %v1923_v7, %v24312_v35 }
 0x325   : > { %22439 = vmatpush3.xpose.msk.msra.mxu0 %vm7907_vm1, %v5279_v2  ;;  %22444 = vmatpush3.xpose.msk.msra.mxu1 %vm7907_vm1, %v5280_v61  ;;  %v4196_v5 = vcombine.high %v24606_v62, %v25928_v41  ;;  %v1938_v21 = vrot.slane %v1924_v18, %v24312_v35  ;;  %v4219_v51 = vrot.slane %v4211_v9, %v24296_v25  ;;  %v26027_v9 = vpop.permute.xlu0 %3343  ;;  %v26040_v61 = vpop.permute.xlu1 %873 }
 0x326   : > { %v4203_v8 = vrot.slane %v4195_v22, %v24296_v25  ;;  %22440 = vmatprep.mubr.msk.f32.mxu0 %vm23779_vm0, %v29613_v37  ;;  %22445 = vmatprep.mubr.msk.f32.mxu1 %vm23779_vm0, %v29613_v37  ;;  %v5228_v62 = vcombine.high %v25923_v11, %v25926_v46  ;;  %v26019_v41 = vrot.slane %v1875_v13, %v24296_v25 }
 0x327   : > { %v4226_v44 = vrot.slane %v4212_v36, %v24296_v25  ;;  %v4210_v6 = vrot.slane %v4196_v5, %v24296_v25  ;;  %22448 = vmatprep.subr.mxu0 %v29613_v37  ;;  %v5260_v42 = vcombine.high %v25933_v45, %v25936_v60  ;;  %v21463_v7 = vcombine.low %v1915_v30, %v1922_v15 }
 0x328   : > { %v4259_v59 = vcombine.low %v4203_v8, %v4219_v51  ;;  %v4260_v18 = vcombine.high %v4203_v8, %v4219_v51  ;;  %22453 = vmatprep.subr.mxu1 %v29613_v37  ;;  %v1891_v11 = vcombine.low %v25849_v16, %v25888_v3  ;;  %v2883_v23 = vrot.slane %v2875_v17, %v24312_v35 }
 0x329   : > { %v4275_v46 = vcombine.low %v4210_v6, %v4226_v44  ;;  %v4276_v57 = vcombine.high %v4210_v6, %v4226_v44  ;;  %v26038_v45 = vrot.slane %v1876_v14, %v24296_v25  ;;  %v21465_v60 = vcombine.high %v1915_v30, %v1922_v15 }
 0x32a   : > { %v21467_v36 = vcombine.low %v1931_v39, %v1938_v21  ;;  %v21469_v2 = vcombine.high %v1931_v39, %v1938_v21  ;;  %v4267_v5 = vrot.slane %v4259_v59, %v24312_v35  ;;  %v4274_v51 = vrot.slane %v4260_v18, %v24312_v35 }
 0x32b   : > { %v26005_v49 = vpop.f32.mrb[8].mxu1  ;;  %v2915_v17 = vrot.slane %v2907_v27, %v24312_v35  ;;  %v5242_v8 = vrot.slane %v5228_v62, %v24312_v35  ;;  %v1892_v30 = vcombine.high %v25849_v16, %v25888_v3  ;;  %v4283_v15 = vrot.slane %v4275_v46, %v24312_v35 }
 0x32c   : > { %v22222_v28 = vpop.f32.mrb[9].mxu1  ;;  %v12773_v19 = vsel %vm12772_vm2, %v26005_v49, -inf  ;;  %v4290_v14 = vrot.slane %v4276_v57, %v24312_v35  ;;  %v5274_v39 = vrot.slane %v5260_v42, %v24312_v35  ;;  %v26060_v44 = vrot.slane %v1891_v11, %v24296_v25  ;;  %v26070_v42 = vpop.permute.xlu0 %897 }
 0x32d   : > { %12774 = vmax.xlane.f32.xlu0 %v12773_v19  ;;  %v26057_v19 = vrot.slane %v21463_v7, %v24296_v25  ;;  %v2927_v27 = vcombine.low %v2883_v23, %v2915_v17  ;;  %v2928_v62 = vcombine.high %v2883_v23, %v2915_v17  ;;  %v26065_v59 = vrot.slane %v21465_v60, %v24296_v25 }
 0x32e   : > { %v26049_v28 = vpop.f32.mrb[16].mxu0  ;;  %v26068_v16 = vrot.slane %v21467_v36, %v24296_v25  ;;  %v5281_v3 = vcombine.low %v5242_v8, %v5274_v39  ;;  %v5282_v18 = vcombine.high %v5242_v8, %v5274_v39  ;;  %v26073_v7 = vrot.slane %v21469_v2, %v24296_v25 }
 0x32f   : > { %v26035_v13 = vpop.f32.mrb[10].mxu1  ;;  %v22252_v21 = vpop.f32.mrb[17].mxu0  ;;  %v21527_v11 = vcombine.low %v4267_v5, %v4274_v51  ;;  %v21529_v57 = vcombine.high %v4267_v5, %v4274_v51  ;;  %22441 = vmatmul.mubr.msk.f32.vlgmr.msra.gmra.mrb[54].mxu0 %vm7907_vm1, %v2927_v27  ;;  %22446 = vmatmul.mubr.msk.f32.vlgmr.msra.gmra.mrb[58].mxu1 %vm7907_vm1, %v2928_v62  ;;  %v26078_v23 = vrot.slane %v1892_v30, %v24296_v25 }
 0x330   : > { %v22227_v22 = vpop.f32.mrb[11].mxu1  ;;  %v21531_v60 = vcombine.low %v4283_v15, %v4290_v14  ;;  %v21533_v36 = vcombine.high %v4283_v15, %v4290_v14  ;;  %22449 = vmatpush3.xpose.msk.msra.mxu0 %vm7907_vm1, %v5281_v3  ;;  %22454 = vmatpush3.xpose.msk.msra.mxu1 %vm7907_vm1, %v5282_v18  ;;  %v1939_v2 = vcombine.low %v26019_v41, %v26060_v44  ;;  %v26128_v21 = vpop.permute.xlu0 %945 }
 0x331   : > { %v26082_v22 = vpop.permute.xlu1 %921  ;;  %v4227_v5 = vcombine.low %v25985_v40, %v26027_v9  ;;  %v4228_v51 = vcombine.high %v25985_v40, %v26027_v9  ;;  %22450 = vmatprep.mubr.msk.f32.mxu0 %vm23779_vm0, %v29613_v37  ;;  %22455 = vmatprep.mubr.msk.f32.mxu1 %vm23779_vm0, %v29613_v37  ;;  %v1940_v30 = vcombine.high %v26019_v41, %v26060_v44  ;;  %v12791_v9 = vsel %vm12772_vm2, %v26049_v28, -inf }
 0x332   : > { %v2890_v15 = vrot.slane %v2876_v12, %v24312_v35  ;;  %v2922_v40 = vrot.slane %v2908_v50, %v24312_v35  ;;  %22458 = vmatprep.subr.mxu0 %v29613_v37  ;;  %v26112_v39 = vrot.slane %v21527_v11, %v24296_v25  ;;  %v26115_v41 = vrot.slane %v21529_v57, %v24296_v25 }
 0x333   : > { %v26062_v6 = vpop.f32.mrb[12].mxu1  ;;  %v4243_v47 = vcombine.low %v25966_v34, %v25996_v52  ;;  %v4244_v29 = vcombine.high %v25966_v34, %v25996_v52  ;;  %22463 = vmatprep.subr.mxu1 %v29613_v37  ;;  %v26123_v53 = vrot.slane %v21531_v60, %v24296_v25  ;;  %v26126_v24 = vrot.slane %v21533_v36, %v24296_v25 }
 0x334   : > { %v22232_v46 = vpop.f32.mrb[13].mxu1  ;;  %v12779_v17 = vsel %vm12772_vm2, %v26062_v6, -inf  ;;  %v2929_v12 = vcombine.low %v2890_v15, %v2922_v40  ;;  %v2930_v50 = vcombine.high %v2890_v15, %v2922_v40  ;;  %v4235_v44 = vrot.slane %v4227_v5, %v24296_v25  ;;  %12792 = vmax.xlane.f32.xlu1 %v12791_v9 }
 0x335   : > { %12780 = vmax.xlane.f32.xlu0 %v12779_v17  ;;  %v4242_v27 = vrot.slane %v4228_v51, %v24296_v25  ;;  %v4251_v62 = vrot.slane %v4243_v47, %v24296_v25  ;;  %v4258_v34 = vrot.slane %v4244_v29, %v24296_v25  ;;  %v26137_v3 = vrot.slane %v1939_v2, %v24312_v35  ;;  %v26145_v11 = vpop.permute.xlu1 %969 }
 0x336   : > { %v1955_v18 = vcombine.low %v26038_v45, %v26078_v23  ;;  %v1956_v46 = vcombine.high %v26038_v45, %v26078_v23  ;;  %22451 = vmatmul.mubr.msk.f32.vlgmr.msra.gmra.mrb[56].mxu0 %vm7907_vm1, %v2929_v12  ;;  %22456 = vmatmul.mubr.msk.f32.vlgmr.msra.gmra.mrb[60].mxu1 %vm7907_vm1, %v2930_v50  ;;  %v1954_v17 = vrot.slane %v1940_v30, %v24312_v35  ;;  %v12776_v15 = vsel %vm12772_vm2, %v26035_v13, -inf }
 0x337   : > { %v26096_v8 = vpop.f32.mrb[14].mxu1  ;;  %v4291_v36 = vcombine.low %v4235_v44, %v4251_v62  ;;  %v4292_v5 = vcombine.high %v4235_v44, %v4251_v62  ;;  %v4307_v2 = vcombine.low %v4242_v27, %v4258_v34  ;;  %v4308_v51 = vcombine.high %v4242_v27, %v4258_v34  ;;  %22460 = vmatprep.mubr.msk.f32.mxu0 %vm23779_vm0, %v29613_v37  ;;  %v26176_v27 = vpop.permute.xlu0 %993 }
 0x338   : > { %v22237_v14 = vpop.f32.mrb[15].mxu1  ;;  %v12782_v57 = vsel %vm12772_vm2, %v26096_v8, -inf  ;;  %v5347_v45 = vcombine.low %v26112_v39, %v26115_v41  ;;  %v5379_v23 = vcombine.low %v26123_v53, %v26126_v24  ;;  %22465 = vmatprep.mubr.msk.f32.mxu1 %vm23779_vm0, %v29613_v37  ;;  %v26170_v29 = vrot.slane %v5731_v31, %v24296_v25  ;;  %12777 = vmax.xlane.f32.xlu1 %v12776_v15 }
 0x339   : > { %v4299_v40 = vrot.slane %v4291_v36, %v24312_v35  ;;  %v4306_v9 = vrot.slane %v4292_v5, %v24312_v35  ;;  %v4315_v14 = vrot.slane %v4307_v2, %v24312_v35  ;;  %v4322_v30 = vrot.slane %v4308_v51, %v24312_v35  ;;  %12783 = vmax.xlane.f32.xlu0 %v12782_v57  ;;  %v26189_v2 = vpop.permute.xlu1 %1017 }
 0x33a   : > { %v1963_v50 = vrot.slane %v1955_v18, %v24312_v35  ;;  %v1970_v44 = vrot.slane %v1956_v46, %v24312_v35  ;;  %v26182_v34 = vrot.slane %v5747_v4, %v24296_v25  ;;  %v2995_v31 = vcombine.low %v26057_v19, %v26065_v59 }
 0x33b   : > { %v26134_v52 = vpop.f32.mrb[16].mxu1  ;;  %v21528_v57 = vcombine.low %v4299_v40, %v4306_v9  ;;  %v2996_v18 = vcombine.high %v26057_v19, %v26065_v59  ;;  %v21464_v46 = vcombine.low %v26137_v3, %v1954_v17  ;;  %v21532_v36 = vcombine.low %v4315_v14, %v4322_v30 }
 0x33c   : > { %v22242_v60 = vpop.f32.mrb[17].mxu1  ;;  %v21534_v5 = vcombine.high %v4315_v14, %v4322_v30  ;;  %v3027_v51 = vcombine.low %v26068_v16, %v26073_v7  ;;  %v5348_v4 = vcombine.high %v26112_v39, %v26115_v41  ;;  %v5355_v15 = vrot.slane %v5347_v45, %v24312_v35 }
 0x33d   : > { %v21530_v60 = vcombine.high %v4299_v40, %v4306_v9  ;;  %v3028_v19 = vcombine.high %v26068_v16, %v26073_v7  ;;  %v21466_v59 = vcombine.high %v26137_v3, %v1954_v17  ;;  %v21468_v9 = vcombine.low %v1963_v50, %v1970_v44  ;;  %v26221_v3 = vpop.permute.xlu0 %3225 }
 0x33e   : > { %v21470_v14 = vcombine.high %v1963_v50, %v1970_v44  ;;  %v5380_v10 = vcombine.high %v26123_v53, %v26126_v24  ;;  %v26205_v12 = vrot.slane %v21528_v57, %v24296_v25  ;;  %v1995_v41 = vcombine.low %v26040_v61, %v26082_v22 }
 0x33f   : > { %v26164_v47 = vpop.f32.mrb[18].mxu1  ;;  %v26208_v39 = vrot.slane %v21530_v60, %v24296_v25  ;;  %v26213_v45 = vrot.slane %v21464_v46, %v24296_v25  ;;  %v26216_v16 = vrot.slane %v21532_v36, %v24296_v25  ;;  %v26219_v7 = vrot.slane %v21534_v5, %v24296_v25  ;;  %v26235_v36 = vpop.permute.xlu1 %3249 }
 0x340   : > { %v22247_v62 = vpop.f32.mrb[19].mxu1  ;;  %v3003_v53 = vrot.slane %v2995_v31, %v24312_v35  ;;  %v5362_v50 = vrot.slane %v5348_v4, %v24312_v35  ;;  %v26227_v44 = vrot.slane %v21466_v59, %v24296_v25  ;;  %v1979_v57 = vcombine.low %v24615_v56, %v26070_v42 }
 0x341   : > { %v5387_v62 = vrot.slane %v5379_v23, %v24312_v35  ;;  %v3035_v23 = vrot.slane %v3027_v51, %v24312_v35  ;;  %v1980_v60 = vcombine.high %v24615_v56, %v26070_v42  ;;  %v1996_v46 = vcombine.high %v26040_v61, %v26082_v22 }
 0x342   : > { %v5363_v31 = vcombine.low %v26205_v12, %v26208_v39  ;;  %v2003_v5 = vrot.slane %v1995_v41, %v24296_v25  ;;  %v5394_v51 = vrot.slane %v5380_v10, %v24312_v35  ;;  %v12788_v4 = vsel %vm12772_vm2, %v26164_v47, -inf }
 0x343   : > { %v26197_v40 = vpop.f32.mrb[20].mxu1  ;;  %v5411_v24 = vcombine.low %v5355_v15, %v5387_v62  ;;  %v5412_v17 = vcombine.high %v5355_v15, %v5387_v62  ;;  %v5395_v56 = vcombine.low %v26216_v16, %v26219_v7  ;;  %v3059_v61 = vcombine.low %v3003_v53, %v3035_v23  ;;  %12789 = vmax.xlane.f32.xlu0 %v12788_v4 }
 0x344   : > { %v22257_v30 = vpop.f32.mrb[21].mxu1  ;;  %v3060_v42 = vcombine.high %v3003_v53, %v3035_v23  ;;  %v26250_v22 = vrot.slane %v21468_v9, %v24296_v25  ;;  %v5413_v15 = vcombine.low %v5362_v50, %v5394_v51  ;;  %v5414_v62 = vcombine.high %v5362_v50, %v5394_v51  ;;  %v3274_v53 = vpop.permute.xlu0 %3273 }
 0x345   : > { %22459 = vmatpush3.xpose.msk.msra.mxu0 %vm7907_vm1, %v5411_v24  ;;  %22464 = vmatpush3.xpose.msk.msra.mxu1 %vm7907_vm1, %v5412_v17  ;;  %v3010_v59 = vrot.slane %v2996_v18, %v24312_v35  ;;  %v26254_v10 = vrot.slane %v21470_v14, %v24296_v25  ;;  %v1987_v30 = vrot.slane %v1979_v57, %v24296_v25  ;;  %v26272_v50 = vpop.permute.xlu1 %3321 }
 0x346   : > { %22468 = vmatprep.subr.mxu0 %v29613_v37  ;;  %22473 = vmatprep.subr.mxu1 %v29613_v37  ;;  %v2010_v41 = vrot.slane %v1996_v46, %v24296_v25  ;;  %v3011_v9 = vcombine.low %v26213_v45, %v26227_v44  ;;  %v3042_v18 = vrot.slane %v3028_v19, %v24312_v35 }
 0x347   : > { %v5371_v14 = vrot.slane %v5363_v31, %v24312_v35  ;;  %v1994_v24 = vrot.slane %v1980_v60, %v24296_v25  ;;  %v2043_v17 = vcombine.low %v1987_v30, %v2003_v5  ;;  %v5403_v23 = vrot.slane %v5395_v56, %v24312_v35 }
 0x348   : > { %22461 = vmatmul.mubr.msk.f32.vlgmr.msra.gmra.mrb[58].mxu0 %vm7907_vm1, %v3059_v61  ;;  %22466 = vmatmul.mubr.msk.f32.vlgmr.msra.gmra.mrb[62].mxu1 %vm7907_vm1, %v3060_v42  ;;  %v2044_v57 = vcombine.high %v1987_v30, %v2003_v5  ;;  %v4347_v46 = vcombine.low %v26221_v3, %v3274_v53  ;;  %v3061_v51 = vcombine.low %v3010_v59, %v3042_v18 }
 0x349   : > { %22469 = vmatpush3.xpose.msk.msra.mxu0 %vm7907_vm1, %v5413_v15  ;;  %22474 = vmatpush3.xpose.msk.msra.mxu1 %vm7907_vm1, %v5414_v62  ;;  %v3062_v19 = vcombine.high %v3010_v59, %v3042_v18  ;;  %v2059_v31 = vcombine.low %v1994_v24, %v2010_v41  ;;  %v4348_v60 = vcombine.high %v26221_v3, %v3274_v53  ;;  %v12794_v53 = vsel %vm12772_vm2, %v26197_v40, -inf }
 0x34a   : > { %22470 = vmatprep.mubr.msk.f32.mxu0 %vm23779_vm0, %v29613_v37  ;;  %22475 = vmatprep.mubr.msk.f32.mxu1 %vm23779_vm0, %v29613_v37  ;;  %v5415_v4 = vcombine.low %v5371_v14, %v5403_v23  ;;  %v5416_v61 = vcombine.high %v5371_v14, %v5403_v23  ;;  %v3012_v42 = vcombine.high %v26213_v45, %v26227_v44 }
 0x34b   : > { %22478 = vmatprep.subr.mxu0 %v29613_v37  ;;  %22483 = vmatprep.subr.mxu1 %v29613_v37  ;;  %v2060_v56 = vcombine.high %v1994_v24, %v2010_v41  ;;  %v4331_v5 = vcombine.low %v24642_v33, %v26235_v36  ;;  %v3043_v15 = vcombine.low %v26250_v22, %v26254_v10  ;;  %v26306_v24 = vpop.permute.xlu1 %5589 }
 0x34c   : > { %22471 = vmatmul.mubr.msk.f32.vlgmr.msra.gmra.mrb[60].mxu0 %vm7907_vm1, %v3061_v51  ;;  %22476 = vmatmul.mubr.msk.f32.vlgmr.msra.gmra.mrb[64].mxu1 %vm7907_vm1, %v3062_v19  ;;  %v2051_v3 = vrot.slane %v2043_v17, %v24312_v35  ;;  %v4332_v62 = vcombine.high %v24642_v33, %v26235_v36  ;;  %v2058_v59 = vrot.slane %v2044_v57, %v24312_v35 }
 0x34d   : > { %22479 = vmatpush3.xpose.msk.msra.mxu0 %vm7907_vm1, %v5415_v4  ;;  %22484 = vmatpush3.xpose.msk.msra.mxu1 %vm7907_vm1, %v5416_v61  ;;  %v4355_v30 = vrot.slane %v4347_v46, %v24296_v25  ;;  %v4339_v41 = vrot.slane %v4331_v5, %v24296_v25  ;;  %v5364_v18 = vcombine.high %v26205_v12, %v26208_v39  ;;  %v26319_v4 = vpop.permute.xlu0 %3297 }
 0x34e   : > { %22480 = vmatprep.mubr.msk.f32.mxu0 %vm23779_vm0, %v29613_v37  ;;  %22485 = vmatprep.mubr.msk.f32.mxu1 %vm23779_vm0, %v29613_v37  ;;  %v2067_v33 = vrot.slane %v2059_v31, %v24312_v35  ;;  %v4362_v36 = vrot.slane %v4348_v60, %v24296_v25  ;;  %v4346_v14 = vrot.slane %v4332_v62, %v24296_v25 }
 0x34f   : > { %22488 = vmatprep.subr.mxu0 %v29613_v37  ;;  %29627 = vst [vmem:[#allocation39_spill] sm:$0xff] %v26306_v24  ;;  %v5396_v17 = vcombine.high %v26216_v16, %v26219_v7  ;;  %v2074_v23 = vrot.slane %v2060_v56, %v24312_v35  ;;  %v4395_v57 = vcombine.low %v4339_v41, %v4355_v30 }
 0x350   : > { %v4396_v46 = vcombine.high %v4339_v41, %v4355_v30  ;;  %22493 = vmatprep.subr.mxu1 %v29613_v37  ;;  %v3044_v12 = vcombine.high %v26250_v22, %v26254_v10  ;;  %v4411_v39 = vcombine.low %v4346_v14, %v4362_v36  ;;  %v4412_v51 = vcombine.high %v4346_v14, %v4362_v36  ;;  %v26332_v41 = vpop.permute.xlu1 %5613 }
 0x351   : > { %v3019_v19 = vrot.slane %v3011_v9, %v24312_v35  ;;  %12795 = vmax.xlane.f32.xlu0 %v12794_v53  ;;  %v2011_v31 = vcombine.low %v26128_v21, %v26176_v27  ;;  %v2012_v16 = vcombine.high %v26128_v21, %v26176_v27  ;;  %v21471_v7 = vcombine.low %v2051_v3, %v2058_v59 }
 0x352   : > { %v21473_v60 = vcombine.high %v2051_v3, %v2058_v59  ;;  %v2027_v61 = vcombine.low %v26145_v11, %v26189_v2  ;;  %v2028_v22 = vcombine.high %v26145_v11, %v26189_v2  ;;  %v3051_v10 = vrot.slane %v3043_v15, %v24312_v35  ;;  %29628 = vst [vmem:[#allocation40_spill] sm:$0xff] %v26332_v41 }
 0x353   : > { %v5378_v9 = vrot.slane %v5364_v18, %v24312_v35  ;;  %v21475_v56 = vcombine.low %v2067_v33, %v2074_v23  ;;  %v4403_v5 = vrot.slane %v4395_v57, %v24312_v35  ;;  %v4410_v62 = vrot.slane %v4396_v46, %v24312_v35 }
 0x354   : > { %v5410_v21 = vrot.slane %v5396_v17, %v24312_v35  ;;  %v4419_v27 = vrot.slane %v4411_v39, %v24312_v35  ;;  %v4426_v3 = vrot.slane %v4412_v51, %v24312_v35  ;;  %v3063_v59 = vcombine.low %v3019_v19, %v3051_v10 }
 0x355   : > { %v3064_v30 = vcombine.high %v3019_v19, %v3051_v10  ;;  %v26335_v11 = vrot.slane %v21471_v7, %v24296_v25  ;;  %v21477_v2 = vcombine.high %v2067_v33, %v2074_v23  ;;  %v26338_v18 = vrot.slane %v21473_v60, %v24296_v25  ;;  %v3346_v23 = vpop.permute.xlu0 %3345 }
 0x356   : > { %v5417_v15 = vcombine.low %v5378_v9, %v5410_v21  ;;  %v5418_v53 = vcombine.high %v5378_v9, %v5410_v21  ;;  %v2035_v36 = vrot.slane %v2027_v61, %v24296_v25  ;;  %v26342_v14 = vrot.slane %v2028_v22, %v24296_v25  ;;  %22481 = vmatmul.mubr.msk.f32.vlgmr.msra.gmra.mrb[62].mxu0 %vm7907_vm1, %v3063_v59  ;;  %v26352_v46 = vpop.f32.mrb[18].mxu0 }
 0x357   : > { %22486 = vmatmul.mubr.msk.f32.vlgmr.msra.gmra.mrb[66].mxu1 %vm7907_vm1, %v3064_v30  ;;  %v2019_v17 = vrot.slane %v2011_v31, %v24296_v25  ;;  %v26348_v57 = vrot.slane %v2012_v16, %v24296_v25  ;;  %v21535_v33 = vcombine.low %v4403_v5, %v4410_v62  ;;  %v21537_v39 = vcombine.high %v4403_v5, %v4410_v62  ;;  %v26358_v31 = vpop.f32.mrb[22].mxu1  ;;  %v22262_v16 = vpop.f32.mrb[19].mxu0 }
 0x358   : > { %22489 = vmatpush3.xpose.msk.msra.mxu0 %vm7907_vm1, %v5417_v15  ;;  %22494 = vmatpush3.xpose.msk.msra.mxu1 %vm7907_vm1, %v5418_v53  ;;  %v21539_v51 = vcombine.low %v4419_v27, %v4426_v3  ;;  %v21541_v19 = vcombine.high %v4419_v27, %v4426_v3  ;;  %v12797_v7 = vsel %vm12772_vm2, %v26352_v46, -inf  ;;  %v26363_v60 = vrot.slane %v21475_v56, %v24296_v25  ;;  %v22267_v9 = vpop.f32.mrb[23].mxu1  ;;  %v3370_v27 = vpop.permute.xlu1 %3369 }
 0x359   : > { %22490 = vmatprep.mubr.msk.f32.mxu0 %vm23779_vm0, %v29613_v37  ;;  %22495 = vmatprep.mubr.msk.f32.mxu1 %vm23779_vm0, %v29613_v37  ;;  %v26366_v61 = vrot.slane %v21477_v2, %v24296_v25  ;;  %v3026_v22 = vrot.slane %v3012_v42, %v24312_v35  ;;  %v3058_v10 = vrot.slane %v3044_v12, %v24312_v35 }
 0x35a   : > { %22498 = vmatprep.subr.mxu0 %v29613_v37  ;;  %v3131_v5 = vcombine.low %v26335_v11, %v26338_v18  ;;  %v2075_v62 = vcombine.low %v2019_v17, %v2035_v36  ;;  %v2076_v21 = vcombine.high %v2019_v17, %v2035_v36  ;;  %v2091_v56 = vcombine.low %v26348_v57, %v26342_v14 }
 0x35b   : > { %22503 = vmatprep.subr.mxu1 %v29613_v37  ;;  %v4363_v3 = vcombine.low %v26319_v4, %v3346_v23  ;;  %v4364_v45 = vcombine.high %v26319_v4, %v3346_v23  ;;  %v3065_v44 = vcombine.low %v3026_v22, %v3058_v10  ;;  %v3066_v42 = vcombine.high %v3026_v22, %v3058_v10 }
 0x35c   : > { %12798 = vmax.xlane.f32.xlu1 %v12797_v7  ;;  %v5427_v12 = vrot.slane %v21535_v33, %v24296_v25  ;;  %v5443_v59 = vrot.slane %v21537_v39, %v24296_v25  ;;  %v5459_v30 = vrot.slane %v21539_v51, %v24296_v25  ;;  %v5475_v2 = vrot.slane %v21541_v19, %v24296_v25  ;;  %v26385_v15 = vpop.f32.mrb[20].mxu0  ;;  %v26387_v53 = vpop.f32.mrb[24].mxu1 }
 0x35d   : > { %22491 = vmatmul.mubr.msk.f32.vlgmr.msra.gmra.mrb[64].mxu0 %vm7907_vm1, %v3065_v44  ;;  %22496 = vmatmul.mubr.msk.f32.vlgmr.msra.gmra.mrb[68].mxu1 %vm7907_vm1, %v3066_v42  ;;  %v4379_v4 = vcombine.low %v26272_v50, %v3370_v27  ;;  %v4380_v17 = vcombine.high %v26272_v50, %v3370_v27  ;;  %v12800_v33 = vsel %vm12772_vm2, %v26358_v31, -inf  ;;  %v22272_v23 = vpop.f32.mrb[21].mxu0  ;;  %v22277_v39 = vpop.f32.mrb[25].mxu1  ;;  %v3163_v51 = vcombine.low %v26363_v60, %v26366_v61 }
 0x35e   : > { %v2083_v19 = vrot.slane %v2075_v62, %v24312_v35  ;;  %v2090_v16 = vrot.slane %v2076_v21, %v24312_v35  ;;  %v2092_v7 = vcombine.high %v26348_v57, %v26342_v14  ;;  %22500 = vmatprep.mubr.msk.f32.mxu0 %vm23779_vm0, %v29613_v37  ;;  %v4371_v50 = vrot.slane %v4363_v3, %v24296_v25 }
 0x35f   : > { %v4378_v22 = vrot.slane %v4364_v45, %v24296_v25  ;;  %v4387_v10 = vrot.slane %v4379_v4, %v24296_v25  ;;  %v4394_v9 = vrot.slane %v4380_v17, %v24296_v25  ;;  %22505 = vmatprep.mubr.msk.f32.mxu1 %vm23779_vm0, %v29613_v37  ;;  %v3164_v62 = vcombine.high %v26363_v60, %v26366_v61 }
 0x360   : > { %v2099_v21 = vrot.slane %v2091_v56, %v24312_v35  ;;  %v5483_v14 = vcombine.low %v5427_v12, %v5443_v59  ;;  %v5515_v57 = vcombine.low %v5459_v30, %v5475_v2  ;;  %12801 = vmax.xlane.f32.xlu0 %v12800_v33  ;;  %v2106_v45 = vrot.slane %v2092_v7, %v24312_v35 }
 0x361   : > { %v4427_v27 = vcombine.low %v4371_v50, %v4387_v10  ;;  %v4428_v44 = vcombine.high %v4371_v50, %v4387_v10  ;;  %v4443_v3 = vcombine.low %v4378_v22, %v4394_v9  ;;  %v4444_v42 = vcombine.high %v4378_v22, %v4394_v9 }
 0x362   : > { %v21472_v4 = vcombine.low %v2083_v19, %v2090_v16  ;;  %v21474_v23 = vcombine.high %v2083_v19, %v2090_v16  ;;  %v5484_v17 = vcombine.high %v5427_v12, %v5443_v59  ;;  %v5516_v56 = vcombine.high %v5459_v30, %v5475_v2 }
 0x363   : > { %v4435_v39 = vrot.slane %v4427_v27, %v24312_v35  ;;  %v4442_v36 = vrot.slane %v4428_v44, %v24312_v35  ;;  %v4451_v60 = vrot.slane %v4443_v3, %v24312_v35  ;;  %v4458_v61 = vrot.slane %v4444_v42, %v24312_v35 }
 0x364   : > { %v5491_v33 = vrot.slane %v5483_v14, %v24312_v35  ;;  %v5523_v50 = vrot.slane %v5515_v57, %v24312_v35  ;;  %v3139_v22 = vrot.slane %v3131_v5, %v24312_v35  ;;  %v3171_v16 = vrot.slane %v3163_v51, %v24312_v35 }
 0x365   : > { %v21536_v10 = vcombine.low %v4435_v39, %v4442_v36  ;;  %v21538_v7 = vcombine.high %v4435_v39, %v4442_v36  ;;  %v21540_v9 = vcombine.low %v4451_v60, %v4458_v61  ;;  %v21542_v19 = vcombine.high %v4451_v60, %v4458_v61 }
 0x366   : > { %v5547_v12 = vcombine.low %v5491_v33, %v5523_v50  ;;  %v5548_v59 = vcombine.high %v5491_v33, %v5523_v50  ;;  %v5498_v27 = vrot.slane %v5484_v17, %v24312_v35  ;;  %v26436_v36 = vpop.f32.mrb[22].mxu0  ;;  %v21476_v14 = vcombine.low %v2099_v21, %v2106_v45  ;;  %v26441_v3 = vpop.f32.mrb[26].mxu1 }
 0x367   : > { %v26425_v44 = vrot.slane %v21536_v10, %v24296_v25  ;;  %v26428_v30 = vrot.slane %v21538_v7, %v24296_v25  ;;  %v26431_v2 = vrot.slane %v21540_v9, %v24296_v25  ;;  %v26434_v5 = vrot.slane %v21542_v19, %v24296_v25  ;;  %v22282_v42 = vpop.f32.mrb[23].mxu0 }
 0x368   : > { %v21478_v57 = vcombine.high %v2099_v21, %v2106_v45  ;;  %22499 = vmatpush3.xpose.msk.msra.mxu0 %vm7907_vm1, %v5547_v12  ;;  %22504 = vmatpush3.xpose.msk.msra.mxu1 %vm7907_vm1, %v5548_v59  ;;  %v5530_v51 = vrot.slane %v5516_v56, %v24312_v35  ;;  %v26444_v17 = vrot.slane %v21472_v4, %v24296_v25  ;;  %v22287_v21 = vpop.f32.mrb[27].mxu1 }
 0x369   : > { %v26447_v39 = vrot.slane %v21474_v23, %v24296_v25  ;;  %v3195_v60 = vcombine.low %v3139_v22, %v3171_v16  ;;  %v3196_v61 = vcombine.high %v3139_v22, %v3171_v16  ;;  %22508 = vmatprep.subr.mxu0 %v29613_v37  ;;  %v5499_v45 = vcombine.low %v26425_v44, %v26428_v30 }
 0x36a   : > { %v5531_v56 = vcombine.low %v26431_v2, %v26434_v5  ;;  %22513 = vmatprep.subr.mxu1 %v29613_v37  ;;  %v5549_v33 = vcombine.low %v5498_v27, %v5530_v51  ;;  %v5550_v50 = vcombine.high %v5498_v27, %v5530_v51  ;;  %v29629_v4 = vcombine.high %v24363_v48, %v24393_v26 }
 0x36b   : > { %22501 = vmatmul.mubr.msk.f32.vlgmr.msra.gmra.mrb[66].mxu0 %vm7907_vm1, %v3195_v60  ;;  %22506 = vmatmul.mubr.msk.f32.vlgmr.msra.gmra.mrb[70].mxu1 %vm7907_vm1, %v3196_v61  ;;  %v29630_v22 = vcombine.high %v26335_v11, %v26338_v18  ;;  %v3178_v7 = vrot.slane %v3164_v62, %v24312_v35  ;;  %v29631_v9 = vcombine.high %v24154_v0, %v24361_v38  ;;  %v26476_v26 = vpop.f32.mrb[24].mxu0  ;;  %v26478_v11 = vpop.f32.mrb[28].mxu1 }
 0x36c   : > { %v5762_v23 = vrot.slane %v29629_v4, %v24296_v25  ;;  %v26471_v12 = vrot.slane %v21476_v14, %v24296_v25  ;;  %v3130_v48 = vrot.slane %v21478_v57, %v24296_v25  ;;  %22509 = vmatpush3.xpose.msk.msra.mxu0 %vm7907_vm1, %v5549_v33  ;;  %22514 = vmatpush3.xpose.msk.msra.mxu1 %vm7907_vm1, %v5550_v50  ;;  %v22292_v62 = vpop.f32.mrb[25].mxu0  ;;  %v22297_v59 = vpop.f32.mrb[29].mxu1  ;;  %v12806_v33 = vsel %vm12772_vm2, %v26387_v53, -inf }
 0x36d   : > { %v3146_v10 = vrot.slane %v29630_v22, %v24312_v35  ;;  %v5746_v19 = vrot.slane %v29631_v9, %v24296_v25  ;;  %v5795_v18 = vcombine.low %v26170_v29, %v26182_v34  ;;  %22510 = vmatprep.mubr.msk.f32.mxu0 %vm23779_vm0, %v29613_v37  ;;  %22515 = vmatprep.mubr.msk.f32.mxu1 %vm23779_vm0, %v29613_v37 }
 0x36e   : > { %v3147_v16 = vcombine.low %v26444_v17, %v26447_v39  ;;  %22518 = vmatprep.subr.mxu0 %v29613_v37  ;;  %22523 = vmatprep.subr.mxu1 %v29613_v37  ;;  %v5507_v27 = vrot.slane %v5499_v45, %v24312_v35  ;;  %v5539_v14 = vrot.slane %v5531_v56, %v24312_v35 }
 0x36f   : > { %v3197_v0 = vcombine.low %v3146_v10, %v3178_v7  ;;  %v3198_v38 = vcombine.high %v3146_v10, %v3178_v7  ;;  %v5796_v57 = vcombine.high %v26170_v29, %v26182_v34  ;;  %v5811_v51 = vcombine.low %v5746_v19, %v5762_v23  ;;  %12807 = vmax.xlane.f32.xlu0 %v12806_v33 }
 0x370   : > { %v5812_v42 = vcombine.high %v5746_v19, %v5762_v23  ;;  %v3179_v60 = vcombine.low %v26471_v12, %v3130_v48  ;;  %v5551_v61 = vcombine.low %v5507_v27, %v5539_v14  ;;  %v5552_v21 = vcombine.high %v5507_v27, %v5539_v14 }
 0x371   : > { %22511 = vmatmul.mubr.msk.f32.vlgmr.msra.gmra.mrb[68].mxu0 %vm7907_vm1, %v3197_v0  ;;  %22516 = vmatmul.mubr.msk.f32.vlgmr.msra.gmra.mrb[72].mxu1 %vm7907_vm1, %v3198_v38  ;;  %v5500_v45 = vcombine.high %v26425_v44, %v26428_v30  ;;  %v5803_v29 = vrot.slane %v5795_v18, %v24312_v35  ;;  %v5532_v34 = vcombine.high %v26431_v2, %v26434_v5  ;;  %v12803_v2 = vsel %vm12772_vm2, %v26385_v15, -inf }
 0x372   : > { %22520 = vmatprep.mubr.msk.f32.mxu0 %vm23779_vm0, %v29613_v37  ;;  %22525 = vmatprep.mubr.msk.f32.mxu1 %vm23779_vm0, %v29613_v37  ;;  %v3155_v56 = vrot.slane %v3147_v16, %v24312_v35  ;;  %v5810_v50 = vrot.slane %v5796_v57, %v24312_v35  ;;  %v5819_v44 = vrot.slane %v5811_v51, %v24312_v35 }
 0x373   : > { %22519 = vmatpush3.xpose.msk.msra.mxu0 %vm7907_vm1, %v5551_v61  ;;  %22524 = vmatpush3.xpose.msk.msra.mxu1 %vm7907_vm1, %v5552_v21  ;;  %v5826_v30 = vrot.slane %v5812_v42, %v24312_v35  ;;  %v3187_v5 = vrot.slane %v3179_v60, %v24312_v35  ;;  %v3148_v4 = vcombine.high %v26444_v17, %v26447_v39  ;;  %v12809_v42 = vsel %vm12772_vm2, %v26436_v36, -inf }
 0x374   : > { %22528 = vmatprep.subr.mxu0 %v29613_v37  ;;  %22533 = vmatprep.subr.mxu1 %v29613_v37  ;;  %v5514_v23 = vrot.slane %v5500_v45, %v24312_v35  ;;  %v3180_v22 = vcombine.high %v26471_v12, %v3130_v48  ;;  %v5546_v9 = vrot.slane %v5532_v34, %v24312_v35  ;;  %v12812_v48 = vsel %vm12772_vm2, %v26441_v3, -inf }
 0x375   : > { %v3199_v10 = vcombine.low %v3155_v56, %v3187_v5  ;;  %v3200_v7 = vcombine.high %v3155_v56, %v3187_v5  ;;  %12804 = vmax.xlane.f32.xlu1 %v12803_v2  ;;  %v21543_v19 = vcombine.low %v5803_v29, %v5810_v50  ;;  %v21545_v18 = vcombine.high %v5803_v29, %v5810_v50 }
 0x376   : > { %v21547_v0 = vcombine.low %v5819_v44, %v5826_v30  ;;  %v21549_v38 = vcombine.high %v5819_v44, %v5826_v30  ;;  %v5553_v62 = vcombine.low %v5514_v23, %v5546_v9  ;;  %v5554_v17 = vcombine.high %v5514_v23, %v5546_v9  ;;  %12813 = vmax.xlane.f32.xlu0 %v12812_v48 }
 0x377   : > { %22521 = vmatmul.mubr.msk.f32.vlgmr.msra.gmra.mrb[70].mxu0 %vm7907_vm1, %v3199_v10  ;;  %22526 = vmatmul.mubr.msk.f32.vlgmr.msra.gmra.mrb[74].mxu1 %vm7907_vm1, %v3200_v7  ;;  %v3162_v39 = vrot.slane %v3148_v4, %v24312_v35  ;;  %v3194_v12 = vrot.slane %v3180_v22, %v24312_v35  ;;  %v6827_v59 = vrot.slane %v21543_v19, %v24296_v25  ;;  %v12818_v21 = vsel %vm12772_vm2, %v26478_v11, -inf }
 0x378   : > { %22530 = vmatprep.mubr.msk.f32.mxu0 %vm23779_vm0, %v29613_v37  ;;  %22529 = vmatpush3.xpose.msk.msra.mxu0 %vm7907_vm1, %v5553_v62  ;;  %v6843_v16 = vrot.slane %v21545_v18, %v24296_v25  ;;  %v6859_v27 = vrot.slane %v21547_v0, %v24296_v25  ;;  %v6875_v51 = vrot.slane %v21549_v38, %v24296_v25  ;;  %v12785_v2 = vsel %vm12772_vm2, %v26134_v52, -inf }
 0x379   : > { %22535 = vmatprep.mubr.msk.f32.mxu1 %vm23779_vm0, %v29613_v37  ;;  %22534 = vmatpush3.xpose.msk.msra.mxu1 %vm7907_vm1, %v5554_v17  ;;  %v3201_v14 = vcombine.low %v3162_v39, %v3194_v12  ;;  %v3202_v57 = vcombine.high %v3162_v39, %v3194_v12  ;;  %v12815_v7 = vsel %vm12772_vm2, %v26476_v26, -inf }
 0x37a   : > { %22538 = vmatprep.subr.mxu0 %v29613_v37  ;;  %22543 = vmatprep.subr.mxu1 %v29613_v37  ;;  %v6883_v60 = vcombine.low %v6827_v59, %v6843_v16  ;;  %v6915_v61 = vcombine.low %v6859_v27, %v6875_v51  ;;  %v6884_v18 = vcombine.high %v6827_v59, %v6843_v16 }
 0x37b   : > { %22531 = vmatmul.mubr.msk.f32.vlgmr.msra.gmra.mrb[72].mxu0 %vm7907_vm1, %v3201_v14  ;;  %12810 = vmax.xlane.f32.xlu1 %v12809_v42  ;;  %v6916_v0 = vcombine.high %v6859_v27, %v6875_v51 }
 0x37c   : > { %22536 = vmatmul.mubr.msk.f32.vlgmr.msra.gmra.mrb[76].mxu1 %vm7907_vm1, %v3202_v57  ;;  %v6891_v45 = vrot.slane %v6883_v60, %v24312_v35  ;;  %v6923_v56 = vrot.slane %v6915_v61, %v24312_v35  ;;  %22540 = vmatprep.mubr.msk.f32.mxu0 %vm23779_vm0, %v29613_v37  ;;  %v26577_v62 = vrot.slane %v6884_v18, %v24312_v35 }
 0x37d   : > { %v26549_v29 = vpop.f32.mrb[26].mxu0  ;;  %12819 = vmax.xlane.f32.xlu0 %v12818_v21  ;;  %22545 = vmatprep.mubr.msk.f32.mxu1 %vm23779_vm0, %v29613_v37  ;;  %v26580_v17 = vrot.slane %v6916_v0, %v24312_v35 }
 0x37e   : > { %v26551_v34 = vpop.f32.mrb[30].mxu1  ;;  %v22302_v33 = vpop.f32.mrb[27].mxu0  ;;  %v6947_v44 = vcombine.low %v6891_v45, %v6923_v56  ;;  %v6948_v30 = vcombine.high %v6891_v45, %v6923_v56  ;;  %v12821_v9 = vsel %vm12772_vm2, %v26549_v29, -inf  ;;  %29632 = vst [vmem:[#allocation41_spill] sm:$0xff] %v26577_v62 }
 0x37f   : > { %v22307_v50 = vpop.f32.mrb[31].mxu1  ;;  %12786 = vmax.xlane.f32.xlu1 %v12785_v2  ;;  %v12824_v4 = vsel %vm12772_vm2, %v26551_v34, -inf  ;;  %29633 = vst [vmem:[#allocation42_spill] sm:$0xff] %v26580_v17 }
 0x380   : > { %22539 = vmatpush3.msra.mxu0 %v6947_v44  ;;  %22544 = vmatpush3.msra.mxu1 %v6948_v30 }
 0x381   : > { %12825 = vmax.xlane.f32.xlu0 %v12824_v4  ;;  %22548 = vmatprep.subr.mxu0 %v29613_v37 }
 0x382   : > { %v26560_v5 = vpop.f32.mrb[28].mxu0  ;;  %v26564_v23 = vpop.f32.mrb[32].mxu1  ;;  %22553 = vmatprep.subr.mxu1 %v29613_v37 }
 0x383   : > { %v22312_v22 = vpop.f32.mrb[29].mxu0  ;;  %v22317_v10 = vpop.f32.mrb[33].mxu1  ;;  %12816 = vmax.xlane.f32.xlu1 %v12815_v7  ;;  %v12830_v19 = vsel %vm12772_vm2, %v26564_v23, -inf  ;;  %v12827_v38 = vsel %vm12772_vm2, %v26560_v5, -inf }
 0x384   : > { %v26680_v37 = vpop.permute.xlu0 %5565 }
 0x385   : > { %12831 = vmax.xlane.f32.xlu0 %v12830_v19  ;;  %29646 = vst [vmem:[#allocation55_spill] sm:$0xff] %v26680_v37 }
 0x387   : > { %12822 = vmax.xlane.f32.xlu1 %v12821_v9 }
 0x38b   : > { %12828 = vmax.xlane.f32.xlu1 %v12827_v38 }
 0x38e   : > { %v26582_v39 = vpop.f32.mrb[30].mxu0  ;;  %v26584_v12 = vpop.f32.mrb[34].mxu1 }
 0x38f   : > { %v22322_v48 = vpop.f32.mrb[31].mxu0  ;;  %v22327_v14 = vpop.f32.mrb[35].mxu1  ;;  %v12836_v59 = vsel %vm12772_vm2, %v26584_v12, -inf  ;;  %v12833_v57 = vsel %vm12772_vm2, %v26582_v39, -inf }
 0x390   : > { %12837 = vmax.xlane.f32.xlu0 %v12836_v59  ;;  %12834 = vmax.xlane.f32.xlu1 %v12833_v57 }
 0x395   : > { %v26594_v51 = vpop.f32.mrb[32].mxu0  ;;  %v26596_v42 = vpop.f32.mrb[36].mxu1 }
 0x396   : > { %v22332_v60 = vpop.f32.mrb[33].mxu0  ;;  %v22337_v61 = vpop.f32.mrb[37].mxu1  ;;  %v12842_v21 = vsel %vm12772_vm2, %v26596_v42, -inf  ;;  %v12839_v45 = vsel %vm12772_vm2, %v26594_v51, -inf }
 0x397   : > { %12843 = vmax.xlane.f32.xlu0 %v12842_v21  ;;  %12840 = vmax.xlane.f32.xlu1 %v12839_v45 }
 0x3a4   : > { %v26602_v56 = vpop.f32.mrb[34].mxu0  ;;  %v26604_v33 = vpop.f32.mrb[38].mxu1 }
 0x3a5   : > { %v22342_v50 = vpop.f32.mrb[35].mxu0  ;;  %v22347_v44 = vpop.f32.mrb[39].mxu1  ;;  %v12848_v30 = vsel %vm12772_vm2, %v26604_v33, -inf  ;;  %v12845_v2 = vsel %vm12772_vm2, %v26602_v56, -inf }
 0x3a6   : > { %12849 = vmax.xlane.f32.xlu0 %v12848_v30  ;;  %12846 = vmax.xlane.f32.xlu1 %v12845_v2 }
 0x3a9   : > { %v26610_v4 = vpop.f32.mrb[36].mxu0 }
 0x3aa   : > { %v26612_v22 = vpop.f32.mrb[40].mxu1  ;;  %v22352_v10 = vpop.f32.mrb[37].mxu0  ;;  %v12851_v19 = vsel %vm12772_vm2, %v26610_v4, -inf }
 0x3ab   : > { %v22357_v7 = vpop.f32.mrb[41].mxu1  ;;  %v12854_v9 = vsel %vm12772_vm2, %v26612_v22, -inf  ;;  %12852 = vmax.xlane.f32.xlu1 %v12851_v19 }
 0x3ac   : > { %12855 = vmax.xlane.f32.xlu0 %v12854_v9 }
 0x3b5   : > { %v26618_v18 = vpop.f32.mrb[38].mxu0  ;;  %v26620_v0 = vpop.f32.mrb[42].mxu1 }
 0x3b6   : > { %v22362_v38 = vpop.f32.mrb[39].mxu0  ;;  %v22367_v48 = vpop.f32.mrb[43].mxu1  ;;  %v12860_v14 = vsel %vm12772_vm2, %v26620_v0, -inf  ;;  %v12857_v59 = vsel %vm12772_vm2, %v26618_v18, -inf }
 0x3b7   : > { %12861 = vmax.xlane.f32.xlu0 %v12860_v14  ;;  %12858 = vmax.xlane.f32.xlu1 %v12857_v59 }
 0x3bb   : > { %v26626_v57 = vpop.f32.mrb[40].mxu0  ;;  %v26628_v60 = vpop.f32.mrb[44].mxu1 }
 0x3bc   : > { %v22372_v61 = vpop.f32.mrb[41].mxu0  ;;  %v22377_v21 = vpop.f32.mrb[45].mxu1  ;;  %v12866_v45 = vsel %vm12772_vm2, %v26628_v60, -inf  ;;  %v12863_v50 = vsel %vm12772_vm2, %v26626_v57, -inf }
 0x3bd   : > { %12867 = vmax.xlane.f32.xlu0 %v12866_v45  ;;  %12864 = vmax.xlane.f32.xlu1 %v12863_v50  ;;  %v26650_v21 = vpop.permute.xlu1 %5637 }
 0x3be   : > { %29636 = vst [vmem:[#allocation45_spill] sm:$0xff] %v26650_v21 }
 0x3cd   : > { %v26634_v44 = vpop.f32.mrb[42].mxu0 }
 0x3ce   : > { %v26636_v30 = vpop.f32.mrb[46].mxu1  ;;  %v22382_v2 = vpop.f32.mrb[43].mxu0  ;;  %v12869_v9 = vsel %vm12772_vm2, %v26634_v44, -inf }
 0x3cf   : > { %v22387_v10 = vpop.f32.mrb[47].mxu1  ;;  %v12872_v7 = vsel %vm12772_vm2, %v26636_v30, -inf  ;;  %12870 = vmax.xlane.f32.xlu1 %v12869_v9 }
 0x3d0   : > { %12873 = vmax.xlane.f32.xlu0 %v12872_v7 }
 0x3d1   : > { %v26642_v19 = vpop.f32.mrb[44].mxu0 }
 0x3d2   : > { %29634 = vst [vmem:[#allocation43_spill] sm:$0xff] %v26642_v19  ;;  %v26644_v38 = vpop.f32.mrb[48].mxu1  ;;  %v22392_v48 = vpop.f32.mrb[45].mxu0  ;;  %v12875_v61 = vsel %vm12772_vm2, %v26642_v19, -inf }
 0x3d3   : > { %29635 = vst [vmem:[#allocation44_spill] sm:$0xff] %v26644_v38  ;;  %v22397_v14 = vpop.f32.mrb[49].mxu1  ;;  %v12878_v59 = vsel %vm12772_vm2, %v26644_v38, -inf  ;;  %12876 = vmax.xlane.f32.xlu1 %v12875_v61  ;;  %v26660_v48 = vpop.permute.xlu1 %5685 }
 0x3d4   : > { %12879 = vmax.xlane.f32.xlu0 %v12878_v59  ;;  %29639 = vst [vmem:[#allocation48_spill] sm:$0xff] %v26660_v48 }
 0x3d7   : > { %v26670_v27 = vpop.permute.xlu1 %5709 }
 0x3d8   : > { %29642 = vst [vmem:[#allocation51_spill] sm:$0xff] %v26670_v27 }
 0x3da   : > { %v26652_v45 = vpop.f32.mrb[46].mxu0  ;;  %v26654_v50 = vpop.f32.mrb[50].mxu1 }
 0x3db   : > { %29637 = vst [vmem:[#allocation46_spill] sm:$0xff] %v26652_v45  ;;  %29638 = vst [vmem:[#allocation47_spill] sm:$0xff] %v26654_v50  ;;  %v22402_v2 = vpop.f32.mrb[47].mxu0  ;;  %v22407_v10 = vpop.f32.mrb[51].mxu1  ;;  %v12884_v7 = vsel %vm12772_vm2, %v26654_v50, -inf  ;;  %v12881_v9 = vsel %vm12772_vm2, %v26652_v45, -inf }
 0x3dc   : > { %12885 = vmax.xlane.f32.xlu0 %v12884_v7  ;;  %12882 = vmax.xlane.f32.xlu1 %v12881_v9  ;;  %v26672_v7 = vpop.permute.xlu1 %5567 }
 0x3dd   : > { %29643 = vst [vmem:[#allocation52_spill] sm:$0xff] %v26672_v7 }
 0x3e0   : > { %v26682_v17 = vpop.permute.xlu1 %5615 }
 0x3e1   : > { %29647 = vst [vmem:[#allocation56_spill] sm:$0xff] %v26682_v17 }
 0x3e2   : > { %v26662_v14 = vpop.f32.mrb[48].mxu0  ;;  %v26664_v59 = vpop.f32.mrb[52].mxu1 }
 0x3e3   : > { %29640 = vst [vmem:[#allocation49_spill] sm:$0xff] %v26662_v14  ;;  %29641 = vst [vmem:[#allocation50_spill] sm:$0xff] %v26664_v59  ;;  %v22412_v61 = vpop.f32.mrb[49].mxu0  ;;  %v22417_v16 = vpop.f32.mrb[53].mxu1  ;;  %v12890_v2 = vsel %vm12772_vm2, %v26664_v59, -inf  ;;  %v12887_v10 = vsel %vm12772_vm2, %v26662_v14, -inf }
 0x3e4   : > { %12891 = vmax.xlane.f32.xlu0 %v12890_v2  ;;  %12888 = vmax.xlane.f32.xlu1 %v12887_v10  ;;  %v26692_v43 = vpop.permute.xlu1 %5663 }
 0x3e5   : > { %29651 = vst [vmem:[#allocation60_spill] sm:$0xff] %v26692_v43 }
 0x3f1   : > { %v26674_v9 = vpop.f32.mrb[50].mxu0 }
 0x3f2   : > { %29644 = vst [vmem:[#allocation53_spill] sm:$0xff] %v26674_v9  ;;  %v26676_v1 = vpop.f32.mrb[54].mxu1  ;;  %v22422_v55 = vpop.f32.mrb[51].mxu0  ;;  %v12893_v16 = vsel %vm12772_vm2, %v26674_v9, -inf }
 0x3f3   : > { %29645 = vst [vmem:[#allocation54_spill] sm:$0xff] %v26676_v1  ;;  %v22427_v61 = vpop.f32.mrb[55].mxu1  ;;  %12894 = vmax.xlane.f32.xlu1 %v12893_v16  ;;  %v26690_v55 = vpop.permute.xlu0 %5661 }
 0x3f4   : > { %29650 = vst [vmem:[#allocation59_spill] sm:$0xff] %v26690_v55  ;;  %v26696_v16 = vpop.permute.xlu1 %5687 }
 0x3f5   : > { %29653 = vst [vmem:[#allocation62_spill] sm:$0xff] %v26696_v16 }
 0x3f7   : > { %v26684_v2 = vpop.f32.mrb[52].mxu0  ;;  %v26686_v10 = vpop.f32.mrb[56].mxu1 }
 0x3f8   : > { %29648 = vst [vmem:[#allocation57_spill] sm:$0xff] %v26684_v2  ;;  %29649 = vst [vmem:[#allocation58_spill] sm:$0xff] %v26686_v10  ;;  %v22432_v62 = vpop.f32.mrb[53].mxu0  ;;  %v22437_v32 = vpop.f32.mrb[57].mxu1  ;;  %v12899_v58 = vsel %vm12772_vm2, %v26684_v2, -inf }
 0x3f9   : > { %12900 = vmax.xlane.f32.xlu1 %v12899_v58  ;;  %v26694_v61 = vpop.permute.xlu0 %5591  ;;  %v26706_v58 = vpop.permute.xlu1 %5593 }
 0x3fa   : > { %29652 = vst [vmem:[#allocation61_spill] sm:$0xff] %v26694_v61  ;;  %29657 = vst [vmem:[#allocation66_spill] sm:$0xff] %v26706_v58 }
 0x3fd   : > { %v26704_v62 = vpop.permute.xlu0 %5639 }
 0x3fe   : > { %29656 = vst [vmem:[#allocation65_spill] sm:$0xff] %v26704_v62 }
 0x402   : > { %v26698_v9 = vpop.f32.mrb[54].mxu0  ;;  %v26700_v7 = vpop.f32.mrb[58].mxu1 }
 0x403   : > { %29654 = vst [vmem:[#allocation63_spill] sm:$0xff] %v26698_v9  ;;  %29655 = vst [vmem:[#allocation64_spill] sm:$0xff] %v26700_v7  ;;  %v22442_v17 = vpop.f32.mrb[55].mxu0  ;;  %v22447_v21 = vpop.f32.mrb[59].mxu1  ;;  %v12905_v32 = vsel %vm12772_vm2, %v26698_v9, -inf }
 0x404   : > { %12906 = vmax.xlane.f32.xlu1 %v12905_v32  ;;  %v26714_v17 = vpop.permute.xlu0 %5711  ;;  %v26716_v21 = vpop.permute.xlu1 %5617 }
 0x405   : > { %29660 = vst [vmem:[#allocation69_spill] sm:$0xff] %v26714_v17  ;;  %29661 = vst [vmem:[#allocation70_spill] sm:$0xff] %v26716_v21 }
 0x408   : > { %v26718_v9 = vpop.permute.xlu0 %5569  ;;  %v26720_v32 = vpop.permute.xlu1 %5641 }
 0x409   : > { %v26708_v2 = vpop.f32.mrb[56].mxu0  ;;  %v26710_v43 = vpop.f32.mrb[60].mxu1  ;;  %29662 = vst [vmem:[#allocation71_spill] sm:$0xff] %v26718_v9  ;;  %29663 = vst [vmem:[#allocation72_spill] sm:$0xff] %v26720_v32 }
 0x40a   : > { %29658 = vst [vmem:[#allocation67_spill] sm:$0xff] %v26708_v2  ;;  %29659 = vst [vmem:[#allocation68_spill] sm:$0xff] %v26710_v43  ;;  %v22452_v61 = vpop.f32.mrb[57].mxu0  ;;  %v22457_v16 = vpop.f32.mrb[61].mxu1  ;;  %v12911_v48 = vsel %vm12772_vm2, %v26708_v2, -inf  ;;  %v12914_v20 = vsel %vm12772_vm2, %v26710_v43, -inf }
 0x40b   : > { %12912 = vmax.xlane.f32.xlu1 %v12911_v48 }
 0x40c   : > { %v26722_v62 = vpop.permute.xlu0 %5665  ;;  %v26730_v48 = vpop.permute.xlu1 %5689 }
 0x40d   : > { %29664 = vst [vmem:[#allocation73_spill] sm:$0xff] %v26722_v62  ;;  %29667 = vst [vmem:[#allocation76_spill] sm:$0xff] %v26730_v48  ;;  %v12902_v48 = vsel %vm12772_vm2, %v26686_v10, -inf }
 0x410   : > { %v26732_v17 = vpop.xlane.xlu0 %12774 }
 0x41b   : > { %v26724_v58 = vpop.f32.mrb[58].mxu0  ;;  %v26726_v35 = vpop.f32.mrb[62].mxu1 }
 0x41c   : > { %29665 = vst [vmem:[#allocation74_spill] sm:$0xff] %v26724_v58  ;;  %29666 = vst [vmem:[#allocation75_spill] sm:$0xff] %v26726_v35  ;;  %v22462_v61 = vpop.f32.mrb[59].mxu0  ;;  %v22467_v16 = vpop.f32.mrb[63].mxu1  ;;  %v12917_v2 = vsel %vm12772_vm2, %v26724_v58, -inf  ;;  %v12896_v58 = vsel %vm12772_vm2, %v26676_v1, -inf }
 0x41d   : > { %12918 = vmax.xlane.f32.xlu1 %v12917_v2  ;;  %v26740_v61 = vpop.permute.xlu1 %5713  ;;  %v26742_v16 = vpop.xlane.xlu0 %12780 }
 0x41e   : > { %29670 = vst [vmem:[#allocation79_spill] sm:$0xff] %v26740_v61 }
 0x41f   : > { %v26734_v21 = vpop.f32.mrb[60].mxu0  ;;  %v26736_v9 = vpop.f32.mrb[64].mxu1 }
 0x420   : > { %29668 = vst [vmem:[#allocation77_spill] sm:$0xff] %v26734_v21  ;;  %29669 = vst [vmem:[#allocation78_spill] sm:$0xff] %v26736_v9  ;;  %v22472_v32 = vpop.f32.mrb[61].mxu0  ;;  %v22477_v62 = vpop.f32.mrb[65].mxu1  ;;  %v12923_v55 = vsel %vm12772_vm2, %v26734_v21, -inf }
 0x421   : > { %12924 = vmax.xlane.f32.xlu0 %v12923_v55  ;;  %v12793_v2 = vpop.xlane.xlu1 %12792  ;;  %v26748_v27 = vpop.xlane.xlu0 %12783 }
 0x425   : > { %12897 = vmax.xlane.f32.xlu0 %v12896_v58  ;;  %v12778_v54 = vpop.xlane.xlu1 %12777  ;;  %v26756_v1 = vpop.xlane.xlu0 %12789 }
 0x426   : > { %v12966_v43 = vsub.f32 %v26035_v13, %v12778_v54 }
 0x429   : > { %12903 = vmax.xlane.f32.xlu0 %v12902_v48  ;;  %v26750_v62 = vpop.f32.mrb[62].mxu0  ;;  %v12799_v58 = vpop.xlane.xlu1 %12798 }
 0x42a   : > { %29671 = vst [vmem:[#allocation80_spill] sm:$0xff] %v26750_v62  ;;  %v26752_v32 = vpop.f32.mrb[66].mxu1  ;;  %v22482_v55 = vpop.f32.mrb[63].mxu0  ;;  %v12929_v61 = vsel %vm12772_vm2, %v26750_v62, -inf }
 0x42b   : > { %29672 = vst [vmem:[#allocation81_spill] sm:$0xff] %v26752_v32  ;;  %v22487_v21 = vpop.f32.mrb[67].mxu1  ;;  %12930 = vmax.xlane.f32.xlu1 %v12929_v61  ;;  %v26764_v55 = vpop.xlane.xlu0 %12795  ;;  %v12932_v13 = vsel %vm12772_vm2, %v26752_v32, -inf }
 0x42c   : > { %v12908_v21 = vsel %vm12772_vm2, %v26700_v7, -inf }
 0x42d   : > { %v12805_v62 = vpop.xlane.xlu1 %12804 }
 0x42f   : > { %v26768_v61 = vpop.xlane.xlu0 %12801 }
 0x430   : > { %v26758_v24 = vpop.f32.mrb[64].mxu0  ;;  %v26760_v10 = vpop.f32.mrb[68].mxu1 }
 0x431   : > { %29673 = vst [vmem:[#allocation82_spill] sm:$0xff] %v26758_v24  ;;  %29674 = vst [vmem:[#allocation83_spill] sm:$0xff] %v26760_v10  ;;  %v22492_v37 = vpop.f32.mrb[65].mxu0  ;;  %v22497_v48 = vpop.f32.mrb[69].mxu1  ;;  %v12935_v41 = vsel %vm12772_vm2, %v26758_v24, -inf }
 0x432   : > { %12936 = vmax.xlane.f32.xlu0 %v12935_v41  ;;  %v26772_v14 = vpop.xlane.xlu1 %12810 }
 0x433   : > { %v26770_v25 = vpop.xlane.xlu0 %12807 }
 0x436   : > { %12909 = vmax.xlane.f32.xlu0 %v12908_v21 }
 0x437   : > { %v26788_v38 = vpop.xlane.xlu0 %12813 }
 0x43e   : > { %v26774_v50 = vpop.f32.mrb[66].mxu0  ;;  %v26776_v37 = vpop.f32.mrb[70].mxu1 }
 0x43f   : > { %29675 = vst [vmem:[#allocation84_spill] sm:$0xff] %v26774_v50  ;;  %29676 = vst [vmem:[#allocation85_spill] sm:$0xff] %v26776_v37  ;;  %v22502_v48 = vpop.f32.mrb[67].mxu0  ;;  %v22507_v24 = vpop.f32.mrb[71].mxu1  ;;  %v12941_v41 = vsel %vm12772_vm2, %v26774_v50, -inf }
 0x440   : > { %12942 = vmax.xlane.f32.xlu0 %v12941_v41  ;;  %v26790_v48 = vpop.xlane.xlu1 %12786  ;;  %v12971_v24 = vsub.f32 %v26049_v28, %v12793_v2  ;;  %v12920_v41 = vsel %vm12772_vm2, %v26726_v35, -inf }
 0x444   : > { %v26780_v59 = vpop.f32.mrb[68].mxu0  ;;  %v26782_v21 = vpop.f32.mrb[72].mxu1  ;;  %12915 = vmax.xlane.f32.xlu0 %v12914_v20 }
 0x445   : > { %29677 = vst [vmem:[#allocation86_spill] sm:$0xff] %v26780_v59  ;;  %29678 = vst [vmem:[#allocation87_spill] sm:$0xff] %v26782_v21  ;;  %v22512_v7 = vpop.f32.mrb[69].mxu0  ;;  %v22517_v45 = vpop.f32.mrb[73].mxu1  ;;  %v12947_v63 = vsel %vm12772_vm2, %v26780_v59, -inf }
 0x446   : > { %12948 = vmax.xlane.f32.xlu1 %v12947_v63  ;;  %v12926_v45 = vsel %vm12772_vm2, %v26736_v9, -inf  ;;  %v26797_v7 = vpop.xlane.xlu0 %12819  ;;  %v12817_v50 = vpop.xlane.xlu1 %12816  ;;  %v13041_v59 = vmul.f32 1.442695, %v12971_v24  ;;  %v12965_v9 = vsub.f32 %v26005_v49, %v26732_v17  ;;  %v12975_v17 = vsub.f32 %v26385_v15, %v12805_v62 }
 0x448   : > { %12921 = vmax.xlane.f32.xlu0 %v12920_v41  ;;  %23232 = vpow2.f32 %v13041_v59  ;;  %v13031_v41 = vmul.f32 1.442695, %v12966_v43 }
 0x44a   : > { %12927 = vmax.xlane.f32.xlu1 %v12926_v45  ;;  %v26800_v19 = vpop.f32.mrb[70].mxu0  ;;  %v26802_v20 = vpop.f32.mrb[74].mxu1  ;;  %v12973_v45 = vsub.f32 %v26352_v46, %v12799_v58  ;;  %23234 = vpow2.f32 %v13031_v41  ;;  %v12938_v58 = vsel %vm12772_vm2, %v26760_v10, -inf  ;;  %v13049_v41 = vmul.f32 1.442695, %v12975_v17 }
 0x44b   : > { %29679 = vst [vmem:[#allocation88_spill] sm:$0xff] %v26800_v19  ;;  %29680 = vst [vmem:[#allocation89_spill] sm:$0xff] %v26802_v20  ;;  %v22522_v63 = vpop.f32.mrb[71].mxu0  ;;  %v22527_v28 = vpop.f32.mrb[75].mxu1  ;;  %v12953_v2 = vsel %vm12772_vm2, %v26800_v19, -inf }
 0x44c   : > { %12954 = vmax.xlane.f32.xlu0 %v12953_v2  ;;  %v26809_v24 = vpop.xlane.xlu0 %12825  ;;  %v26811_v54 = vpop.xlane.xlu1 %12822  ;;  %v13029_v63 = vmul.f32 1.442695, %v12965_v9  ;;  %v12967_v28 = vsub.f32 %v26062_v6, %v26742_v16  ;;  %v13045_v59 = vmul.f32 1.442695, %v12973_v45  ;;  %v12950_v9 = vsel %vm12772_vm2, %v26782_v21, -inf }
 0x44d   : > { %v12979_v16 = vsub.f32 %v26476_v26, %v12817_v50  ;;  %v12968_v2 = vsub.f32 %v26096_v8, %v26748_v27  ;;  %v12970_v26 = vsub.f32 %v26164_v47, %v26756_v1  ;;  %v12944_v8 = vsel %vm12772_vm2, %v26776_v37, -inf  ;;  %v29725_v37 = vld [vmem:[#allocation49_spill] sm:$0xff] }
 0x44e   : > { %v26817_v19 = vpop.f32.mrb[72].mxu0  ;;  %23236 = vpow2.f32 %v13029_v63  ;;  %v13033_v6 = vmul.f32 1.442695, %v12967_v28  ;;  %v12977_v63 = vsub.f32 %v26436_v36, %v26772_v14  ;;  %v12972_v1 = vsub.f32 %v26197_v40, %v26764_v55 }
 0x44f   : > { %29681 = vst [vmem:[#allocation90_spill] sm:$0xff] %v26817_v19  ;;  %v26819_v35 = vpop.f32.mrb[76].mxu1  ;;  %v22532_v49 = vpop.f32.mrb[73].mxu0  ;;  %v12959_v46 = vsel %vm12772_vm2, %v26817_v19, -inf  ;;  %23238 = vpow2.f32 %v13045_v59  ;;  %v13057_v50 = vmul.f32 1.442695, %v12979_v16  ;;  %v12969_v14 = vsub.f32 %v26134_v52, %v26790_v48 }
 0x450   : > { %29682 = vst [vmem:[#allocation91_spill] sm:$0xff] %v26819_v35  ;;  %12933 = vmax.xlane.f32.xlu0 %v12932_v13  ;;  %v22537_v43 = vpop.f32.mrb[77].mxu1  ;;  %12960 = vmax.xlane.f32.xlu1 %v12959_v46  ;;  %v26831_v45 = vpop.xlane.xlu0 %12831  ;;  %v12962_v62 = vsel %vm12772_vm2, %v26819_v35, -inf  ;;  %23240 = vpow2.f32 %v13033_v6  ;;  %v13035_v27 = vmul.f32 1.442695, %v12968_v2  ;;  %v12956_v59 = vsel %vm12772_vm2, %v26802_v20, -inf }
 0x451   : > { %v12829_v15 = vpop.xlane.xlu1 %12828  ;;  %23242 = vpow2.f32 %v13049_v41  ;;  %v13039_v43 = vmul.f32 1.442695, %v12970_v26  ;;  %v13053_v36 = vmul.f32 1.442695, %v12977_v63  ;;  %v13043_v55 = vmul.f32 1.442695, %v12972_v1 }
 0x452   : > { %v26835_v13 = vpop.eup %23232  ;;  %23244 = vpow2.f32 %v13057_v50  ;;  %v12983_v6 = vsub.f32 %v26560_v5, %v12829_v15  ;;  %v13037_v2 = vmul.f32 1.442695, %v12969_v14  ;;  %v12981_v52 = vsub.f32 %v26549_v29, %v26811_v54 }
 0x453   : > { %v13175_v28 = vsel %vm12772_vm2, %v26835_v13, 0.0  ;;  %23246 = vpow2.f32 %v13035_v27  ;;  %v12974_v5 = vsub.f32 %v26358_v31, %v26768_v61 }
 0x454   : > { %12951 = vmax.xlane.f32.xlu0 %v12950_v9  ;;  %12939 = vmax.xlane.f32.xlu1 %v12938_v58  ;;  %v26845_v49 = vpop.eup %23234  ;;  %v26849_v47 = vpop.xlane.xlu0 %12837  ;;  %23248 = vpow2.f32 %v13039_v43  ;;  %v13065_v15 = vmul.f32 1.442695, %v12983_v6  ;;  %v13061_v29 = vmul.f32 1.442695, %v12981_v52 }
 0x455   : > { %v12835_v46 = vpop.xlane.xlu1 %12834  ;;  %v13160_v9 = vsel %vm12772_vm2, %v26845_v49, 0.0  ;;  %23250 = vpow2.f32 %v13053_v36  ;;  %v13047_v31 = vmul.f32 1.442695, %v12974_v5 }
 0x456   : > { %23252 = vpow2.f32 %v13043_v55  ;;  %v12985_v61 = vsub.f32 %v26582_v39, %v12835_v46  ;;  %v12976_v39 = vsub.f32 %v26387_v53, %v26770_v25 }
 0x457   : > { %23254 = vpow2.f32 %v13037_v2 }
 0x458   : > { %12963 = vmax.xlane.f32.xlu0 %v12962_v62  ;;  %12945 = vmax.xlane.f32.xlu1 %v12944_v8  ;;  %v26853_v17 = vpop.eup %23236  ;;  %v26868_v48 = vpop.xlane.xlu0 %12843  ;;  %23256 = vpow2.f32 %v13065_v15  ;;  %v13069_v46 = vmul.f32 1.442695, %v12985_v61  ;;  %v13051_v25 = vmul.f32 1.442695, %v12976_v39 }
 0x459   : > { %v26859_v40 = vpop.eup %23238  ;;  %v13157_v16 = vsel %vm12772_vm2, %v26853_v17, 0.0  ;;  %v12841_v41 = vpop.xlane.xlu1 %12840  ;;  %23258 = vpow2.f32 %v13061_v29 }
 0x45a   : > { %v26864_v58 = vpop.eup %23240  ;;  %v13181_v62 = vsel %vm12772_vm2, %v26859_v40, 0.0  ;;  %v12987_v54 = vsub.f32 %v26594_v51, %v12841_v41  ;;  %v12978_v51 = vsub.f32 %v26441_v3, %v26788_v38  ;;  %23260 = vpow2.f32 %v13047_v31 }
 0x45b   : > { %v26872_v26 = vpop.eup %23242  ;;  %v13163_v50 = vsel %vm12772_vm2, %v26864_v58, 0.0  ;;  %v12980_v38 = vsub.f32 %v26478_v11, %v26797_v7 }
 0x45c   : > { %13176 = vadd.xlane.f32.xlu0 %v13175_v28  ;;  %12957 = vmax.xlane.f32.xlu1 %v12956_v59  ;;  %v26878_v8 = vpop.eup %23244  ;;  %v26881_v27 = vpop.xlane.xlu0 %12849  ;;  %v13187_v63 = vsel %vm12772_vm2, %v26872_v26, 0.0  ;;  %v13073_v36 = vmul.f32 1.442695, %v12987_v54  ;;  %v13055_v3 = vmul.f32 1.442695, %v12978_v51 }
 0x45d   : > { %29683 = vst [vmem:[#allocation92_spill] sm:$0xff] %v26878_v8  ;;  %v26885_v28 = vpop.eup %23246  ;;  %v12847_v43 = vpop.xlane.xlu1 %12846  ;;  %v13199_v1 = vsel %vm12772_vm2, %v26878_v8, 0.0  ;;  %v13059_v11 = vmul.f32 1.442695, %v12980_v38 }
 0x45e   : > { %v26890_v59 = vpop.eup %23248  ;;  %v13166_v14 = vsel %vm12772_vm2, %v26885_v28, 0.0  ;;  %23262 = vpow2.f32 %v13073_v36  ;;  %v12989_v53 = vsub.f32 %v26602_v56, %v12847_v43  ;;  %v12988_v56 = vsub.f32 %v26596_v42, %v26868_v48 }
 0x45f   : > { %v13172_v6 = vsel %vm12772_vm2, %v26890_v59, 0.0  ;;  %23264 = vpow2.f32 %v13069_v46 }
 0x460   : > { %13161 = vadd.xlane.f32.xlu0 %v13160_v9  ;;  %13158 = vadd.xlane.f32.xlu1 %v13157_v16  ;;  %v26896_v9 = vpop.eup %23250  ;;  %v12856_v55 = vpop.xlane.xlu0 %12855  ;;  %23266 = vpow2.f32 %v13055_v3  ;;  %v13077_v54 = vmul.f32 1.442695, %v12989_v53  ;;  %v13075_v42 = vmul.f32 1.442695, %v12988_v56 }
 0x461   : > { %29684 = vst [vmem:[#allocation93_spill] sm:$0xff] %v26896_v9  ;;  %v26902_v16 = vpop.eup %23252  ;;  %v12853_v2 = vpop.xlane.xlu1 %12852  ;;  %v13193_v52 = vsel %vm12772_vm2, %v26896_v9, 0.0  ;;  %23268 = vpow2.f32 %v13051_v25  ;;  %v12992_v48 = vsub.f32 %v26612_v22, %v12856_v55 }
 0x462   : > { %v26908_v41 = vpop.eup %23254  ;;  %v12991_v7 = vsub.f32 %v26610_v4, %v12853_v2  ;;  %23270 = vpow2.f32 %v13059_v11  ;;  %v12982_v4 = vsub.f32 %v26551_v34, %v26809_v24 }
 0x463   : > { %v26913_v5 = vpop.eup %23256  ;;  %23272 = vpow2.f32 %v13077_v54  ;;  %v13083_v22 = vmul.f32 1.442695, %v12992_v48 }
 0x464   : > { %13182 = vadd.xlane.f32.xlu0 %v13181_v62  ;;  %13164 = vadd.xlane.f32.xlu1 %v13163_v50  ;;  %v13178_v62 = vsel %vm12772_vm2, %v26902_v16, 0.0  ;;  %29685 = vst [vmem:[#allocation94_spill] sm:$0xff] %v26913_v5  ;;  %v12862_v15 = vpop.xlane.xlu0 %12861  ;;  %v13169_v50 = vsel %vm12772_vm2, %v26908_v41, 0.0  ;;  %v26918_v29 = vpop.eup %23258  ;;  %v13081_v61 = vmul.f32 1.442695, %v12991_v7 }
 0x465   : > { %29686 = vst [vmem:[#allocation95_spill] sm:$0xff] %v26918_v29  ;;  %v26924_v31 = vpop.eup %23260  ;;  %v12859_v43 = vpop.xlane.xlu1 %12858  ;;  %v13063_v34 = vmul.f32 1.442695, %v12982_v4  ;;  %v12994_v55 = vsub.f32 %v26620_v0, %v12862_v15  ;;  %v12986_v4 = vsub.f32 %v26584_v12, %v26849_v47 }
 0x466   : > { %23274 = vpow2.f32 %v13081_v61  ;;  %v12993_v24 = vsub.f32 %v26618_v18, %v12859_v43  ;;  %v12984_v18 = vsub.f32 %v26564_v23, %v26831_v45 }
 0x467   : > { %23276 = vpow2.f32 %v13075_v42  ;;  %v13087_v0 = vmul.f32 1.442695, %v12994_v55  ;;  %v13071_v48 = vmul.f32 1.442695, %v12986_v4 }
 0x468   : > { %13188 = vadd.xlane.f32.xlu0 %v13187_v63  ;;  %13200 = vadd.xlane.f32.xlu1 %v13199_v1  ;;  %v13211_v63 = vsel %vm12772_vm2, %v26913_v5, 0.0  ;;  %v13205_v1 = vsel %vm12772_vm2, %v26918_v29, 0.0  ;;  %v26930_v51 = vpop.eup %23262  ;;  %v26933_v36 = vpop.xlane.xlu0 %12867  ;;  %23278 = vpow2.f32 %v13063_v34 }
 0x469   : > { %29687 = vst [vmem:[#allocation96_spill] sm:$0xff] %v26930_v51  ;;  %v26937_v39 = vpop.eup %23264  ;;  %v13223_v46 = vsel %vm12772_vm2, %v26930_v51, 0.0  ;;  %v12865_v25 = vpop.xlane.xlu1 %12864  ;;  %23280 = vpow2.f32 %v13083_v22  ;;  %v12996_v55 = vsub.f32 %v26628_v60, %v26933_v36 }
 0x46a   : > { %29688 = vst [vmem:[#allocation97_spill] sm:$0xff] %v26937_v39  ;;  %v13217_v38 = vsel %vm12772_vm2, %v26937_v39, 0.0  ;;  %v12995_v23 = vsub.f32 %v26626_v57, %v12865_v25 }
 0x46c   : > { %13167 = vadd.xlane.f32.xlu0 %v13166_v14  ;;  %13173 = vadd.xlane.f32.xlu1 %v13172_v6  ;;  %v13184_v14 = vsel %vm12772_vm2, %v26924_v31, 0.0  ;;  %v26942_v6 = vpop.eup %23266  ;;  %v12874_v3 = vpop.xlane.xlu0 %12873  ;;  %v13089_v61 = vmul.f32 1.442695, %v12995_v23 }
 0x46d   : > { %29689 = vst [vmem:[#allocation98_spill] sm:$0xff] %v26942_v6  ;;  %v26947_v2 = vpop.eup %23268  ;;  %v13196_v53 = vsel %vm12772_vm2, %v26942_v6, 0.0  ;;  %v12998_v11 = vsub.f32 %v26636_v30, %v12874_v3  ;;  %v12871_v34 = vpop.xlane.xlu1 %12870 }
 0x46e   : > { %v13190_v7 = vsel %vm12772_vm2, %v26947_v2, 0.0 }
 0x46f   : > { %v13095_v54 = vmul.f32 1.442695, %v12998_v11  ;;  %v29701_v11 = vld [vmem:[#allocation43_spill] sm:$0xff] }
 0x470   : > { %13194 = vadd.xlane.f32.xlu0 %v13193_v52  ;;  %13179 = vadd.xlane.f32.xlu1 %v13178_v62  ;;  %v13085_v52 = vmul.f32 1.442695, %v12993_v24  ;;  %v26953_v62 = vpop.eup %23270 }
 0x471   : > { %29690 = vst [vmem:[#allocation99_spill] sm:$0xff] %v26953_v62  ;;  %v26958_v15 = vpop.eup %23272  ;;  %v13202_v45 = vsel %vm12772_vm2, %v26953_v62, 0.0  ;;  %v12877_v25 = vpop.xlane.xlu1 %12876 }
 0x472   : > { %29691 = vst [vmem:[#allocation100_spill] sm:$0xff] %v26958_v15  ;;  %23282 = vpow2.f32 %v13085_v52  ;;  %v26963_v56 = vpop.eup %23274  ;;  %v13229_v30 = vsel %vm12772_vm2, %v26958_v15, 0.0  ;;  %v12997_v52 = vsub.f32 %v26634_v44, %v12871_v34  ;;  %v29707_v34 = vld [vmem:[#allocation25_spill] sm:$0xff] }
 0x473   : > { %29692 = vst [vmem:[#allocation101_spill] sm:$0xff] %v26963_v56  ;;  %23284 = vpow2.f32 %v13087_v0  ;;  %v13235_v57 = vsel %vm12772_vm2, %v26963_v56, 0.0 }
 0x474   : > { %13170 = vadd.xlane.f32.xlu0 %v13169_v50  ;;  %13212 = vadd.xlane.f32.xlu1 %v13211_v63  ;;  %v13067_v50 = vmul.f32 1.442695, %v12984_v18  ;;  %v26967_v63 = vpop.eup %23276  ;;  %v13091_v18 = vmul.f32 1.442695, %v12996_v55  ;;  %v13093_v0 = vmul.f32 1.442695, %v12997_v52 }
 0x475   : > { %29693 = vst [vmem:[#allocation102_spill] sm:$0xff] %v26967_v63  ;;  %v26973_v43 = vpop.eup %23278 }
 0x476   : > { %23286 = vpow2.f32 %v13067_v50  ;;  %29694 = vst [vmem:[#allocation103_spill] sm:$0xff] %v26973_v43  ;;  %v26977_v42 = vpop.eup %23280  ;;  %v13208_v12 = vsel %vm12772_vm2, %v26973_v43, 0.0  ;;  %v12880_v50 = vpop.xlane.xlu0 %12879 }
 0x477   : > { %23288 = vpow2.f32 %v13095_v54  ;;  %29695 = vst [vmem:[#allocation104_spill] sm:$0xff] %v26977_v42  ;;  %v13238_v24 = vsel %vm12772_vm2, %v26977_v42, 0.0 }
 0x478   : > { %13206 = vadd.xlane.f32.xlu0 %v13205_v1  ;;  %13185 = vadd.xlane.f32.xlu1 %v13184_v14  ;;  %v13226_v1 = vsel %vm12772_vm2, %v26967_v63, 0.0  ;;  %v12990_v14 = vsub.f32 %v26604_v33, %v26881_v27  ;;  %23290 = vpow2.f32 %v13089_v61 }
 0x479   : > { %23292 = vpow2.f32 %v13071_v48 }
 0x47a   : > { %v13079_v22 = vmul.f32 1.442695, %v12990_v14  ;;  %v12886_v55 = vpop.xlane.xlu0 %12885 }
 0x47c   : > { %13224 = vadd.xlane.f32.xlu0 %v13223_v46  ;;  %13218 = vadd.xlane.f32.xlu1 %v13217_v38  ;;  %v26983_v47 = vpop.eup %23282  ;;  %23294 = vpow2.f32 %v13079_v22 }
 0x47d   : > { %29696 = vst [vmem:[#allocation105_spill] sm:$0xff] %v26983_v47  ;;  %v26987_v46 = vpop.eup %23284  ;;  %v13241_v33 = vsel %vm12772_vm2, %v26983_v47, 0.0  ;;  %23296 = vpow2.f32 %v13091_v18 }
 0x47e   : > { %29697 = vst [vmem:[#allocation106_spill] sm:$0xff] %v26987_v46  ;;  %v13244_v3 = vsel %vm12772_vm2, %v26987_v46, 0.0  ;;  %23298 = vpow2.f32 %v13093_v0  ;;  %v29752_v46 = vld [vmem:[#allocation52_spill] sm:$0xff] }
 0x480   : > { %13197 = vadd.xlane.f32.xlu0 %v13196_v53  ;;  %13191 = vadd.xlane.f32.xlu1 %v13190_v7  ;;  %v26993_v27 = vpop.eup %23286  ;;  %v12999_v7 = vsub.f32 %v29701_v11, %v12877_v25  ;;  %v12892_v25 = vpop.xlane.xlu0 %12891 }
 0x481   : > { %29698 = vst [vmem:[#allocation107_spill] sm:$0xff] %v26993_v27  ;;  %v26997_v38 = vpop.eup %23288  ;;  %v13214_v60 = vsel %vm12772_vm2, %v26993_v27, 0.0 }
 0x482   : > { %29699 = vst [vmem:[#allocation108_spill] sm:$0xff] %v26997_v38  ;;  %v27002_v36 = vpop.eup %23290  ;;  %v13256_v53 = vsel %vm12772_vm2, %v26997_v38, 0.0 }
 0x483   : > { %29700 = vst [vmem:[#allocation109_spill] sm:$0xff] %v27002_v36  ;;  %v13247_v44 = vsel %vm12772_vm2, %v27002_v36, 0.0  ;;  %v27009_v23 = vpop.eup %23292  ;;  %v29755_v36 = vld [vmem:[#allocation32_spill] sm:$0xff] }
 0x484   : > { %13203 = vadd.xlane.f32.xlu0 %v13202_v45  ;;  %13230 = vadd.xlane.f32.xlu1 %v13229_v30  ;;  %29702 = vst [vmem:[#allocation43_spill] sm:$0xff] %v27009_v23  ;;  %v29703_v45 = vld [vmem:[#allocation44_spill] sm:$0xff]  ;;  %v13097_v30 = vmul.f32 1.442695, %v12999_v7  ;;  %v13220_v4 = vsel %vm12772_vm2, %v27009_v23, 0.0 }
 0x485   : > { %v13000_v54 = vsub.f32 %v29703_v45, %v12880_v50 }
 0x486   : > { %v27014_v61 = vpop.eup %23294  ;;  %23300 = vpow2.f32 %v13097_v30 }
 0x487   : > { %29704 = vst [vmem:[#allocation44_spill] sm:$0xff] %v27014_v61  ;;  %v27018_v48 = vpop.eup %23296 }
 0x488   : > { %13236 = vadd.xlane.f32.xlu0 %v13235_v57  ;;  %13227 = vadd.xlane.f32.xlu1 %v13226_v1  ;;  %v13099_v57 = vmul.f32 1.442695, %v13000_v54  ;;  %v13232_v1 = vsel %vm12772_vm2, %v27014_v61, 0.0  ;;  %29705 = vst [vmem:[#allocation110_spill] sm:$0xff] %v27018_v48  ;;  %v13250_v14 = vsel %vm12772_vm2, %v27018_v48, 0.0 }
 0x48a   : > { %23302 = vpow2.f32 %v13099_v57 }
 0x48c   : > { %13209 = vadd.xlane.f32.xlu0 %v13208_v12  ;;  %13239 = vadd.xlane.f32.xlu1 %v13238_v24  ;;  %v27022_v12 = vpop.eup %23298  ;;  %v29708_v24 = vld [vmem:[#allocation36_spill] sm:$0xff] }
 0x48d   : > { %29706 = vst [vmem:[#allocation111_spill] sm:$0xff] %v27022_v12  ;;  %v27026_v22 = vadd.f32 %v29708_v24, %v29707_v34 }
 0x490   : > { %13242 = vadd.xlane.f32.xlu0 %v13241_v33  ;;  %13245 = vadd.xlane.f32.xlu1 %v13244_v3  ;;  %v13253_v33 = vsel %vm12772_vm2, %v27022_v12, 0.0  ;;  %v27032_v3 = vpop.eup %23300 }
 0x491   : > { %29709 = vst [vmem:[#allocation36_spill] sm:$0xff] %v27032_v3  ;;  %v13259_v18 = vsel %vm12772_vm2, %v27032_v3, 0.0 }
 0x494   : > { %13215 = vadd.xlane.f32.xlu0 %v13214_v60  ;;  %13257 = vadd.xlane.f32.xlu1 %v13256_v53  ;;  %v27038_v52 = vpop.eup %23302  ;;  %v12883_v60 = vpop.xlane.xlu1 %12882 }
 0x495   : > { %29710 = vst [vmem:[#allocation112_spill] sm:$0xff] %v27038_v52  ;;  %v13262_v53 = vsel %vm12772_vm2, %v27038_v52, 0.0  ;;  %v29741_v52 = vld [vmem:[#allocation39_spill] sm:$0xff] }
 0x498   : > { %13248 = vadd.xlane.f32.xlu0 %v13247_v44  ;;  %v12889_v11 = vpop.xlane.xlu1 %12888  ;;  %v29712_v44 = vld [vmem:[#allocation46_spill] sm:$0xff] }
 0x499   : > { %v13001_v45 = vsub.f32 %v29712_v44, %v12883_v60  ;;  %v13003_v21 = vsub.f32 %v29725_v37, %v12889_v11  ;;  %v29735_v11 = vld [vmem:[#allocation26_spill] sm:$0xff] }
 0x49b   : > { %v13101_v30 = vmul.f32 1.442695, %v13001_v45  ;;  %v13105_v32 = vmul.f32 1.442695, %v13003_v21 }
 0x49c   : > { %13221 = vadd.xlane.f32.xlu0 %v13220_v4  ;;  %v27046_v50 = vpop.xlane.xlu1 %12894  ;;  %v29713_v4 = vld [vmem:[#allocation50_spill] sm:$0xff] }
 0x49d   : > { %v13004_v57 = vsub.f32 %v29713_v4, %v12892_v25  ;;  %23304 = vpow2.f32 %v13101_v30  ;;  %v29722_v4 = vld [vmem:[#allocation47_spill] sm:$0xff] }
 0x4a0   : > { %13233 = vadd.xlane.f32.xlu0 %v13232_v1  ;;  %v27052_v1 = vpop.xlane.xlu1 %12900 }
 0x4a4   : > { %13251 = vadd.xlane.f32.xlu0 %v13250_v14  ;;  %v13107_v14 = vmul.f32 1.442695, %v13004_v57  ;;  %v13002_v57 = vsub.f32 %v29722_v4, %v12886_v55  ;;  %v29729_v55 = vld [vmem:[#allocation31_spill] sm:$0xff] }
 0x4a5   : > { %5571 = vrot.lane.b32.xlu1 %v27026_v22, %s23772_s27 }
 0x4a6   : > { %23306 = vpow2.f32 %v13107_v14  ;;  %v13103_v20 = vmul.f32 1.442695, %v13002_v57 }
 0x4a8   : > { %13254 = vadd.xlane.f32.xlu0 %v13253_v33  ;;  %v27056_v33 = vpop.xlane.xlu1 %12906  ;;  %23308 = vpow2.f32 %v13103_v20 }
 0x4a9   : > { %5619 = vrot.lane.b32.xlu1 %v27026_v22, %s23774_s22  ;;  %29715 = vst [vmem:[#allocation50_spill] sm:$0xff] %v27056_v33  ;;  %23310 = vpow2.f32 %v13105_v32  ;;  %v29737_v32 = vld [vmem:[#allocation40_spill] sm:$0xff] }
 0x4ac   : > { %13260 = vadd.xlane.f32.xlu0 %v13259_v18  ;;  %v27062_v60 = vpop.xlane.xlu1 %12912 }
 0x4ad   : > { %29717 = vst [vmem:[#allocation115_spill] sm:$0xff] %v27062_v60  ;;  %v29751_v60 = vld [vmem:[#allocation56_spill] sm:$0xff] }
 0x4ae   : > { %v27042_v0 = vpop.xlane.xlu0 %12924 }
 0x4af   : > { %29711 = vst [vmem:[#allocation113_spill] sm:$0xff] %v27042_v0  ;;  %v29738_v0 = vld [vmem:[#allocation55_spill] sm:$0xff] }
 0x4b0   : > { %13263 = vadd.xlane.f32.xlu0 %v13262_v53  ;;  %v27064_v53 = vpop.eup %23304  ;;  %v27068_v25 = vpop.xlane.xlu1 %12918 }
 0x4b1   : > { %29718 = vst [vmem:[#allocation116_spill] sm:$0xff] %v27064_v53  ;;  %29720 = vst [vmem:[#allocation118_spill] sm:$0xff] %v27068_v25  ;;  %v13265_v45 = vsel %vm12772_vm2, %v27064_v53, 0.0  ;;  %v27072_v30 = vpop.eup %23306  ;;  %v29732_v53 = vld [vmem:[#allocation29_spill] sm:$0xff] }
 0x4b2   : > { %v27044_v7 = vpop.xlane.xlu0 %12897  ;;  %29721 = vst [vmem:[#allocation119_spill] sm:$0xff] %v27072_v30  ;;  %v13274_v19 = vsel %vm12772_vm2, %v27072_v30, 0.0  ;;  %v29733_v30 = vld [vmem:[#allocation30_spill] sm:$0xff]  ;;  %v27106_v25 = vpop.eup %23308 }
 0x4b3   : > { %v5779_v57 = vcombine.low %v29733_v30, %v29732_v53  ;;  %v5780_v21 = vcombine.high %v29733_v30, %v29732_v53  ;;  %29739 = vst [vmem:[#allocation30_spill] sm:$0xff] %v27106_v25  ;;  %v29742_v53 = vld [vmem:[#allocation34_spill] sm:$0xff] }
 0x4b4   : > { %v5867_v30 = vcombine.low %v29742_v53, %v29741_v52 }
 0x4b6   : > { %v27049_v54 = vpop.xlane.xlu0 %12903 }
 0x4b8   : > { %v27077_v35 = vpop.xlane.xlu1 %12930 }
 0x4b9   : > { %29724 = vst [vmem:[#allocation120_spill] sm:$0xff] %v27077_v35 }
 0x4bf   : > { %v27054_v24 = vpop.xlane.xlu0 %12936 }
 0x4c0   : > { %29714 = vst [vmem:[#allocation46_spill] sm:$0xff] %v27054_v24 }
 0x4c3   : > { %v27060_v18 = vpop.xlane.xlu0 %12909 }
 0x4c4   : > { %29716 = vst [vmem:[#allocation114_spill] sm:$0xff] %v27060_v18 }
 0x4c6   : > { %5595 = vrot.lane.b32.xlu0 %v27026_v22, %s23771_s15 }
 0x4cd   : > { %v27066_v44 = vpop.xlane.xlu0 %12942  ;;  %13266 = vadd.xlane.f32.xlu1 %v13265_v45  ;;  %v29730_v45 = vld [vmem:[#allocation28_spill] sm:$0xff] }
 0x4ce   : > { %29719 = vst [vmem:[#allocation117_spill] sm:$0xff] %v27066_v44  ;;  %v5763_v4 = vcombine.low %v29730_v45, %v29729_v55 }
 0x4d1   : > { %v27075_v14 = vpop.xlane.xlu0 %12915  ;;  %13275 = vadd.xlane.f32.xlu1 %v13274_v19  ;;  %v5764_v19 = vcombine.high %v29730_v45, %v29729_v55  ;;  %v5884_v55 = vcombine.high %v29738_v0, %v29737_v32 }
 0x4d2   : > { %29723 = vst [vmem:[#allocation47_spill] sm:$0xff] %v27075_v14 }
 0x4d3   : > { %v27082_v44 = vpop.xlane.xlu1 %12948 }
 0x4d4   : > { %29726 = vst [vmem:[#allocation49_spill] sm:$0xff] %v27082_v44  ;;  %v5771_v44 = vrot.slane %v5763_v4, %v29735_v11 }
 0x4d5   : > { %v27084_v24 = vpop.xlane.xlu0 %12921 }
 0x4d6   : > { %29727 = vst [vmem:[#allocation121_spill] sm:$0xff] %v27084_v24  ;;  %v5778_v24 = vrot.slane %v5764_v19, %v29735_v11  ;;  %v27125_v19 = vpop.eup %23310 }
 0x4d7   : > { %v27090_v35 = vpop.xlane.xlu1 %12927  ;;  %29744 = vst [vmem:[#allocation55_spill] sm:$0xff] %v27125_v19 }
 0x4d8   : > { %29731 = vst [vmem:[#allocation31_spill] sm:$0xff] %v27090_v35  ;;  %v5883_v35 = vcombine.low %v29738_v0, %v29737_v32  ;;  %v13268_v0 = vsel %vm12772_vm2, %v27106_v25, 0.0  ;;  %v5898_v32 = vrot.slane %v5884_v55, %v29735_v11  ;;  %v5875_v25 = vrot.slane %v5867_v30, %v29735_v11  ;;  %v29750_v55 = vld [vmem:[#allocation45_spill] sm:$0xff] }
 0x4d9   : > { %v27086_v10 = vpop.xlane.xlu0 %12954 }
 0x4da   : > { %29728 = vst [vmem:[#allocation122_spill] sm:$0xff] %v27086_v10  ;;  %v5787_v10 = vrot.slane %v5779_v57, %v29735_v11  ;;  %v5868_v57 = vcombine.high %v29742_v53, %v29741_v52  ;;  %v5891_v38 = vrot.slane %v5883_v35, %v29735_v11  ;;  %v29748_v53 = vld [vmem:[#allocation27_spill] sm:$0xff] }
 0x4dc   : > { %v5827_v4 = vcombine.low %v5771_v44, %v5787_v10  ;;  %v5932_v33 = vcombine.high %v5875_v25, %v5891_v38 }
 0x4dd   : > { %v27096_v37 = vpop.xlane.xlu0 %12933  ;;  %v27101_v20 = vpop.xlane.xlu1 %12960 }
 0x4de   : > { %29734 = vst [vmem:[#allocation28_spill] sm:$0xff] %v27096_v37  ;;  %29736 = vst [vmem:[#allocation29_spill] sm:$0xff] %v27101_v20  ;;  %v5828_v37 = vcombine.high %v5771_v44, %v5787_v10  ;;  %v5794_v20 = vrot.slane %v5780_v21, %v29735_v11  ;;  %v29745_v21 = vld [vmem:[#allocation51_spill] sm:$0xff]  ;;  %v27133_v35 = vrot.slane %v5827_v4, %v29748_v53 }
 0x4df   : > { %v5931_v4 = vcombine.low %v5875_v25, %v5891_v38 }
 0x4e0   : > { %v5843_v10 = vcombine.low %v5778_v24, %v5794_v20  ;;  %v5844_v44 = vcombine.high %v5778_v24, %v5794_v20  ;;  %v5882_v24 = vrot.slane %v5868_v57, %v29735_v11  ;;  %v29749_v20 = vld [vmem:[#allocation48_spill] sm:$0xff] }
 0x4e1   : > { %v27111_v45 = vpop.xlane.xlu0 %12951  ;;  %v27118_v3 = vpop.xlane.xlu1 %12939  ;;  %v5899_v48 = vcombine.low %v29750_v55, %v29749_v20 }
 0x4e2   : > { %29740 = vst [vmem:[#allocation26_spill] sm:$0xff] %v27111_v45  ;;  %29743 = vst [vmem:[#allocation40_spill] sm:$0xff] %v27118_v3  ;;  %5667 = vrot.lane.b32.xlu1 %v27026_v22, %s23776_s16  ;;  %v29746_v45 = vld [vmem:[#allocation59_spill] sm:$0xff]  ;;  %v27136_v3 = vrot.slane %v5828_v37, %v29748_v53  ;;  %v5900_v37 = vcombine.high %v29750_v55, %v29749_v20  ;;  %v5947_v30 = vcombine.low %v5882_v24, %v5898_v32 }
 0x4e3   : > { %v5915_v12 = vcombine.low %v29746_v45, %v29745_v21  ;;  %v5916_v14 = vcombine.high %v29746_v45, %v29745_v21  ;;  %v13271_v45 = vsel %vm12772_vm2, %v27125_v19, 0.0  ;;  %v5948_v57 = vcombine.high %v5882_v24, %v5898_v32  ;;  %v29754_v21 = vld [vmem:[#allocation61_spill] sm:$0xff] }
 0x4e4   : > { %v6003_v42 = vcombine.low %v29755_v36, %v29754_v21  ;;  %v5851_v38 = vrot.slane %v5843_v10, %v29748_v53  ;;  %v5858_v25 = vrot.slane %v5844_v44, %v29748_v53  ;;  %v21544_v20 = vcombine.low %v27133_v35, %v27136_v3 }
 0x4e5   : > { %v27130_v52 = vpop.xlane.xlu0 %12963  ;;  %13269 = vadd.xlane.f32.xlu0 %v13268_v0  ;;  %v27146_v0 = vpop.xlane.xlu1 %12945  ;;  %v5923_v47 = vrot.slane %v5915_v12, %v29735_v11  ;;  %v5930_v55 = vrot.slane %v5916_v14, %v29735_v11  ;;  %v21546_v32 = vcombine.high %v27133_v35, %v27136_v3  ;;  %v5907_v24 = vrot.slane %v5899_v48, %v29735_v11 }
 0x4e6   : > { %29747 = vst [vmem:[#allocation39_spill] sm:$0xff] %v27130_v52  ;;  %v6019_v52 = vcombine.low %v29752_v46, %v29751_v60  ;;  %29753 = vst [vmem:[#allocation34_spill] sm:$0xff] %v27146_v0  ;;  %5691 = vrot.lane.b32.xlu1 %v27026_v22, %s23775_s24  ;;  %v6020_v12 = vcombine.high %v29752_v46, %v29751_v60  ;;  %v27173_v10 = vrot.slane %v5931_v4, %v29748_v53 }
 0x4e7   : > { %v27176_v44 = vrot.slane %v5932_v33, %v29748_v53  ;;  %v6004_v14 = vcombine.high %v29755_v36, %v29754_v21  ;;  %v5914_v3 = vrot.slane %v5900_v37, %v29735_v11  ;;  %v27182_v48 = vrot.slane %v5947_v30, %v29748_v53  ;;  %v29762_v30 = vld [vmem:[#allocation60_spill] sm:$0xff] }
 0x4e8   : > { %v6027_v0 = vrot.slane %v6019_v52, %v29735_v11  ;;  %v27185_v46 = vrot.slane %v5948_v57, %v29748_v53  ;;  %v6011_v60 = vrot.slane %v6003_v42, %v29735_v11  ;;  %v5963_v52 = vcombine.low %v5907_v24, %v5923_v47 }
 0x4e9   : > { %v27157_v61 = vpop.xlane.xlu0 %13176  ;;  %13272 = vadd.xlane.f32.xlu0 %v13271_v45  ;;  %v27170_v45 = vpop.xlane.xlu1 %12957  ;;  %v5964_v4 = vcombine.high %v5907_v24, %v5923_v47  ;;  %v5980_v19 = vcombine.high %v5914_v3, %v5930_v55  ;;  %v21548_v33 = vcombine.low %v5851_v38, %v5858_v25  ;;  %v21550_v56 = vcombine.high %v5851_v38, %v5858_v25  ;;  %v29757_v38 = vld [vmem:[#allocation38_spill] sm:$0xff] }
 0x4ea   : > { %29756 = vst [vmem:[#allocation51_spill] sm:$0xff] %v27170_v45  ;;  %v5979_v45 = vcombine.low %v5914_v3, %v5930_v55  ;;  %v6034_v36 = vrot.slane %v6020_v12, %v29735_v11  ;;  %v6067_v21 = vcombine.low %v6011_v60, %v6027_v0  ;;  %v6018_v42 = vrot.slane %v6004_v14, %v29735_v11  ;;  %v29760_v55 = vld [vmem:[#allocation65_spill] sm:$0xff] }
 0x4eb   : > { %v6068_v63 = vcombine.high %v6011_v60, %v6027_v0  ;;  %v27200_v25 = vadd.f32 %v29757_v38, %v29707_v34  ;;  %v27205_v12 = vrot.slane %v5963_v52, %v29748_v53  ;;  %v27208_v3 = vrot.slane %v5964_v4, %v29748_v53  ;;  %v29761_v4 = vld [vmem:[#allocation69_spill] sm:$0xff] }
 0x4ec   : > { %v27211_v0 = vrot.slane %v5979_v45, %v29748_v53  ;;  %v27214_v14 = vrot.slane %v5980_v19, %v29748_v53  ;;  %v27217_v60 = vrot.slane %v6067_v21, %v29748_v53  ;;  %v6084_v38 = vcombine.high %v6018_v42, %v6034_v36 }
 0x4ed   : > { %v13162_v35 = vpop.xlane.xlu0 %13161  ;;  %v13159_v37 = vpop.xlane.xlu1 %13158  ;;  %29758 = vst [vmem:[#allocation59_spill] sm:$0xff] %v27200_v25  ;;  %v27222_v52 = vrot.slane %v6068_v63, %v29748_v53  ;;  %v6051_v34 = vcombine.low %v29762_v30, %v29761_v4  ;;  %v27231_v21 = vrot.slane %v21544_v20, %v29735_v11  ;;  %v27240_v63 = vrot.slane %v21550_v56, %v29735_v11  ;;  %v29763_v20 = vld [vmem:[#allocation53_spill] sm:$0xff] }
 0x4ee   : > { %23312 = vrcp.f32 %v13162_v35  ;;  %v6083_v35 = vcombine.low %v6018_v42, %v6034_v36  ;;  %v27234_v36 = vrot.slane %v21546_v32, %v29735_v11  ;;  %v27237_v42 = vrot.slane %v21548_v33, %v29735_v11 }
 0x4ef   : > { %23314 = vrcp.f32 %v13159_v37  ;;  %v29759_v37 = vld [vmem:[#allocation62_spill] sm:$0xff]  ;;  %v27261_v51 = vrot.slane %v6084_v38, %v29748_v53 }
 0x4f0   : > { %v6035_v47 = vcombine.low %v29760_v55, %v29759_v37  ;;  %v6036_v45 = vcombine.high %v29760_v55, %v29759_v37  ;;  %v6052_v55 = vcombine.high %v29762_v30, %v29761_v4  ;;  %v13005_v37 = vsub.f32 %v29763_v20, %v27046_v50  ;;  %v29764_v20 = vld [vmem:[#allocation58_spill] sm:$0xff] }
 0x4f1   : > { %v27202_v24 = vpop.xlane.xlu0 %13182  ;;  %v13165_v57 = vpop.xlane.xlu1 %13164  ;;  %v27255_v56 = vrot.slane %v6083_v35, %v29748_v53  ;;  %v6059_v30 = vrot.slane %v6051_v34, %v29735_v11  ;;  %v13008_v33 = vsub.f32 %v29764_v20, %v27049_v54  ;;  %v6931_v38 = vcombine.low %v27237_v42, %v27240_v63  ;;  %v29765_v54 = vld [vmem:[#allocation66_spill] sm:$0xff]  ;;  %v29766_v20 = vld [vmem:[#allocation33_spill] sm:$0xff] }
 0x4f2   : > { %23316 = vrcp.f32 %v13165_v57  ;;  %v6043_v15 = vrot.slane %v6035_v47, %v29735_v11  ;;  %v6050_v4 = vrot.slane %v6036_v45, %v29735_v11  ;;  %v6899_v47 = vcombine.low %v27231_v21, %v27234_v36 }
 0x4f3   : > { %v6066_v50 = vrot.slane %v6052_v55, %v29735_v11  ;;  %v13109_v34 = vmul.f32 1.442695, %v13005_v37  ;;  %v6139_v5 = vcombine.low %v29766_v20, %v29765_v54  ;;  %v29769_v37 = vld [vmem:[#allocation41_spill] sm:$0xff]  ;;  %v13115_v25 = vmul.f32 1.442695, %v13008_v33 }
 0x4f4   : > { %v6099_v39 = vcombine.low %v6043_v15, %v6059_v30  ;;  %v6100_v27 = vcombine.high %v6043_v15, %v6059_v30  ;;  %v29772_v15 = vmov 0.0   ;;  %v27296_v9 = vrot.slane %v6931_v38, %v29748_v53 }
 0x4f5   : > { %v27228_v19 = vpop.xlane.xlu0 %13188  ;;  %v27258_v23 = vpop.xlane.xlu1 %13200  ;;  %v6115_v62 = vcombine.low %v6050_v4, %v6066_v50  ;;  %v6116_v30 = vcombine.high %v6050_v4, %v6066_v50  ;;  %v6140_v33 = vcombine.high %v29766_v20, %v29765_v54  ;;  %v6147_v50 = vrot.slane %v6139_v5, %v29735_v11 }
 0x4f6   : > { %v6932_v54 = vcombine.high %v27237_v42, %v27240_v63  ;;  %v29774_v20 = vcombine.low %v27173_v10, %v27176_v44  ;;  %v29777_v63 = vcombine.high %v27182_v48, %v27185_v46 }
 0x4f7   : > { %v27321_v5 = vrot.slane %v6115_v62, %v29748_v53  ;;  %v6900_v62 = vcombine.high %v27231_v21, %v27234_v36  ;;  %v29776_v36 = vcombine.low %v27182_v48, %v27185_v46  ;;  %v29778_v46 = vld [vmem:[#allocation76_spill] sm:$0xff] }
 0x4f8   : > { %v23313_v57 = vpop.eup %23312 }
 0x4f9   : > { %v13168_v35 = vpop.xlane.xlu0 %13167  ;;  %v13414_v32 = vmul.f32 %v23313_v57, %v26845_v49  ;;  %v23315_v45 = vpop.eup %23314  ;;  %v29767_v49 = vld [vmem:[#allocation70_spill] sm:$0xff]  ;;  %v29768_v57 = vld [vmem:[#allocation71_spill] sm:$0xff]  ;;  %v27359_v42 = vrot.slane %v29776_v36, %v29735_v11 }
 0x4fa   : > { %23318 = vrcp.f32 %v13168_v35  ;;  %v6155_v29 = vcombine.low %v29768_v57, %v29767_v49  ;;  %v13174_v43 = vpop.xlane.xlu1 %13173  ;;  %v6156_v18 = vcombine.high %v29768_v57, %v29767_v49  ;;  %v13413_v55 = vmul.f32 %v23315_v45, %v26853_v17  ;;  %v29770_v35 = vld [vmem:[#allocation42_spill] sm:$0xff] }
 0x4fb   : > { %22546 = vmatmul.mubr.msk.f32.vlgmr.msra.gmra.mrb[78].mxu1 %vm12772_vm2, %v13414_v32  ;;  %23320 = vrcp.f32 %v13174_v43  ;;  %v29771_v8 = vcombine.high %v29769_v37, %v29770_v35  ;;  %v27293_v32 = vrot.slane %v6899_v47, %v29748_v53  ;;  %v21563_v43 = vcombine.low %v27255_v56, %v27261_v51 }
 0x4fc   : > { %22555 = vmatprep.mubr.msk.f32.mxu1 %vm23779_vm0, %v29772_v15  ;;  %v23317_v17 = vpop.eup %23316  ;;  %23322 = vpow2.f32 %v13109_v34  ;;  %22541 = vmatmul.mubr.msk.f32.vlgmr.msra.gmra.mrb[74].mxu0 %vm12772_vm2, %v13413_v55  ;;  %v6163_v4 = vrot.slane %v6155_v29, %v29735_v11  ;;  %v29773_v47 = vcombine.low %v29769_v37, %v29770_v35  ;;  %v27315_v49 = vrot.slane %v6099_v39, %v29748_v53 }
 0x4fd   : > { %22554 = vmatpush3.msra.mxu1 %v29771_v8  ;;  %v27290_v6 = vpop.xlane.xlu0 %13194  ;;  %22550 = vmatprep.mubr.msk.f32.mxu0 %vm23779_vm0, %v29772_v15  ;;  %v13415_v45 = vmul.f32 %v23317_v17, %v26864_v58  ;;  %v27318_v34 = vrot.slane %v6100_v27, %v29748_v53  ;;  %v27327_v29 = vrot.slane %v6116_v30, %v29748_v53  ;;  %v29779_v17 = vld [vmem:[#allocation72_spill] sm:$0xff] }
 0x4fe   : > { %22563 = vmatprep.subr.mxu1 %v29772_v15  ;;  %22549 = vmatpush3.msra.mxu0 %v29773_v47  ;;  %v13180_v38 = vpop.xlane.xlu1 %13179  ;;  %v27330_v58 = vrot.slane %v6156_v18, %v29735_v11  ;;  %v6951_v39 = vcombine.low %v27293_v32, %v27296_v9  ;;  %v27343_v18 = vrot.slane %v29774_v20, %v29735_v11 }
 0x4ff   : > { %23324 = vrcp.f32 %v13180_v38  ;;  %22558 = vmatprep.subr.mxu0 %v29772_v15  ;;  %5643 = vrot.lane.b32.xlu0 %v27026_v22, %s23773_s14  ;;  %v29775_v57 = vcombine.high %v27173_v10, %v27176_v44  ;;  %v27365_v55 = vrot.slane %v29777_v63, %v29735_v11  ;;  %v27368_v35 = vrot.slane %v6140_v33, %v29735_v11 }
 0x500   : > { %23326 = vpow2.f32 %v13115_v25  ;;  %22551 = vmatmul.mubr.msk.f32.vlgmr.msra.gmra.mrb[76].mxu0 %vm12772_vm2, %v13415_v45  ;;  %v6203_v30 = vcombine.low %v6147_v50, %v6163_v4  ;;  %v6204_v10 = vcombine.high %v6147_v50, %v6163_v4  ;;  %v6171_v47 = vcombine.low %v29779_v17, %v29778_v46 }
 0x501   : > { %v13171_v27 = vpop.xlane.xlu0 %13170  ;;  %22559 = vmatpush3.msra.mxu0 %v6951_v39  ;;  %22560 = vmatprep.mubr.msk.f32.mxu0 %vm23779_vm0, %v29772_v15  ;;  %v27353_v21 = vrot.slane %v29775_v57, %v29735_v11  ;;  %v6952_v38 = vcombine.high %v27293_v32, %v27296_v9  ;;  %v27388_v45 = vrot.slane %v6900_v62, %v29748_v53 }
 0x502   : > { %23328 = vrcp.f32 %v13171_v27  ;;  %v27345_v25 = vpop.xlane.xlu1 %13212  ;;  %22568 = vmatprep.subr.mxu0 %v29772_v15  ;;  %v6946_v39 = vrot.slane %v6932_v54, %v29748_v53  ;;  %v7051_v57 = vcombine.low %v27359_v42, %v27365_v55  ;;  %v27404_v62 = vrot.slane %v6203_v30, %v29748_v53 }
 0x503   : > { %23330 = vrcp.f32 %v27157_v61  ;;  %5715 = vrot.lane.b32.xlu0 %v27026_v22, %s23777_s2  ;;  %v6219_v61 = vcombine.low %v27368_v35, %v27330_v58  ;;  %v27407_v54 = vrot.slane %v6204_v10, %v29748_v53  ;;  %v27416_v63 = vrot.slane %v6171_v47, %v29735_v11 }
 0x504   : > { %v23319_v37 = vpop.eup %23318  ;;  %23332 = vrcp.f32 %v27202_v24  ;;  %v6220_v24 = vcombine.high %v27368_v35, %v27330_v58  ;;  %v6954_v58 = vcombine.high %v27388_v45, %v6946_v39  ;;  %v7020_v35 = vcombine.high %v27343_v18, %v27353_v21 }
 0x505   : > { %v27380_v33 = vpop.xlane.xlu0 %13206  ;;  %v13416_v50 = vmul.f32 %v23319_v37, %v26885_v28  ;;  %v23321_v4 = vpop.eup %23320  ;;  %v7019_v28 = vcombine.low %v27343_v18, %v27353_v21  ;;  %v29782_v21 = vld [vmem:[#allocation54_spill] sm:$0xff] }
 0x506   : > { %v13186_v20 = vpop.xlane.xlu1 %13185  ;;  %v27399_v9 = vpop.eup %23322  ;;  %v13418_v30 = vmul.f32 %v23321_v4, %v26890_v59  ;;  %v7059_v4 = vrot.slane %v7051_v57, %v29748_v53  ;;  %v13006_v36 = vsub.f32 %v29782_v21, %v27044_v7  ;;  %v27465_v21 = vrot.slane %v7020_v35, %v29748_v53 }
 0x507   : > { %22556 = vmatmul.mubr.msk.f32.vlgmr.msra.gmra.mrb[80].mxu1 %vm12772_vm2, %v13416_v50  ;;  %23334 = vrcp.f32 %v13186_v20  ;;  %v27423_v50 = vrot.slane %v6219_v61, %v29748_v53  ;;  %v29781_v20 = vld [vmem:[#allocation73_spill] sm:$0xff]  ;;  %v13277_v48 = vsel %vm12772_vm2, %v27399_v9, 0.0  ;;  %v7027_v59 = vrot.slane %v7019_v28, %v29748_v53 }
 0x508   : > { %22564 = vmatpush3.msra.mxu1 %v6952_v38  ;;  %22565 = vmatprep.mubr.msk.f32.mxu1 %vm23779_vm0, %v29772_v15  ;;  %v29780_v38 = vld [vmem:[#allocation79_spill] sm:$0xff]  ;;  %v7052_v61 = vcombine.high %v27359_v42, %v27365_v55  ;;  %23336 = vrcp.f32 %v27228_v19  ;;  %v29783_v28 = vcombine.low %v27205_v12, %v27208_v3  ;;  %v29784_v19 = vcombine.high %v27205_v12, %v27208_v3 }
 0x509   : > { %v27418_v37 = vpop.xlane.xlu0 %13224  ;;  %22573 = vmatprep.subr.mxu1 %v29772_v15  ;;  %v23325_v10 = vpop.eup %23324  ;;  %v6187_v32 = vcombine.low %v29781_v20, %v29780_v38  ;;  %v6188_v18 = vcombine.high %v29781_v20, %v29780_v38  ;;  %23338 = vrcp.f32 %v27290_v6  ;;  %v21567_v35 = vcombine.low %v27404_v62, %v27407_v54 }
 0x50a   : > { %v27430_v47 = vpop.eup %23326  ;;  %v27432_v27 = vpop.xlane.xlu1 %13218  ;;  %13278 = vadd.xlane.f32.xlu1 %v13277_v48  ;;  %v13420_v7 = vmul.f32 %v23325_v10, %v26902_v16  ;;  %v27461_v55 = vrot.slane %v29784_v19, %v29735_v11  ;;  %v29786_v16 = vcombine.high %v27211_v0, %v27214_v14  ;;  %v13111_v10 = vmul.f32 1.442695, %v13006_v36 }
 0x50b   : > { %22566 = vmatmul.mubr.msk.f32.vlgmr.msra.gmra.mrb[82].mxu1 %vm12772_vm2, %v13418_v30  ;;  %v27450_v30 = vrot.slane %v29783_v28, %v29735_v11  ;;  %v29785_v28 = vcombine.low %v27211_v0, %v27214_v14  ;;  %v13286_v3 = vsel %vm12772_vm2, %v27430_v47, 0.0  ;;  %v29787_v0 = vld [vmem:[#allocation57_spill] sm:$0xff]  ;;  %v7083_v36 = vcombine.low %v7027_v59, %v7059_v4 }
 0x50c   : > { %v23329_v44 = vpop.eup %23328  ;;  %22574 = vmatpush3.msra.mxu1 %v6954_v58  ;;  %22575 = vmatprep.mubr.msk.f32.mxu1 %vm23779_vm0, %v29772_v15  ;;  %v6953_v58 = vcombine.low %v27388_v45, %v6946_v39  ;;  %v7066_v45 = vrot.slane %v7052_v61, %v29748_v53  ;;  %v27486_v39 = vrot.slane %v6220_v24, %v29748_v53 }
 0x50d   : > { %v13198_v57 = vpop.xlane.xlu0 %13197  ;;  %22583 = vmatprep.subr.mxu1 %v29772_v15  ;;  %v13417_v42 = vmul.f32 %v23329_v44, %v26908_v41  ;;  %v23331_v48 = vpop.eup %23330  ;;  %v27471_v8 = vrot.slane %v29785_v28, %v29735_v11  ;;  %v27477_v41 = vrot.slane %v29786_v16, %v29735_v11  ;;  %v7084_v44 = vcombine.high %v7027_v59, %v7059_v4 }
 0x50e   : > { %v13192_v12 = vpop.xlane.xlu1 %13191  ;;  %v13007_v14 = vsub.f32 %v29787_v0, %v27052_v1  ;;  %13287 = vadd.xlane.f32.xlu1 %v13286_v3  ;;  %v23333_v6 = vpop.eup %23332  ;;  %v13419_v61 = vmul.f32 %v23331_v48, %v26835_v13  ;;  %v7035_v24 = vcombine.low %v27450_v30, %v27461_v55  ;;  %v21569_v1 = vcombine.high %v27404_v62, %v27407_v54 }
 0x50f   : > { %22561 = vmatmul.mubr.msk.f32.vlgmr.msra.gmra.mrb[78].mxu0 %vm12772_vm2, %v13417_v42  ;;  %22576 = vmatmul.mubr.msk.f32.vlgmr.msra.gmra.mrb[84].mxu1 %vm12772_vm2, %v13420_v7  ;;  %23340 = vrcp.f32 %v13192_v12  ;;  %v7067_v19 = vcombine.low %v27471_v8, %v27477_v41  ;;  %v7085_v59 = vcombine.low %v27465_v21, %v7066_v45  ;;  %v7068_v16 = vcombine.high %v27471_v8, %v27477_v41 }
 0x510   : > { %22569 = vmatpush3.msra.mxu0 %v6953_v58  ;;  %22584 = vmatpush3.msra.mxu1 %v7084_v44  ;;  %23342 = vrcp.f32 %v13198_v57  ;;  %v27505_v58 = vrot.slane %v6187_v32, %v29735_v11  ;;  %v7086_v57 = vcombine.high %v27465_v21, %v7066_v45  ;;  %v13113_v48 = vmul.f32 1.442695, %v13007_v14 }
 0x511   : > { %v13204_v42 = vpop.xlane.xlu0 %13203  ;;  %22570 = vmatprep.mubr.msk.f32.mxu0 %vm23779_vm0, %v29772_v15  ;;  %v23335_v7 = vpop.eup %23334  ;;  %22578 = vmatprep.subr.mxu0 %v29772_v15  ;;  %23344 = vpow2.f32 %v13111_v10  ;;  %v7036_v32 = vcombine.high %v27450_v30, %v27461_v55  ;;  %v7043_v28 = vrot.slane %v7035_v24, %v29748_v53  ;;  %v29788_v30 = vcombine.low %v27217_v60, %v27222_v52 }
 0x512   : > { %22585 = vmatprep.mubr.msk.f32.mxu1 %vm23779_vm0, %v29772_v15  ;;  %22593 = vmatprep.subr.mxu1 %v29772_v15  ;;  %v13422_v13 = vmul.f32 %v23335_v7, %v26924_v31  ;;  %23346 = vrcp.f32 %v27258_v23  ;;  %v13421_v31 = vmul.f32 %v23333_v6, %v26859_v40  ;;  %v23337_v12 = vpop.eup %23336  ;;  %v7075_v23 = vrot.slane %v7067_v19, %v29748_v53 }
 0x513   : > { %22571 = vmatmul.mubr.msk.f32.vlgmr.msra.gmra.mrb[80].mxu0 %vm12772_vm2, %v13419_v61  ;;  %23348 = vrcp.f32 %v13204_v42  ;;  %v27532_v55 = vrot.slane %v29788_v30, %v29735_v11  ;;  %v29789_v40 = vcombine.high %v27217_v60, %v27222_v52  ;;  %v27544_v8 = vrot.slane %v6188_v18, %v29735_v11 }
 0x514   : > { %22579 = vmatpush3.msra.mxu0 %v7083_v36  ;;  %22580 = vmatprep.mubr.msk.f32.mxu0 %vm23779_vm0, %v29772_v15  ;;  %v27552_v41 = vrot.slane %v21563_v43, %v29735_v11  ;;  %v29790_v60 = vcombine.high %v27255_v56, %v27261_v51  ;;  %v21571_v38 = vcombine.low %v27423_v50, %v27486_v39  ;;  %23350 = vpow2.f32 %v13113_v48  ;;  %v27568_v43 = vpop.xlane.xlu1 %13230  ;;  %v23339_v51 = vpop.eup %23338 }
 0x515   : > { %22586 = vmatmul.mubr.msk.f32.vlgmr.msra.gmra.mrb[86].mxu1 %vm12772_vm2, %v13422_v13  ;;  %v27518_v4 = vpop.xlane.xlu0 %13236  ;;  %22588 = vmatprep.subr.mxu0 %v29772_v15  ;;  %v27538_v21 = vrot.slane %v29789_v40, %v29735_v11  ;;  %v29791_v20 = vcombine.high %v29779_v17, %v29778_v46  ;;  %v6235_v3 = vcombine.low %v27416_v63, %v27505_v58  ;;  %23352 = vrcp.f32 %v27380_v33 }
 0x516   : > { %22594 = vmatpush3.msra.mxu1 %v7086_v57  ;;  %22595 = vmatprep.mubr.msk.f32.mxu1 %vm23779_vm0, %v29772_v15  ;;  %v27558_v52 = vrot.slane %v29790_v60, %v29735_v11  ;;  %v13423_v44 = vmul.f32 %v23337_v12, %v26872_v26  ;;  %v7050_v46 = vrot.slane %v7036_v32, %v29748_v53 }
 0x517   : > { %22581 = vmatmul.mubr.msk.f32.vlgmr.msra.gmra.mrb[82].mxu0 %vm12772_vm2, %v13421_v31  ;;  %22603 = vmatprep.subr.mxu1 %v29772_v15  ;;  %v6186_v18 = vrot.slane %v29791_v20, %v29735_v11  ;;  %v7082_v17 = vrot.slane %v7068_v16, %v29748_v53  ;;  %v21573_v0 = vcombine.high %v27423_v50, %v27486_v39 }
 0x518   : > { %22589 = vmatpush3.msra.mxu0 %v7085_v59  ;;  %22590 = vmatprep.mubr.msk.f32.mxu0 %vm23779_vm0, %v29772_v15  ;;  %v7087_v14 = vcombine.low %v7043_v28, %v7075_v23  ;;  %v7155_v10 = vcombine.low %v27532_v55, %v27538_v21  ;;  %v6236_v33 = vcombine.high %v27416_v63, %v27505_v58  ;;  %v27602_v48 = vpop.xlane.xlu1 %13227 }
 0x519   : > { %v13210_v56 = vpop.xlane.xlu0 %13209  ;;  %22598 = vmatprep.subr.mxu0 %v29772_v15  ;;  %v23341_v45 = vpop.eup %23340  ;;  %v6251_v6 = vcombine.low %v6186_v18, %v27544_v8  ;;  %v7187_v42 = vcombine.low %v27552_v41, %v27558_v52  ;;  %v27589_v24 = vrot.slane %v6235_v3, %v29748_v53  ;;  %v6252_v7 = vcombine.high %v6186_v18, %v27544_v8 }
 0x51a   : > { %23354 = vrcp.f32 %v13210_v56  ;;  %v13424_v26 = vmul.f32 %v23341_v45, %v26947_v2  ;;  %v23343_v61 = vpop.eup %23342  ;;  %v7088_v36 = vcombine.high %v7043_v28, %v7075_v23  ;;  %v29792_v2 = vld [vmem:[#allocation93_spill] sm:$0xff]  ;;  %v7089_v58 = vcombine.low %v7050_v46, %v7082_v17 }
 0x51b   : > { %22591 = vmatmul.mubr.msk.f32.vlgmr.msra.gmra.mrb[84].mxu0 %vm12772_vm2, %v13423_v44  ;;  %v13425_v19 = vmul.f32 %v23339_v51, %v29792_v2  ;;  %v7090_v13 = vcombine.high %v7050_v46, %v7082_v17  ;;  %v27599_v57 = vpop.eup %23344  ;;  %23356 = vrcp.f32 %v27345_v25  ;;  %v7163_v59 = vrot.slane %v7155_v10, %v29748_v53  ;;  %v29793_v25 = vld [vmem:[#allocation98_spill] sm:$0xff]  ;;  %v29800_v46 = vld [vmem:[#allocation99_spill] sm:$0xff] }
 0x51c   : > { %22599 = vmatpush3.msra.mxu0 %v7087_v14  ;;  %22600 = vmatprep.mubr.msk.f32.mxu0 %vm23779_vm0, %v29772_v15  ;;  %v7156_v32 = vcombine.high %v27532_v55, %v27538_v21  ;;  %v7188_v31 = vcombine.high %v27552_v41, %v27558_v52  ;;  %v23347_v28 = vpop.eup %23346  ;;  %v13426_v16 = vmul.f32 %v23343_v61, %v29793_v25  ;;  %23358 = vrcp.f32 %v27432_v27 }
 0x51d   : > { %22596 = vmatmul.mubr.msk.f32.vlgmr.msra.gmra.mrb[88].mxu1 %vm12772_vm2, %v13424_v26  ;;  %v27595_v63 = vpop.xlane.xlu0 %13242  ;;  %22608 = vmatprep.subr.mxu0 %v29772_v15  ;;  %v7195_v12 = vrot.slane %v7187_v42, %v29748_v53  ;;  %v29794_v23 = vcombine.low %v27315_v49, %v27318_v34  ;;  %v23349_v40 = vpop.eup %23348  ;;  %v29795_v55 = vcombine.high %v27315_v49, %v27318_v34  ;;  %v29798_v49 = vld [vmem:[#allocation59_spill] sm:$0xff] }
 0x51e   : > { %22604 = vmatpush3.msra.mxu1 %v7088_v36  ;;  %22605 = vmatprep.mubr.msk.f32.mxu1 %vm23779_vm0, %v29772_v15  ;;  %v29796_v8 = vcombine.low %v27321_v5, %v27327_v29  ;;  %v29797_v60 = vcombine.high %v27321_v5, %v27327_v29  ;;  %v27636_v20 = vrot.slane %v6236_v33, %v29748_v53  ;;  %v27648_v51 = vpop.eup %23350  ;;  %v13280_v5 = vsel %vm12772_vm2, %v27599_v57, 0.0  ;;  %v29799_v29 = vld [vmem:[#allocation92_spill] sm:$0xff]  ;;  %v27659_v33 = vpop.xlane.xlu1 %13239 }
 0x51f   : > { %22613 = vmatprep.subr.mxu1 %v29772_v15  ;;  %22601 = vmatmul.mubr.msk.f32.vlgmr.msra.gmra.mrb[86].mxu0 %vm12772_vm2, %v13425_v19  ;;  %v27619_v30 = vrot.slane %v29794_v23, %v29735_v11  ;;  %v7122_v21 = vrot.slane %v29795_v55, %v29735_v11  ;;  %v27639_v18 = vrot.slane %v6251_v6, %v29748_v53  ;;  %v23353_v44 = vpop.eup %23352  ;;  %v13283_v19 = vsel %vm12772_vm2, %v27648_v51, 0.0 }
 0x520   : > { %22609 = vmatpush3.msra.mxu0 %v7089_v58  ;;  %22610 = vmatprep.mubr.msk.f32.mxu0 %vm23779_vm0, %v29772_v15  ;;  %v7138_v41 = vrot.slane %v29796_v8, %v29735_v11  ;;  %v7154_v52 = vrot.slane %v29797_v60, %v29735_v11  ;;  %v27642_v3 = vrot.slane %v6252_v7, %v29748_v53  ;;  %v29801_v58 = vld [vmem:[#allocation103_spill] sm:$0xff] }
 0x521   : > { %5597 = vrot.lane.b32.xlu1 %v29798_v49, %s23771_s15  ;;  %22606 = vmatmul.mubr.msk.f32.vlgmr.msra.gmra.mrb[90].mxu1 %vm12772_vm2, %v13426_v16  ;;  %v13216_v34 = vpop.xlane.xlu0 %13215  ;;  %v13427_v56 = vmul.f32 %v23347_v28, %v29799_v29  ;;  %v7170_v27 = vrot.slane %v7156_v32, %v29748_v53  ;;  %v13428_v17 = vmul.f32 %v23349_v40, %v29800_v46  ;;  %v29805_v29 = vld [vmem:[#allocation97_spill] sm:$0xff] }
 0x522   : > { %22614 = vmatpush3.msra.mxu1 %v7090_v13  ;;  %23360 = vrcp.f32 %v13216_v34  ;;  %22615 = vmatprep.mubr.msk.f32.mxu1 %vm23779_vm0, %v29772_v15  ;;  %v7219_v45 = vcombine.low %v7163_v59, %v7195_v12  ;;  %v7202_v14 = vrot.slane %v7188_v31, %v29748_v53  ;;  %v7220_v6 = vcombine.high %v7163_v59, %v7195_v12  ;;  %v27717_v16 = vpop.xlane.xlu1 %13245 }
 0x523   : > { %13281 = vadd.xlane.f32.xlu0 %v13280_v5  ;;  %22618 = vmatprep.subr.mxu0 %v29772_v15  ;;  %v7171_v26 = vcombine.low %v27619_v30, %v7122_v21  ;;  %v7203_v42 = vcombine.low %v7138_v41, %v7154_v52  ;;  %v7172_v7 = vcombine.high %v27619_v30, %v7122_v21  ;;  %23362 = vrcp.f32 %v27418_v37  ;;  %v29803_v30 = vld [vmem:[#allocation94_spill] sm:$0xff] }
 0x524   : > { %v23355_v10 = vpop.eup %23354  ;;  %22623 = vmatprep.subr.mxu1 %v29772_v15  ;;  %22611 = vmatmul.mubr.msk.f32.vlgmr.msra.gmra.mrb[88].mxu0 %vm12772_vm2, %v13427_v56  ;;  %v7204_v36 = vcombine.high %v7138_v41, %v7154_v52  ;;  %v27674_v2 = vrot.slane %v21567_v35, %v29735_v11  ;;  %v27684_v59 = vrot.slane %v21569_v1, %v29735_v11  ;;  %v29802_v35 = vld [vmem:[#allocation95_spill] sm:$0xff]  ;;  %23364 = vrcp.f32 %v27568_v43 }
 0x525   : > { %5621 = vrot.lane.b32.xlu1 %v29798_v49, %s23774_s22  ;;  %22616 = vmatmul.mubr.msk.f32.vlgmr.msra.gmra.mrb[92].mxu1 %vm12772_vm2, %v13428_v17  ;;  %v27667_v61 = vpop.xlane.xlu0 %13248  ;;  %v13430_v13 = vmul.f32 %v23355_v10, %v29801_v58  ;;  %v13429_v32 = vmul.f32 %v23353_v44, %v29802_v35  ;;  %v27693_v37 = vrot.slane %v21571_v38, %v29735_v11  ;;  %v23357_v62 = vpop.eup %23356  ;;  %v29804_v52 = vld [vmem:[#allocation107_spill] sm:$0xff] }
 0x526   : > { %22619 = vmatpush3.msra.mxu0 %v7219_v45  ;;  %22624 = vmatpush3.msra.mxu1 %v7220_v6  ;;  %v27699_v31 = vrot.slane %v21573_v0, %v29735_v11  ;;  %v7221_v54 = vcombine.low %v7170_v27, %v7202_v14  ;;  %v7179_v1 = vrot.slane %v7171_v26, %v29748_v53  ;;  %v23359_v12 = vpop.eup %23358  ;;  %v27761_v46 = vpop.xlane.xlu1 %13257  ;;  %v29806_v6 = vld [vmem:[#allocation114_spill] sm:$0xff]  ;;  %v29807_v26 = vld [vmem:[#allocation64_spill] sm:$0xff] }
 0x527   : > { %13284 = vadd.xlane.f32.xlu0 %v13283_v19  ;;  %22620 = vmatprep.mubr.msk.f32.mxu0 %vm23779_vm0, %v29772_v15  ;;  %v7211_v28 = vrot.slane %v7203_v42, %v29748_v53  ;;  %v7222_v50 = vcombine.high %v7170_v27, %v7202_v14  ;;  %v27710_v38 = vrot.slane %v7172_v7, %v29748_v53 }
 0x528   : > { %22625 = vmatprep.mubr.msk.f32.mxu1 %vm23779_vm0, %v29772_v15  ;;  %22628 = vmatprep.subr.mxu0 %v29772_v15  ;;  %v27713_v0 = vrot.slane %v7204_v36, %v29748_v53  ;;  %v21568_v25 = vcombine.low %v27589_v24, %v27636_v20  ;;  %v7291_v43 = vcombine.low %v27674_v2, %v27684_v59  ;;  %v29808_v36 = vld [vmem:[#allocation96_spill] sm:$0xff] }
 0x529   : > { %22633 = vmatprep.subr.mxu1 %v29772_v15  ;;  %22621 = vmatmul.mubr.msk.f32.vlgmr.msra.gmra.mrb[90].mxu0 %vm12772_vm2, %v13429_v32  ;;  %v13222_v39 = vpop.xlane.xlu0 %13221  ;;  %v21570_v23 = vcombine.high %v27589_v24, %v27636_v20  ;;  %v13431_v40 = vmul.f32 %v23357_v62, %v29803_v30  ;;  %v7323_v55 = vcombine.low %v27693_v37, %v27699_v31 }
 0x52a   : > { %22626 = vmatmul.mubr.msk.f32.vlgmr.msra.gmra.mrb[94].mxu1 %vm12772_vm2, %v13430_v13  ;;  %22629 = vmatpush3.msra.mxu0 %v7221_v54  ;;  %23366 = vrcp.f32 %v13222_v39  ;;  %v21572_v8 = vcombine.low %v27639_v18, %v27642_v3  ;;  %v21574_v41 = vcombine.high %v27639_v18, %v27642_v3  ;;  %v7223_v24 = vcombine.low %v7179_v1, %v7211_v28 }
 0x52b   : > { %22634 = vmatpush3.msra.mxu1 %v7222_v50  ;;  %22630 = vmatprep.mubr.msk.f32.mxu0 %vm23779_vm0, %v29772_v15  ;;  %23368 = vrcp.f32 %v27602_v48  ;;  %v7224_v34 = vcombine.high %v7179_v1, %v7211_v28  ;;  %v7225_v5 = vcombine.low %v27710_v38, %v27713_v0  ;;  %v27746_v48 = vrot.slane %v7291_v43, %v29748_v53  ;;  %v27792_v1 = vpop.permute.xlu1 %5571 }
 0x52c   : > { %v23361_v21 = vpop.eup %23360  ;;  %22638 = vmatprep.subr.mxu0 %v29772_v15  ;;  %22635 = vmatprep.mubr.msk.f32.mxu1 %vm23779_vm0, %v29772_v15  ;;  %23370 = vrcp.f32 %v27518_v4  ;;  %v7292_v18 = vcombine.high %v27674_v2, %v27684_v59  ;;  %v7324_v3 = vcombine.high %v27693_v37, %v27699_v31  ;;  %v13433_v56 = vmul.f32 %v23359_v12, %v29805_v29  ;;  %v29809_v37 = vld [vmem:[#allocation43_spill] sm:$0xff]  ;;  %v29814_v29 = vld [vmem:[#allocation105_spill] sm:$0xff] }
 0x52d   : > { %22631 = vmatmul.mubr.msk.f32.vlgmr.msra.gmra.mrb[92].mxu0 %vm12772_vm2, %v13431_v40  ;;  %v13234_v60 = vpop.xlane.xlu0 %13233  ;;  %22643 = vmatprep.subr.mxu1 %v29772_v15  ;;  %v13432_v20 = vmul.f32 %v23361_v21, %v29804_v52  ;;  %v27756_v4 = vrot.slane %v7323_v55, %v29748_v53  ;;  %v27759_v27 = vrot.slane %v21568_v25, %v29735_v11  ;;  %v23363_v44 = vpop.eup %23362  ;;  %v29812_v55 = vld [vmem:[#allocation101_spill] sm:$0xff] }
 0x52e   : > { %22639 = vmatpush3.msra.mxu0 %v7223_v24  ;;  %22640 = vmatprep.mubr.msk.f32.mxu0 %vm23779_vm0, %v29772_v15  ;;  %v7258_v17 = vrot.slane %v21570_v23, %v29735_v11  ;;  %v7274_v45 = vrot.slane %v21572_v8, %v29735_v11  ;;  %v7290_v14 = vrot.slane %v21574_v41, %v29735_v11  ;;  %23372 = vrcp.f32 %v13234_v60  ;;  %v23365_v7 = vpop.eup %23364  ;;  %v29811_v23 = vld [vmem:[#allocation102_spill] sm:$0xff] }
 0x52f   : > { %22648 = vmatprep.subr.mxu0 %v29772_v15  ;;  %22636 = vmatmul.mubr.msk.f32.vlgmr.msra.gmra.mrb[96].mxu1 %vm12772_vm2, %v13432_v20  ;;  %v13010_v42 = vsub.f32 %v29807_v26, %v29806_v6  ;;  %23374 = vrcp.f32 %v27595_v63  ;;  %v13435_v2 = vmul.f32 %v23363_v44, %v29808_v36  ;;  %v27778_v19 = vrot.slane %v7292_v18, %v29748_v53  ;;  %v5620_v41 = vpop.permute.xlu1 %5619  ;;  %v29815_v6 = vld [vmem:[#allocation104_spill] sm:$0xff]  ;;  %v29816_v36 = vld [vmem:[#allocation109_spill] sm:$0xff] }
 0x530   : > { %22644 = vmatpush3.msra.mxu1 %v7224_v34  ;;  %22645 = vmatprep.mubr.msk.f32.mxu1 %vm23779_vm0, %v29772_v15  ;;  %v27781_v58 = vrot.slane %v7324_v3, %v29748_v53  ;;  %v7355_v59 = vcombine.low %v27746_v48, %v27756_v4  ;;  %v7307_v63 = vcombine.low %v27759_v27, %v7258_v17  ;;  %23376 = vrcp.f32 %v27659_v33  ;;  %v29810_v33 = vld [vmem:[#allocation100_spill] sm:$0xff] }
 0x531   : > { %22641 = vmatmul.mubr.msk.f32.vlgmr.msra.gmra.mrb[94].mxu0 %vm12772_vm2, %v13433_v56  ;;  %v13252_v10 = vpop.xlane.xlu0 %13251  ;;  %22653 = vmatprep.subr.mxu1 %v29772_v15  ;;  %v7339_v35 = vcombine.low %v7274_v45, %v7290_v14  ;;  %v13119_v54 = vmul.f32 1.442695, %v13010_v42  ;;  %23378 = vrcp.f32 %v27667_v61  ;;  %v7226_v28 = vcombine.high %v27710_v38, %v27713_v0  ;;  %v29813_v34 = vld [vmem:[#allocation44_spill] sm:$0xff] }
 0x532   : > { %22649 = vmatpush3.msra.mxu0 %v7225_v5  ;;  %22650 = vmatprep.mubr.msk.f32.mxu0 %vm23779_vm0, %v29772_v15  ;;  %v13437_v50 = vmul.f32 %v23365_v7, %v29810_v33  ;;  %v7357_v39 = vcombine.low %v27778_v19, %v27781_v58  ;;  %v7308_v61 = vcombine.high %v27759_v27, %v7258_v17  ;;  %23380 = vrcp.f32 %v27717_v16 }
 0x533   : > { %22658 = vmatprep.subr.mxu0 %v29772_v15  ;;  %v7315_v38 = vrot.slane %v7307_v63, %v29748_v53  ;;  %v7347_v0 = vrot.slane %v7339_v35, %v29748_v53  ;;  %v7340_v43 = vcombine.high %v7274_v45, %v7290_v14  ;;  %23382 = vpow2.f32 %v13119_v54  ;;  %v29818_v63 = vld [vmem:[#allocation63_spill] sm:$0xff] }
 0x534   : > { %v23367_v13 = vpop.eup %23366  ;;  %v7356_v16 = vcombine.high %v27746_v48, %v27756_v4  ;;  %23384 = vrcp.f32 %v13252_v10  ;;  %v27824_v60 = vrot.slane %v7308_v61, %v29748_v53  ;;  %v6291_v18 = vcombine.low %v27792_v1, %v5620_v41 }
 0x535   : > { %22651 = vmatmul.mubr.msk.f32.vlgmr.msra.gmra.mrb[96].mxu0 %vm12772_vm2, %v13435_v2  ;;  %v27788_v32 = vpop.xlane.xlu0 %13254  ;;  %v13434_v31 = vmul.f32 %v23367_v13, %v29809_v37  ;;  %v23369_v62 = vpop.eup %23368  ;;  %v7359_v24 = vcombine.low %v7315_v38, %v7347_v0  ;;  %v27827_v52 = vrot.slane %v7340_v43, %v29748_v53  ;;  %v7358_v3 = vcombine.high %v27778_v19, %v27781_v58  ;;  %v29819_v37 = vld [vmem:[#allocation106_spill] sm:$0xff]  ;;  %v29821_v43 = vld [vmem:[#allocation67_spill] sm:$0xff] }
 0x536   : > { %22659 = vmatpush3.msra.mxu0 %v7355_v59  ;;  %22660 = vmatprep.mubr.msk.f32.mxu0 %vm23779_vm0, %v29772_v15  ;;  %v23371_v25 = vpop.eup %23370  ;;  %v13436_v30 = vmul.f32 %v23369_v62, %v29811_v23  ;;  %v6292_v27 = vcombine.high %v27792_v1, %v5620_v41  ;;  %v6299_v42 = vrot.slane %v6291_v18, %v29735_v11  ;;  %23386 = vrcp.f32 %v27761_v46  ;;  %v29817_v59 = vld [vmem:[#allocation50_spill] sm:$0xff] }
 0x537   : > { %22668 = vmatprep.subr.mxu0 %v29772_v15  ;;  %22646 = vmatmul.mubr.msk.f32.vlgmr.msra.gmra.mrb[98].mxu1 %vm12772_vm2, %v13434_v31  ;;  %v13439_v21 = vmul.f32 %v23371_v25, %v29812_v55  ;;  %v7361_v44 = vcombine.low %v27824_v60, %v27827_v52  ;;  %v7360_v7 = vcombine.high %v7315_v38, %v7347_v0  ;;  %23388 = vrcp.f32 %v27788_v32  ;;  %v29820_v0 = vld [vmem:[#allocation115_spill] sm:$0xff]  ;;  %v29822_v23 = vld [vmem:[#allocation110_spill] sm:$0xff] }
 0x538   : > { %22654 = vmatpush3.msra.mxu1 %v7226_v28  ;;  %22655 = vmatprep.mubr.msk.f32.mxu1 %vm23779_vm0, %v29772_v15  ;;  %v23373_v40 = vpop.eup %23372  ;;  %v13009_v35 = vsub.f32 %v29818_v63, %v29817_v59  ;;  %v7362_v33 = vcombine.high %v27824_v60, %v27827_v52  ;;  %v29827_v63 = vld [vmem:[#allocation36_spill] sm:$0xff] }
 0x539   : > { %22661 = vmatmul.mubr.msk.f32.vlgmr.msra.gmra.mrb[98].mxu0 %vm12772_vm2, %v13437_v50  ;;  %v27810_v12 = vpop.xlane.xlu0 %13260  ;;  %22663 = vmatprep.subr.mxu1 %v29772_v15  ;;  %v23375_v8 = vpop.eup %23374  ;;  %v13438_v5 = vmul.f32 %v23373_v40, %v29813_v34  ;;  %v29824_v34 = vld [vmem:[#allocation68_spill] sm:$0xff] }
 0x53a   : > { %22669 = vmatpush3.msra.mxu0 %v7357_v39  ;;  %22670 = vmatprep.mubr.msk.f32.mxu0 %vm23779_vm0, %v29772_v15  ;;  %v23377_v48 = vpop.eup %23376  ;;  %v13441_v56 = vmul.f32 %v23375_v8, %v29814_v29  ;;  %23390 = vrcp.f32 %v27810_v12  ;;  %v13117_v38 = vmul.f32 1.442695, %v13009_v35  ;;  %v13011_v12 = vsub.f32 %v29821_v43, %v29820_v0 }
 0x53b   : > { %22678 = vmatprep.subr.mxu0 %v29772_v15  ;;  %22656 = vmatmul.mubr.msk.f32.vlgmr.msra.gmra.mrb[100].mxu1 %vm12772_vm2, %v13436_v30  ;;  %v23379_v4 = vpop.eup %23378  ;;  %v13440_v26 = vmul.f32 %v23377_v48, %v29815_v6 }
 0x53c   : > { %22664 = vmatpush3.msra.mxu1 %v7356_v16  ;;  %22665 = vmatprep.mubr.msk.f32.mxu1 %vm23779_vm0, %v29772_v15  ;;  %v23381_v45 = vpop.eup %23380  ;;  %v13443_v2 = vmul.f32 %v23379_v4, %v29816_v36  ;;  %v13121_v52 = vmul.f32 1.442695, %v13011_v12 }
 0x53d   : > { %22671 = vmatmul.mubr.msk.f32.vlgmr.msra.gmra.mrb[100].mxu0 %vm12772_vm2, %v13439_v21  ;;  %5573 = vrot.lane.b32.xlu0 %v29798_v49, %s23772_s27  ;;  %v13264_v20 = vpop.xlane.xlu0 %13263  ;;  %v27856_v19 = vpop.eup %23382  ;;  %v13442_v46 = vmul.f32 %v23381_v45, %v29819_v37  ;;  %v29828_v37 = vld [vmem:[#allocation112_spill] sm:$0xff] }
 0x53e   : > { %22679 = vmatpush3.msra.mxu0 %v7359_v24  ;;  %22673 = vmatprep.subr.mxu1 %v29772_v15  ;;  %v23385_v31 = vpop.eup %23384  ;;  %v13292_v32 = vsel %vm12772_vm2, %v27856_v19, 0.0  ;;  %23392 = vrcp.f32 %v13264_v20  ;;  %v29823_v20 = vld [vmem:[#allocation47_spill] sm:$0xff] }
 0x53f   : > { %22680 = vmatprep.mubr.msk.f32.mxu0 %vm23779_vm0, %v29772_v15  ;;  %22688 = vmatprep.subr.mxu0 %v29772_v15  ;;  %v13444_v30 = vmul.f32 %v23385_v31, %v29822_v23  ;;  %23394 = vpow2.f32 %v13117_v38 }
 0x540   : > { %22666 = vmatmul.mubr.msk.f32.vlgmr.msra.gmra.mrb[102].mxu1 %vm12772_vm2, %v13438_v5  ;;  %v13012_v5 = vsub.f32 %v29824_v34, %v29823_v20  ;;  %v23387_v48 = vpop.eup %23386  ;;  %23396 = vpow2.f32 %v13121_v52  ;;  %v29831_v20 = vld [vmem:[#allocation118_spill] sm:$0xff] }
 0x541   : > { %22674 = vmatpush3.msra.mxu1 %v7358_v3  ;;  %22681 = vmatmul.mubr.msk.f32.vlgmr.msra.gmra.mrb[102].mxu0 %vm12772_vm2, %v13441_v56  ;;  %v5596_v17 = vpop.permute.xlu0 %5595  ;;  %v23389_v4 = vpop.eup %23388  ;;  %v29832_v34 = vld [vmem:[#allocation74_spill] sm:$0xff] }
 0x542   : > { %22689 = vmatpush3.msra.mxu0 %v7361_v44  ;;  %v6275_v14 = vcombine.low %v27026_v22, %v5596_v17  ;;  %v6276_v10 = vcombine.high %v27026_v22, %v5596_v17  ;;  %22675 = vmatprep.mubr.msk.f32.mxu1 %vm23779_vm0, %v29772_v15  ;;  %v6306_v22 = vrot.slane %v6292_v27, %v29735_v11 }
 0x543   : > { %22683 = vmatprep.subr.mxu1 %v29772_v15  ;;  %22690 = vmatprep.mubr.msk.f32.mxu0 %vm23779_vm0, %v29772_v15 }
 0x544   : > { %v6283_v58 = vrot.slane %v6275_v14, %v29735_v11  ;;  %v6290_v13 = vrot.slane %v6276_v10, %v29735_v11  ;;  %22676 = vmatmul.mubr.msk.f32.vlgmr.msra.gmra.mrb[104].mxu1 %vm12772_vm2, %v13440_v26  ;;  %22698 = vmatprep.subr.mxu0 %v29772_v15  ;;  %v23391_v17 = vpop.eup %23390  ;;  %v13123_v10 = vmul.f32 1.442695, %v13012_v5  ;;  %v13013_v5 = vsub.f32 %v29832_v34, %v29831_v20  ;;  %v29840_v34 = vld [vmem:[#allocation55_spill] sm:$0xff] }
 0x545   : > { %22684 = vmatpush3.msra.mxu1 %v7360_v7  ;;  %22691 = vmatmul.mubr.msk.f32.vlgmr.msra.gmra.mrb[104].mxu0 %vm12772_vm2, %v13443_v2  ;;  %v29825_v7 = vld [vmem:[#allocation111_spill] sm:$0xff]  ;;  %v29826_v2 = vld [vmem:[#allocation108_spill] sm:$0xff]  ;;  %v13447_v35 = vmul.f32 %v23391_v17, %v29827_v63 }
 0x546   : > { %v6339_v62 = vcombine.low %v6283_v58, %v6299_v42  ;;  %v6340_v54 = vcombine.high %v6283_v58, %v6299_v42  ;;  %v6355_v1 = vcombine.low %v6290_v13, %v6306_v22  ;;  %v6356_v28 = vcombine.high %v6290_v13, %v6306_v22  ;;  %22685 = vmatprep.mubr.msk.f32.mxu1 %vm23779_vm0, %v29772_v15 }
 0x547   : > { %22693 = vmatprep.subr.mxu1 %v29772_v15  ;;  %22700 = vmatprep.mubr.msk.f32.mxu0 %vm23779_vm0, %v29772_v15  ;;  %v13445_v36 = vmul.f32 %v23389_v4, %v29825_v7  ;;  %v13446_v22 = vmul.f32 %v23387_v48, %v29826_v2  ;;  %23398 = vpow2.f32 %v13123_v10  ;;  %v29834_v10 = vld [vmem:[#allocation77_spill] sm:$0xff] }
 0x548   : > { %v6347_v50 = vrot.slane %v6339_v62, %v29748_v53  ;;  %v6354_v39 = vrot.slane %v6340_v54, %v29748_v53  ;;  %v6363_v61 = vrot.slane %v6355_v1, %v29748_v53  ;;  %v6370_v25 = vrot.slane %v6356_v28, %v29748_v53  ;;  %22686 = vmatmul.mubr.msk.f32.vlgmr.msra.gmra.mrb[106].mxu1 %vm12772_vm2, %v13442_v46  ;;  %v23393_v42 = vpop.eup %23392 }
 0x549   : > { %13293 = vadd.xlane.f32.xlu1 %v13292_v32  ;;  %22694 = vmatpush3.msra.mxu1 %v7362_v33  ;;  %v27909_v59 = vpop.eup %23394  ;;  %v13448_v46 = vmul.f32 %v23393_v42, %v29828_v37  ;;  %v29829_v33 = vld [vmem:[#allocation121_spill] sm:$0xff]  ;;  %v29835_v37 = vld [vmem:[#allocation31_spill] sm:$0xff] }
 0x54a   : > { %v21575_v16 = vcombine.low %v6347_v50, %v6354_v39  ;;  %v21577_v40 = vcombine.high %v6347_v50, %v6354_v39  ;;  %v21579_v55 = vcombine.low %v6363_v61, %v6370_v25  ;;  %v21581_v21 = vcombine.high %v6363_v61, %v6370_v25  ;;  %22695 = vmatprep.mubr.msk.f32.mxu1 %vm23779_vm0, %v29772_v15  ;;  %v27927_v62 = vpop.eup %23396  ;;  %v29830_v50 = vld [vmem:[#allocation75_spill] sm:$0xff] }
 0x54b   : > { %22703 = vmatprep.subr.mxu1 %v29772_v15  ;;  %v13289_v31 = vsel %vm12772_vm2, %v27909_v59, 0.0  ;;  %v13295_v54 = vsel %vm12772_vm2, %v27927_v62, 0.0  ;;  %v13014_v39 = vsub.f32 %v29830_v50, %v29829_v33 }
 0x54c   : > { %22696 = vmatmul.mubr.msk.f32.vlgmr.msra.gmra.mrb[108].mxu1 %vm12772_vm2, %v13444_v30  ;;  %v7371_v8 = vrot.slane %v21575_v16, %v29735_v11  ;;  %v7387_v41 = vrot.slane %v21577_v40, %v29735_v11  ;;  %v7403_v24 = vrot.slane %v21579_v55, %v29735_v11  ;;  %v7419_v60 = vrot.slane %v21581_v21, %v29735_v11 }
 0x54d   : > { %22705 = vmatprep.mubr.msk.f32.mxu1 %vm23779_vm0, %v29772_v15  ;;  %v13127_v38 = vmul.f32 1.442695, %v13014_v39 }
 0x54e   : > { %v7427_v18 = vcombine.low %v7371_v8, %v7387_v41  ;;  %v7459_v3 = vcombine.low %v7403_v24, %v7419_v60  ;;  %v7428_v29 = vcombine.high %v7371_v8, %v7387_v41  ;;  %v7460_v56 = vcombine.high %v7403_v24, %v7419_v60 }
 0x54f   : > { %23400 = vpow2.f32 %v13127_v38 }
 0x550   : > { %v7435_v27 = vrot.slane %v7427_v18, %v29748_v53  ;;  %v7467_v44 = vrot.slane %v7459_v3, %v29748_v53  ;;  %v7442_v45 = vrot.slane %v7428_v29, %v29748_v53  ;;  %v7474_v14 = vrot.slane %v7460_v56, %v29748_v53 }
 0x551   : > { %v27935_v1 = vpop.eup %23398 }
 0x552   : > { %v7491_v6 = vcombine.low %v7435_v27, %v7467_v44  ;;  %v7492_v26 = vcombine.high %v7435_v27, %v7467_v44  ;;  %v7493_v58 = vcombine.low %v7442_v45, %v7474_v14  ;;  %v7494_v13 = vcombine.high %v7442_v45, %v7474_v14  ;;  %v29833_v14 = vld [vmem:[#allocation113_spill] sm:$0xff] }
 0x553   : > { %v13298_v28 = vsel %vm12772_vm2, %v27935_v1, 0.0  ;;  %v13125_v45 = vmul.f32 1.442695, %v13013_v5 }
 0x554   : > { %22699 = vmatpush3.msra.mxu0 %v7491_v6  ;;  %22704 = vmatpush3.msra.mxu1 %v7492_v26  ;;  %v13015_v6 = vsub.f32 %v29834_v10, %v29833_v14  ;;  %v29844_v14 = vld [vmem:[#allocation80_spill] sm:$0xff] }
 0x555   : > { %22701 = vmatmul.mubr.msk.f32.vlgmr.msra.gmra.mrb[106].mxu0 %vm12772_vm2, %v13445_v36  ;;  %22706 = vmatmul.mubr.msk.f32.vlgmr.msra.gmra.mrb[110].mxu1 %vm12772_vm2, %v13446_v22 }
 0x556   : > { %22708 = vmatprep.subr.mxu0 %v29772_v15  ;;  %22713 = vmatprep.subr.mxu1 %v29772_v15 }
 0x557   : > { %22709 = vmatpush3.msra.mxu0 %v7493_v58  ;;  %22714 = vmatpush3.msra.mxu1 %v7494_v13 }
 0x558   : > { %22710 = vmatprep.mubr.msk.f32.mxu0 %vm23779_vm0, %v29772_v15  ;;  %22715 = vmatprep.mubr.msk.f32.mxu1 %vm23779_vm0, %v29772_v15 }
 0x559   : > { %22711 = vmatmul.mubr.msk.f32.vlgmr.msra.gmra.mrb[108].mxu0 %vm12772_vm2, %v13447_v35  ;;  %22716 = vmatmul.mubr.msk.f32.vlgmr.msra.gmra.mrb[112].mxu1 %vm12772_vm2, %v13448_v46  ;;  %v27945_v8 = vpop.eup %23400  ;;  %v13129_v35 = vmul.f32 1.442695, %v13015_v6  ;;  %v29836_v46 = vld [vmem:[#allocation78_spill] sm:$0xff] }
 0x55a   : > { %5645 = vrot.lane.b32.xlu1 %v29798_v49, %s23773_s14  ;;  %22718 = vmatprep.subr.mxu0 %v29772_v15  ;;  %v13267_v32 = vpop.xlane.xlu1 %13266  ;;  %v13304_v56 = vsel %vm12772_vm2, %v27945_v8, 0.0 }
 0x55b   : > { %22723 = vmatprep.subr.mxu1 %v29772_v15  ;;  %22720 = vmatprep.mubr.msk.f32.mxu0 %vm23779_vm0, %v29772_v15  ;;  %23402 = vrcp.f32 %v13267_v32 }
 0x55c   : > { %13290 = vadd.xlane.f32.xlu0 %v13289_v31  ;;  %22725 = vmatprep.mubr.msk.f32.mxu1 %vm23779_vm0, %v29772_v15  ;;  %v13016_v31 = vsub.f32 %v29836_v46, %v29835_v37 }
 0x55e   : > { %5693 = vrot.lane.b32.xlu1 %v29798_v49, %s23775_s24  ;;  %v13276_v61 = vpop.xlane.xlu1 %13275 }
 0x560   : > { %13296 = vadd.xlane.f32.xlu0 %v13295_v54 }
 0x562   : > { %5717 = vrot.lane.b32.xlu1 %v29798_v49, %s23777_s2  ;;  %v5668_v0 = vpop.permute.xlu1 %5667 }
 0x564   : > { %13299 = vadd.xlane.f32.xlu0 %v13298_v28 }
 0x565   : > { %v23403_v63 = vpop.eup %23402 }
 0x566   : > { %v5692_v23 = vpop.permute.xlu1 %5691 }
 0x572   : > { %v13270_v25 = vpop.xlane.xlu0 %13269 }
 0x573   : > { %23404 = vrcp.f32 %v13270_v25 }
 0x574   : > { %23406 = vrcp.f32 %v13276_v61 }
 0x576   : > { %v13273_v43 = vpop.xlane.xlu0 %13272 }
 0x577   : > { %23408 = vrcp.f32 %v13273_v43  ;;  %v13131_v43 = vmul.f32 1.442695, %v13016_v31 }
 0x578   : > { %23410 = vpow2.f32 %v13125_v45  ;;  %v29843_v45 = vld [vmem:[#allocation120_spill] sm:$0xff] }
 0x579   : > { %23412 = vpow2.f32 %v13129_v35  ;;  %v13017_v10 = vsub.f32 %v29844_v14, %v29843_v45  ;;  %v29852_v45 = vld [vmem:[#allocation82_spill] sm:$0xff] }
 0x57a   : > { %5669 = vrot.lane.b32.xlu0 %v29798_v49, %s23776_s16  ;;  %v5644_v12 = vpop.permute.xlu0 %5643  ;;  %23414 = vpow2.f32 %v13131_v43 }
 0x57b   : > { %v6307_v30 = vcombine.low %v5644_v12, %v5692_v23  ;;  %v6308_v16 = vcombine.high %v5644_v12, %v5692_v23 }
 0x57d   : > { %v6315_v41 = vrot.slane %v6307_v30, %v29735_v11  ;;  %v6322_v24 = vrot.slane %v6308_v16, %v29735_v11  ;;  %v23405_v50 = vpop.eup %23404  ;;  %v29837_v16 = vld [vmem:[#allocation116_spill] sm:$0xff] }
 0x57e   : > { %v5716_v40 = vpop.permute.xlu0 %5715  ;;  %v23407_v25 = vpop.eup %23406 }
 0x57f   : > { %v6323_v55 = vcombine.low %v5668_v0, %v5716_v40  ;;  %v6324_v21 = vcombine.high %v5668_v0, %v5716_v40  ;;  %v13449_v40 = vmul.f32 %v23403_v63, %v29837_v16 }
 0x581   : > { %v6331_v60 = vrot.slane %v6323_v55, %v29735_v11  ;;  %v6338_v52 = vrot.slane %v6324_v21, %v29735_v11  ;;  %v23409_v30 = vpop.eup %23408  ;;  %v29838_v55 = vld [vmem:[#allocation30_spill] sm:$0xff] }
 0x582   : > { %v13450_v21 = vmul.f32 %v23405_v50, %v29838_v55  ;;  %v13451_v5 = vmul.f32 %v23409_v30, %v29840_v34  ;;  %v29850_v55 = vld [vmem:[#allocation81_spill] sm:$0xff] }
 0x583   : > { %v6371_v48 = vcombine.low %v6315_v41, %v6331_v60  ;;  %v6372_v18 = vcombine.high %v6315_v41, %v6331_v60  ;;  %v6387_v3 = vcombine.low %v6322_v24, %v6338_v52  ;;  %v6388_v29 = vcombine.high %v6322_v24, %v6338_v52  ;;  %v27977_v60 = vpop.eup %23410  ;;  %v29839_v52 = vld [vmem:[#allocation119_spill] sm:$0xff] }
 0x584   : > { %v13452_v20 = vmul.f32 %v23407_v25, %v29839_v52 }
 0x585   : > { %v6379_v4 = vrot.slane %v6371_v48, %v29748_v53  ;;  %v6386_v27 = vrot.slane %v6372_v18, %v29748_v53  ;;  %v6395_v44 = vrot.slane %v6387_v3, %v29748_v53  ;;  %v6402_v17 = vrot.slane %v6388_v29, %v29748_v53  ;;  %v29841_v48 = vld [vmem:[#allocation25_spill] sm:$0xff]  ;;  %v29842_v18 = vld [vmem:[#allocation35_spill] sm:$0xff] }
 0x586   : > { %13305 = vadd.xlane.f32.xlu1 %v13304_v56  ;;  %v27983_v3 = vadd.f32 %v29842_v18, %v29841_v48  ;;  %v13301_v29 = vsel %vm12772_vm2, %v27977_v60, 0.0  ;;  %v27999_v56 = vpop.eup %23412 }
 0x587   : > { %v21576_v26 = vcombine.low %v6379_v4, %v6386_v27  ;;  %v21578_v42 = vcombine.high %v6379_v4, %v6386_v27  ;;  %v21580_v7 = vcombine.low %v6395_v44, %v6402_v17  ;;  %v21582_v36 = vcombine.high %v6395_v44, %v6402_v17  ;;  %v28007_v27 = vpop.eup %23414 }
 0x588   : > { %v13307_v4 = vsel %vm12772_vm2, %v27999_v56, 0.0  ;;  %v13310_v44 = vsel %vm12772_vm2, %v28007_v27, 0.0 }
 0x589   : > { %v7378_v2 = vrot.slane %v21576_v26, %v29735_v11  ;;  %v7394_v22 = vrot.slane %v21578_v42, %v29735_v11  ;;  %v7410_v58 = vrot.slane %v21580_v7, %v29735_v11  ;;  %v7426_v13 = vrot.slane %v21582_v36, %v29735_v11  ;;  %v29845_v42 = vld [vmem:[#allocation40_spill] sm:$0xff]  ;;  %v29846_v7 = vld [vmem:[#allocation83_spill] sm:$0xff] }
 0x58a   : > { %v13133_v26 = vmul.f32 1.442695, %v13017_v10  ;;  %v13020_v36 = vsub.f32 %v29846_v7, %v29845_v42 }
 0x58b   : > { %v7443_v54 = vcombine.low %v7378_v2, %v7394_v22  ;;  %v7475_v28 = vcombine.low %v7410_v58, %v7426_v13  ;;  %v7444_v32 = vcombine.high %v7378_v2, %v7394_v22  ;;  %v7476_v33 = vcombine.high %v7410_v58, %v7426_v13 }
 0x58c   : > { %23416 = vpow2.f32 %v13133_v26  ;;  %v13139_v22 = vmul.f32 1.442695, %v13020_v36 }
 0x58d   : > { %v7451_v39 = vrot.slane %v7443_v54, %v29748_v53  ;;  %v7483_v61 = vrot.slane %v7475_v28, %v29748_v53  ;;  %v7458_v38 = vrot.slane %v7444_v32, %v29748_v53  ;;  %v7490_v0 = vrot.slane %v7476_v33, %v29748_v53 }
 0x58e   : > { %23418 = vpow2.f32 %v13139_v22 }
 0x58f   : > { %v7495_v12 = vcombine.low %v7451_v39, %v7483_v61  ;;  %v7496_v23 = vcombine.high %v7451_v39, %v7483_v61  ;;  %v7497_v41 = vcombine.low %v7458_v38, %v7490_v0  ;;  %v7498_v24 = vcombine.high %v7458_v38, %v7490_v0 }
 0x591   : > { %22719 = vmatpush3.msra.mxu0 %v7495_v12  ;;  %22724 = vmatpush3.msra.mxu1 %v7496_v23 }
 0x592   : > { %22721 = vmatmul.mubr.msk.f32.vlgmr.msra.gmra.mrb[110].mxu0 %vm12772_vm2, %v13449_v40  ;;  %22726 = vmatmul.mubr.msk.f32.vlgmr.msra.gmra.mrb[114].mxu1 %vm12772_vm2, %v13450_v21  ;;  %v29849_v40 = vld [vmem:[#allocation28_spill] sm:$0xff] }
 0x593   : > { %22728 = vmatprep.subr.mxu0 %v29772_v15  ;;  %22733 = vmatprep.subr.mxu1 %v29772_v15  ;;  %v13018_v21 = vsub.f32 %v29850_v55, %v29849_v40 }
 0x594   : > { %22729 = vmatpush3.msra.mxu0 %v7497_v41  ;;  %22734 = vmatpush3.msra.mxu1 %v7498_v24 }
 0x595   : > { %22730 = vmatprep.mubr.msk.f32.mxu0 %vm23779_vm0, %v29772_v15  ;;  %22735 = vmatprep.mubr.msk.f32.mxu1 %vm23779_vm0, %v29772_v15  ;;  %v13135_v10 = vmul.f32 1.442695, %v13018_v21 }
 0x596   : > { %22731 = vmatmul.mubr.msk.f32.vlgmr.msra.gmra.mrb[112].mxu0 %vm12772_vm2, %v13451_v5  ;;  %22736 = vmatmul.mubr.msk.f32.vlgmr.msra.gmra.mrb[116].mxu1 %vm12772_vm2, %v13452_v20  ;;  %v28019_v28 = vpop.eup %23416 }
 0x597   : > { %5575 = vrot.lane.b32.xlu1 %v27983_v3, %s23772_s27  ;;  %22738 = vmatprep.subr.mxu0 %v29772_v15  ;;  %v13279_v17 = vpop.xlane.xlu1 %13278  ;;  %29847 = vst [vmem:[#allocation27_spill] sm:$0xff] %v28019_v28  ;;  %v13313_v0 = vsel %vm12772_vm2, %v28019_v28, 0.0 }
 0x598   : > { %22743 = vmatprep.subr.mxu1 %v29772_v15  ;;  %22740 = vmatprep.mubr.msk.f32.mxu0 %vm23779_vm0, %v29772_v15  ;;  %23420 = vrcp.f32 %v13279_v17  ;;  %v28027_v43 = vpop.eup %23418  ;;  %v29851_v17 = vld [vmem:[#allocation46_spill] sm:$0xff] }
 0x599   : > { %13302 = vadd.xlane.f32.xlu0 %v13301_v29  ;;  %22745 = vmatprep.mubr.msk.f32.mxu1 %vm23779_vm0, %v29772_v15  ;;  %29848 = vst [vmem:[#allocation48_spill] sm:$0xff] %v28027_v43  ;;  %v13322_v34 = vsel %vm12772_vm2, %v28027_v43, 0.0  ;;  %v13019_v14 = vsub.f32 %v29852_v45, %v29851_v17  ;;  %v29859_v45 = vld [vmem:[#allocation26_spill] sm:$0xff] }
 0x59b   : > { %5623 = vrot.lane.b32.xlu1 %v27983_v3, %s23774_s22  ;;  %v13288_v6 = vpop.xlane.xlu1 %13287 }
 0x59d   : > { %13308 = vadd.xlane.f32.xlu0 %v13307_v4 }
 0x59f   : > { %v5598_v58 = vpop.permute.xlu1 %5597 }
 0x5a0   : > { %v6411_v63 = vcombine.low %v29798_v49, %v5598_v58  ;;  %v6412_v35 = vcombine.high %v29798_v49, %v5598_v58 }
 0x5a1   : > { %13311 = vadd.xlane.f32.xlu0 %v13310_v44 }
 0x5a2   : > { %v6419_v32 = vrot.slane %v6411_v63, %v29735_v11  ;;  %v6426_v33 = vrot.slane %v6412_v35, %v29735_v11  ;;  %v23421_v44 = vpop.eup %23420 }
 0x5a3   : > { %v5622_v37 = vpop.permute.xlu1 %5621 }
 0x5b0   : > { %v13282_v2 = vpop.xlane.xlu0 %13281 }
 0x5b1   : > { %23422 = vrcp.f32 %v13282_v2 }
 0x5b2   : > { %23424 = vrcp.f32 %v13288_v6 }
 0x5b4   : > { %v13285_v13 = vpop.xlane.xlu0 %13284 }
 0x5b5   : > { %23426 = vrcp.f32 %v13285_v13  ;;  %v13137_v13 = vmul.f32 1.442695, %v13019_v14  ;;  %v29860_v14 = vld [vmem:[#allocation87_spill] sm:$0xff] }
 0x5b6   : > { %23428 = vpow2.f32 %v13135_v10  ;;  %v13024_v10 = vsub.f32 %v29860_v14, %v29859_v45  ;;  %v29866_v45 = vld [vmem:[#allocation88_spill] sm:$0xff] }
 0x5b7   : > { %5599 = vrot.lane.b32.xlu0 %v27983_v3, %s23771_s15  ;;  %23430 = vpow2.f32 %v13137_v13 }
 0x5b8   : > { %v5574_v46 = vpop.permute.xlu0 %5573 }
 0x5b9   : > { %v6427_v31 = vcombine.low %v5574_v46, %v5622_v37  ;;  %v6428_v54 = vcombine.high %v5574_v46, %v5622_v37 }
 0x5bb   : > { %v6435_v50 = vrot.slane %v6427_v31, %v29735_v11  ;;  %v6442_v39 = vrot.slane %v6428_v54, %v29735_v11  ;;  %v23423_v36 = vpop.eup %23422  ;;  %v13453_v54 = vmul.f32 %v23421_v44, %v27399_v9  ;;  %v29858_v44 = vld [vmem:[#allocation86_spill] sm:$0xff] }
 0x5bc   : > { %v23425_v58 = vpop.eup %23424 }
 0x5bd   : > { %v6475_v49 = vcombine.low %v6419_v32, %v6435_v50  ;;  %v6476_v61 = vcombine.high %v6419_v32, %v6435_v50  ;;  %v6491_v25 = vcombine.low %v6426_v33, %v6442_v39  ;;  %v6492_v38 = vcombine.high %v6426_v33, %v6442_v39 }
 0x5be   : > { %v13454_v32 = vmul.f32 %v23423_v36, %v27599_v57  ;;  %v13456_v39 = vmul.f32 %v23425_v58, %v27430_v47 }
 0x5bf   : > { %v6483_v12 = vrot.slane %v6475_v49, %v29748_v53  ;;  %v6490_v23 = vrot.slane %v6476_v61, %v29748_v53  ;;  %v6499_v30 = vrot.slane %v6491_v25, %v29748_v53  ;;  %v6506_v16 = vrot.slane %v6492_v38, %v29748_v53  ;;  %13314 = vadd.xlane.f32.xlu1 %v13313_v0  ;;  %v23427_v31 = vpop.eup %23426 }
 0x5c0   : > { %v13455_v49 = vmul.f32 %v23427_v31, %v27648_v51  ;;  %v28063_v47 = vpop.eup %23428  ;;  %v29861_v31 = vld [vmem:[#allocation34_spill] sm:$0xff] }
 0x5c1   : > { %v21583_v41 = vcombine.low %v6483_v12, %v6490_v23  ;;  %v21585_v24 = vcombine.high %v6483_v12, %v6490_v23  ;;  %v21587_v52 = vcombine.low %v6499_v30, %v6506_v16  ;;  %v21589_v20 = vcombine.high %v6499_v30, %v6506_v16  ;;  %29853 = vst [vmem:[#allocation45_spill] sm:$0xff] %v28063_v47  ;;  %v28073_v0 = vpop.eup %23430 }
 0x5c2   : > { %v13316_v38 = vsel %vm12772_vm2, %v28063_v47, 0.0  ;;  %29854 = vst [vmem:[#allocation56_spill] sm:$0xff] %v28073_v0  ;;  %v13319_v16 = vsel %vm12772_vm2, %v28073_v0, 0.0 }
 0x5c3   : > { %v7507_v5 = vrot.slane %v21583_v41, %v29735_v11  ;;  %v7523_v18 = vrot.slane %v21585_v24, %v29735_v11  ;;  %v7539_v29 = vrot.slane %v21587_v52, %v29735_v11  ;;  %v7555_v4 = vrot.slane %v21589_v20, %v29735_v11  ;;  %13323 = vadd.xlane.f32.xlu1 %v13322_v34  ;;  %v29855_v24 = vld [vmem:[#allocation117_spill] sm:$0xff]  ;;  %v29856_v52 = vld [vmem:[#allocation84_spill] sm:$0xff] }
 0x5c4   : > { %v13021_v20 = vsub.f32 %v29856_v52, %v29855_v24 }
 0x5c5   : > { %v7563_v6 = vcombine.low %v7507_v5, %v7523_v18  ;;  %v7595_v26 = vcombine.low %v7539_v29, %v7555_v4  ;;  %v7564_v42 = vcombine.high %v7507_v5, %v7523_v18  ;;  %v7596_v7 = vcombine.high %v7539_v29, %v7555_v4  ;;  %v29857_v4 = vld [vmem:[#allocation49_spill] sm:$0xff] }
 0x5c6   : > { %v13023_v17 = vsub.f32 %v29858_v44, %v29857_v4 }
 0x5c7   : > { %v7571_v2 = vrot.slane %v7563_v6, %v29748_v53  ;;  %v7603_v22 = vrot.slane %v7595_v26, %v29748_v53  ;;  %v7578_v63 = vrot.slane %v7564_v42, %v29748_v53  ;;  %v7610_v35 = vrot.slane %v7596_v7, %v29748_v53 }
 0x5c9   : > { %v7627_v37 = vcombine.low %v7571_v2, %v7603_v22  ;;  %v7628_v46 = vcombine.high %v7571_v2, %v7603_v22  ;;  %v7629_v33 = vcombine.low %v7578_v63, %v7610_v35  ;;  %v7630_v50 = vcombine.high %v7578_v63, %v7610_v35 }
 0x5ca   : > { %v13141_v22 = vmul.f32 1.442695, %v13021_v20 }
 0x5cb   : > { %22739 = vmatpush3.msra.mxu0 %v7627_v37  ;;  %22744 = vmatpush3.msra.mxu1 %v7628_v46  ;;  %v13145_v37 = vmul.f32 1.442695, %v13023_v17  ;;  %v13147_v46 = vmul.f32 1.442695, %v13024_v10  ;;  %v29865_v17 = vld [vmem:[#allocation122_spill] sm:$0xff] }
 0x5cc   : > { %22741 = vmatmul.mubr.msk.f32.vlgmr.msra.gmra.mrb[114].mxu0 %vm12772_vm2, %v13453_v54  ;;  %22746 = vmatmul.mubr.msk.f32.vlgmr.msra.gmra.mrb[118].mxu1 %vm12772_vm2, %v13454_v32  ;;  %v29862_v54 = vld [vmem:[#allocation85_spill] sm:$0xff]  ;;  %23432 = vpow2.f32 %v13141_v22  ;;  %v13025_v14 = vsub.f32 %v29866_v45, %v29865_v17 }
 0x5cd   : > { %22748 = vmatprep.subr.mxu0 %v29772_v15  ;;  %22753 = vmatprep.subr.mxu1 %v29772_v15  ;;  %v13022_v32 = vsub.f32 %v29862_v54, %v29861_v31  ;;  %23434 = vpow2.f32 %v13147_v46 }
 0x5ce   : > { %22749 = vmatpush3.msra.mxu0 %v7629_v33  ;;  %22754 = vmatpush3.msra.mxu1 %v7630_v50  ;;  %v13619_v9 = vpop.f32.mrb[78].mxu1  ;;  %23436 = vpow2.f32 %v13145_v37  ;;  %v28127_v31 = vmul.f32 1.442695, %v13025_v14  ;;  %v29873_v14 = vld [vmem:[#allocation39_spill] sm:$0xff] }
 0x5cf   : > { %22750 = vmatprep.mubr.msk.f32.mxu0 %vm23779_vm0, %v29772_v15  ;;  %22755 = vmatprep.mubr.msk.f32.mxu1 %vm23779_vm0, %v29772_v15  ;;  %v22547_v57 = vpop.f32.mrb[79].mxu1  ;;  %v13546_v61 = vpop.f32.mrb[74].mxu0 }
 0x5d0   : > { %22751 = vmatmul.mubr.msk.f32.vlgmr.msra.gmra.mrb[116].mxu0 %vm12772_vm2, %v13455_v49  ;;  %22756 = vmatmul.mubr.msk.f32.vlgmr.msra.gmra.mrb[120].mxu1 %vm12772_vm2, %v13456_v39  ;;  %v22542_v51 = vpop.f32.mrb[75].mxu0 }
 0x5d1   : > { %22758 = vmatprep.subr.mxu0 %v29772_v15  ;;  %22763 = vmatprep.subr.mxu1 %v29772_v15 }
 0x5d2   : > { %22760 = vmatprep.mubr.msk.f32.mxu0 %vm23779_vm0, %v29772_v15  ;;  %22765 = vmatprep.mubr.msk.f32.mxu1 %vm23779_vm0, %v29772_v15 }
 0x5d3   : > { %v13692_v25 = vpop.f32.mrb[76].mxu0 }
 0x5d4   : > { %5671 = vrot.lane.b32.xlu1 %v27983_v3, %s23776_s16  ;;  %v18149_v12 = vcombine.low %v13546_v61, %v13692_v25  ;;  %v18150_v23 = vcombine.high %v13546_v61, %v13692_v25  ;;  %v22552_v30 = vpop.f32.mrb[77].mxu0 }
 0x5d6   : > { %13317 = vadd.xlane.f32.xlu0 %v13316_v38  ;;  %v18157_v34 = vrot.slane %v18149_v12, %v29735_v11  ;;  %v18164_v5 = vrot.slane %v18150_v23, %v29735_v11  ;;  %v13294_v33 = vpop.xlane.xlu1 %13293  ;;  %v13143_v23 = vmul.f32 1.442695, %v13022_v32 }
 0x5d7   : > { %23438 = vrcp.f32 %v13294_v33 }
 0x5d8   : > { %5695 = vrot.lane.b32.xlu1 %v27983_v3, %s23775_s24  ;;  %23440 = vpow2.f32 %v13143_v23 }
 0x5da   : > { %13320 = vadd.xlane.f32.xlu0 %v13319_v16  ;;  %v13765_v40 = vpop.f32.mrb[80].mxu1  ;;  %v28105_v52 = vpop.permute.xlu1 %5645 }
 0x5db   : > { %v18165_v55 = vcombine.low %v13619_v9, %v13765_v40  ;;  %v18166_v21 = vcombine.high %v13619_v9, %v13765_v40  ;;  %v22557_v41 = vpop.f32.mrb[81].mxu1 }
 0x5dc   : > { %v29864_v41 = vld [vmem:[#allocation89_spill] sm:$0xff] }
 0x5dd   : > { %v18173_v18 = vrot.slane %v18165_v55, %v29735_v11  ;;  %v18180_v29 = vrot.slane %v18166_v21, %v29735_v11  ;;  %v29863_v21 = vld [vmem:[#allocation51_spill] sm:$0xff] }
 0x5de   : > { %v13911_v6 = vpop.f32.mrb[82].mxu1  ;;  %v13026_v24 = vsub.f32 %v29864_v41, %v29863_v21  ;;  %v5694_v32 = vpop.permute.xlu1 %5693  ;;  %v29871_v21 = vld [vmem:[#allocation29_spill] sm:$0xff]  ;;  %v29872_v41 = vld [vmem:[#allocation90_spill] sm:$0xff] }
 0x5df   : > { %v18213_v26 = vcombine.low %v18157_v34, %v18173_v18  ;;  %v18214_v42 = vcombine.high %v18157_v34, %v18173_v18  ;;  %v18229_v7 = vcombine.low %v18164_v5, %v18180_v29  ;;  %v18230_v36 = vcombine.high %v18164_v5, %v18180_v29  ;;  %v22567_v2 = vpop.f32.mrb[83].mxu1 }
 0x5e0   : > { %v29867_v2 = vld [vmem:[#allocation37_spill] sm:$0xff] }
 0x5e1   : > { %v18221_v58 = vrot.slane %v18213_v26, %v29748_v53  ;;  %v18228_v13 = vrot.slane %v18214_v42, %v29748_v53  ;;  %v28092_v63 = vrot.slane %v18229_v7, %v29748_v53  ;;  %v28095_v35 = vrot.slane %v18230_v36, %v29748_v53 }
 0x5e2   : > { %v13838_v50 = vpop.f32.mrb[78].mxu0  ;;  %v14057_v61 = vpop.f32.mrb[84].mxu1  ;;  %v28117_v22 = vadd.f32 %v29867_v2, %v29841_v48 }
 0x5e3   : > { %v21799_v39 = vcombine.low %v18221_v58, %v18228_v13  ;;  %v21801_v49 = vcombine.high %v18221_v58, %v18228_v13  ;;  %v21803_v9 = vcombine.low %v28092_v63, %v28095_v35  ;;  %v21805_v57 = vcombine.high %v28092_v63, %v28095_v35  ;;  %v22562_v51 = vpop.f32.mrb[79].mxu0  ;;  %v22577_v12 = vpop.f32.mrb[85].mxu1 }
 0x5e4   : > { %v18197_v25 = vcombine.low %v13911_v6, %v14057_v61  ;;  %v18198_v38 = vcombine.high %v13911_v6, %v14057_v61  ;;  %v13151_v58 = vmul.f32 1.442695, %v13026_v24 }
 0x5e5   : > { %v28130_v54 = vrot.slane %v21799_v39, %v29735_v11  ;;  %v28133_v48 = vrot.slane %v21801_v49, %v29735_v11  ;;  %v28144_v39 = vrot.slane %v21803_v9, %v29735_v11  ;;  %v28147_v49 = vrot.slane %v21805_v57, %v29735_v11 }
 0x5e6   : > { %v13984_v30 = vpop.f32.mrb[80].mxu0  ;;  %v18205_v34 = vrot.slane %v18197_v25, %v29735_v11  ;;  %v18212_v5 = vrot.slane %v18198_v38, %v29735_v11  ;;  %v6444_v9 = vcombine.high %v28105_v52, %v5694_v32 }
 0x5e7   : > { %v18181_v16 = vcombine.low %v13838_v50, %v13984_v30  ;;  %v18182_v40 = vcombine.high %v13838_v50, %v13984_v30  ;;  %v22572_v55 = vpop.f32.mrb[81].mxu0  ;;  %v28135_v50 = vpop.eup %23432 }
 0x5e8   : > { %v28107_v20 = vpop.f32.mrb[86].mxu1  ;;  %29868 = vst [vmem:[#allocation52_spill] sm:$0xff] %v28135_v50  ;;  %v28141_v23 = vpop.eup %23434 }
 0x5e9   : > { %v18189_v18 = vrot.slane %v18181_v16, %v29735_v11  ;;  %v18196_v29 = vrot.slane %v18182_v40, %v29735_v11  ;;  %v22587_v4 = vpop.f32.mrb[87].mxu1  ;;  %v13291_v44 = vpop.xlane.xlu0 %13290  ;;  %29869 = vst [vmem:[#allocation61_spill] sm:$0xff] %v28141_v23 }
 0x5ea   : > { %v14130_v10 = vpop.f32.mrb[82].mxu0  ;;  %23442 = vrcp.f32 %v13291_v44  ;;  %v28151_v55 = vpop.eup %23436 }
 0x5eb   : > { %v18245_v6 = vcombine.low %v18189_v18, %v18205_v34  ;;  %v18246_v26 = vcombine.high %v18189_v18, %v18205_v34  ;;  %v18261_v42 = vcombine.low %v18196_v29, %v18212_v5  ;;  %v18262_v7 = vcombine.high %v18196_v29, %v18212_v5  ;;  %v22582_v36 = vpop.f32.mrb[83].mxu0  ;;  %29870 = vst [vmem:[#allocation32_spill] sm:$0xff] %v28151_v55  ;;  %v23439_v57 = vpop.eup %23438 }
 0x5ec   : > { %v6443_v34 = vcombine.low %v28105_v52, %v5694_v32  ;;  %v13325_v52 = vsel %vm12772_vm2, %v28135_v50, 0.0 }
 0x5ed   : > { %v18253_v13 = vrot.slane %v18245_v6, %v29748_v53  ;;  %v18260_v63 = vrot.slane %v18246_v26, %v29748_v53  ;;  %v28122_v35 = vrot.slane %v18261_v42, %v29748_v53  ;;  %v28125_v37 = vrot.slane %v18262_v7, %v29748_v53  ;;  %v13297_v46 = vpop.xlane.xlu0 %13296  ;;  %v28171_v7 = vpop.eup %23440 }
 0x5ee   : > { %23444 = vrcp.f32 %v13297_v46  ;;  %v14276_v33 = vpop.f32.mrb[84].mxu0  ;;  %v28169_v42 = vsel %vm12772_vm2, %v28141_v23, 0.0  ;;  %29875 = vst [vmem:[#allocation38_spill] sm:$0xff] %v28171_v7 }
 0x5ef   : > { %v21800_v61 = vcombine.low %v18253_v13, %v18260_v63  ;;  %v21802_v51 = vcombine.high %v18253_v13, %v18260_v63  ;;  %v21804_v25 = vcombine.low %v28122_v35, %v28125_v37  ;;  %v21806_v38 = vcombine.high %v28122_v35, %v28125_v37  ;;  %v22592_v12 = vpop.f32.mrb[85].mxu0 }
 0x5f0   : > { %v18285_v30 = vcombine.low %v14130_v10, %v14276_v33  ;;  %v18286_v16 = vcombine.high %v14130_v10, %v14276_v33  ;;  %v14349_v40 = vpop.f32.mrb[88].mxu1  ;;  %5647 = vrot.lane.b32.xlu0 %v27983_v3, %s23773_s14  ;;  %23446 = vpow2.f32 %v13151_v58  ;;  %v29874_v10 = vld [vmem:[#allocation91_spill] sm:$0xff]  ;;  %v28184_v63 = vmul.f32 %v23439_v57, %v27856_v19 }
 0x5f1   : > { %v22597_v5 = vpop.f32.mrb[89].mxu1  ;;  %v13300_v18 = vpop.xlane.xlu0 %13299  ;;  %v18301_v44 = vcombine.low %v28107_v20, %v14349_v40  ;;  %v18302_v17 = vcombine.high %v28107_v20, %v14349_v40  ;;  %v6451_v35 = vrot.slane %v6443_v34, %v29735_v11  ;;  %v6458_v37 = vrot.slane %v6444_v9, %v29735_v11 }
 0x5f2   : > { %v18293_v29 = vrot.slane %v18285_v30, %v29735_v11  ;;  %v18300_v4 = vrot.slane %v18286_v16, %v29735_v11  ;;  %v28161_v45 = vpop.f32.mrb[86].mxu0  ;;  %23448 = vrcp.f32 %v13300_v18  ;;  %v28189_v46 = vrot.slane %v21800_v61, %v29735_v11  ;;  %v5718_v30 = vpop.permute.xlu1 %5717 }
 0x5f3   : > { %v22602_v26 = vpop.f32.mrb[87].mxu0  ;;  %v18309_v36 = vrot.slane %v18301_v44, %v29735_v11  ;;  %v18316_v20 = vrot.slane %v18302_v17, %v29735_v11  ;;  %v28192_v44 = vrot.slane %v21802_v51, %v29735_v11  ;;  %v28195_v19 = vrot.slane %v21804_v25, %v29735_v11 }
 0x5f4   : > { %v28175_v2 = vpop.f32.mrb[90].mxu1  ;;  %5719 = vrot.lane.b32.xlu0 %v27983_v3, %s23777_s2  ;;  %v23443_v12 = vpop.eup %23442  ;;  %v28202_v51 = vrot.slane %v21806_v38, %v29735_v11 }
 0x5f5   : > { %v22607_v32 = vpop.f32.mrb[91].mxu1  ;;  %v5670_v33 = vpop.permute.xlu0 %5669  ;;  %v18349_v16 = vcombine.low %v18293_v29, %v18309_v36  ;;  %v18350_v40 = vcombine.high %v18293_v29, %v18309_v36  ;;  %v18365_v5 = vcombine.low %v18300_v4, %v18316_v20  ;;  %v18366_v18 = vcombine.high %v18300_v4, %v18316_v20 }
 0x5f6   : > { %v6459_v34 = vcombine.low %v5670_v33, %v5718_v30  ;;  %v6460_v57 = vcombine.high %v5670_v33, %v5718_v30  ;;  %v28210_v38 = vmul.f32 %v23443_v12, %v27909_v59 }
 0x5f7   : > { %v14568_v9 = vpop.f32.mrb[88].mxu0  ;;  %v18357_v61 = vrot.slane %v18349_v16, %v29748_v53  ;;  %v18364_v26 = vrot.slane %v18350_v40, %v29748_v53  ;;  %v18373_v32 = vrot.slane %v18365_v5, %v29748_v53  ;;  %v18380_v29 = vrot.slane %v18366_v18, %v29748_v53 }
 0x5f8   : > { %v23445_v17 = vpop.eup %23444  ;;  %v14641_v36 = vpop.f32.mrb[92].mxu1  ;;  %v6467_v25 = vrot.slane %v6459_v34, %v29735_v11  ;;  %v6474_v20 = vrot.slane %v6460_v57, %v29735_v11  ;;  %v18317_v33 = vcombine.low %v28161_v45, %v14568_v9 }
 0x5f9   : > { %v22612_v4 = vpop.f32.mrb[89].mxu0  ;;  %v22617_v30 = vpop.f32.mrb[93].mxu1  ;;  %v21807_v13 = vcombine.low %v18357_v61, %v18364_v26  ;;  %v21809_v16 = vcombine.high %v18357_v61, %v18364_v26  ;;  %v21811_v58 = vcombine.low %v18373_v32, %v18380_v29  ;;  %v21813_v40 = vcombine.high %v18373_v32, %v18380_v29 }
 0x5fa   : > { %v28207_v6 = vpop.eup %23446  ;;  %v6507_v5 = vcombine.low %v6451_v35, %v6467_v25  ;;  %v6508_v18 = vcombine.high %v6451_v35, %v6467_v25  ;;  %v6523_v24 = vcombine.low %v6458_v37, %v6474_v20  ;;  %v6524_v4 = vcombine.high %v6458_v37, %v6474_v20 }
 0x5fb   : > { %29876 = vst [vmem:[#allocation62_spill] sm:$0xff] %v28207_v6  ;;  %v28213_v34 = vmul.f32 %v23445_v17, %v27927_v62  ;;  %v28216_v57 = vrot.slane %v21807_v13, %v29735_v11  ;;  %v28219_v30 = vrot.slane %v21809_v16, %v29735_v11  ;;  %v28226_v17 = vrot.slane %v21811_v58, %v29735_v11 }
 0x5fc   : > { %13326 = vadd.xlane.f32.xlu1 %v13325_v52  ;;  %v14714_v61 = vpop.f32.mrb[90].mxu0  ;;  %v23449_v26 = vpop.eup %23448  ;;  %v6515_v32 = vrot.slane %v6507_v5, %v29748_v53  ;;  %v6522_v35 = vrot.slane %v6508_v18, %v29748_v53  ;;  %v6531_v37 = vrot.slane %v6523_v24, %v29748_v53  ;;  %v6538_v59 = vrot.slane %v6524_v4, %v29748_v53 }
 0x5fd   : > { %v14787_v12 = vpop.f32.mrb[94].mxu1  ;;  %v22622_v62 = vpop.f32.mrb[91].mxu0  ;;  %v18318_v13 = vcombine.high %v28161_v45, %v14568_v9  ;;  %v18325_v29 = vrot.slane %v18317_v33, %v29735_v11  ;;  %v18333_v52 = vcombine.low %v28175_v2, %v14641_v36  ;;  %v28232_v24 = vrot.slane %v21813_v40, %v29735_v11 }
 0x5fe   : > { %v22627_v25 = vpop.f32.mrb[95].mxu1  ;;  %v21584_v20 = vcombine.low %v6515_v32, %v6522_v35  ;;  %v21586_v16 = vcombine.high %v6515_v32, %v6522_v35  ;;  %v21588_v5 = vcombine.low %v6531_v37, %v6538_v59  ;;  %v21590_v18 = vcombine.high %v6531_v37, %v6538_v59 }
 0x5ff   : > { %v18332_v4 = vrot.slane %v18318_v13, %v29735_v11  ;;  %v18334_v62 = vcombine.high %v28175_v2, %v14641_v36  ;;  %v18341_v58 = vrot.slane %v18333_v52, %v29735_v11  ;;  %v28239_v9 = vmul.f32 %v23449_v26, %v27935_v1 }
 0x600   : > { %13335 = vadd.xlane.f32.xlu1 %v28169_v42  ;;  %v14860_v45 = vpop.f32.mrb[92].mxu0  ;;  %v28242_v33 = vrot.slane %v21584_v20, %v29735_v11  ;;  %v28245_v32 = vrot.slane %v21586_v16, %v29735_v11  ;;  %v28248_v40 = vrot.slane %v21588_v5, %v29735_v11  ;;  %v28252_v13 = vrot.slane %v21590_v18, %v29735_v11 }
 0x601   : > { %v22632_v35 = vpop.f32.mrb[93].mxu0  ;;  %v18348_v2 = vrot.slane %v18334_v62, %v29735_v11  ;;  %v18381_v36 = vcombine.low %v18325_v29, %v18341_v58  ;;  %v18382_v37 = vcombine.high %v18325_v29, %v18341_v58  ;;  %v18421_v59 = vcombine.low %v14714_v61, %v14860_v45 }
 0x602   : > { %v14933_v42 = vpop.f32.mrb[96].mxu1  ;;  %v18422_v1 = vcombine.high %v14714_v61, %v14860_v45 }
 0x603   : > { %v18437_v26 = vcombine.low %v14787_v12, %v14933_v42  ;;  %v18438_v52 = vcombine.high %v14787_v12, %v14933_v42  ;;  %v22637_v25 = vpop.f32.mrb[97].mxu1  ;;  %v18389_v20 = vrot.slane %v18381_v36, %v29748_v53  ;;  %v18396_v16 = vrot.slane %v18382_v37, %v29748_v53 }
 0x604   : > { %v18397_v5 = vcombine.low %v18332_v4, %v18348_v2  ;;  %v18398_v23 = vcombine.high %v18332_v4, %v18348_v2  ;;  %v15006_v35 = vpop.f32.mrb[94].mxu0  ;;  %v18429_v62 = vrot.slane %v18421_v59, %v29735_v11  ;;  %v18436_v29 = vrot.slane %v18422_v1, %v29735_v11 }
 0x605   : > { %v18445_v58 = vrot.slane %v18437_v26, %v29735_v11  ;;  %v18452_v18 = vrot.slane %v18438_v52, %v29735_v11  ;;  %v22642_v50 = vpop.f32.mrb[95].mxu0  ;;  %v21808_v45 = vcombine.low %v18389_v20, %v18396_v16  ;;  %v21810_v36 = vcombine.high %v18389_v20, %v18396_v16 }
 0x606   : > { %v18405_v61 = vrot.slane %v18397_v5, %v29748_v53  ;;  %v18412_v12 = vrot.slane %v18398_v23, %v29748_v53  ;;  %v7579_v26 = vcombine.low %v28242_v33, %v28245_v32 }
 0x607   : > { %v18485_v42 = vcombine.low %v18429_v62, %v18445_v58  ;;  %v18486_v37 = vcombine.high %v18429_v62, %v18445_v58  ;;  %v18501_v25 = vcombine.low %v18436_v29, %v18452_v18  ;;  %v18502_v4 = vcombine.high %v18436_v29, %v18452_v18 }
 0x608   : > { %v28263_v2 = vrot.slane %v21808_v45, %v29735_v11  ;;  %v21812_v59 = vcombine.low %v18405_v61, %v18412_v12  ;;  %v21814_v1 = vcombine.high %v18405_v61, %v18412_v12  ;;  %v15152_v0 = vpop.f32.mrb[96].mxu0  ;;  %v28272_v5 = vrot.slane %v21810_v36, %v29735_v11 }
 0x609   : > { %v18493_v50 = vrot.slane %v18485_v42, %v29748_v53  ;;  %v18500_v52 = vrot.slane %v18486_v37, %v29748_v53  ;;  %v18509_v23 = vrot.slane %v18501_v25, %v29748_v53  ;;  %v18516_v20 = vrot.slane %v18502_v4, %v29748_v53  ;;  %v22652_v16 = vpop.f32.mrb[97].mxu0 }
 0x60a   : > { %v28275_v62 = vrot.slane %v21812_v59, %v29735_v11  ;;  %v18453_v29 = vcombine.low %v15006_v35, %v15152_v0  ;;  %v18454_v58 = vcombine.high %v15006_v35, %v15152_v0  ;;  %v15079_v18 = vpop.f32.mrb[98].mxu1  ;;  %v7587_v4 = vrot.slane %v7579_v26, %v29748_v53 }
 0x60b   : > { %v21815_v61 = vcombine.low %v18493_v50, %v18500_v52  ;;  %v21817_v12 = vcombine.high %v18493_v50, %v18500_v52  ;;  %v21819_v45 = vcombine.low %v18509_v23, %v18516_v20  ;;  %v21821_v42 = vcombine.high %v18509_v23, %v18516_v20  ;;  %v22647_v43 = vpop.f32.mrb[99].mxu1 }
 0x60c   : > { %29877 = vst [vmem:[#allocation65_spill] sm:$0xff] %v28275_v62  ;;  %v18461_v37 = vrot.slane %v18453_v29, %v29735_v11  ;;  %v18468_v25 = vrot.slane %v18454_v58, %v29735_v11  ;;  %v7611_v36 = vcombine.low %v28248_v40, %v28252_v13  ;;  %v28282_v16 = vpop.f32.mrb[98].mxu0  ;;  %v7580_v52 = vcombine.high %v28242_v33, %v28245_v32 }
 0x60d   : > { %v28285_v59 = vrot.slane %v21815_v61, %v29735_v11  ;;  %v28288_v0 = vrot.slane %v21817_v12, %v29735_v11  ;;  %v28291_v35 = vrot.slane %v21819_v45, %v29735_v11  ;;  %v28294_v43 = vrot.slane %v21821_v42, %v29735_v11  ;;  %v22662_v50 = vpop.f32.mrb[99].mxu0 }
 0x60e   : > { %v7619_v26 = vrot.slane %v7611_v36, %v29748_v53  ;;  %v7612_v23 = vcombine.high %v28248_v40, %v28252_v13  ;;  %v15225_v20 = vpop.f32.mrb[100].mxu1  ;;  %v7594_v33 = vrot.slane %v7580_v52, %v29748_v53  ;;  %v28316_v47 = vrot.slane %v21814_v1, %v29735_v11 }
 0x60f   : > { %v18469_v58 = vcombine.low %v15079_v18, %v15225_v20  ;;  %v18470_v61 = vcombine.high %v15079_v18, %v15225_v20  ;;  %v22657_v12 = vpop.f32.mrb[101].mxu1  ;;  %v19573_v45 = vcombine.low %v28285_v59, %v28288_v0  ;;  %v19605_v42 = vcombine.low %v28291_v35, %v28294_v43 }
 0x610   : > { %v7631_v36 = vcombine.low %v7587_v4, %v7619_v26  ;;  %v7632_v50 = vcombine.high %v7587_v4, %v7619_v26  ;;  %v7626_v32 = vrot.slane %v7612_v23, %v29748_v53  ;;  %v15444_v40 = vpop.f32.mrb[100].mxu0  ;;  %29878 = vst [vmem:[#allocation69_spill] sm:$0xff] %v28316_v47 }
 0x611   : > { %v18477_v13 = vrot.slane %v18469_v58, %v29735_v11  ;;  %v18484_v29 = vrot.slane %v18470_v61, %v29735_v11  ;;  %v18557_v18 = vcombine.low %v28282_v16, %v15444_v40  ;;  %v18558_v20 = vcombine.high %v28282_v16, %v15444_v40  ;;  %5601 = vrot.lane.b32.xlu1 %v28117_v22, %s23771_s15  ;;  %v22672_v12 = vpop.f32.mrb[101].mxu0 }
 0x612   : > { %22759 = vmatpush3.msra.mxu0 %v7631_v36  ;;  %22764 = vmatpush3.msra.mxu1 %v7632_v50  ;;  %v7633_v4 = vcombine.low %v7594_v33, %v7626_v32  ;;  %v7634_v26 = vcombine.high %v7594_v33, %v7626_v32 }
 0x613   : > { %22761 = vmatmul.mubr.msk.f32.vlgmr.msra.gmra.mrb[118].mxu0 %vm12772_vm2, %v28210_v38  ;;  %22766 = vmatmul.mubr.msk.f32.vlgmr.msra.gmra.mrb[122].mxu1 %vm12772_vm2, %v28184_v63  ;;  %v18517_v52 = vcombine.low %v18461_v37, %v18477_v13  ;;  %v18518_v23 = vcombine.high %v18461_v37, %v18477_v13  ;;  %v18533_v16 = vcombine.low %v18468_v25, %v18484_v29  ;;  %v13306_v58 = vpop.xlane.xlu1 %13305  ;;  %v15371_v61 = vpop.f32.mrb[102].mxu1 }
 0x614   : > { %22768 = vmatprep.subr.mxu0 %v29772_v15  ;;  %22773 = vmatprep.subr.mxu1 %v29772_v15  ;;  %v18534_v1 = vcombine.high %v18468_v25, %v18484_v29  ;;  %v28325_v36 = vrot.slane %v18557_v18, %v29735_v11  ;;  %23450 = vrcp.f32 %v13306_v58  ;;  %v15590_v50 = vpop.f32.mrb[102].mxu0  ;;  %v22667_v33 = vpop.f32.mrb[103].mxu1  ;;  %v28328_v38 = vrot.slane %v19573_v45, %v29748_v53 }
 0x615   : > { %23452 = vpow2.f32 %v28127_v31  ;;  %22769 = vmatpush3.msra.mxu0 %v7633_v4  ;;  %22774 = vmatpush3.msra.mxu1 %v7634_v26  ;;  %v18525_v63 = vrot.slane %v18517_v52, %v29748_v53  ;;  %v18532_v37 = vrot.slane %v18518_v23, %v29748_v53  ;;  %v18541_v32 = vrot.slane %v18533_v16, %v29748_v53  ;;  %v22682_v25 = vpop.f32.mrb[103].mxu0 }
 0x616   : > { %29879 = vst [vmem:[#allocation60_spill] sm:$0xff] %v28328_v38  ;;  %v29880_v29 = vsub.f32 %v29872_v41, %v29871_v21  ;;  %22770 = vmatprep.mubr.msk.f32.mxu0 %vm23779_vm0, %v29772_v15  ;;  %22775 = vmatprep.mubr.msk.f32.mxu1 %vm23779_vm0, %v29772_v15  ;;  %v18548_v31 = vrot.slane %v18534_v1, %v29748_v53  ;;  %v13328_v18 = vsel %vm12772_vm2, %v28171_v7, 0.0 }
 0x617   : > { %v28345_v45 = vrot.slane %v19605_v42, %v29748_v53  ;;  %v19574_v13 = vcombine.high %v28285_v59, %v28288_v0  ;;  %22771 = vmatmul.mubr.msk.f32.vlgmr.msra.gmra.mrb[120].mxu0 %vm12772_vm2, %v28213_v34  ;;  %22776 = vmatmul.mubr.msk.f32.vlgmr.msra.gmra.mrb[124].mxu1 %vm12772_vm2, %v28239_v9  ;;  %v21816_v21 = vcombine.low %v18525_v63, %v18532_v37  ;;  %v28355_v12 = vpop.permute.xlu1 %5575  ;;  %v15517_v4 = vpop.f32.mrb[104].mxu1  ;;  %v13331_v34 = vsel %vm12772_vm2, %v28151_v55, 0.0 }
 0x618   : > { %v28337_v40 = vmul.f32 1.442695, %v29880_v29  ;;  %v21818_v41 = vcombine.high %v18525_v63, %v18532_v37  ;;  %v19606_v42 = vcombine.high %v28291_v35, %v28294_v43  ;;  %v21820_v26 = vcombine.low %v18541_v32, %v18548_v31  ;;  %13329 = vadd.xlane.f32.xlu0 %v13328_v18  ;;  %5625 = vrot.lane.b32.xlu1 %v28117_v22, %s23774_s22  ;;  %v15736_v59 = vpop.f32.mrb[104].mxu0  ;;  %v22677_v0 = vpop.f32.mrb[105].mxu1 }
 0x619   : > { %29881 = vst [vmem:[#allocation53_spill] sm:$0xff] %v28345_v45  ;;  %v21822_v52 = vcombine.high %v18541_v32, %v18548_v31  ;;  %v18573_v9 = vcombine.low %v15371_v61, %v15517_v4  ;;  %v28364_v23 = vrot.slane %v21816_v21, %v29735_v11  ;;  %v18572_v16 = vrot.slane %v18558_v20, %v29735_v11  ;;  %v22692_v35 = vpop.f32.mrb[105].mxu0 }
 0x61a   : > { %v18574_v58 = vcombine.high %v15371_v61, %v15517_v4  ;;  %v18589_v1 = vcombine.low %v15590_v50, %v15736_v59  ;;  %22778 = vmatprep.subr.mxu0 %v29772_v15  ;;  %v28369_v43 = vrot.slane %v21818_v41, %v29735_v11  ;;  %v28372_v33 = vrot.slane %v21820_v26, %v29735_v11 }
 0x61b   : > { %v18581_v63 = vrot.slane %v18573_v9, %v29735_v11  ;;  %v18590_v37 = vcombine.high %v15590_v50, %v15736_v59  ;;  %22783 = vmatprep.subr.mxu1 %v29772_v15  ;;  %v28377_v32 = vrot.slane %v21822_v52, %v29735_v11  ;;  %v28380_v61 = vpop.permute.xlu1 %5623  ;;  %v15663_v25 = vpop.f32.mrb[106].mxu1  ;;  %v28384_v29 = vsel %vm12772_vm2, %v28207_v6, 0.0  ;;  %22780 = vmatprep.mubr.msk.f32.mxu0 %vm23779_vm0, %v29772_v15 }
 0x61c   : > { %v18588_v20 = vrot.slane %v18574_v58, %v29735_v11  ;;  %22785 = vmatprep.mubr.msk.f32.mxu1 %vm23779_vm0, %v29772_v15  ;;  %13332 = vadd.xlane.f32.xlu0 %v13331_v34  ;;  %v18597_v41 = vrot.slane %v18589_v1, %v29735_v11  ;;  %v6563_v18 = vcombine.low %v28355_v12, %v28380_v61  ;;  %v22687_v4 = vpop.f32.mrb[107].mxu1 }
 0x61d   : > { %v18621_v31 = vcombine.low %v28325_v36, %v18581_v63  ;;  %v18622_v21 = vcombine.high %v28325_v36, %v18581_v63  ;;  %v18604_v9 = vrot.slane %v18590_v37, %v29735_v11  ;;  %v28399_v59 = vrot.slane %v19574_v13, %v29748_v53 }
 0x61e   : > { %v18637_v26 = vcombine.low %v18572_v16, %v18588_v20  ;;  %v18638_v52 = vcombine.high %v18572_v16, %v18588_v20  ;;  %v23451_v0 = vpop.eup %23450  ;;  %v28406_v1 = vrot.slane %v19606_v42, %v29748_v53  ;;  %v28416_v37 = vrot.slane %v6563_v18, %v29735_v11 }
 0x61f   : > { %v18629_v34 = vrot.slane %v18621_v31, %v29748_v53  ;;  %v18636_v58 = vrot.slane %v18622_v21, %v29748_v53  ;;  %v28408_v35 = vpop.eup %23452  ;;  %v28411_v16 = vmul.f32 %v23451_v0, %v27945_v8  ;;  %v15809_v20 = vpop.f32.mrb[108].mxu1 }
 0x620   : > { %29882 = vst [vmem:[#allocation58_spill] sm:$0xff] %v28408_v35  ;;  %v18645_v63 = vrot.slane %v18637_v26, %v29748_v53  ;;  %v18652_v13 = vrot.slane %v18638_v52, %v29748_v53  ;;  %v18605_v4 = vcombine.low %v15663_v25, %v15809_v20  ;;  %v18606_v36 = vcombine.high %v15663_v25, %v15809_v20  ;;  %v22697_v50 = vpop.f32.mrb[109].mxu1 }
 0x621   : > { %v21823_v31 = vcombine.low %v18629_v34, %v18636_v58  ;;  %v21825_v21 = vcombine.high %v18629_v34, %v18636_v58  ;;  %v19639_v55 = vcombine.low %v28399_v59, %v28406_v1  ;;  %v19640_v8 = vcombine.high %v28399_v59, %v28406_v1 }
 0x622   : > { %v21827_v42 = vcombine.low %v18645_v63, %v18652_v13  ;;  %v21829_v6 = vcombine.high %v18645_v63, %v18652_v13  ;;  %v18613_v18 = vrot.slane %v18605_v4, %v29735_v11  ;;  %v18620_v0 = vrot.slane %v18606_v36, %v29735_v11 }
 0x623   : > { %v19653_v26 = vrot.slane %v21823_v31, %v29735_v11  ;;  %v19669_v52 = vrot.slane %v21825_v21, %v29735_v11  ;;  %v19589_v50 = vcombine.low %v28364_v23, %v28369_v43  ;;  %v19621_v58 = vcombine.low %v28372_v33, %v28377_v32 }
 0x624   : > { %v19685_v34 = vrot.slane %v21827_v42, %v29735_v11  ;;  %v19701_v25 = vrot.slane %v21829_v6, %v29735_v11  ;;  %v18653_v63 = vcombine.low %v18597_v41, %v18613_v18  ;;  %v18654_v59 = vcombine.high %v18597_v41, %v18613_v18 }
 0x625   : > { %v18669_v1 = vcombine.low %v18604_v9, %v18620_v0  ;;  %v18670_v13 = vcombine.high %v18604_v9, %v18620_v0  ;;  %v19709_v20 = vcombine.low %v19653_v26, %v19669_v52  ;;  %v19710_v21 = vcombine.high %v19653_v26, %v19669_v52 }
 0x626   : > { %v19741_v31 = vcombine.low %v19685_v34, %v19701_v25  ;;  %v19742_v4 = vcombine.high %v19685_v34, %v19701_v25  ;;  %v18661_v36 = vrot.slane %v18653_v63, %v29748_v53  ;;  %v18668_v42 = vrot.slane %v18654_v59, %v29748_v53  ;;  %v13303_v28 = vpop.xlane.xlu0 %13302 }
 0x627   : > { %v18677_v6 = vrot.slane %v18669_v1, %v29748_v53  ;;  %v18684_v7 = vrot.slane %v18670_v13, %v29748_v53  ;;  %23454 = vrcp.f32 %v13303_v28  ;;  %v28437_v35 = vrot.slane %v19709_v20, %v29748_v53 }
 0x628   : > { %v28440_v41 = vrot.slane %v19741_v31, %v29748_v53  ;;  %v19724_v9 = vrot.slane %v19710_v21, %v29748_v53  ;;  %v21824_v26 = vcombine.low %v18661_v36, %v18668_v42  ;;  %v21826_v52 = vcombine.high %v18661_v36, %v18668_v42  ;;  %v15882_v34 = vpop.f32.mrb[106].mxu0  ;;  %v15955_v25 = vpop.f32.mrb[110].mxu1 }
 0x629   : > { %29883 = vst [vmem:[#allocation66_spill] sm:$0xff] %v28437_v35  ;;  %v21828_v18 = vcombine.low %v18677_v6, %v18684_v7  ;;  %v21830_v0 = vcombine.high %v18677_v6, %v18684_v7  ;;  %v22702_v63 = vpop.f32.mrb[107].mxu0  ;;  %v22707_v59 = vpop.f32.mrb[111].mxu1  ;;  %v19756_v28 = vrot.slane %v19742_v4, %v29748_v53  ;;  %v19597_v13 = vrot.slane %v19589_v50, %v29748_v53 }
 0x62a   : > { %29884 = vst [vmem:[#allocation33_spill] sm:$0xff] %v28440_v41  ;;  %v19774_v1 = vcombine.high %v28437_v35, %v28440_v41  ;;  %v19629_v20 = vrot.slane %v19621_v58, %v29748_v53  ;;  %v28449_v31 = vrot.slane %v21824_v26, %v29735_v11  ;;  %v28452_v21 = vrot.slane %v21826_v52, %v29735_v11  ;;  %v13309_v42 = vpop.xlane.xlu0 %13308 }
 0x62b   : > { %v28455_v7 = vrot.slane %v21828_v18, %v29735_v11  ;;  %v28458_v36 = vrot.slane %v21830_v0, %v29735_v11  ;;  %23456 = vrcp.f32 %v13309_v42  ;;  %v29885_v4 = vcombine.high %v28328_v38, %v28345_v45 }
 0x62c   : > { %v19775_v58 = vcombine.low %v19724_v9, %v19756_v28  ;;  %v19776_v6 = vcombine.high %v19724_v9, %v19756_v28  ;;  %v16028_v26 = vpop.f32.mrb[108].mxu0  ;;  %v16101_v63 = vpop.f32.mrb[112].mxu1  ;;  %v19641_v59 = vcombine.low %v19597_v13, %v19629_v20  ;;  %v19725_v52 = vcombine.low %v28449_v31, %v28452_v21 }
 0x62d   : > { %v28463_v50 = vpack.i.bf16 %v19774_v1, %v29885_v4  ;;  %v19757_v18 = vcombine.low %v28455_v7, %v28458_v36  ;;  %v19642_v0 = vcombine.high %v19597_v13, %v19629_v20  ;;  %v18693_v35 = vcombine.low %v15882_v34, %v16028_v26  ;;  %v22712_v62 = vpop.f32.mrb[109].mxu0  ;;  %v22717_v38 = vpop.f32.mrb[113].mxu1 }
 0x62e   : > { %v18694_v41 = vcombine.high %v15882_v34, %v16028_v26  ;;  %v18709_v42 = vcombine.low %v15955_v25, %v16101_v63  ;;  %v18710_v15 = vcombine.high %v15955_v25, %v16101_v63  ;;  %v13312_v1 = vpop.xlane.xlu0 %13311  ;;  %v28469_v4 = vpack.i.bf16 %v19775_v58, %v19639_v55 }
 0x62f   : > { %29886 = vst [vmem:[#allocation70_spill] sm:$0xff] %v28463_v50  ;;  %v28471_v9 = vpack.i.bf16 %v19776_v6, %v19640_v8  ;;  %v19733_v28 = vrot.slane %v19725_v52, %v29748_v53  ;;  %v19765_v50 = vrot.slane %v19757_v18, %v29748_v53  ;;  %v18701_v45 = vrot.slane %v18693_v35, %v29735_v11 }
 0x630   : > { %v18708_v47 = vrot.slane %v18694_v41, %v29735_v11  ;;  %v18717_v13 = vrot.slane %v18709_v42, %v29735_v11  ;;  %v18724_v34 = vrot.slane %v18710_v15, %v29735_v11  ;;  %v29887_v62 = vcombine.high %v28355_v12, %v28380_v61 }
 0x631   : > { %v19777_v38 = vcombine.low %v19733_v28, %v19765_v50  ;;  %v19778_v8 = vcombine.high %v19733_v28, %v19765_v50  ;;  %v19590_v25 = vcombine.high %v28364_v23, %v28369_v43  ;;  %v23455_v20 = vpop.eup %23454  ;;  %23458 = vrcp.f32 %v13312_v1 }
 0x632   : > { %v6578_v55 = vrot.slane %v29887_v62, %v29735_v11  ;;  %v18757_v58 = vcombine.low %v18701_v45, %v18717_v13  ;;  %v18758_v6 = vcombine.high %v18701_v45, %v18717_v13  ;;  %v18773_v35 = vcombine.low %v18708_v47, %v18724_v34  ;;  %5577 = vrot.lane.b32.xlu0 %v28117_v22, %s23772_s27  ;;  %v5600_v15 = vpop.permute.xlu0 %5599 }
 0x633   : > { %v18774_v26 = vcombine.high %v18708_v47, %v18724_v34  ;;  %v28487_v41 = vpack.i.bf16 %v19777_v38, %v19641_v59  ;;  %v28489_v63 = vpack.i.bf16 %v19778_v8, %v19642_v0  ;;  %v19604_v12 = vrot.slane %v19590_v25, %v29748_v53 }
 0x634   : > { %v18765_v61 = vrot.slane %v18757_v58, %v29748_v53  ;;  %v18772_v23 = vrot.slane %v18758_v6, %v29748_v53  ;;  %v18781_v43 = vrot.slane %v18773_v35, %v29748_v53  ;;  %v6547_v47 = vcombine.low %v27983_v3, %v5600_v15 }
 0x635   : > { %v18788_v45 = vrot.slane %v18774_v26, %v29748_v53  ;;  %v6548_v50 = vcombine.high %v27983_v3, %v5600_v15  ;;  %v19622_v59 = vcombine.high %v28372_v33, %v28377_v32  ;;  %v19726_v52 = vcombine.high %v28449_v31, %v28452_v21  ;;  %v23457_v18 = vpop.eup %23456 }
 0x636   : > { %v21831_v0 = vcombine.low %v18765_v61, %v18772_v23  ;;  %v21833_v42 = vcombine.high %v18765_v61, %v18772_v23  ;;  %v28503_v13 = vmul.f32 %v23455_v20, %v27977_v60  ;;  %v6555_v34 = vrot.slane %v6547_v47, %v29735_v11 }
 0x637   : > { %v21835_v1 = vcombine.low %v18781_v43, %v18788_v45  ;;  %v21837_v28 = vcombine.high %v18781_v43, %v18788_v45  ;;  %v6562_v62 = vrot.slane %v6548_v50, %v29735_v11  ;;  %v19636_v3 = vrot.slane %v19622_v59, %v29748_v53 }
 0x638   : > { %v28509_v38 = vmul.f32 %v23457_v18, %v27999_v56  ;;  %v28512_v33 = vrot.slane %v21831_v0, %v29735_v11  ;;  %v28515_v32 = vrot.slane %v21833_v42, %v29735_v11  ;;  %v6611_v60 = vcombine.low %v6555_v34, %v28416_v37 }
 0x639   : > { %v28518_v31 = vrot.slane %v21835_v1, %v29735_v11  ;;  %v6612_v21 = vcombine.high %v6555_v34, %v28416_v37  ;;  %v6627_v8 = vcombine.low %v6562_v62, %v6578_v55  ;;  %v6628_v25 = vcombine.high %v6562_v62, %v6578_v55 }
 0x63a   : > { %v19643_v20 = vcombine.low %v19604_v12, %v19636_v3  ;;  %v19740_v58 = vrot.slane %v19726_v52, %v29748_v53  ;;  %v19758_v56 = vcombine.high %v28455_v7, %v28458_v36  ;;  %v19644_v6 = vcombine.high %v19604_v12, %v19636_v3 }
 0x63b   : > { %v6619_v35 = vrot.slane %v6611_v60, %v29748_v53  ;;  %v6626_v26 = vrot.slane %v6612_v21, %v29748_v53  ;;  %v6635_v15 = vrot.slane %v6627_v8, %v29748_v53  ;;  %v6642_v61 = vrot.slane %v6628_v25, %v29748_v53  ;;  %v23459_v36 = vpop.eup %23458 }
 0x63c   : > { %v28530_v23 = vrot.slane %v21837_v28, %v29735_v11  ;;  %v19772_v37 = vrot.slane %v19758_v56, %v29748_v53  ;;  %v29888_v55 = vcombine.low %v28216_v57, %v28219_v30  ;;  %v19469_v7 = vcombine.low %v28226_v17, %v28232_v24  ;;  %13341 = vadd.xlane.f32.xlu1 %v28384_v29 }
 0x63d   : > { %v21591_v12 = vcombine.low %v6619_v35, %v6626_v26  ;;  %v21593_v45 = vcombine.high %v6619_v35, %v6626_v26  ;;  %v21595_v47 = vcombine.low %v6635_v15, %v6642_v61  ;;  %v21597_v50 = vcombine.high %v6635_v15, %v6642_v61 }
 0x63e   : > { %v28537_v43 = vrot.slane %v29888_v55, %v29748_v53  ;;  %v19779_v59 = vcombine.low %v19740_v58, %v19772_v37  ;;  %v19780_v52 = vcombine.high %v19740_v58, %v19772_v37  ;;  %v28543_v18 = vrot.slane %v19469_v7, %v29748_v53 }
 0x63f   : > { %v19302_v0 = vcombine.high %v28130_v54, %v28133_v48  ;;  %v7643_v42 = vrot.slane %v21591_v12, %v29735_v11  ;;  %v7659_v1 = vrot.slane %v21593_v45, %v29735_v11  ;;  %v7675_v28 = vrot.slane %v21595_v47, %v29735_v11 }
 0x640   : > { %v7691_v34 = vrot.slane %v21597_v50, %v29735_v11  ;;  %v13464_v62 = vmul.f32 %v23459_v36, %v28007_v27  ;;  %v28552_v3 = vpack.i.bf16 %v19779_v59, %v19643_v20  ;;  %v28554_v29 = vpack.i.bf16 %v19780_v52, %v19644_v6 }
 0x641   : > { %v19502_v60 = vcombine.high %v28537_v43, %v28543_v18  ;;  %v7699_v21 = vcombine.low %v7643_v42, %v7659_v1  ;;  %v7700_v25 = vcombine.high %v7643_v42, %v7659_v1  ;;  %v19316_v56 = vrot.slane %v19302_v0, %v29748_v53 }
 0x642   : > { %v7731_v8 = vcombine.low %v7675_v28, %v7691_v34  ;;  %v7732_v58 = vcombine.high %v7675_v28, %v7691_v34  ;;  %v19334_v35 = vcombine.high %v28144_v39, %v28147_v49  ;;  %v19438_v26 = vcombine.high %v28216_v57, %v28219_v30  ;;  %v29890_v34 = vld [vmem:[#allocation69_spill] sm:$0xff] }
 0x643   : > { %v19470_v27 = vcombine.high %v28226_v17, %v28232_v24  ;;  %v7707_v20 = vrot.slane %v7699_v21, %v29748_v53  ;;  %v7714_v15 = vrot.slane %v7700_v25, %v29748_v53  ;;  %v19317_v57 = vcombine.low %v28189_v46, %v28192_v44  ;;  %v29891_v21 = vld [vmem:[#allocation65_spill] sm:$0xff] }
 0x644   : > { %v7739_v6 = vrot.slane %v7731_v8, %v29748_v53  ;;  %v7746_v61 = vrot.slane %v7732_v58, %v29748_v53  ;;  %v19348_v37 = vrot.slane %v19334_v35, %v29748_v53  ;;  %v19452_v55 = vrot.slane %v19438_v26, %v29748_v53 }
 0x645   : > { %v19484_v7 = vrot.slane %v19470_v27, %v29748_v53  ;;  %23460 = vpow2.f32 %v28337_v40  ;;  %v19325_v59 = vrot.slane %v19317_v57, %v29748_v53  ;;  %v19349_v52 = vcombine.low %v28195_v19, %v28202_v51  ;;  %v29893_v57 = vld [vmem:[#allocation58_spill] sm:$0xff] }
 0x646   : > { %v7763_v30 = vcombine.low %v7707_v20, %v7739_v6  ;;  %v7764_v36 = vcombine.high %v7707_v20, %v7739_v6  ;;  %v7765_v17 = vcombine.low %v7714_v15, %v7746_v61  ;;  %v7766_v24 = vcombine.high %v7714_v15, %v7746_v61 }
 0x647   : > { %v19367_v12 = vcombine.low %v19316_v56, %v19348_v37  ;;  %v19503_v45 = vcombine.low %v19452_v55, %v19484_v7  ;;  %v19368_v47 = vcombine.high %v19316_v56, %v19348_v37  ;;  %v19504_v50 = vcombine.high %v19452_v55, %v19484_v7 }
 0x648   : > { %22779 = vmatpush3.msra.mxu0 %v7763_v30  ;;  %22784 = vmatpush3.msra.mxu1 %v7764_v36  ;;  %v19453_v0 = vcombine.low %v28263_v2, %v28272_v5  ;;  %v29889_v42 = vsub.f32 %v29874_v10, %v29873_v14  ;;  %v19485_v8 = vcombine.low %v29891_v21, %v29890_v34  ;;  %v29892_v25 = vmov 0.0  }
 0x649   : > { %22781 = vmatmul.mubr.msk.f32.vlgmr.msra.gmra.mrb[122].mxu0 %vm12772_vm2, %v28503_v13  ;;  %22786 = vmatmul.mubr.msk.f32.vlgmr.msra.gmra.mrb[126].mxu1 %vm12772_vm2, %v28411_v16  ;;  %v28587_v40 = vpack.i.bf16 %v19503_v45, %v19367_v12  ;;  %v28589_v28 = vpack.i.bf16 %v19504_v50, %v19368_v47  ;;  %v19357_v14 = vrot.slane %v19349_v52, %v29748_v53  ;;  %v13337_v30 = vsel %vm12772_vm2, %v29893_v57, 0.0 }
 0x64a   : > { %v13155_v1 = vmul.f32 1.442695, %v29889_v42  ;;  %22788 = vmatprep.subr.mxu0 %v29892_v25  ;;  %22793 = vmatprep.subr.mxu1 %v29892_v25  ;;  %v19461_v10 = vrot.slane %v19453_v0, %v29748_v53  ;;  %v19318_v13 = vcombine.high %v28189_v46, %v28192_v44  ;;  %v19493_v16 = vrot.slane %v19485_v8, %v29748_v53  ;;  %v29894_v42 = vld [vmem:[#allocation53_spill] sm:$0xff]  ;;  %v29897_v8 = vld [vmem:[#allocation66_spill] sm:$0xff] }
 0x64b   : > { %22789 = vmatpush3.msra.mxu0 %v7765_v17  ;;  %22794 = vmatpush3.msra.mxu1 %v7766_v24  ;;  %v19350_v58 = vcombine.high %v28195_v19, %v28202_v51  ;;  %v19454_v56 = vcombine.high %v28263_v2, %v28272_v5  ;;  %v19369_v35 = vcombine.low %v19325_v59, %v19357_v14 }
 0x64c   : > { %22790 = vmatprep.mubr.msk.f32.mxu0 %vm23779_vm0, %v29892_v25  ;;  %22795 = vmatprep.mubr.msk.f32.mxu1 %vm23779_vm0, %v29892_v25  ;;  %v19370_v26 = vcombine.high %v19325_v59, %v19357_v14  ;;  %v19332_v46 = vrot.slane %v19318_v13, %v29748_v53  ;;  %23462 = vpow2.f32 %v13155_v1  ;;  %v19505_v44 = vcombine.low %v19461_v10, %v19493_v16  ;;  %v29895_v1 = vld [vmem:[#allocation60_spill] sm:$0xff]  ;;  %v29898_v13 = vld [vmem:[#allocation70_spill] sm:$0xff] }
 0x64d   : > { %22791 = vmatmul.mubr.msk.f32.vlgmr.msra.gmra.mrb[124].mxu0 %vm12772_vm2, %v28509_v38  ;;  %22796 = vmatmul.mubr.msk.f32.vlgmr.msra.gmra.mrb[128].mxu1 %vm12772_vm2, %v13464_v62  ;;  %v19506_v19 = vcombine.high %v19461_v10, %v19493_v16  ;;  %v19364_v51 = vrot.slane %v19350_v58, %v29748_v53  ;;  %v19468_v2 = vrot.slane %v19454_v56, %v29748_v53  ;;  %v13315_v16 = vpop.xlane.xlu1 %13314 }
 0x64e   : > { %22798 = vmatprep.subr.mxu0 %v29892_v25  ;;  %22803 = vmatprep.subr.mxu1 %v29892_v25  ;;  %v19486_v5 = vcombine.high %v29891_v21, %v29890_v34  ;;  %v19845_v27 = vcombine.low %v28512_v33, %v28515_v32  ;;  %v28622_v38 = vpack.i.bf16 %v19505_v44, %v19369_v35  ;;  %v29896_v21 = vld [vmem:[#allocation33_spill] sm:$0xff]  ;;  %23464 = vrcp.f32 %v13315_v16 }
 0x64f   : > { %5649 = vrot.lane.b32.xlu1 %v28117_v22, %s23773_s14  ;;  %v28624_v62 = vpack.i.bf16 %v19506_v19, %v19370_v26  ;;  %v19371_v20 = vcombine.low %v19332_v46, %v19364_v51  ;;  %22800 = vmatprep.mubr.msk.f32.mxu0 %vm23779_vm0, %v29892_v25  ;;  %v19372_v15 = vcombine.high %v19332_v46, %v19364_v51  ;;  %v28637_v7 = vpop.eup %23460 }
 0x650   : > { %v19500_v6 = vrot.slane %v19486_v5, %v29748_v53  ;;  %22805 = vmatprep.mubr.msk.f32.mxu1 %vm23779_vm0, %v29892_v25  ;;  %v19877_v61 = vcombine.low %v28518_v31, %v28530_v23  ;;  %v19846_v37 = vcombine.high %v28512_v33, %v28515_v32  ;;  %v19878_v55 = vcombine.high %v28518_v31, %v28530_v23 }
 0x651   : > { %13338 = vadd.xlane.f32.xlu0 %v13337_v30  ;;  %v13343_v52 = vsel %vm12772_vm2, %v28637_v7, 0.0  ;;  %v19637_v34 = vcombine.low %v29895_v1, %v29894_v42  ;;  %v19773_v14 = vcombine.low %v29897_v8, %v29896_v21  ;;  %v28675_v58 = vpop.xlane.xlu1 %13323 }
 0x652   : > { %v19507_v36 = vcombine.low %v19468_v2, %v19500_v6  ;;  %v19508_v17 = vcombine.high %v19468_v2, %v19500_v6  ;;  %v28644_v24 = vrot.slane %v19846_v37, %v29748_v53  ;;  %v28647_v12 = vrot.slane %v19878_v55, %v29748_v53 }
 0x653   : > { %5697 = vrot.lane.b32.xlu1 %v28117_v22, %s23775_s24 }
 0x654   : > { %v28649_v45 = vpack.i.bf16 %v19507_v36, %v19371_v20  ;;  %v28651_v47 = vpack.i.bf16 %v19508_v17, %v19372_v15  ;;  %v19911_v50 = vcombine.low %v28644_v24, %v28647_v12  ;;  %v19912_v59 = vcombine.high %v28644_v24, %v28647_v12 }
 0x655   : > { %13344 = vadd.xlane.f32.xlu0 %v13343_v52  ;;  %v5672_v51 = vpop.permute.xlu1 %5671  ;;  %v29900_v36 = vcombine.low %v28144_v39, %v28147_v49 }
 0x656   : > { %v28659_v0 = vpop.eup %23462 }
 0x657   : > { %5721 = vrot.lane.b32.xlu1 %v28117_v22, %s23777_s2  ;;  %v13346_v10 = vsel %vm12772_vm2, %v28659_v0, 0.0 }
 0x659   : > { %13347 = vadd.xlane.f32.xlu0 %v13346_v10 }
 0x65b   : > { %23044 = vrot.lane.b32.xlu1 %v29898_v13, %s23777_s2 }
 0x65f   : > { %23054 = vrot.lane.b32.xlu1 %v28469_v4, %s23775_s24 }
 0x663   : > { %23064 = vrot.lane.b32.xlu1 %v28471_v9, %s23776_s16  ;;  %v13318_v56 = vpop.xlane.xlu0 %13317 }
 0x664   : > { %23466 = vrcp.f32 %v13318_v56 }
 0x665   : > { %v16174_v35 = vpop.f32.mrb[110].mxu0  ;;  %v16247_v26 = vpop.f32.mrb[114].mxu1  ;;  %23468 = vrcp.f32 %v28675_v58 }
 0x666   : > { %v22722_v46 = vpop.f32.mrb[111].mxu0  ;;  %v22727_v44 = vpop.f32.mrb[115].mxu1 }
 0x667   : > { %23074 = vrot.lane.b32.xlu1 %v28487_v41, %s23773_s14  ;;  %v28679_v19 = vpop.xlane.xlu0 %13320  ;;  %v29899_v41 = vcombine.low %v28130_v54, %v28133_v48  ;;  %v5696_v54 = vpop.permute.xlu1 %5695 }
 0x668   : > { %23470 = vrcp.f32 %v28679_v19 }
 0x669   : > { %v16320_v4 = vpop.f32.mrb[112].mxu0  ;;  %v16393_v2 = vpop.f32.mrb[116].mxu1  ;;  %v28687_v30 = vrot.slane %v29899_v41, %v29748_v53 }
 0x66a   : > { %v18725_v5 = vcombine.low %v16174_v35, %v16320_v4  ;;  %v18726_v9 = vcombine.high %v16174_v35, %v16320_v4  ;;  %v18741_v20 = vcombine.low %v16247_v26, %v16393_v2  ;;  %v18742_v6 = vcombine.high %v16247_v26, %v16393_v2  ;;  %v22732_v15 = vpop.f32.mrb[113].mxu0  ;;  %v22737_v37 = vpop.f32.mrb[117].mxu1 }
 0x66b   : > { %23084 = vrot.lane.b32.xlu1 %v28489_v63, %s23774_s22  ;;  %v5648_v55 = vpop.permute.xlu0 %5647  ;;  %v28693_v63 = vrot.slane %v29900_v36, %v29748_v53  ;;  %v19501_v37 = vcombine.low %v28537_v43, %v28543_v18 }
 0x66c   : > { %v18733_v17 = vrot.slane %v18725_v5, %v29735_v11  ;;  %v18740_v52 = vrot.slane %v18726_v9, %v29735_v11  ;;  %v18749_v10 = vrot.slane %v18741_v20, %v29735_v11  ;;  %v18756_v13 = vrot.slane %v18742_v6, %v29735_v11 }
 0x66d   : > { %v6579_v39 = vcombine.low %v5648_v55, %v5696_v54  ;;  %v6580_v49 = vcombine.high %v5648_v55, %v5696_v54  ;;  %v19366_v44 = vcombine.high %v28687_v30, %v28693_v63 }
 0x66e   : > { %v18789_v48 = vcombine.low %v18733_v17, %v18749_v10  ;;  %v18790_v35 = vcombine.high %v18733_v17, %v18749_v10  ;;  %v18805_v26 = vcombine.low %v18740_v52, %v18756_v13  ;;  %v18806_v46 = vcombine.high %v18740_v52, %v18756_v13 }
 0x66f   : > { %23094 = vrot.lane.b32.xlu1 %v28552_v3, %s23771_s15  ;;  %5673 = vrot.lane.b32.xlu0 %v28117_v22, %s23776_s16  ;;  %v5720_v4 = vpop.permute.xlu0 %5719  ;;  %v23038_v20 = vpack.i.bf16 %v19502_v60, %v19366_v44  ;;  %v6587_v52 = vrot.slane %v6579_v39, %v29735_v11  ;;  %v6594_v10 = vrot.slane %v6580_v49, %v29735_v11 }
 0x670   : > { %v18797_v2 = vrot.slane %v18789_v48, %v29748_v53  ;;  %v18804_v5 = vrot.slane %v18790_v35, %v29748_v53  ;;  %v18813_v3 = vrot.slane %v18805_v26, %v29748_v53  ;;  %v18820_v9 = vrot.slane %v18806_v46, %v29748_v53 }
 0x671   : > { %v6595_v6 = vcombine.low %v5672_v51, %v5720_v4  ;;  %v6596_v15 = vcombine.high %v5672_v51, %v5720_v4 }
 0x672   : > { %v21832_v55 = vcombine.low %v18797_v2, %v18804_v5  ;;  %v21834_v41 = vcombine.high %v18797_v2, %v18804_v5  ;;  %v21836_v36 = vcombine.low %v18813_v3, %v18820_v9  ;;  %v21838_v17 = vcombine.high %v18813_v3, %v18820_v9 }
 0x673   : > { %23104 = vrot.lane.b32.xlu1 %v28554_v29, %s23772_s27  ;;  %23039 = vrot.lane.b32.xlu0 %v23038_v20, %s23777_s2  ;;  %v6603_v29 = vrot.slane %v6595_v6, %v29735_v11  ;;  %v6610_v13 = vrot.slane %v6596_v15, %v29735_v11 }
 0x674   : > { %v19812_v58 = vrot.slane %v21834_v41, %v29735_v11  ;;  %v19828_v9 = vrot.slane %v21836_v36, %v29735_v11  ;;  %v19844_v20 = vrot.slane %v21838_v17, %v29735_v11 }
 0x675   : > { %v6643_v60 = vcombine.low %v6587_v52, %v6603_v29  ;;  %v6644_v51 = vcombine.high %v6587_v52, %v6603_v29  ;;  %v6659_v54 = vcombine.low %v6594_v10, %v6610_v13  ;;  %v6660_v48 = vcombine.high %v6594_v10, %v6610_v13  ;;  %v23465_v10 = vpop.eup %23464 }
 0x676   : > { %v23467_v13 = vpop.eup %23466 }
 0x677   : > { %v6651_v35 = vrot.slane %v6643_v60, %v29748_v53  ;;  %v6658_v26 = vrot.slane %v6644_v51, %v29748_v53  ;;  %v6667_v46 = vrot.slane %v6659_v54, %v29748_v53  ;;  %v6674_v39 = vrot.slane %v6660_v48, %v29748_v53  ;;  %23049 = vrot.lane.b32.xlu0 %v28587_v40, %s23775_s24  ;;  %v23469_v54 = vpop.eup %23468  ;;  %v29901_v48 = vld [vmem:[#allocation27_spill] sm:$0xff] }
 0x678   : > { %v19796_v40 = vrot.slane %v21832_v55, %v29735_v11  ;;  %v19893_v60 = vcombine.low %v19828_v9, %v19844_v20 }
 0x679   : > { %v21592_v49 = vcombine.low %v6651_v35, %v6658_v26  ;;  %v21594_v16 = vcombine.high %v6651_v35, %v6658_v26  ;;  %v21596_v44 = vcombine.low %v6667_v46, %v6674_v39  ;;  %v21598_v4 = vcombine.high %v6667_v46, %v6674_v39  ;;  %v29902_v46 = vld [vmem:[#allocation45_spill] sm:$0xff] }
 0x67a   : > { %v19861_v36 = vcombine.low %v19796_v40, %v19812_v58  ;;  %v13465_v35 = vmul.f32 %v23465_v10, %v29901_v48  ;;  %v13466_v39 = vmul.f32 %v23467_v13, %v29902_v46 }
 0x67b   : > { %v7650_v56 = vrot.slane %v21592_v49, %v29735_v11  ;;  %v7666_v2 = vrot.slane %v21594_v16, %v29735_v11  ;;  %v7682_v5 = vrot.slane %v21596_v44, %v29735_v11  ;;  %v7698_v3 = vrot.slane %v21598_v4, %v29735_v11  ;;  %23059 = vrot.lane.b32.xlu0 %v28589_v28, %s23776_s16  ;;  %v23471_v49 = vpop.eup %23470 }
 0x67c   : > { %v28747_v26 = vrot.slane %v19861_v36, %v29748_v53 }
 0x67d   : > { %v7715_v19 = vcombine.low %v7650_v56, %v7666_v2  ;;  %v7747_v6 = vcombine.low %v7682_v5, %v7698_v3  ;;  %v7716_v15 = vcombine.high %v7650_v56, %v7666_v2  ;;  %v7748_v52 = vcombine.high %v7682_v5, %v7698_v3  ;;  %v29904_v5 = vld [vmem:[#allocation56_spill] sm:$0xff] }
 0x67e   : > { %v13467_v3 = vmul.f32 %v23471_v49, %v29904_v5 }
 0x67f   : > { %23069 = vrot.lane.b32.xlu0 %v28622_v38, %s23773_s14  ;;  %v7723_v29 = vrot.slane %v7715_v19, %v29748_v53  ;;  %v7755_v28 = vrot.slane %v7747_v6, %v29748_v53  ;;  %v7730_v55 = vrot.slane %v7716_v15, %v29748_v53  ;;  %v7762_v41 = vrot.slane %v7748_v52, %v29748_v53 }
 0x680   : > { %v28750_v38 = vrot.slane %v19893_v60, %v29748_v53  ;;  %v19862_v19 = vcombine.high %v19796_v40, %v19812_v58  ;;  %v19894_v6 = vcombine.high %v19828_v9, %v19844_v20 }
 0x681   : > { %v7767_v17 = vcombine.low %v7723_v29, %v7755_v28  ;;  %v7768_v51 = vcombine.high %v7723_v29, %v7755_v28  ;;  %v7769_v16 = vcombine.low %v7730_v55, %v7762_v41  ;;  %v7770_v4 = vcombine.high %v7730_v55, %v7762_v41 }
 0x682   : > { %v19913_v44 = vcombine.low %v28747_v26, %v28750_v38  ;;  %v19914_v56 = vcombine.high %v28747_v26, %v28750_v38  ;;  %v28785_v15 = vrot.slane %v19894_v6, %v29748_v53 }
 0x683   : > { %23079 = vrot.lane.b32.xlu0 %v28624_v62, %s23774_s22  ;;  %22799 = vmatpush3.msra.mxu0 %v7767_v17  ;;  %v29903_v62 = vld [vmem:[#allocation48_spill] sm:$0xff] }
 0x684   : > { %22804 = vmatpush3.msra.mxu1 %v7768_v51  ;;  %22801 = vmatmul.mubr.msk.f32.vlgmr.msra.gmra.mrb[126].mxu0 %vm12772_vm2, %v13465_v35  ;;  %v13468_v2 = vmul.f32 %v23469_v54, %v29903_v62 }
 0x685   : > { %22806 = vmatmul.mubr.msk.f32.vlgmr.msra.gmra.mrb[130].mxu1 %vm12772_vm2, %v13466_v39  ;;  %22808 = vmatprep.subr.mxu0 %v29892_v25 }
 0x686   : > { %22813 = vmatprep.subr.mxu1 %v29892_v25  ;;  %22809 = vmatpush3.msra.mxu0 %v7769_v16 }
 0x687   : > { %23089 = vrot.lane.b32.xlu0 %v28649_v45, %s23771_s15  ;;  %22814 = vmatpush3.msra.mxu1 %v7770_v4  ;;  %v28782_v45 = vrot.slane %v19862_v19, %v29748_v53 }
 0x688   : > { %22810 = vmatprep.mubr.msk.f32.mxu0 %vm23779_vm0, %v29892_v25  ;;  %22815 = vmatprep.mubr.msk.f32.mxu1 %vm23779_vm0, %v29892_v25 }
 0x689   : > { %22811 = vmatmul.mubr.msk.f32.vlgmr.msra.gmra.mrb[128].mxu0 %vm12772_vm2, %v13467_v3  ;;  %22816 = vmatmul.mubr.msk.f32.vlgmr.msra.gmra.mrb[132].mxu1 %vm12772_vm2, %v13468_v2  ;;  %v19915_v52 = vcombine.low %v28782_v45, %v28785_v15  ;;  %v19916_v40 = vcombine.high %v28782_v45, %v28785_v15  ;;  %v13327_v58 = vpop.xlane.xlu1 %13326  ;;  %v23213_v45 = vld [vmem:[#allocation7 + $0x18] sm:$0xff]   ;;  %v23214_v15 = vld [vmem:[#allocation7 + $0x20] sm:$0xff]  }
 0x68a   : > { %22818 = vmatprep.subr.mxu0 %v29892_v25  ;;  %22823 = vmatprep.subr.mxu1 %v29892_v25  ;;  %23472 = vrcp.f32 %v13327_v58 }
 0x68b   : > { %23099 = vrot.lane.b32.xlu0 %v28651_v47, %s23772_s27  ;;  %22820 = vmatprep.mubr.msk.f32.mxu0 %vm23779_vm0, %v29892_v25 }
 0x68c   : > { %22825 = vmatprep.mubr.msk.f32.mxu1 %vm23779_vm0, %v29892_v25 }
 0x68d   : > { %v13336_v29 = vpop.xlane.xlu1 %13335 }
 0x68e   : > { %23474 = vrcp.f32 %v13336_v29 }
 0x691   : > { %v5602_v39 = vpop.permute.xlu1 %5601 }
 0x692   : > { %v6683_v6 = vcombine.low %v28117_v22, %v5602_v39 }
 0x694   : > { %v6691_v33 = vrot.slane %v6683_v6, %v29735_v11 }
 0x69f   : > { %v16466_v47 = vpop.f32.mrb[114].mxu0  ;;  %v16539_v9 = vpop.f32.mrb[118].mxu1 }
 0x6a0   : > { %v22742_v20 = vpop.f32.mrb[115].mxu0  ;;  %v22747_v10 = vpop.f32.mrb[119].mxu1 }
 0x6a3   : > { %v16612_v28 = vpop.f32.mrb[116].mxu0  ;;  %v16685_v13 = vpop.f32.mrb[120].mxu1 }
 0x6a4   : > { %v18829_v55 = vcombine.low %v16466_v47, %v16612_v28  ;;  %v18830_v41 = vcombine.high %v16466_v47, %v16612_v28  ;;  %v18845_v36 = vcombine.low %v16539_v9, %v16685_v13  ;;  %v18846_v60 = vcombine.high %v16539_v9, %v16685_v13  ;;  %v22752_v17 = vpop.f32.mrb[117].mxu0  ;;  %v22757_v51 = vpop.f32.mrb[121].mxu1 }
 0x6a5   : > { %v13330_v54 = vpop.xlane.xlu0 %13329  ;;  %v6684_v47 = vcombine.high %v28117_v22, %v5602_v39  ;;  %v28805_v13 = vrot.slane %v19845_v27, %v29748_v53  ;;  %v28811_v22 = vrot.slane %v19877_v61, %v29748_v53 }
 0x6a6   : > { %v18837_v48 = vrot.slane %v18829_v55, %v29735_v11  ;;  %v18844_v35 = vrot.slane %v18830_v41, %v29735_v11  ;;  %v18853_v46 = vrot.slane %v18845_v36, %v29735_v11  ;;  %v18860_v49 = vrot.slane %v18846_v60, %v29735_v11  ;;  %v5626_v55 = vpop.permute.xlu1 %5625 }
 0x6a7   : > { %v6698_v32 = vrot.slane %v6684_v47, %v29735_v11  ;;  %23476 = vrcp.f32 %v13330_v54 }
 0x6a8   : > { %v18893_v16 = vcombine.low %v18837_v48, %v18853_v46  ;;  %v18894_v4 = vcombine.high %v18837_v48, %v18853_v46  ;;  %v18909_v62 = vcombine.low %v18844_v35, %v18860_v49  ;;  %v18910_v2 = vcombine.high %v18844_v35, %v18860_v49 }
 0x6a9   : > { %v13333_v5 = vpop.xlane.xlu0 %13332  ;;  %v19910_v46 = vcombine.high %v28805_v13, %v28811_v22 }
 0x6aa   : > { %v18901_v3 = vrot.slane %v18893_v16, %v29748_v53  ;;  %v18908_v19 = vrot.slane %v18894_v4, %v29748_v53  ;;  %v18917_v9 = vrot.slane %v18909_v62, %v29748_v53  ;;  %v18924_v20 = vrot.slane %v18910_v2, %v29748_v53 }
 0x6ab   : > { %23478 = vrcp.f32 %v13333_v5 }
 0x6ac   : > { %v21839_v10 = vcombine.low %v18901_v3, %v18908_v19  ;;  %v21841_v28 = vcombine.high %v18901_v3, %v18908_v19  ;;  %v21843_v41 = vcombine.low %v18917_v9, %v18924_v20  ;;  %v21845_v36 = vcombine.high %v18917_v9, %v18924_v20 }
 0x6ad   : > { %v5578_v60 = vpop.permute.xlu0 %5577 }
 0x6ae   : > { %v19925_v58 = vrot.slane %v21839_v10, %v29735_v11  ;;  %v19941_v17 = vrot.slane %v21841_v28, %v29735_v11  ;;  %v6699_v51 = vcombine.low %v5578_v60, %v5626_v55  ;;  %v6700_v48 = vcombine.high %v5578_v60, %v5626_v55 }
 0x6af   : > { %v19957_v27 = vrot.slane %v21843_v41, %v29735_v11  ;;  %v19973_v29 = vrot.slane %v21845_v36, %v29735_v11  ;;  %v23473_v36 = vpop.eup %23472 }
 0x6b0   : > { %v6707_v35 = vrot.slane %v6699_v51, %v29735_v11  ;;  %v6714_v31 = vrot.slane %v6700_v48, %v29735_v11  ;;  %v19981_v23 = vcombine.low %v19925_v58, %v19941_v17  ;;  %v19982_v61 = vcombine.high %v19925_v58, %v19941_v17  ;;  %v23475_v48 = vpop.eup %23474 }
 0x6b1   : > { %v20013_v39 = vcombine.low %v19957_v27, %v19973_v29  ;;  %v20014_v49 = vcombine.high %v19957_v27, %v19973_v29 }
 0x6b2   : > { %v6747_v16 = vcombine.low %v6691_v33, %v6707_v35  ;;  %v6748_v4 = vcombine.high %v6691_v33, %v6707_v35  ;;  %v6763_v62 = vcombine.low %v6698_v32, %v6714_v31  ;;  %v6764_v2 = vcombine.high %v6698_v32, %v6714_v31 }
 0x6b3   : > { %v28824_v3 = vrot.slane %v19981_v23, %v29748_v53  ;;  %v28827_v19 = vrot.slane %v20013_v39, %v29748_v53  ;;  %v19996_v6 = vrot.slane %v19982_v61, %v29748_v53  ;;  %v20028_v47 = vrot.slane %v20014_v49, %v29748_v53  ;;  %v23477_v49 = vpop.eup %23476 }
 0x6b4   : > { %v6755_v54 = vrot.slane %v6747_v16, %v29748_v53  ;;  %v6762_v9 = vrot.slane %v6748_v4, %v29748_v53  ;;  %v6771_v20 = vrot.slane %v6763_v62, %v29748_v53  ;;  %v6778_v10 = vrot.slane %v6764_v2, %v29748_v53 }
 0x6b5   : > { %v20046_v28 = vcombine.high %v28824_v3, %v28827_v19  ;;  %v20047_v55 = vcombine.low %v19996_v6, %v20028_v47  ;;  %v20048_v41 = vcombine.high %v19996_v6, %v20028_v47  ;;  %v20045_v27 = vcombine.low %v28824_v3, %v28827_v19  ;;  %v23479_v2 = vpop.eup %23478  ;;  %v29905_v6 = vld [vmem:[#allocation52_spill] sm:$0xff] }
 0x6b6   : > { %v21599_v60 = vcombine.low %v6755_v54, %v6762_v9  ;;  %v21601_v58 = vcombine.high %v6755_v54, %v6762_v9  ;;  %v21603_v17 = vcombine.low %v6771_v20, %v6778_v10  ;;  %v21605_v51 = vcombine.high %v6771_v20, %v6778_v10  ;;  %v29906_v54 = vld [vmem:[#allocation38_spill] sm:$0xff] }
 0x6b7   : > { %v23108_v33 = vpack.i.bf16 %v20046_v28, %v19910_v46  ;;  %v23118_v32 = vpack.i.bf16 %v20047_v55, %v19911_v50  ;;  %v23128_v5 = vpack.i.bf16 %v20048_v41, %v19912_v59  ;;  %v13469_v47 = vmul.f32 %v23473_v36, %v29905_v6  ;;  %v29907_v28 = vld [vmem:[#allocation32_spill] sm:$0xff]  ;;  %v29908_v41 = vld [vmem:[#allocation61_spill] sm:$0xff] }
 0x6b8   : > { %v7779_v29 = vrot.slane %v21599_v60, %v29735_v11  ;;  %v7795_v35 = vrot.slane %v21601_v58, %v29735_v11  ;;  %v7811_v31 = vrot.slane %v21603_v17, %v29735_v11  ;;  %v7827_v23 = vrot.slane %v21605_v51, %v29735_v11 }
 0x6b9   : > { %23109 = vrot.lane.b32.xlu0 %v23108_v33, %s23777_s2  ;;  %v13470_v9 = vmul.f32 %v23477_v49, %v29906_v54  ;;  %v13471_v55 = vmul.f32 %v23479_v2, %v29907_v28  ;;  %v13472_v36 = vmul.f32 %v23475_v48, %v29908_v41 }
 0x6ba   : > { %v7835_v61 = vcombine.low %v7779_v29, %v7795_v35  ;;  %v7867_v46 = vcombine.low %v7811_v31, %v7827_v23  ;;  %v7836_v50 = vcombine.high %v7779_v29, %v7795_v35  ;;  %v7868_v39 = vcombine.high %v7811_v31, %v7827_v23 }
 0x6bc   : > { %v7843_v24 = vrot.slane %v7835_v61, %v29748_v53  ;;  %v7875_v12 = vrot.slane %v7867_v46, %v29748_v53  ;;  %v7850_v59 = vrot.slane %v7836_v50, %v29748_v53  ;;  %v7882_v16 = vrot.slane %v7868_v39, %v29748_v53 }
 0x6bd   : > { %23119 = vrot.lane.b32.xlu0 %v23118_v32, %s23775_s24 }
 0x6be   : > { %v7899_v4 = vcombine.low %v7843_v24, %v7875_v12  ;;  %v7900_v62 = vcombine.high %v7843_v24, %v7875_v12  ;;  %v7901_v20 = vcombine.low %v7850_v59, %v7882_v16  ;;  %v7902_v10 = vcombine.high %v7850_v59, %v7882_v16 }
 0x6bf   : > { %v19365_v12 = vcombine.low %v28687_v30, %v28693_v63 }
 0x6c0   : > { %22819 = vmatpush3.msra.mxu0 %v7899_v4  ;;  %22824 = vmatpush3.msra.mxu1 %v7900_v62 }
 0x6c1   : > { %22821 = vmatmul.mubr.msk.f32.vlgmr.msra.gmra.mrb[130].mxu0 %vm12772_vm2, %v13469_v47  ;;  %22826 = vmatmul.mubr.msk.f32.vlgmr.msra.gmra.mrb[134].mxu1 %vm12772_vm2, %v13470_v9 }
 0x6c2   : > { %22828 = vmatprep.subr.mxu0 %v29892_v25  ;;  %22833 = vmatprep.subr.mxu1 %v29892_v25 }
 0x6c3   : > { %22829 = vmatpush3.msra.mxu0 %v7901_v20  ;;  %22834 = vmatpush3.msra.mxu1 %v7902_v10 }
 0x6c4   : > { %22830 = vmatprep.mubr.msk.f32.mxu0 %vm23779_vm0, %v29892_v25  ;;  %22835 = vmatprep.mubr.msk.f32.mxu1 %vm23779_vm0, %v29892_v25 }
 0x6c5   : > { %23129 = vrot.lane.b32.xlu0 %v23128_v5, %s23776_s16  ;;  %22831 = vmatmul.mubr.msk.f32.vlgmr.msra.gmra.mrb[132].mxu0 %vm12772_vm2, %v13471_v55 }
 0x6c6   : > { %22836 = vmatmul.mubr.msk.f32.vlgmr.msra.gmra.mrb[136].mxu1 %vm12772_vm2, %v13472_v36  ;;  %22838 = vmatprep.subr.mxu0 %v29892_v25 }
 0x6c7   : > { %22843 = vmatprep.subr.mxu1 %v29892_v25  ;;  %22840 = vmatprep.mubr.msk.f32.mxu0 %vm23779_vm0, %v29892_v25 }
 0x6c8   : > { %22845 = vmatprep.mubr.msk.f32.mxu1 %vm23779_vm0, %v29892_v25 }
 0x6c9   : > { %v13342_v60 = vpop.xlane.xlu1 %13341 }
 0x6ca   : > { %23480 = vrcp.f32 %v13342_v60 }
 0x6cd   : > { %v5650_v58 = vpop.permute.xlu1 %5649 }
 0x6d1   : > { %v5698_v17 = vpop.permute.xlu1 %5697 }
 0x6d2   : > { %v6715_v35 = vcombine.low %v5650_v58, %v5698_v17  ;;  %v6716_v31 = vcombine.high %v5650_v58, %v5698_v17 }
 0x6d4   : > { %v6723_v62 = vrot.slane %v6715_v35, %v29735_v11  ;;  %v28884_v2 = vrot.slane %v6716_v31, %v29735_v11 }
 0x6d5   : > { %v5722_v51 = vpop.permute.xlu1 %5721 }
 0x6d9   : > { %v23045_v48 = vpop.permute.xlu1 %23044 }
 0x6da   : > { %v23047_v23 = vunpack.i.h.bf16 %v23045_v48  ;;  %v23046_v46 = vunpack.i.l.bf16 %v23045_v48 }
 0x6dc   : > { %v20552_v6 = vsel %vm7907_vm1, %v19773_v14, %v23047_v23  ;;  %v20551_v54 = vsel %vm7907_vm1, %v19637_v34, %v23046_v46 }
 0x6dd   : > { %v23055_v33 = vpop.permute.xlu1 %23054 }
 0x6de   : > { %v13339_v32 = vpop.xlane.xlu0 %13338  ;;  %v23057_v59 = vunpack.i.h.bf16 %v23055_v33  ;;  %v23056_v16 = vunpack.i.l.bf16 %v23055_v33 }
 0x6df   : > { %23482 = vrcp.f32 %v13339_v32 }
 0x6e0   : > { %v20560_v8 = vsel %vm20557_vm3, %v20551_v54, %v23056_v16  ;;  %v20561_v14 = vsel %vm20557_vm3, %v20552_v6, %v23057_v59 }
 0x6e1   : > { %v23065_v5 = vpop.permute.xlu1 %23064 }
 0x6e2   : > { %v13345_v29 = vpop.xlane.xlu0 %13344  ;;  %v23067_v9 = vunpack.i.h.bf16 %v23065_v5  ;;  %v23066_v20 = vunpack.i.l.bf16 %v23065_v5 }
 0x6e3   : > { %23484 = vrcp.f32 %v13345_v29 }
 0x6e4   : > { %v20569_v32 = vsel %vm20566_vm4, %v20560_v8, %v23066_v20  ;;  %v20570_v5 = vsel %vm20566_vm4, %v20561_v14, %v23067_v9 }
 0x6e5   : > { %v28876_v61 = vpop.permute.xlu1 %23074 }
 0x6e6   : > { %v16758_v50 = vpop.f32.mrb[118].mxu0  ;;  %v16831_v39 = vpop.f32.mrb[122].mxu1  ;;  %v23076_v42 = vunpack.i.l.bf16 %v28876_v61 }
 0x6e7   : > { %v22762_v49 = vpop.f32.mrb[119].mxu0  ;;  %v22767_v24 = vpop.f32.mrb[123].mxu1 }
 0x6e8   : > { %v28880_v4 = vpop.xlane.xlu0 %13347  ;;  %v20578_v49 = vsel %vm20575_vm5, %v20569_v32, %v23076_v42 }
 0x6e9   : > { %v28890_v47 = vpop.permute.xlu1 %23084  ;;  %23486 = vrcp.f32 %v28880_v4 }
 0x6ea   : > { %v16904_v10 = vpop.f32.mrb[120].mxu0  ;;  %v16977_v28 = vpop.f32.mrb[124].mxu1 }
 0x6eb   : > { %v18861_v55 = vcombine.low %v16758_v50, %v16904_v10  ;;  %v18862_v41 = vcombine.high %v16758_v50, %v16904_v10  ;;  %v18877_v36 = vcombine.low %v16831_v39, %v16977_v28  ;;  %v18878_v60 = vcombine.high %v16831_v39, %v16977_v28  ;;  %v22772_v58 = vpop.f32.mrb[121].mxu0  ;;  %v22777_v21 = vpop.f32.mrb[125].mxu1 }
 0x6ec   : > { %v5674_v1 = vpop.permute.xlu0 %5673  ;;  %v23077_v39 = vunpack.i.h.bf16 %v28876_v61 }
 0x6ed   : > { %v18869_v34 = vrot.slane %v18861_v55, %v29735_v11  ;;  %v18876_v17 = vrot.slane %v18862_v41, %v29735_v11  ;;  %v18885_v48 = vrot.slane %v18877_v36, %v29735_v11  ;;  %v18892_v33 = vrot.slane %v18878_v60, %v29735_v11  ;;  %v23095_v6 = vpop.permute.xlu1 %23094  ;;  %v23481_v41 = vpop.eup %23480 }
 0x6ee   : > { %v6731_v35 = vcombine.low %v5674_v1, %v5722_v51  ;;  %v6732_v31 = vcombine.high %v5674_v1, %v5722_v51  ;;  %v23483_v8 = vpop.eup %23482  ;;  %v20579_v14 = vsel %vm20575_vm5, %v20570_v5, %v23077_v39 }
 0x6ef   : > { %v18925_v23 = vcombine.low %v18869_v34, %v18885_v48  ;;  %v18926_v29 = vcombine.high %v18869_v34, %v18885_v48  ;;  %v18941_v46 = vcombine.low %v18876_v17, %v18892_v33  ;;  %v18942_v50 = vcombine.high %v18876_v17, %v18892_v33  ;;  %v23485_v33 = vpop.eup %23484 }
 0x6f0   : > { %v6739_v24 = vrot.slane %v6731_v35, %v29735_v11  ;;  %v6746_v59 = vrot.slane %v6732_v31, %v29735_v11  ;;  %v28909_v16 = vpop.permute.xlu0 %23039  ;;  %v23097_v48 = vunpack.i.h.bf16 %v23095_v6  ;;  %v23096_v31 = vunpack.i.l.bf16 %v23095_v6 }
 0x6f1   : > { %v18933_v51 = vrot.slane %v18925_v23, %v29748_v53  ;;  %v18940_v54 = vrot.slane %v18926_v29, %v29748_v53  ;;  %v18949_v9 = vrot.slane %v18941_v46, %v29748_v53  ;;  %v18956_v20 = vrot.slane %v18942_v50, %v29748_v53  ;;  %v23105_v23 = vpop.permute.xlu1 %23104 }
 0x6f2   : > { %v6779_v10 = vcombine.low %v6723_v62, %v6739_v24  ;;  %v6780_v61 = vcombine.high %v6723_v62, %v6739_v24  ;;  %v6795_v28 = vcombine.low %v28884_v2, %v6746_v59  ;;  %v6796_v55 = vcombine.high %v28884_v2, %v6746_v59 }
 0x6f3   : > { %v21840_v36 = vcombine.low %v18933_v51, %v18940_v54  ;;  %v21842_v60 = vcombine.high %v18933_v51, %v18940_v54  ;;  %v21844_v58 = vcombine.low %v18949_v9, %v18956_v20  ;;  %v21846_v21 = vcombine.high %v18949_v9, %v18956_v20 }
 0x6f4   : > { %v6787_v42 = vrot.slane %v6779_v10, %v29748_v53  ;;  %v6794_v1 = vrot.slane %v6780_v61, %v29748_v53  ;;  %v6803_v34 = vrot.slane %v6795_v28, %v29748_v53  ;;  %v28921_v17 = vpop.permute.xlu0 %23049  ;;  %v23087_v62 = vunpack.i.h.bf16 %v28890_v47 }
 0x6f5   : > { %v23086_v2 = vunpack.i.l.bf16 %v28890_v47  ;;  %v6810_v32 = vrot.slane %v6796_v55, %v29748_v53  ;;  %v19932_v29 = vrot.slane %v21840_v36, %v29735_v11  ;;  %v19948_v46 = vrot.slane %v21842_v60, %v29735_v11  ;;  %v29909_v36 = vld [vmem:[#allocation62_spill] sm:$0xff] }
 0x6f6   : > { %v21600_v35 = vcombine.low %v6787_v42, %v6794_v1  ;;  %v21602_v5 = vcombine.high %v6787_v42, %v6794_v1  ;;  %v28930_v50 = vrot.slane %v21844_v58, %v29735_v11  ;;  %v28933_v4 = vrot.slane %v21846_v21, %v29735_v11 }
 0x6f7   : > { %v21604_v24 = vcombine.low %v6803_v34, %v6810_v32  ;;  %v21606_v59 = vcombine.high %v6803_v34, %v6810_v32  ;;  %v20587_v6 = vsel %vm20584_vm6, %v20578_v49, %v23086_v2  ;;  %v20588_v54 = vsel %vm20584_vm6, %v20579_v14, %v23087_v62 }
 0x6f8   : > { %v7786_v47 = vrot.slane %v21600_v35, %v29735_v11  ;;  %v7802_v39 = vrot.slane %v21602_v5, %v29735_v11  ;;  %v28937_v51 = vpop.permute.xlu0 %23059  ;;  %v23107_v9 = vunpack.i.h.bf16 %v23105_v23  ;;  %v23106_v20 = vunpack.i.l.bf16 %v23105_v23 }
 0x6f9   : > { %v7818_v10 = vrot.slane %v21604_v24, %v29735_v11  ;;  %v7834_v61 = vrot.slane %v21606_v59, %v29735_v11  ;;  %v20596_v28 = vsel %vm20593_vm7, %v20587_v6, %v23096_v31  ;;  %v20597_v55 = vsel %vm20593_vm7, %v20588_v54, %v23097_v48  ;;  %v23487_v24 = vpop.eup %23486 }
 0x6fa   : > { %v13474_v60 = vmul.f32 %v23481_v41, %v29909_v36  ;;  %v23041_v58 = vunpack.i.l.bf16 %v28909_v16  ;;  %v28948_v21 = vsel %vm20602_vm8, %v20596_v28, %v23106_v20  ;;  %v28951_v49 = vsel %vm20602_vm8, %v20597_v55, %v23107_v9 }
 0x6fb   : > { %v20612_v14 = vpack.c.bf16 %v28951_v49, %v28948_v21  ;;  %v19997_v1 = vcombine.low %v19932_v29, %v19948_v46  ;;  %v20029_v34 = vcombine.low %v28930_v50, %v28933_v4  ;;  %v7851_v62 = vcombine.low %v7786_v47, %v7802_v39 }
 0x6fc   : > { %v23070_v42 = vpop.permute.xlu0 %23069  ;;  %v13473_v2 = vmul.f32 %v23483_v8, %v29893_v57  ;;  %v28959_v41 = vmul.f32 %v23485_v33, %v28637_v7  ;;  %v23042_v48 = vunpack.i.h.bf16 %v28909_v16  ;;  %v23052_v32 = vunpack.i.h.bf16 %v28921_v17 }
 0x6fd   : > { %v20005_v35 = vrot.slane %v19997_v1, %v29748_v53  ;;  %v20037_v5 = vrot.slane %v20029_v34, %v29748_v53  ;;  %v7859_v31 = vrot.slane %v7851_v62, %v29748_v53  ;;  %v7883_v23 = vcombine.low %v7818_v10, %v7834_v61 }
 0x6fe   : > { %v20549_v57 = vsel %vm7907_vm1, %v19365_v12, %v23041_v58  ;;  %v23051_v7 = vunpack.i.l.bf16 %v28921_v17  ;;  %v7852_v8 = vcombine.high %v7786_v47, %v7802_v39  ;;  %v7884_v33 = vcombine.high %v7818_v10, %v7834_v61 }
 0x6ff   : > { %v20049_v16 = vcombine.low %v20005_v35, %v20037_v5  ;;  %v7891_v59 = vrot.slane %v7883_v23, %v29748_v53  ;;  %v20050_v54 = vcombine.high %v20005_v35, %v20037_v5  ;;  %v19998_v9 = vcombine.high %v19932_v29, %v19948_v46 }
 0x700   : > { %v23080_v6 = vpop.permute.xlu0 %23079  ;;  %v23062_v20 = vunpack.i.h.bf16 %v28937_v51  ;;  %v23061_v28 = vunpack.i.l.bf16 %v28937_v51  ;;  %v7866_v55 = vrot.slane %v7852_v8, %v29748_v53  ;;  %v7898_v30 = vrot.slane %v7884_v33, %v29748_v53 }
 0x701   : > { %v23138_v63 = vpack.i.bf16 %v20049_v16, %v19913_v44  ;;  %v7903_v12 = vcombine.low %v7859_v31, %v7891_v59  ;;  %v7904_v17 = vcombine.high %v7859_v31, %v7891_v59  ;;  %v23148_v47 = vpack.i.bf16 %v20050_v54, %v19914_v56  ;;  %v23212_v16 = vld [vmem:[#allocation7 + $0x10] sm:$0xff]  }
 0x702   : > { %v20550_v29 = vsel %vm7907_vm1, %v19501_v37, %v23042_v48  ;;  %v20558_v46 = vsel %vm20557_vm3, %v20549_v57, %v23051_v7  ;;  %v23072_v39 = vunpack.i.h.bf16 %v23070_v42  ;;  %v23071_v51 = vunpack.i.l.bf16 %v23070_v42  ;;  %v23210_v42 = vld [vmem:[#allocation7] sm:$0xff]   ;;  %v23211_v48 = vld [vmem:[#allocation7 + $0x8] sm:$0xff]  }
 0x703   : > { %v20559_v10 = vsel %vm20557_vm3, %v20550_v29, %v23052_v32  ;;  %23139 = vrot.lane.b32.xlu0 %v23138_v63, %s23773_s14  ;;  %22839 = vmatpush3.msra.mxu0 %v7903_v12  ;;  %v23081_v44 = vunpack.i.l.bf16 %v23080_v6  ;;  %v20012_v36 = vrot.slane %v19998_v9, %v29748_v53  ;;  %v20030_v26 = vcombine.high %v28930_v50, %v28933_v4  ;;  %v23216_v9 = vld [vmem:[#allocation7 + $0x30] sm:$0xff]   ;;  %v23217_v29 = vld [vmem:[#allocation7 + $0x38] sm:$0xff]  }
 0x704   : > { %v23090_v61 = vpop.permute.xlu0 %23089  ;;  %v20567_v43 = vsel %vm20566_vm4, %v20558_v46, %v23061_v28  ;;  %22844 = vmatpush3.msra.mxu1 %v7904_v17  ;;  %v23082_v18 = vunpack.i.h.bf16 %v23080_v6  ;;  %22841 = vmatmul.mubr.msk.f32.vlgmr.msra.gmra.mrb[134].mxu0 %vm12772_vm2, %v13473_v2  ;;  %v7905_v37 = vcombine.low %v7866_v55, %v7898_v30  ;;  %v20568_v56 = vsel %vm20566_vm4, %v20559_v10, %v23062_v20 }
 0x705   : > { %v23091_v38 = vunpack.i.l.bf16 %v23090_v61  ;;  %22846 = vmatmul.mubr.msk.f32.vlgmr.msra.gmra.mrb[138].mxu1 %vm12772_vm2, %v13474_v60  ;;  %22848 = vmatprep.subr.mxu0 %v29892_v25  ;;  %v7906_v58 = vcombine.high %v7866_v55, %v7898_v30  ;;  %v23092_v1 = vunpack.i.h.bf16 %v23090_v61  ;;  %v20044_v34 = vrot.slane %v20030_v26, %v29748_v53 }
 0x706   : > { %v13476_v50 = vmul.f32 %v23487_v24, %v28659_v0  ;;  %v20577_v4 = vsel %vm20575_vm5, %v20568_v56, %v23072_v39  ;;  %v20576_v62 = vsel %vm20575_vm5, %v20567_v43, %v23071_v51  ;;  %22853 = vmatprep.subr.mxu1 %v29892_v25  ;;  %22849 = vmatpush3.msra.mxu0 %v7905_v37 }
 0x707   : > { %v20585_v2 = vsel %vm20584_vm6, %v20576_v62, %v23081_v44  ;;  %23149 = vrot.lane.b32.xlu0 %v23148_v47, %s23774_s22  ;;  %22854 = vmatpush3.msra.mxu1 %v7906_v58  ;;  %v20051_v60 = vcombine.low %v20012_v36, %v20044_v34  ;;  %v20052_v35 = vcombine.high %v20012_v36, %v20044_v34 }
 0x708   : > { %v23100_v32 = vpop.permute.xlu0 %23099  ;;  %v20586_v5 = vsel %vm20584_vm6, %v20577_v4, %v23082_v18  ;;  %22850 = vmatprep.mubr.msk.f32.mxu0 %vm23779_vm0, %v29892_v25  ;;  %22855 = vmatprep.mubr.msk.f32.mxu1 %vm23779_vm0, %v29892_v25  ;;  %v20594_v0 = vsel %vm20593_vm7, %v20585_v2, %v23091_v38 }
 0x709   : > { %v23102_v31 = vunpack.i.h.bf16 %v23100_v32  ;;  %v23101_v23 = vunpack.i.l.bf16 %v23100_v32  ;;  %22858 = vmatprep.subr.bf16.mxu0 %v23210_v42  ;;  %v20595_v24 = vsel %vm20593_vm7, %v20586_v5, %v23092_v1  ;;  %v23158_v57 = vpack.i.bf16 %v20051_v60, %v19915_v52  ;;  %22851 = vmatmul.mubr.msk.f32.vlgmr.msra.gmra.mrb[136].mxu0 %vm12772_vm2, %v28959_v41  ;;  %v23215_v52 = vld [vmem:[#allocation7 + $0x28] sm:$0xff]  }
 0x70a   : > { %v23168_v7 = vpack.i.bf16 %v20052_v35, %v19916_v40  ;;  %22856 = vmatmul.mubr.msk.f32.vlgmr.msra.gmra.mrb[140].mxu1 %vm12772_vm2, %v13476_v50  ;;  %22859 = vmatpush3.bf16.msra.mxu0 %v23210_v42 }
 0x70b   : > { %v20603_v8 = vsel %vm20602_vm8, %v20594_v0, %v23101_v23  ;;  %v20604_v33 = vsel %vm20602_vm8, %v20595_v24, %v23102_v31  ;;  %23159 = vrot.lane.b32.xlu0 %v23158_v57, %s23771_s15  ;;  %22860 = vmatprep.subr.bf16.mxu0 %v23211_v48 }
 0x70c   : > { %v20611_v59 = vpack.c.bf16 %v20604_v33, %v20603_v8  ;;  %22882 = vmatprep.subr.bf16.mxu1 %v29892_v25  ;;  %22898 = vmatprep.mubr.msk.bf16.mxu1 %vm23779_vm0, %v29892_v25 }
 0x70e   : > { %22874 = vmatprep.mubr.bf16.mxu0 %v20611_v59  ;;  %22861 = vmatpush3.bf16.msra.mxu0 %v23211_v48 }
 0x70f   : > { %23169 = vrot.lane.b32.xlu0 %v23168_v7, %s23772_s27  ;;  %22862 = vmatprep.subr.bf16.mxu0 %v23212_v16 }
 0x712   : > { %22863 = vmatpush3.bf16.msra.mxu0 %v23212_v16 }
 0x713   : > { %22864 = vmatprep.subr.bf16.mxu0 %v23213_v45 }
 0x716   : > { %22865 = vmatpush3.bf16.msra.mxu0 %v23213_v45 }
 0x717   : > { %22866 = vmatprep.subr.bf16.mxu0 %v23214_v15 }
 0x71a   : > { %22867 = vmatpush3.bf16.msra.mxu0 %v23214_v15 }
 0x71b   : > { %22868 = vmatprep.subr.bf16.mxu0 %v23215_v52 }
 0x71c   : > { %v17050_v40 = vpop.f32.mrb[122].mxu0  ;;  %v17123_v41 = vpop.f32.mrb[126].mxu1 }
 0x71d   : > { %v22782_v6 = vpop.f32.mrb[123].mxu0  ;;  %v22787_v54 = vpop.f32.mrb[127].mxu1 }
 0x71e   : > { %22869 = vmatpush3.bf16.msra.mxu0 %v23215_v52 }
 0x71f   : > { %22870 = vmatprep.subr.bf16.mxu0 %v23216_v9 }
 0x720   : > { %v17196_v20 = vpop.f32.mrb[124].mxu0  ;;  %v17269_v28 = vpop.f32.mrb[128].mxu1 }
 0x721   : > { %v18965_v55 = vcombine.low %v17050_v40, %v17196_v20  ;;  %v18966_v30 = vcombine.high %v17050_v40, %v17196_v20  ;;  %v18981_v63 = vcombine.low %v17123_v41, %v17269_v28  ;;  %v18982_v12 = vcombine.high %v17123_v41, %v17269_v28  ;;  %v22792_v17 = vpop.f32.mrb[125].mxu0  ;;  %v22797_v47 = vpop.f32.mrb[129].mxu1 }
 0x722   : > { %22871 = vmatpush3.bf16.msra.mxu0 %v23216_v9 }
 0x723   : > { %v18973_v46 = vrot.slane %v18965_v55, %v29735_v11  ;;  %v18980_v39 = vrot.slane %v18966_v30, %v29735_v11  ;;  %v18989_v51 = vrot.slane %v18981_v63, %v29735_v11  ;;  %v18996_v10 = vrot.slane %v18982_v12, %v29735_v11  ;;  %22872 = vmatprep.subr.bf16.mxu0 %v23217_v29 }
 0x725   : > { %v19029_v44 = vcombine.low %v18973_v46, %v18989_v51  ;;  %v19030_v61 = vcombine.high %v18973_v46, %v18989_v51  ;;  %v19045_v36 = vcombine.low %v18980_v39, %v18996_v10  ;;  %v19046_v26 = vcombine.high %v18980_v39, %v18996_v10 }
 0x726   : > { %22873 = vmatpush3.bf16.msra.mxu0 %v23217_v29 }
 0x727   : > { %v19037_v43 = vrot.slane %v19029_v44, %v29748_v53  ;;  %v19044_v18 = vrot.slane %v19030_v61, %v29748_v53  ;;  %v19053_v37 = vrot.slane %v19045_v36, %v29748_v53  ;;  %v19060_v38 = vrot.slane %v19046_v26, %v29748_v53  ;;  %22902 = vmatprep.subr.bf16.mxu0 %v29892_v25 }
 0x729   : > { %v21847_v56 = vcombine.low %v19037_v43, %v19044_v18  ;;  %v21849_v58 = vcombine.high %v19037_v43, %v19044_v18  ;;  %v21851_v42 = vcombine.low %v19053_v37, %v19060_v38  ;;  %v21853_v1 = vcombine.high %v19053_v37, %v19060_v38  ;;  %22875 = vmatmul.mubr.bf16.vlgmr.msra.gmra.mrb[140].mxu0 %v20612_v14 }
 0x72b   : > { %v29037_v34 = vrot.slane %v21847_v56, %v29735_v11  ;;  %v29040_v50 = vrot.slane %v21849_v58, %v29735_v11  ;;  %v29043_v4 = vrot.slane %v21851_v42, %v29735_v11  ;;  %v29046_v62 = vrot.slane %v21853_v1, %v29735_v11  ;;  %v23110_v46 = vpop.permute.xlu0 %23109 }
 0x72d   : > { %v20117_v2 = vcombine.low %v29037_v34, %v29040_v50  ;;  %v20149_v60 = vcombine.low %v29043_v4, %v29046_v62  ;;  %v20118_v48 = vcombine.high %v29037_v34, %v29040_v50  ;;  %v20150_v32 = vcombine.high %v29043_v4, %v29046_v62 }
 0x72f   : > { %v29060_v35 = vrot.slane %v20118_v48, %v29748_v53  ;;  %v29063_v5 = vrot.slane %v20150_v32, %v29748_v53  ;;  %v23120_v18 = vpop.permute.xlu0 %23119 }
 0x731   : > { %v20183_v21 = vcombine.low %v29060_v35, %v29063_v5  ;;  %v20184_v49 = vcombine.high %v29060_v35, %v29063_v5 }
 0x737   : > { %v23130_v38 = vpop.permute.xlu0 %23129 }
 0x757   : > { %v17342_v14 = vpop.f32.mrb[126].mxu0 }
 0x758   : > { %v17415_v0 = vpop.f32.mrb[130].mxu1  ;;  %v22802_v31 = vpop.f32.mrb[127].mxu0 }
 0x759   : > { %v22807_v23 = vpop.f32.mrb[131].mxu1  ;;  %v23111_v31 = vunpack.i.l.bf16 %v23110_v46 }
 0x75c   : > { %v17488_v24 = vpop.f32.mrb[128].mxu0  ;;  %v17561_v57 = vpop.f32.mrb[132].mxu1 }
 0x75d   : > { %v18997_v7 = vcombine.low %v17342_v14, %v17488_v24  ;;  %v18998_v8 = vcombine.high %v17342_v14, %v17488_v24  ;;  %v19013_v33 = vcombine.low %v17415_v0, %v17561_v57  ;;  %v19014_v16 = vcombine.high %v17415_v0, %v17561_v57  ;;  %v22812_v59 = vpop.f32.mrb[129].mxu0  ;;  %v22817_v45 = vpop.f32.mrb[133].mxu1 }
 0x75e   : > { %v23112_v0 = vunpack.i.h.bf16 %v23110_v46  ;;  %v23122_v24 = vunpack.i.h.bf16 %v23120_v18  ;;  %v23121_v57 = vunpack.i.l.bf16 %v23120_v18 }
 0x75f   : > { %v19005_v15 = vrot.slane %v18997_v7, %v29735_v11  ;;  %v19012_v52 = vrot.slane %v18998_v8, %v29735_v11  ;;  %v19021_v40 = vrot.slane %v19013_v33, %v29735_v11  ;;  %v19028_v41 = vrot.slane %v19014_v16, %v29735_v11 }
 0x760   : > { %v19909_v7 = vcombine.low %v28805_v13, %v28811_v22  ;;  %v23132_v8 = vunpack.i.h.bf16 %v23130_v38  ;;  %v23131_v33 = vunpack.i.l.bf16 %v23130_v38 }
 0x761   : > { %v19061_v6 = vcombine.low %v19005_v15, %v19021_v40  ;;  %v19062_v54 = vcombine.high %v19005_v15, %v19021_v40  ;;  %v19077_v9 = vcombine.low %v19012_v52, %v19028_v41  ;;  %v19078_v20 = vcombine.high %v19012_v52, %v19028_v41 }
 0x762   : > { %v20553_v15 = vsel %vm7907_vm1, %v19909_v7, %v23111_v31  ;;  %v20554_v52 = vsel %vm7907_vm1, %v20045_v27, %v23112_v0 }
 0x763   : > { %v19069_v28 = vrot.slane %v19061_v6, %v29748_v53  ;;  %v19076_v55 = vrot.slane %v19062_v54, %v29748_v53  ;;  %v19085_v30 = vrot.slane %v19077_v9, %v29748_v53  ;;  %v19092_v63 = vrot.slane %v19078_v20, %v29748_v53 }
 0x764   : > { %v20562_v6 = vsel %vm20557_vm3, %v20553_v15, %v23121_v57  ;;  %v20563_v54 = vsel %vm20557_vm3, %v20554_v52, %v23122_v24 }
 0x765   : > { %v21848_v12 = vcombine.low %v19069_v28, %v19076_v55  ;;  %v21850_v17 = vcombine.high %v19069_v28, %v19076_v55  ;;  %v21852_v47 = vcombine.low %v19085_v30, %v19092_v63  ;;  %v21854_v29 = vcombine.high %v19085_v30, %v19092_v63 }
 0x766   : > { %v20571_v22 = vsel %vm20566_vm4, %v20562_v6, %v23131_v33  ;;  %v20572_v20 = vsel %vm20566_vm4, %v20563_v54, %v23132_v8 }
 0x767   : > { %v20068_v39 = vrot.slane %v21848_v12, %v29735_v11  ;;  %v20084_v51 = vrot.slane %v21850_v17, %v29735_v11  ;;  %v20100_v10 = vrot.slane %v21852_v47, %v29735_v11  ;;  %v20116_v44 = vrot.slane %v21854_v29, %v29735_v11 }
 0x769   : > { %v20133_v61 = vcombine.low %v20068_v39, %v20084_v51  ;;  %v20165_v36 = vcombine.low %v20100_v10, %v20116_v44  ;;  %v20134_v42 = vcombine.high %v20068_v39, %v20084_v51  ;;  %v20166_v1 = vcombine.high %v20100_v10, %v20116_v44 }
 0x76b   : > { %v29082_v26 = vrot.slane %v20133_v61, %v29748_v53  ;;  %v29085_v43 = vrot.slane %v20165_v36, %v29748_v53  ;;  %v29092_v48 = vrot.slane %v20134_v42, %v29748_v53  ;;  %v29095_v32 = vrot.slane %v20166_v1, %v29748_v53 }
 0x76d   : > { %v20185_v37 = vcombine.low %v29082_v26, %v29085_v43  ;;  %v20186_v56 = vcombine.high %v29082_v26, %v29085_v43  ;;  %v20187_v23 = vcombine.low %v29092_v48, %v29095_v32  ;;  %v20188_v28 = vcombine.high %v29092_v48, %v29095_v32  ;;  %v29201_v26 = vld [vmem:[%s29429_s4] ss:$0 sm:$0xff]  ;;  %v23504_v32 = vld [vmem:[%s24079_s28 + $0x10] sm:$0xff] }
 0x775   : > { %v23140_v58 = vpop.permute.xlu0 %23139 }
 0x776   : > { %v23142_v16 = vunpack.i.h.bf16 %v23140_v58  ;;  %v23141_v59 = vunpack.i.l.bf16 %v23140_v58 }
 0x778   : > { %v20581_v55 = vsel %vm20575_vm5, %v20572_v20, %v23142_v16  ;;  %v20580_v3 = vsel %vm20575_vm5, %v20571_v22, %v23141_v59 }
 0x779   : > { %v23150_v14 = vpop.permute.xlu0 %23149 }
 0x77a   : > { %v23152_v40 = vunpack.i.h.bf16 %v23150_v14  ;;  %v23151_v41 = vunpack.i.l.bf16 %v23150_v14 }
 0x77c   : > { %v20589_v27 = vsel %vm20584_vm6, %v20580_v3, %v23151_v41  ;;  %v20590_v30 = vsel %vm20584_vm6, %v20581_v55, %v23152_v40  ;;  %v29136_v3 = vrot.slane %v20117_v2, %v29748_v53 }
 0x77d   : > { %v23160_v45 = vpop.permute.xlu0 %23159 }
 0x77e   : > { %v23162_v9 = vunpack.i.h.bf16 %v23160_v45  ;;  %v23161_v13 = vunpack.i.l.bf16 %v23160_v45 }
 0x780   : > { %v20598_v17 = vsel %vm20593_vm7, %v20589_v27, %v23161_v13  ;;  %v20599_v47 = vsel %vm20593_vm7, %v20590_v30, %v23162_v9 }
 0x781   : > { %v23170_v19 = vpop.permute.xlu0 %23169 }
 0x782   : > { %v23172_v63 = vunpack.i.h.bf16 %v23170_v19  ;;  %v23171_v12 = vunpack.i.l.bf16 %v23170_v19  ;;  %v29142_v19 = vrot.slane %v20149_v60, %v29748_v53 }
 0x784   : > { %v20607_v29 = vsel %vm20602_vm8, %v20598_v17, %v23171_v12  ;;  %v20608_v46 = vsel %vm20602_vm8, %v20599_v47, %v23172_v63  ;;  %v20182_v2 = vcombine.high %v29136_v3, %v29142_v19 }
 0x785   : > { %v20613_v39 = vpack.c.bf16 %v20608_v46, %v20607_v29 }
 0x787   : > { %22878 = vmatprep.mubr.bf16.mxu0 %v20613_v39 }
 0x794   : > { %v17634_v51 = vpop.f32.mrb[130].mxu0  ;;  %v17707_v10 = vpop.f32.mrb[134].mxu1 }
 0x795   : > { %v22822_v44 = vpop.f32.mrb[131].mxu0  ;;  %v22827_v61 = vpop.f32.mrb[135].mxu1 }
 0x798   : > { %v17780_v36 = vpop.f32.mrb[132].mxu0 }
 0x799   : > { %v19101_v18 = vcombine.low %v17634_v51, %v17780_v36  ;;  %v19102_v38 = vcombine.high %v17634_v51, %v17780_v36  ;;  %v17853_v58 = vpop.f32.mrb[136].mxu1  ;;  %v22832_v42 = vpop.f32.mrb[133].mxu0 }
 0x79a   : > { %v19117_v1 = vcombine.low %v17707_v10, %v17853_v58  ;;  %v19118_v14 = vcombine.high %v17707_v10, %v17853_v58  ;;  %v22837_v0 = vpop.f32.mrb[137].mxu1 }
 0x79b   : > { %v19109_v31 = vrot.slane %v19101_v18, %v29735_v11  ;;  %v19116_v24 = vrot.slane %v19102_v38, %v29735_v11 }
 0x79c   : > { %v19125_v57 = vrot.slane %v19117_v1, %v29735_v11  ;;  %v19132_v7 = vrot.slane %v19118_v14, %v29735_v11 }
 0x79e   : > { %v19165_v8 = vcombine.low %v19109_v31, %v19125_v57  ;;  %v19166_v33 = vcombine.high %v19109_v31, %v19125_v57  ;;  %v19181_v16 = vcombine.low %v19116_v24, %v19132_v7  ;;  %v19182_v59 = vcombine.high %v19116_v24, %v19132_v7 }
 0x7a0   : > { %v19173_v45 = vrot.slane %v19165_v8, %v29748_v53  ;;  %v19180_v15 = vrot.slane %v19166_v33, %v29748_v53  ;;  %v19189_v52 = vrot.slane %v19181_v16, %v29748_v53  ;;  %v19196_v40 = vrot.slane %v19182_v59, %v29748_v53 }
 0x7a2   : > { %v21855_v41 = vcombine.low %v19173_v45, %v19180_v15  ;;  %v21857_v6 = vcombine.high %v19173_v45, %v19180_v15  ;;  %v21859_v54 = vcombine.low %v19189_v52, %v19196_v40  ;;  %v21861_v9 = vcombine.high %v19189_v52, %v19196_v40 }
 0x7a4   : > { %v20197_v13 = vrot.slane %v21855_v41, %v29735_v11  ;;  %v20213_v22 = vrot.slane %v21857_v6, %v29735_v11  ;;  %v20229_v20 = vrot.slane %v21859_v54, %v29735_v11  ;;  %v20245_v55 = vrot.slane %v21861_v9, %v29735_v11 }
 0x7a6   : > { %v20253_v27 = vcombine.low %v20197_v13, %v20213_v22  ;;  %v20285_v30 = vcombine.low %v20229_v20, %v20245_v55  ;;  %v20254_v63 = vcombine.high %v20197_v13, %v20213_v22  ;;  %v20286_v12 = vcombine.high %v20229_v20, %v20245_v55 }
 0x7a8   : > { %v29145_v17 = vrot.slane %v20253_v27, %v29748_v53  ;;  %v29148_v47 = vrot.slane %v20285_v30, %v29748_v53  ;;  %v20268_v34 = vrot.slane %v20254_v63, %v29748_v53  ;;  %v20300_v50 = vrot.slane %v20286_v12, %v29748_v53 }
 0x7aa   : > { %v20318_v4 = vcombine.high %v29145_v17, %v29148_v47  ;;  %v20319_v62 = vcombine.low %v20268_v34, %v20300_v50  ;;  %v20320_v60 = vcombine.high %v20268_v34, %v20300_v50  ;;  %v20317_v29 = vcombine.low %v29145_v17, %v29148_v47 }
 0x7ac   : > { %v23113_v46 = vpack.i.bf16 %v20318_v4, %v20182_v2  ;;  %v23123_v39 = vpack.i.bf16 %v20319_v62, %v20183_v21  ;;  %v23133_v51 = vpack.i.bf16 %v20320_v60, %v20184_v49 }
 0x7ae   : > { %23114 = vrot.lane.b32.xlu1 %v23113_v46, %s23777_s2 }
 0x7b2   : > { %23124 = vrot.lane.b32.xlu1 %v23123_v39, %s23775_s24 }
 0x7b6   : > { %23134 = vrot.lane.b32.xlu1 %v23133_v51, %s23776_s16  ;;  %v23505_v51 = vld [vmem:[%s24079_s28] sm:$0xff] }
 0x7d7   : > { %v17926_v10 = vpop.f32.mrb[134].mxu0 }
 0x7d8   : > { %v17999_v44 = vpop.f32.mrb[138].mxu1  ;;  %v22842_v61 = vpop.f32.mrb[135].mxu0 }
 0x7d9   : > { %v22847_v36 = vpop.f32.mrb[139].mxu1  ;;  %v23506_v61 = vld [vmem:[%s24079_s28 + $0x18] sm:$0xff] }
 0x7dc   : > { %v18072_v18 = vpop.f32.mrb[136].mxu0 }
 0x7dd   : > { %v19133_v38 = vcombine.low %v17926_v10, %v18072_v18  ;;  %v19134_v58 = vcombine.high %v17926_v10, %v18072_v18  ;;  %v18145_v42 = vpop.f32.mrb[140].mxu1  ;;  %v22852_v1 = vpop.f32.mrb[137].mxu0 }
 0x7de   : > { %v19149_v21 = vcombine.low %v17999_v44, %v18145_v42  ;;  %v19150_v14 = vcombine.high %v17999_v44, %v18145_v42  ;;  %v22857_v0 = vpop.f32.mrb[141].mxu1 }
 0x7df   : > { %v19141_v35 = vrot.slane %v19133_v38, %v29735_v11  ;;  %v19148_v5 = vrot.slane %v19134_v58, %v29735_v11  ;;  %v23507_v38 = vld [vmem:[%s24079_s28 + $0x8] sm:$0xff] }
 0x7e0   : > { %v19157_v49 = vrot.slane %v19149_v21, %v29735_v11  ;;  %v19164_v31 = vrot.slane %v19150_v14, %v29735_v11 }
 0x7e2   : > { %v19197_v24 = vcombine.low %v19141_v35, %v19157_v49  ;;  %v19198_v57 = vcombine.high %v19141_v35, %v19157_v49  ;;  %v19213_v7 = vcombine.low %v19148_v5, %v19164_v31  ;;  %v19214_v8 = vcombine.high %v19148_v5, %v19164_v31 }
 0x7e4   : > { %v19205_v33 = vrot.slane %v19197_v24, %v29748_v53  ;;  %v19212_v16 = vrot.slane %v19198_v57, %v29748_v53  ;;  %v19221_v59 = vrot.slane %v19213_v7, %v29748_v53  ;;  %v19228_v45 = vrot.slane %v19214_v8, %v29748_v53 }
 0x7e5   : > { %v20181_v24 = vcombine.low %v29136_v3, %v29142_v19 }
 0x7e6   : > { %v21856_v15 = vcombine.low %v19205_v33, %v19212_v16  ;;  %v21858_v52 = vcombine.high %v19205_v33, %v19212_v16  ;;  %v21860_v40 = vcombine.low %v19221_v59, %v19228_v45  ;;  %v21862_v41 = vcombine.high %v19221_v59, %v19228_v45 }
 0x7e8   : > { %v20204_v6 = vrot.slane %v21856_v15, %v29735_v11  ;;  %v20220_v54 = vrot.slane %v21858_v52, %v29735_v11  ;;  %v20236_v9 = vrot.slane %v21860_v40, %v29735_v11  ;;  %v20252_v13 = vrot.slane %v21862_v41, %v29735_v11 }
 0x7ea   : > { %v20269_v22 = vcombine.low %v20204_v6, %v20220_v54  ;;  %v20301_v20 = vcombine.low %v20236_v9, %v20252_v13  ;;  %v20270_v55 = vcombine.high %v20204_v6, %v20220_v54  ;;  %v20302_v27 = vcombine.high %v20236_v9, %v20252_v13 }
 0x7ec   : > { %v20277_v30 = vrot.slane %v20269_v22, %v29748_v53  ;;  %v20309_v63 = vrot.slane %v20301_v20, %v29748_v53  ;;  %v20284_v12 = vrot.slane %v20270_v55, %v29748_v53  ;;  %v20316_v34 = vrot.slane %v20302_v27, %v29748_v53 }
 0x7ee   : > { %v20321_v50 = vcombine.low %v20277_v30, %v20309_v63  ;;  %v20322_v2 = vcombine.high %v20277_v30, %v20309_v63  ;;  %v20323_v4 = vcombine.low %v20284_v12, %v20316_v34  ;;  %v20324_v62 = vcombine.high %v20284_v12, %v20316_v34 }
 0x7f0   : > { %v23143_v11 = vpack.i.bf16 %v20321_v50, %v20185_v37  ;;  %v23153_v60 = vpack.i.bf16 %v20322_v2, %v20186_v56  ;;  %v23163_v46 = vpack.i.bf16 %v20323_v4, %v20187_v23  ;;  %v23173_v53 = vpack.i.bf16 %v20324_v62, %v20188_v28 }
 0x7f2   : > { %23144 = vrot.lane.b32.xlu1 %v23143_v11, %s23773_s14 }
 0x7f6   : > { %23154 = vrot.lane.b32.xlu1 %v23153_v60, %s23774_s22  ;;  %s514_s22 = sand.u32 1, %s23750_s26  }
 0x7f7   : > { %s21388_s24 = sshll.u32 %s514_s22, 3  ;;  %s21240_s23 = scalar_lea.sflag [#allocation4], %s514_s22 }
 0x7f8   : > { %s516_s6 = scalar_lea.vmem [#allocation13], %s21388_s24 }
 0x7f9   : > { %s21253_s19 = sshll.u32 %s516_s6, 4  ;;  %s29385_s19 = int_to_ptr.vmem [resolvable:$true] %s21253_s19 }
 0x7fa   : > { %23164 = vrot.lane.b32.xlu1 %v23163_v46, %s23771_s15  ;;  %s23680_s29 = scalar_lea.vmem %s29385_s19, 128 }
 0x7fb   : > { %p23681_p4 = scmp.ne.s32.totalorder %s29385_s19, %s23680_s29 }
 0x7fc   : > { %v22876_v43 = vpop.f32.mrb[140].mxu0 }
 0x7fd   : > { %v20729_v37 = vadd.f32 %v22876_v43, %v29201_v26  ;;  %v20720_v56 = vpop.f32.mrb[141].mxu0  ;;  %p23682_p8 = pnand %p23681_p4, %p29911_p7 }
 0x7fe   : > { %23174 = vrot.lane.b32.xlu1 %v23173_v53, %s23772_s27  ;;  %v22877_v48 = vpop.f32.mrb[142].mxu0  ;;  %v20721_v28 = vadd.f32 %v29201_v26, %v20720_v56 }
 0x7ff   : > { %v29206_v23 = vadd.f32 %v23504_v32, %v20729_v37  ;;  %v20723_v39 = vpop.f32.mrb[143].mxu0  ;;  %v20732_v44 = vadd.f32 %v22877_v48, %v29201_v26  ;;  %v23508_v37 = vld [vmem:[%s24079_s28 + $0x20] sm:$0xff]  ;;  %p23683_p11 = pneg %p23682_p8 }
 0x800   : > { %v29211_v10 = vadd.f32 %v23505_v51, %v20721_v28  ;;  %v20724_v18 = vadd.f32 %v29201_v26, %v20723_v39  ;;  %v23509_v39 = vld [vmem:[%s24079_s28 + $0x28] sm:$0xff] }
 0x801   : > { %20763 = vadd.xlane.f32.xlu0 %v29206_v23  ;;  %v29216_v36 = vadd.f32 %v23506_v61, %v20732_v44 }
 0x802   : > { %v29221_v58 = vadd.f32 %v23507_v38, %v20724_v18  ;;  %v23510_v38 = vld [vmem:[%s24079_s28 + $0x30] sm:$0xff] }
 0x805   : > { %20759 = vadd.xlane.f32.xlu0 %v29211_v10 }
 0x809   : > { %20765 = vadd.xlane.f32.xlu0 %v29216_v36 }
 0x820   : > { %v23115_v42 = vpop.permute.xlu1 %23114 }
 0x821   : > { %v23117_v35 = vunpack.i.h.bf16 %v23115_v42  ;;  %v23116_v5 = vunpack.i.l.bf16 %v23115_v42 }
 0x822   : > { %20761 = vadd.xlane.f32.xlu1 %v29221_v58 }
 0x823   : > { %v20556_v59 = vsel %vm7907_vm1, %v20317_v29, %v23117_v35  ;;  %v20555_v45 = vsel %vm7907_vm1, %v20181_v24, %v23116_v5 }
 0x824   : > { %v23125_v1 = vpop.permute.xlu1 %23124 }
 0x825   : > { %v23127_v49 = vunpack.i.h.bf16 %v23125_v1  ;;  %v23126_v31 = vunpack.i.l.bf16 %v23125_v1 }
 0x827   : > { %v20564_v40 = vsel %vm20557_vm3, %v20555_v45, %v23126_v31  ;;  %v20565_v41 = vsel %vm20557_vm3, %v20556_v59, %v23127_v49 }
 0x828   : > { %v23135_v21 = vpop.permute.xlu1 %23134 }
 0x829   : > { %v23137_v57 = vunpack.i.h.bf16 %v23135_v21  ;;  %v23136_v7 = vunpack.i.l.bf16 %v23135_v21 }
 0x82b   : > { %v20573_v19 = vsel %vm20566_vm4, %v20564_v40, %v23136_v7  ;;  %v20574_v54 = vsel %vm20566_vm4, %v20565_v41, %v23137_v57 }
 0x864   : > { %v23145_v14 = vpop.permute.xlu1 %23144 }
 0x865   : > { %v23147_v8 = vunpack.i.h.bf16 %v23145_v14  ;;  %v23146_v33 = vunpack.i.l.bf16 %v23145_v14  ;;  %v23511_v14 = vld [vmem:[%s24079_s28 + $0x38] sm:$0xff]  ;;  %s23684_s28 = sshll.u32 %s23782_s13, 4  ;;  %s23685_s28 = int_to_ptr.vmem [resolvable:$false] %s23684_s28 }
 0x866   : > { %s23686_s15 = scalar_lea.vmem %s23685_s28, 256  ;;  %p23687_p13 = scmp.lt.s32.totalorder %s29385_s19, %s23685_s28 }
 0x867   : > { %v20582_v9 = vsel %vm20575_vm5, %v20573_v19, %v23146_v33  ;;  %v20583_v17 = vsel %vm20575_vm5, %v20574_v54, %v23147_v8  ;;  %v23219_v19 = vld [vmem:[%s29432_s7 + $0x8] sm:$0xff]   ;;  %v23220_v54 = vld [vmem:[%s29432_s7 + $0x10] sm:$0xff]   ;;  %p23688_p0 = scmp.lt.s32.totalorder %s23686_s15, %s23680_s29 }
 0x868   : > { %v23155_v0 = vpop.permute.xlu1 %23154 }
 0x869   : > { %v23157_v15 = vunpack.i.h.bf16 %v23155_v0  ;;  %v23156_v52 = vunpack.i.l.bf16 %v23155_v0  ;;  %p23689_p1 = por %p23688_p0, %p23687_p13 }
 0x86b   : > { %v20591_v29 = vsel %vm20584_vm6, %v20582_v9, %v23156_v52  ;;  %v20592_v13 = vsel %vm20584_vm6, %v20583_v17, %v23157_v15  ;;  %v23221_v9 = vld [vmem:[%s29432_s7 + $0x18] sm:$0xff]   ;;  %v23222_v17 = vld [vmem:[%s29432_s7 + $0x20] sm:$0xff]   ;;  %p23690_p6 = pnand %p23689_p1, %p23683_p11 }
 0x86c   : > { %v23165_v16 = vpop.permute.xlu1 %23164 }
 0x86d   : > { %v23167_v6 = vunpack.i.h.bf16 %v23165_v16  ;;  %v23166_v3 = vunpack.i.l.bf16 %v23165_v16 }
 0x86f   : > { %v20600_v55 = vsel %vm20593_vm7, %v20591_v29, %v23166_v3  ;;  %v20601_v27 = vsel %vm20593_vm7, %v20592_v13, %v23167_v6  ;;  %v23218_v3 = vld [vmem:[%s29432_s7] sm:$0xff]   ;;  %v23227_v13 = vld [vmem:[%s29434_s9 + $0x8] sm:$0xff]  }
 0x870   : > { %v23175_v47 = vpop.permute.xlu1 %23174  ;;  %22883 = vmatpush3.bf16.msra.mxu1 %v23218_v3  ;;  %v23226_v29 = vld [vmem:[%s29434_s9] sm:$0xff]  }
 0x871   : > { %v23177_v22 = vunpack.i.h.bf16 %v23175_v47  ;;  %v23176_v20 = vunpack.i.l.bf16 %v23175_v47  ;;  %22884 = vmatprep.subr.bf16.mxu1 %v29892_v25  ;;  %v23223_v47 = vld [vmem:[%s29432_s7 + $0x28] sm:$0xff]   ;;  %22903 = vmatpush3.bf16.msra.mxu0 %v23226_v29 }
 0x872   : > { %22904 = vmatprep.subr.bf16.mxu0 %v29892_v25 }
 0x873   : > { %v20609_v30 = vsel %vm20602_vm8, %v20600_v55, %v23176_v20  ;;  %v20610_v63 = vsel %vm20602_vm8, %v20601_v27, %v23177_v22  ;;  %v23224_v22 = vld [vmem:[%s29432_s7 + $0x30] sm:$0xff]   ;;  %v23225_v20 = vld [vmem:[%s29432_s7 + $0x38] sm:$0xff]  }
 0x874   : > { %v20614_v12 = vpack.c.bf16 %v20610_v63, %v20609_v30  ;;  %22885 = vmatpush3.bf16.msra.mxu1 %v23219_v19 }
 0x875   : > { %22886 = vmatprep.subr.bf16.mxu1 %v29892_v25  ;;  %22905 = vmatpush3.bf16.msra.mxu0 %v23227_v13 }
 0x876   : > { %22879 = vmatmul.mubr.bf16.gmra.mrb[144].mxu0 %v20614_v12  ;;  %22906 = vmatprep.subr.bf16.mxu0 %v29892_v25 }
 0x877   : > { %22910 = vmatprep.mubr.msk.bf16.mxu0 %vm23779_vm0, %v29892_v25 }
 0x878   : > { %22887 = vmatpush3.bf16.msra.mxu1 %v23220_v54 }
 0x879   : > { %22888 = vmatprep.subr.bf16.mxu1 %v29892_v25 }
 0x87c   : > { %22889 = vmatpush3.bf16.msra.mxu1 %v23221_v9 }
 0x87d   : > { %22890 = vmatprep.subr.bf16.mxu1 %v29892_v25 }
 0x880   : > { %22891 = vmatpush3.bf16.msra.mxu1 %v23222_v17 }
 0x881   : > { %22892 = vmatprep.subr.bf16.mxu1 %v29892_v25 }
 0x884   : > { %22893 = vmatpush3.bf16.msra.mxu1 %v23223_v47 }
 0x885   : > { %22894 = vmatprep.subr.bf16.mxu1 %v29892_v25 }
 0x888   : > { %22895 = vmatpush3.bf16.msra.mxu1 %v23224_v22 }
 0x889   : > { %22896 = vmatprep.subr.bf16.mxu1 %v29892_v25 }
 0x88c   : > { %22897 = vmatpush3.bf16.msra.mxu1 %v23225_v20 }
 0x88d   : > { %22914 = vmatprep.subr.bf16.mxu1 %v29892_v25 }
 0x88e   : > { %v20764_v34 = vpop.xlane.xlu0 %20763 }
 0x88f   : > { %v20778_v53 = vmul.f32 0.0078125, %v20764_v34 }
 0x891   : > { %v29252_v61 = vsub.f32 %v29206_v23, %v20778_v53 }
 0x892   : > { %v20760_v50 = vpop.xlane.xlu0 %20759 }
 0x893   : > { %v20776_v18 = vmul.f32 0.0078125, %v20760_v50  ;;  %v20794_v35 = vmul.f32 %v29252_v61, %v29252_v61 }
 0x896   : > { %v20766_v60 = vpop.xlane.xlu0 %20765 }
 0x897   : > { %v20779_v32 = vmul.f32 0.0078125, %v20766_v60 }
 0x899   : > { %v29256_v1 = vsub.f32 %v29216_v36, %v20779_v32 }
 0x89b   : > { %v20795_v5 = vmul.f32 %v29256_v1, %v29256_v1 }
 0x8af   : > { %v20762_v44 = vpop.xlane.xlu1 %20761 }
 0x8b0   : > { %v20777_v21 = vmul.f32 0.0078125, %v20762_v44  ;;  %v29339_v44 = vld [vmem:[#allocation8] ss:$0 sm:$0xff] }
 0x8b2   : > { %v29265_v23 = vsub.f32 %v29221_v58, %v20777_v21 }
 0x949   : > { %v22880_v2 = vpop.f32.mrb[144].mxu0 }
 0x94a   : > { %v20736_v4 = vpop.f32.mrb[145].mxu0  ;;  %v20745_v43 = vadd.f32 %v22880_v2, %v29201_v26 }
 0x94b   : > { %v20737_v62 = vadd.f32 %v29201_v26, %v20736_v4  ;;  %v22881_v11 = vpop.f32.mrb[146].mxu0 }
 0x94c   : > { %v20739_v46 = vpop.f32.mrb[147].mxu0  ;;  %v20748_v28 = vadd.f32 %v22881_v11, %v29201_v26  ;;  %v20757_v42 = vadd.f32 %v23510_v38, %v20745_v43 }
 0x94d   : > { %v20755_v56 = vadd.f32 %v23508_v37, %v20737_v62  ;;  %v20740_v48 = vadd.f32 %v29201_v26, %v20739_v46  ;;  %v29260_v26 = vsub.f32 %v29211_v10, %v20776_v18  ;;  %v20793_v10 = vmul.f32 %v29265_v23, %v29265_v23 }
 0x94e   : > { %v20758_v0 = vadd.f32 %v23511_v14, %v20748_v28 }
 0x94f   : > { %v20756_v51 = vadd.f32 %v23509_v39, %v20740_v48  ;;  %20767 = vadd.xlane.f32.xlu1 %v20755_v56  ;;  %v20792_v36 = vmul.f32 %v29260_v26, %v29260_v26  ;;  %v29334_v48 = vld [vmem:[%s29430_s5] ss:$0 sm:$0xff] }
 0x951   : > { %20769 = vadd.xlane.f32.xlu0 %v20756_v51 }
 0x953   : > { %20771 = vadd.xlane.f32.xlu1 %v20757_v42 }
 0x955   : > { %20773 = vadd.xlane.f32.xlu0 %v20758_v0 }
 0x957   : > { %20804 = vadd.xlane.f32.xlu1 %v20794_v35 }
 0x959   : > { %20806 = vadd.xlane.f32.xlu0 %v20795_v5 }
 0x95b   : > { %20800 = vadd.xlane.f32.xlu1 %v20792_v36 }
 0x95d   : > { %20802 = vadd.xlane.f32.xlu0 %v20793_v10 }
 0x9dc   : > { %v20768_v49 = vpop.xlane.xlu1 %20767 }
 0x9dd   : > { %v20780_v31 = vmul.f32 0.0078125, %v20768_v49 }
 0x9de   : > { %v20770_v24 = vpop.xlane.xlu0 %20769 }
 0x9df   : > { %v29273_v57 = vsub.f32 %v20755_v56, %v20780_v31  ;;  %v20781_v58 = vmul.f32 0.0078125, %v20770_v24 }
 0x9e0   : > { %v20772_v7 = vpop.xlane.xlu1 %20771 }
 0x9e1   : > { %v29275_v8 = vsub.f32 %v20756_v51, %v20781_v58  ;;  %v20782_v33 = vmul.f32 0.0078125, %v20772_v7  ;;  %v20796_v16 = vmul.f32 %v29273_v57, %v29273_v57 }
 0x9e2   : > { %v20774_v59 = vpop.xlane.xlu0 %20773 }
 0x9e3   : > { %v29279_v45 = vsub.f32 %v20757_v42, %v20782_v33  ;;  %v20783_v15 = vmul.f32 0.0078125, %v20774_v59  ;;  %20808 = vadd.xlane.f32.xlu1 %v20796_v16  ;;  %v20797_v52 = vmul.f32 %v29275_v8, %v29275_v8 }
 0x9e4   : > { %v20805_v27 = vpop.xlane.xlu1 %20804 }
 0x9e5   : > { %v29283_v40 = vsub.f32 %v20758_v0, %v20783_v15  ;;  %20810 = vadd.xlane.f32.xlu0 %v20797_v52  ;;  %v20798_v41 = vmul.f32 %v29279_v45, %v29279_v45  ;;  %v20818_v2 = vmul.f32 0.0078125, %v20805_v27 }
 0x9e6   : > { %v20807_v55 = vpop.xlane.xlu0 %20806 }
 0x9e7   : > { %20812 = vadd.xlane.f32.xlu1 %v20798_v41  ;;  %v20799_v6 = vmul.f32 %v29283_v40, %v29283_v40  ;;  %v20826_v62 = vadd.f32 1e-05, %v20818_v2  ;;  %v20819_v11 = vmul.f32 0.0078125, %v20807_v55 }
 0x9e8   : > { %v20801_v63 = vpop.xlane.xlu1 %20800 }
 0x9e9   : > { %20814 = vadd.xlane.f32.xlu0 %v20799_v6  ;;  %v20816_v34 = vmul.f32 0.0078125, %v20801_v63  ;;  %v20827_v60 = vadd.f32 1e-05, %v20819_v11 }
 0x9ea   : > { %v20803_v30 = vpop.xlane.xlu0 %20802 }
 0x9eb   : > { %v20817_v12 = vmul.f32 0.0078125, %v20803_v30  ;;  %v20824_v4 = vadd.f32 1e-05, %v20816_v34 }
 0x9ed   : > { %v20825_v50 = vadd.f32 1e-05, %v20817_v12 }
 0x9ef   : > { %23488 = vrsqrt.f32 %v20825_v50 }
 0x9f0   : > { %23490 = vrsqrt.f32 %v20824_v4 }
 0x9f1   : > { %23492 = vrsqrt.f32 %v20826_v62 }
 0x9f2   : > { %23494 = vrsqrt.f32 %v20827_v60 }
 0x9f9   : > { %v23489_v46 = vpop.eup %23488 }
 0x9fa   : > { %v23491_v53 = vpop.eup %23490  ;;  %v20841_v43 = vmul.f32 %v23489_v46, %v29265_v23 }
 0x9fb   : > { %v23493_v37 = vpop.eup %23492  ;;  %v20840_v56 = vmul.f32 %v23491_v53, %v29260_v26 }
 0x9fc   : > { %v20856_v32 = vmul.f32 %v29334_v48, %v20841_v43  ;;  %v20842_v28 = vmul.f32 %v23493_v37, %v29252_v61  ;;  %v23495_v39 = vpop.eup %23494 }
 0x9fd   : > { %v20855_v51 = vmul.f32 %v29334_v48, %v20840_v56  ;;  %v20843_v42 = vmul.f32 %v23495_v39, %v29256_v1 }
 0x9fe   : > { %v20871_v18 = vadd.f32 %v29339_v44, %v20856_v32  ;;  %v20857_v38 = vmul.f32 %v29334_v48, %v20842_v28 }
 0x9ff   : > { %v20870_v21 = vadd.f32 %v29339_v44, %v20855_v51  ;;  %v20858_v26 = vmul.f32 %v29334_v48, %v20843_v42 }
 0xa00   : > { %v20884_v14 = vrot.slane %v20871_v18, 4  ;;  %v20872_v0 = vadd.f32 %v29339_v44, %v20857_v38 }
 0xa01   : > { %v20878_v35 = vrot.slane %v20870_v21, 4  ;;  %v20873_v5 = vadd.f32 %v29339_v44, %v20858_v26 }
 0xa02   : > { %v20885_v61 = vadd.f32 %v20884_v14, %v20871_v18  ;;  %v20890_v23 = vrot.slane %v20872_v0, 4 }
 0xa03   : > { %v20879_v10 = vadd.f32 %v20878_v35, %v20870_v21  ;;  %v20896_v33 = vrot.slane %v20873_v5, 4 }
 0xa04   : > { %v20886_v24 = vrot.slane %v20885_v61, 2  ;;  %v20891_v1 = vadd.f32 %v20890_v23, %v20872_v0 }
 0xa05   : > { %v20880_v59 = vrot.slane %v20879_v10, 2  ;;  %v20897_v9 = vadd.f32 %v20896_v33, %v20873_v5 }
 0xa06   : > { %v20887_v6 = vadd.f32 %v20886_v24, %v20885_v61  ;;  %v20892_v54 = vrot.slane %v20891_v1, 2 }
 0xa07   : > { %v20881_v17 = vadd.f32 %v20880_v59, %v20879_v10  ;;  %v20898_v22 = vrot.slane %v20897_v9, 2 }
 0xa08   : > { %v20888_v29 = vrot.slane %v20887_v6, 1  ;;  %v20893_v13 = vadd.f32 %v20892_v54, %v20891_v1 }
 0xa09   : > { %v20882_v20 = vrot.slane %v20881_v17, 1  ;;  %v20899_v34 = vadd.f32 %v20898_v22, %v20897_v9 }
 0xa0a   : > { %v20889_v27 = vadd.f32 %v20888_v29, %v20887_v6  ;;  %v20894_v12 = vrot.slane %v20893_v13, 1 }
 0xa0b   : > { %v20883_v50 = vadd.f32 %v20882_v20, %v20881_v17  ;;  %v20900_v56 = vrot.slane %v20899_v34, 1 }
 0xa0c   : > { %v20928_v11 = vmul.f32 0.125, %v20889_v27  ;;  %v20895_v37 = vadd.f32 %v20894_v12, %v20893_v13 }
 0xa0e   : > { %v20929_v14 = vmul.f32 0.125, %v20895_v37 }
 0xa70   : > { %v20809_v36 = vpop.xlane.xlu1 %20808 }
 0xa71   : > { %v20820_v49 = vmul.f32 0.0078125, %v20809_v36 }
 0xa72   : > { %v20811_v31 = vpop.xlane.xlu0 %20810 }
 0xa73   : > { %v20828_v58 = vadd.f32 1e-05, %v20820_v49  ;;  %v20821_v7 = vmul.f32 0.0078125, %v20811_v31  ;;  %v20937_v31 = vpack.c.bf16 %v20929_v14, %v20929_v14  ;;  %v23231_v14 = vld [vmem:[#allocation11 + $0x8] sm:$0xff]  }
 0xa74   : > { %v20813_v16 = vpop.xlane.xlu1 %20812 }
 0xa75   : > { %23496 = vrsqrt.f32 %v20828_v58  ;;  %v20829_v15 = vadd.f32 1e-05, %v20821_v7  ;;  %v20822_v52 = vmul.f32 0.0078125, %v20813_v16  ;;  %v20976_v6 = vunpack.c.l.b16 %v20937_v31 }
 0xa76   : > { %v20815_v41 = vpop.xlane.xlu0 %20814 }
 0xa77   : > { %23498 = vrsqrt.f32 %v20829_v15  ;;  %v20830_v3 = vadd.f32 1e-05, %v20822_v52  ;;  %v20823_v19 = vmul.f32 0.0078125, %v20815_v41 }
 0xa79   : > { %23500 = vrsqrt.f32 %v20830_v3  ;;  %v20831_v47 = vadd.f32 1e-05, %v20823_v19 }
 0xa7b   : > { %23502 = vrsqrt.f32 %v20831_v47 }
 0xa7f   : > { %v23497_v55 = vpop.eup %23496 }
 0xa80   : > { %v20844_v30 = vmul.f32 %v23497_v55, %v29273_v57  ;;  %v20927_v57 = vmul.f32 0.125, %v20883_v50 }
 0xa81   : > { %v23499_v63 = vpop.eup %23498 }
 0xa82   : > { %v20859_v2 = vmul.f32 %v29334_v48, %v20844_v30  ;;  %v20845_v4 = vmul.f32 %v23499_v63, %v29275_v8  ;;  %v20936_v8 = vpack.c.bf16 %v20928_v11, %v20928_v11  ;;  %v20935_v0 = vpack.c.bf16 %v20927_v57, %v20927_v57  ;;  %v23229_v57 = vld [vmem:[%s29434_s9 + $0x18] sm:$0xff]  }
 0xa83   : > { %v23501_v62 = vpop.eup %23500 }
 0xa84   : > { %v20874_v60 = vadd.f32 %v29339_v44, %v20859_v2  ;;  %v20860_v46 = vmul.f32 %v29334_v48, %v20845_v4  ;;  %v20846_v53 = vmul.f32 %v23501_v62, %v29279_v45  ;;  %v20901_v45 = vadd.f32 %v20900_v56, %v20899_v34  ;;  %v23228_v56 = vld [vmem:[%s29434_s9 + $0x10] sm:$0xff]  }
 0xa85   : > { %v23503_v43 = vpop.eup %23502  ;;  %v20975_v5 = vunpack.c.l.b16 %v20936_v8  ;;  %v20974_v24 = vunpack.c.l.b16 %v20935_v0  ;;  %22907 = vmatpush3.bf16.msra.mxu0 %v23228_v56 }
 0xa86   : > { %v20902_v32 = vrot.slane %v20874_v60, 4  ;;  %v20875_v28 = vadd.f32 %v29339_v44, %v20860_v46  ;;  %v20861_v39 = vmul.f32 %v29334_v48, %v20846_v53  ;;  %v20847_v51 = vmul.f32 %v23503_v43, %v29283_v40  ;;  %22908 = vmatprep.subr.bf16.mxu0 %v29892_v25 }
 0xa87   : > { %v20930_v58 = vmul.f32 0.125, %v20901_v45  ;;  %v20983_v16 = vsel %vm20982_vm9, %v20975_v5, %v20974_v24  ;;  %v21883_v45 = vld [vmem:[%s29435_s10] ss:$0 sm:$0xff] }
 0xa88   : > { %v20903_v18 = vadd.f32 %v20902_v32, %v20874_v60  ;;  %v20908_v38 = vrot.slane %v20875_v28, 4  ;;  %v20876_v42 = vadd.f32 %v29339_v44, %v20861_v39  ;;  %v20862_v21 = vmul.f32 %v29334_v48, %v20847_v51  ;;  %v21874_v32 = vld [vmem:[#allocation10] ss:$0 sm:$0xff] }
 0xa89   : > { %v20985_v17 = vsel %vm20984_vm10, %v20976_v6, %v20983_v16  ;;  %22909 = vmatpush3.bf16.msra.mxu0 %v23229_v57 }
 0xa8a   : > { %v20904_v26 = vrot.slane %v20903_v18, 2  ;;  %v20909_v35 = vadd.f32 %v20908_v38, %v20875_v28  ;;  %v20914_v61 = vrot.slane %v20876_v42, 4  ;;  %v20877_v23 = vadd.f32 %v29339_v44, %v20862_v21  ;;  %v23230_v21 = vld [vmem:[#allocation11] sm:$0xff]  }
 0xa8b   : > { %v20938_v44 = vpack.c.bf16 %v20930_v58, %v20930_v58 }
 0xa8c   : > { %v20905_v36 = vadd.f32 %v20904_v26, %v20903_v18  ;;  %v20910_v10 = vrot.slane %v20909_v35, 2  ;;  %v20915_v40 = vadd.f32 %v20914_v61, %v20876_v42  ;;  %v20920_v49 = vrot.slane %v20877_v23, 4 }
 0xa8d   : > { %v20977_v20 = vunpack.c.l.b16 %v20938_v44 }
 0xa8e   : > { %v20916_v7 = vrot.slane %v20915_v40, 2  ;;  %v20906_v1 = vrot.slane %v20905_v36, 1  ;;  %v20911_v48 = vadd.f32 %v20910_v10, %v20909_v35  ;;  %v20921_v33 = vadd.f32 %v20920_v49, %v20877_v23 }
 0xa8f   : > { %v20987_v12 = vsel %vm20986_vm11, %v20977_v20, %v20985_v17 }
 0xa90   : > { %v20907_v59 = vadd.f32 %v20906_v1, %v20905_v36  ;;  %v20912_v15 = vrot.slane %v20911_v48, 1  ;;  %v20917_v52 = vadd.f32 %v20916_v7, %v20915_v40  ;;  %v20922_v41 = vrot.slane %v20921_v33, 2 }
 0xa92   : > { %v20913_v3 = vadd.f32 %v20912_v15, %v20911_v48  ;;  %v20918_v19 = vrot.slane %v20917_v52, 1  ;;  %v20923_v54 = vadd.f32 %v20922_v41, %v20921_v33  ;;  %v20931_v9 = vmul.f32 0.125, %v20907_v59 }
 0xa94   : > { %v20919_v47 = vadd.f32 %v20918_v19, %v20917_v52  ;;  %v20924_v29 = vrot.slane %v20923_v54, 1  ;;  %v20932_v13 = vmul.f32 0.125, %v20913_v3  ;;  %v20939_v22 = vpack.c.bf16 %v20931_v9, %v20931_v9 }
 0xa96   : > { %v20925_v55 = vadd.f32 %v20924_v29, %v20923_v54  ;;  %v20933_v27 = vmul.f32 0.125, %v20919_v47  ;;  %v20940_v30 = vpack.c.bf16 %v20932_v13, %v20932_v13  ;;  %v20978_v63 = vunpack.c.l.b16 %v20939_v22 }
 0xa98   : > { %v20934_v34 = vmul.f32 0.125, %v20925_v55  ;;  %v20941_v50 = vpack.c.bf16 %v20933_v27, %v20933_v27  ;;  %v20979_v2 = vunpack.c.l.b16 %v20940_v30  ;;  %v20989_v4 = vsel %vm20988_vm12, %v20978_v63, %v20987_v12 }
 0xa9a   : > { %v20942_v62 = vpack.c.bf16 %v20934_v34, %v20934_v34  ;;  %v20980_v11 = vunpack.c.l.b16 %v20941_v50  ;;  %v20991_v60 = vsel %vm20990_vm13, %v20979_v2, %v20989_v4 }
 0xa9c   : > { %v20981_v46 = vunpack.c.l.b16 %v20942_v62  ;;  %v20993_v53 = vsel %vm20992_vm14, %v20980_v11, %v20991_v60 }
 0xa9e   : > { %v20995_v43 = vsel %vm20994_vm15, %v20981_v46, %v20993_v53 }
 0xa9f   : > { %v20996_v37 = vpack.c.b16 %v20995_v43, %v20995_v43 }
 0xaa1   : > { %22899 = vmatmul.mubr.bf16.vlgmr.msra.gmra.mrb[144].mxu1 %v20996_v37 }
 0xaa2   : > { %22918 = vmatprep.mubr.msk.bf16.mxu1 %vm23779_vm0, %v29892_v25  ;;  %22915 = vmatpush3.bf16.msra.mxu1 %v23230_v21 }
 0xaa3   : > { %22916 = vmatprep.subr.bf16.mxu1 %v29892_v25  ;;  %v21889_v25 = vld [vmem:[%s29437_s12] ss:$0 sm:$0xff] }
 0xaa6   : > { %22917 = vmatpush3.bf16.msra.mxu1 %v23231_v14 }
 0xb74   : > { %v21080_v28 = vpop.f32.mrb[144].mxu1 }
 0xb75   : > { %v21081_v39 = vadd.f32 %v21874_v32, %v21080_v28  ;;  %v22900_v51 = vpop.f32.mrb[145].mxu1 }
 0xb76   : > { %v21083_v8 = vpop.f32.mrb[146].mxu1 }
 0xb77   : > { %v21086_v18 = vmax.f32 %v21081_v39, 0.0  ;;  %v22901_v38 = vpop.f32.mrb[147].mxu1 }
 0xb79   : > { %v21087_v42 = vpack.c.bf16 %v21086_v18, %v21086_v18 }
 0xb7b   : > { %22911 = vmatmul.mubr.msk.bf16.vlgmr.msra.gmra.mrb[148].mxu0 %vm20575_vm5, %v21087_v42 }
 0xc4e   : > { %v21164_v0 = vpop.f32.mrb[148].mxu0 }
 0xc4f   : > { %v21165_v26 = vadd.f32 %v21883_v45, %v21164_v0  ;;  %v22912_v35 = vpop.f32.mrb[149].mxu0 }
 0xc50   : > { %v21167_v61 = vpop.f32.mrb[150].mxu0 }
 0xc51   : > { %v21170_v23 = vmax.f32 %v21165_v26, 0.0  ;;  %v22913_v5 = vpop.f32.mrb[151].mxu0 }
 0xc53   : > { %v21171_v36 = vpack.c.bf16 %v21170_v23, %v21170_v23 }
 0xc55   : > { %22919 = vmatmul.mubr.msk.bf16.vlgmr.msra.gmra.mrb[148].mxu1 %vm20557_vm3, %v21171_v36 }
 0xd28   : > { %v21232_v10 = vpop.f32.mrb[148].mxu1 }
 0xd29   : > { %v21233_v40 = vadd.f32 %v21889_v25, %v21232_v10  ;;  %v22920_v49 = vpop.f32.mrb[149].mxu1 }
 0xd2a   : > { %v21235_v31 = vpop.f32.mrb[150].mxu1 }
 0xd2b   : > { %21238 = vst [vmem:[%s516_s6] sm:$0xff] %v21233_v40  ;;  %v22921_v24 = vpop.f32.mrb[151].mxu1 }
 0xd2c   : > { %23693 = shalt.err (!%p23690_p6)
}
 0xd2d   : > { %s23694_s27 = scalar_lea.hbm %s29383_s30, 128  ;;  %s23698_s24 = scalar_lea.hbm %s29910_s20, 256 }
 0xd2e   : > { %p23695_p5 = scmp.ne.s32.totalorder %s29383_s30, %s23694_s27  ;;  %p23699_p10 = scmp.lt.u32.totalorder %s29383_s30, %s29910_s20 }
 0xd2f   : > { %p23700_p2 = scmp.lt.u32.totalorder %s23698_s24, %s23694_s27  ;;  %p23702_p4 = scmp.lt.u32.totalorder %s23694_s27, %s29383_s30 }
 0xd30   : > { %p23696_p9 = pnand %p23695_p5, %p29911_p7 }
 0xd31   : > { %p23701_p3 = por %p23700_p2, %p23699_p10 }
 0xd32   : > { %p23697_p12 = pneg %p23696_p9 }
 0xd33   : > { %p23703_p8 = por %p23702_p4, %p23701_p3 }
 0xd35   : > { %p23704_p11 = pnand %p23703_p8, %p23697_p12 }
 0xd37   : > { %23707 = shalt.err (!%p23704_p11)
}
 0xd38   : > { %22946 = dma.vmem_to_hbm [thread:$0]  (%p29911_p7), %s29385_s19, 128, %s29383_s30, %s21240_s23  }
 0xd39 PF: > { %s29912_s21 = sld [smem:[#allocation21_spill]]  ;;  %s29913_s6 = sld [smem:[#allocation19_spill]] }
 0xd3a   : > { %s29914_s17 = sld [smem:[#allocation24_spill]] }
 0xd3f   : > { %p22983_p13 = scmp.ge.s32.totalorder %s29912_s21, 2  ;;  %s21265_s25 = sand.u32 1, %s29913_s6  }
 0xd40   : > { %p29915_p0 = scmp.ne.s32.totalorder %s29914_s17, 0  ;;  %s21266_s29 = scalar_lea.sflag [#allocation4], %s21265_s25 }
 0xd42   : > { %p22968_p1 = pnand %p22983_p13, %p29915_p0 }
 0xd44   : > { %23741 = dma.done.wait (!%p22968_p1), %s21266_s29, 128  }
 0xd45   : > { %23743 = vsyncadd (!%p22968_p1), %s21266_s29, 4294967168  ;;  %s29916_s28 = sld [smem:[#allocation22_spill]]  ;;  %s29917_s13 = sld [smem:[#allocation20_spill]] }
 0xd46   : > { %s29918_s27 = sld [smem:[#allocation23_spill]]  ;;  %s29919_s25 = smov %s23750_s26 }
 0xd4b   : > { %p27_p6 = scmp.ge.s32.totalorder %s29916_s28, 4   ;;  %s29920_s26 = smov %s29917_s13 }
 0xd4d   :  { %29 = sbr.rel (!%p27_p6) target bundleno = 11 (0xb), region = 132 }
 0xd54   :  { %21271 = vsyncpa [#allocation3], 1 }
 0xd55   :  { %21273 = vsyncpa [#allocation3 + $0x1], 1 }
 0xd56   :  { %21274 = vsyncpa [#allocation6], 1 }
 0xd57   :  { %21275 = vsyncpa [#allocation9], 1 }
 0xd58   :  { %21276 = vsyncpa [#allocation12], 1 }
 0xd59   :  { %21277 = vsyncpa [#allocation4], 1 }
 0xd5a   :  { %21279 = vsyncpa [#allocation4 + $0x1], 1 }

</bundles_post_ra>
